<compile_context>
chip_gen: v7x
topology: tpu7x:2x2x1
jax: 0.10.0
libtpu: 0.0.40
codegen_flags: <defaults>
</compile_context>

<pallas_src>
import functools

import jax
import jax.numpy as jnp
from jax.experimental import pallas as pl
from jax.experimental.pallas import tpu as pltpu

C_PAD = 128          # lane width: padded channel / class dimension
W_OFF = 8            # interior column offset inside padded f32 buffers (8-aligned)
NUM_CLASSES = 10
CIN = 3              # RGB input channels
C_STEM = 8           # stem / block-1 channels
C2 = 16              # block-2 channels

_TAPS9 = [(t // 3, t % 3) for t in range(9)]


def _round_up(x, m):
    return (x + m - 1) // m * m


# ----------------------------------------------------------------------------
# the fused kernel: one batch element per grid step
# ----------------------------------------------------------------------------
def _resnet_kernel(x_ref, w_ref, b_ref, out_ref, p0, p1, p2, q, *, h, w):
    f32, bf16 = jnp.float32, jnp.bfloat16
    oh, ow = h // 2, w // 2
    m1, m2 = h * w, oh * ow

    # ---- scratch (re)initialisation ----------------------------------------
    # p0 holds the lane-padded input: the whole read region (all 128 lanes)
    # must be zero before the 3 real channels are scattered in.
    p0[...] = jnp.zeros_like(p0)
    p0[1:1 + h, W_OFF:W_OFF + w, 0:CIN] = x_ref[0]

    def zero_borders(ref, hh, ww):
        # zero only what the 3x3 taps read outside the interior (cheap, and
        # megacore-safe because it runs every grid step on this core's scratch)
        wp = ref.shape[1]
        ref[0:1, :, :] = jnp.zeros((1, wp, C_PAD), f32)
        ref[hh + 1:hh + 2, :, :] = jnp.zeros((1, wp, C_PAD), f32)
        ref[1:hh + 1, 0:W_OFF, :] = jnp.zeros((hh, W_OFF, C_PAD), f32)
        ref[1:hh + 1, W_OFF + ww:, :] = jnp.zeros((hh, wp - W_OFF - ww, C_PAD), f32)

    zero_borders(p1, h, w)
    zero_borders(p2, h, w)
    zero_borders(q, oh, ow)

    def bias(i):
        return b_ref[i:i + 1, :]                       # (1, 128) f32

    def pack_s1(src, cin, hh, ww, taps):
        """Stacked-tap activation for a stride-1 3x3 conv: lane group
        [cin*i, cin*i+cin) of the result holds the i-th shifted view."""
        m = hh * ww
        acc = None
        for i, (ki, kj) in enumerate(taps):
            v = src[ki:ki + hh, W_OFF - 1 + kj:W_OFF - 1 + kj + ww, :]
            v = v.reshape(m, C_PAD)
            if cin * i:
                v = pltpu.roll(v, cin * i, 1)          # XLU lane shift
            acc = v if acc is None else acc + v
        return acc

    def mxu(act_f32, wi):
        return jnp.dot(act_f32.astype(bf16), w_ref[wi],
                       preferred_element_type=f32)

    def store_interior(dst, y, hh, ww):
        dst[1:1 + hh, W_OFF:W_OFF + ww, :] = y.reshape(hh, ww, C_PAD)

    # ---- stem: conv3x3 + folded-BN + ReLU -----------------------------------
    y = jnp.maximum(mxu(pack_s1(p0, CIN, h, w, _TAPS9), 0) + bias(0), 0.0)
    store_interior(p1, y, h, w)

    # ---- block 1, conv1 ------------------------------------------------------
    y = jnp.maximum(mxu(pack_s1(p1, C_STEM, h, w, _TAPS9), 1) + bias(1), 0.0)
    store_interior(p2, y, h, w)

    # ---- block 1, conv2 + identity residual + ReLU ---------------------------
    identity = p1[1:1 + h, W_OFF:W_OFF + w, :].reshape(m1, C_PAD)
    y = jnp.maximum(mxu(pack_s1(p2, C_STEM, h, w, _TAPS9), 2) + bias(2) + identity,
                    0.0)
    store_interior(p0, y, h, w)            # p0 now holds block-1's output

    # ---- block 2, conv1: 3x3 stride-2 via in-kernel strided reads -----------
    acc = None
    for i, (ki, kj) in enumerate(_TAPS9):
        v = p0[pl.ds(ki, oh, stride=2),
               pl.ds(W_OFF - 1 + kj, ow, stride=2), :].reshape(m2, C_PAD)
        if C_STEM * i:
            v = pltpu.roll(v, C_STEM * i, 1)
        acc = v if acc is None else acc + v
    y1 = jnp.maximum(mxu(acc, 3) + bias(3), 0.0)
    store_interior(q, y1, oh, ow)

    # ---- block 2 projection shortcut: 1x1 stride-2 conv + BN (no ReLU) ------
    vds = p0[pl.ds(1, oh, stride=2), pl.ds(W_OFF, ow, stride=2), :]
    idn = mxu(vds.reshape(m2, C_PAD), 4) + bias(4)

    # ---- block 2, conv2 (cin=16 -> 2 packed dots) + residual + ReLU ---------
    y2 = mxu(pack_s1(q, C2, oh, ow, _TAPS9[:8]), 5)
    v8 = q[2:2 + oh, W_OFF + 1:W_OFF + 1 + ow, :].reshape(m2, C_PAD)
    y2 = y2 + mxu(v8, 6)
    h2 = jnp.maximum(y2 + bias(5) + idn, 0.0)

    # ---- fused global average pool + FC head --------------------------------
    feat = jnp.mean(h2, axis=0, keepdims=True)          # (1, C_PAD)
    logits = mxu(feat, 7) + bias(6)
    out_ref[...] = logits.reshape(1, 1, C_PAD)


# ----------------------------------------------------------------------------
# WrappedResnet.forward(x) == self.model(x)
# ----------------------------------------------------------------------------
def wrapped_resnet_forward(x_nchw, params):
    n, cin, h, w = x_nchw.shape
    assert cin == CIN and h % 2 == 0 and w % 2 == 0
    x = jnp.transpose(x_nchw, (0, 2, 3, 1)).astype(jnp.float32)   # compact NHWC

    oh, ow = h // 2, w // 2
    hp, wp = h + 2, _round_up(W_OFF + w + 1, 8)
    qhp, qwp = oh + 2, _round_up(W_OFF + ow + 1, 8)
    w_all, b_all = params["w"], params["b"]

    out = pl.pallas_call(
        functools.partial(_resnet_kernel, h=h, w=w),
        grid=(n,),
        in_specs=[
            pl.BlockSpec((1, h, w, CIN), lambda b: (b, 0, 0, 0)),   # compact input
            pl.BlockSpec(w_all.shape, lambda b: (0, 0, 0)),         # packed weights
            pl.BlockSpec(b_all.shape, lambda b: (0, 0)),            # folded biases
        ],
        out_specs=pl.BlockSpec((1, 1, C_PAD), lambda b: (b, 0, 0)),
        out_shape=jax.ShapeDtypeStruct((n, 1, C_PAD), jnp.float32),
        scratch_shapes=[pltpu.VMEM((hp, wp, C_PAD), jnp.float32),   # padded input
                        pltpu.VMEM((hp, wp, C_PAD), jnp.float32),   # stem out
                        pltpu.VMEM((hp, wp, C_PAD), jnp.float32),   # b1c1 out
                        pltpu.VMEM((qhp, qwp, C_PAD), jnp.float32)],  # b2c1 out
        compiler_params=pltpu.CompilerParams(
            dimension_semantics=("parallel",)),        # v7x megacore over batch
    )(x, w_all, b_all)

    # TODO(synk): get_encoding_size / get_encoding / the __init__-time print are
    # init-time shape introspection (latent_dim == C2 here); no kernel-side op.
    return out.reshape(n, C_PAD)[:, :NUM_CLASSES]


# ----------------------------------------------------------------------------
# Deterministic parameter init (synthetic small ResNet; no checkpoint loading)
# and packing into the tap-stacked, BN-folded, lane-padded kernel form.
# ----------------------------------------------------------------------------
def _fold_bn(key, c, eps=1e-5):
    kg, kb = jax.random.split(key)
    gamma = 1.0 + 0.1 * jax.random.normal(kg, (c,), jnp.float32)
    beta = 0.1 * jax.random.normal(kb, (c,), jnp.float32)
    running_mean = jnp.zeros((c,), jnp.float32)
    running_var = jnp.ones((c,), jnp.float32)
    scale = gamma / jnp.sqrt(running_var + eps)
    bias = beta - running_mean * scale
    return scale, bias


def _pack_taps(w_hwio, scale, taps, cin):
    """Conv weight (+ folded BN scale) -> (128,128) packed weight whose row
    cin*i + c holds tap i's weights for input channel c (matches the kernel's
    pltpu.roll(view_i, cin*i) activation packing)."""
    cout = w_hwio.shape[-1]
    wq = jnp.zeros((C_PAD, C_PAD), jnp.float32)
    for i, (ki, kj) in enumerate(taps):
        wq = wq.at[cin * i:cin * i + cin, :cout].set(w_hwio[ki, kj] * scale[None, :])
    return wq


def _pad_row(v):
    return jnp.zeros((C_PAD,), jnp.float32).at[:v.shape[0]].set(v)


def init_params(key, num_classes=NUM_CLASSES):
    ks = jax.random.split(key, 16)

    def conv_w(k, kh, kw, cin, cout):
        fan_in = kh * kw * cin
        return (jax.random.normal(k, (kh, kw, cin, cout), jnp.float32)
                * (2.0 / fan_in) ** 0.5)

    w_stem = conv_w(ks[0], 3, 3, CIN, C_STEM)
    w_11 = conv_w(ks[2], 3, 3, C_STEM, C_STEM)
    w_12 = conv_w(ks[4], 3, 3, C_STEM, C_STEM)
    w_21 = conv_w(ks[6], 3, 3, C_STEM, C2)
    w_22 = conv_w(ks[8], 3, 3, C2, C2)
    w_ds = conv_w(ks[10], 1, 1, C_STEM, C2)

    s_stem, b_stem = _fold_bn(ks[1], C_STEM)
    s_11, b_11 = _fold_bn(ks[3], C_STEM)
    s_12, b_12 = _fold_bn(ks[5], C_STEM)
    s_21, b_21 = _fold_bn(ks[7], C2)
    s_22, b_22 = _fold_bn(ks[9], C2)
    s_ds, b_ds = _fold_bn(ks[11], C2)

    fc_w = (jax.random.normal(ks[12], (C2, num_classes), jnp.float32)
            / jnp.sqrt(jnp.float32(C2)))
    fc_b = 0.01 * jax.random.normal(ks[13], (num_classes,), jnp.float32)
    fc_wq = jnp.zeros((C_PAD, C_PAD), jnp.float32).at[:C2, :num_classes].set(fc_w)

    w_all = jnp.stack([
        _pack_taps(w_stem, s_stem, _TAPS9, CIN),      # 0: stem
        _pack_taps(w_11, s_11, _TAPS9, C_STEM),       # 1: block1 conv1
        _pack_taps(w_12, s_12, _TAPS9, C_STEM),       # 2: block1 conv2
        _pack_taps(w_21, s_21, _TAPS9, C_STEM),       # 3: block2 conv1 (s2)
        _pack_taps(w_ds, s_ds, [(0, 0)], C_STEM),     # 4: block2 downsample
        _pack_taps(w_22, s_22, _TAPS9[:8], C2),       # 5: block2 conv2, taps 0..7
        _pack_taps(w_22, s_22, _TAPS9[8:], C2),       # 6: block2 conv2, tap 8
        fc_wq,                                        # 7: fc
    ]).astype(jnp.bfloat16)

    b_all = jnp.stack([
        _pad_row(b_stem), _pad_row(b_11), _pad_row(b_12),
        _pad_row(b_21), _pad_row(b_ds), _pad_row(b_22),
        _pad_row(fc_b), jnp.zeros((C_PAD,), jnp.float32),
    ])
    return {"w": w_all, "b": b_all}


if __name__ == "__main__":
    key = jax.random.PRNGKey(0)
    k_x, k_p = jax.random.split(key)
    x = jax.random.normal(k_x, (2, 3, 16, 16), jnp.float32)   # NCHW like PyTorch
    params = init_params(k_p)

    fwd = jax.jit(wrapped_resnet_forward)
    logits = fwd(x, params)
    jax.block_until_ready(logits)
    assert logits.shape == (2, NUM_CLASSES) and logits.dtype == jnp.float32
    print("KERNEL_OK")
</pallas_src>

<mosaic_0001>
module attributes {stable_mosaic.version = 11 : i64} {
  func.func @_resnet_kernel(%arg0: i32, %arg1: memref<1x16x16x3xf32, #tpu.memory_space<vmem>>, %arg2: memref<8x128x128xbf16, #tpu.memory_space<vmem>>, %arg3: memref<8x128xf32, #tpu.memory_space<vmem>>, %arg4: memref<1x1x128xf32, #tpu.memory_space<vmem>>, %arg5: memref<18x32x128xf32, #tpu.memory_space<vmem>>, %arg6: memref<18x32x128xf32, #tpu.memory_space<vmem>>, %arg7: memref<18x32x128xf32, #tpu.memory_space<vmem>>, %arg8: memref<10x24x128xf32, #tpu.memory_space<vmem>>) attributes {dimension_semantics = [#tpu.dimension_semantics<parallel>], iteration_bounds = array<i64: 2>, scalar_prefetch = 0 : i64, scratch_operands = 4 : i64, tpu.core_type = #tpu.core_type<tc>, window_params = [{transform_indices = @transform_0, window_bounds = array<i64: 1, 16, 16, 3>}, {pipeline_mode = #tpu.pipeline_mode<synchronous>, transform_indices = @transform_1, window_bounds = array<i64: 8, 128, 128>}, {pipeline_mode = #tpu.pipeline_mode<synchronous>, transform_indices = @transform_2, window_bounds = array<i64: 8, 128>}, {transform_indices = @transform_3, window_bounds = array<i64: 1, 1, 128>}]} {
    %cst = arith.constant 0.000000e+00 : f32
    %0 = vector.broadcast %cst : f32 to vector<18x32x128xf32>
    %c0 = arith.constant 0 : index
    %c0_0 = arith.constant 0 : index
    %c0_1 = arith.constant 0 : index
    %1 = vector.load %arg5[%c0, %c0_0, %c0_1] : memref<18x32x128xf32, #tpu.memory_space<vmem>>, vector<18x32x128xf32>
    tpu.vector_store %arg5[%c0, %c0_0, %c0_1], %0 {strides = array<i32>} : memref<18x32x128xf32, #tpu.memory_space<vmem>>, vector<18x32x128xf32>,
    %c0_2 = arith.constant 0 : index
    %c0_3 = arith.constant 0 : index
    %c0_4 = arith.constant 0 : index
    %c0_5 = arith.constant 0 : index
    %2 = vector.load %arg1[%c0_2, %c0_3, %c0_4, %c0_5] : memref<1x16x16x3xf32, #tpu.memory_space<vmem>>, vector<1x16x16x3xf32>
    %3 = vector.shape_cast %2 : vector<1x16x16x3xf32> to vector<16x16x3xf32>
    %c1 = arith.constant 1 : index
    %c8 = arith.constant 8 : index
    %c0_6 = arith.constant 0 : index
    %4 = vector.load %arg5[%c1, %c8, %c0_6] : memref<18x32x128xf32, #tpu.memory_space<vmem>>, vector<16x16x3xf32>
    tpu.vector_store %arg5[%c1, %c8, %c0_6], %3 {strides = array<i32>} : memref<18x32x128xf32, #tpu.memory_space<vmem>>, vector<16x16x3xf32>,
    %cst_7 = arith.constant 0.000000e+00 : f32
    %5 = vector.broadcast %cst_7 : f32 to vector<1x32x128xf32>
    %c0_8 = arith.constant 0 : index
    %c0_9 = arith.constant 0 : index
    %c0_10 = arith.constant 0 : index
    %6 = vector.load %arg6[%c0_8, %c0_9, %c0_10] : memref<18x32x128xf32, #tpu.memory_space<vmem>>, vector<1x32x128xf32>
    tpu.vector_store %arg6[%c0_8, %c0_9, %c0_10], %5 {strides = array<i32>} : memref<18x32x128xf32, #tpu.memory_space<vmem>>, vector<1x32x128xf32>,
    %cst_11 = arith.constant 0.000000e+00 : f32
    %7 = vector.broadcast %cst_11 : f32 to vector<1x32x128xf32>
    %c17 = arith.constant 17 : index
    %c0_12 = arith.constant 0 : index
    %c0_13 = arith.constant 0 : index
    %8 = vector.load %arg6[%c17, %c0_12, %c0_13] : memref<18x32x128xf32, #tpu.memory_space<vmem>>, vector<1x32x128xf32>
    tpu.vector_store %arg6[%c17, %c0_12, %c0_13], %7 {strides = array<i32>} : memref<18x32x128xf32, #tpu.memory_space<vmem>>, vector<1x32x128xf32>,
    %cst_14 = arith.constant 0.000000e+00 : f32
    %9 = vector.broadcast %cst_14 : f32 to vector<16x8x128xf32>
    %c1_15 = arith.constant 1 : index
    %c0_16 = arith.constant 0 : index
    %c0_17 = arith.constant 0 : index
    %10 = vector.load %arg6[%c1_15, %c0_16, %c0_17] : memref<18x32x128xf32, #tpu.memory_space<vmem>>, vector<16x8x128xf32>
    tpu.vector_store %arg6[%c1_15, %c0_16, %c0_17], %9 {strides = array<i32>} : memref<18x32x128xf32, #tpu.memory_space<vmem>>, vector<16x8x128xf32>,
    %cst_18 = arith.constant 0.000000e+00 : f32
    %11 = vector.broadcast %cst_18 : f32 to vector<16x8x128xf32>
    %c1_19 = arith.constant 1 : index
    %c24 = arith.constant 24 : index
    %c0_20 = arith.constant 0 : index
    %12 = vector.load %arg6[%c1_19, %c24, %c0_20] : memref<18x32x128xf32, #tpu.memory_space<vmem>>, vector<16x8x128xf32>
    tpu.vector_store %arg6[%c1_19, %c24, %c0_20], %11 {strides = array<i32>} : memref<18x32x128xf32, #tpu.memory_space<vmem>>, vector<16x8x128xf32>,
    %cst_21 = arith.constant 0.000000e+00 : f32
    %13 = vector.broadcast %cst_21 : f32 to vector<1x32x128xf32>
    %c0_22 = arith.constant 0 : index
    %c0_23 = arith.constant 0 : index
    %c0_24 = arith.constant 0 : index
    %14 = vector.load %arg7[%c0_22, %c0_23, %c0_24] : memref<18x32x128xf32, #tpu.memory_space<vmem>>, vector<1x32x128xf32>
    tpu.vector_store %arg7[%c0_22, %c0_23, %c0_24], %13 {strides = array<i32>} : memref<18x32x128xf32, #tpu.memory_space<vmem>>, vector<1x32x128xf32>,
    %cst_25 = arith.constant 0.000000e+00 : f32
    %15 = vector.broadcast %cst_25 : f32 to vector<1x32x128xf32>
    %c17_26 = arith.constant 17 : index
    %c0_27 = arith.constant 0 : index
    %c0_28 = arith.constant 0 : index
    %16 = vector.load %arg7[%c17_26, %c0_27, %c0_28] : memref<18x32x128xf32, #tpu.memory_space<vmem>>, vector<1x32x128xf32>
    tpu.vector_store %arg7[%c17_26, %c0_27, %c0_28], %15 {strides = array<i32>} : memref<18x32x128xf32, #tpu.memory_space<vmem>>, vector<1x32x128xf32>,
    %cst_29 = arith.constant 0.000000e+00 : f32
    %17 = vector.broadcast %cst_29 : f32 to vector<16x8x128xf32>
    %c1_30 = arith.constant 1 : index
    %c0_31 = arith.constant 0 : index
    %c0_32 = arith.constant 0 : index
    %18 = vector.load %arg7[%c1_30, %c0_31, %c0_32] : memref<18x32x128xf32, #tpu.memory_space<vmem>>, vector<16x8x128xf32>
    tpu.vector_store %arg7[%c1_30, %c0_31, %c0_32], %17 {strides = array<i32>} : memref<18x32x128xf32, #tpu.memory_space<vmem>>, vector<16x8x128xf32>,
    %cst_33 = arith.constant 0.000000e+00 : f32
    %19 = vector.broadcast %cst_33 : f32 to vector<16x8x128xf32>
    %c1_34 = arith.constant 1 : index
    %c24_35 = arith.constant 24 : index
    %c0_36 = arith.constant 0 : index
    %20 = vector.load %arg7[%c1_34, %c24_35, %c0_36] : memref<18x32x128xf32, #tpu.memory_space<vmem>>, vector<16x8x128xf32>
    tpu.vector_store %arg7[%c1_34, %c24_35, %c0_36], %19 {strides = array<i32>} : memref<18x32x128xf32, #tpu.memory_space<vmem>>, vector<16x8x128xf32>,
    %cst_37 = arith.constant 0.000000e+00 : f32
    %21 = vector.broadcast %cst_37 : f32 to vector<1x24x128xf32>
    %c0_38 = arith.constant 0 : index
    %c0_39 = arith.constant 0 : index
    %c0_40 = arith.constant 0 : index
    %22 = vector.load %arg8[%c0_38, %c0_39, %c0_40] : memref<10x24x128xf32, #tpu.memory_space<vmem>>, vector<1x24x128xf32>
    tpu.vector_store %arg8[%c0_38, %c0_39, %c0_40], %21 {strides = array<i32>} : memref<10x24x128xf32, #tpu.memory_space<vmem>>, vector<1x24x128xf32>,
    %cst_41 = arith.constant 0.000000e+00 : f32
    %23 = vector.broadcast %cst_41 : f32 to vector<1x24x128xf32>
    %c9 = arith.constant 9 : index
    %c0_42 = arith.constant 0 : index
    %c0_43 = arith.constant 0 : index
    %24 = vector.load %arg8[%c9, %c0_42, %c0_43] : memref<10x24x128xf32, #tpu.memory_space<vmem>>, vector<1x24x128xf32>
    tpu.vector_store %arg8[%c9, %c0_42, %c0_43], %23 {strides = array<i32>} : memref<10x24x128xf32, #tpu.memory_space<vmem>>, vector<1x24x128xf32>,
    %cst_44 = arith.constant 0.000000e+00 : f32
    %25 = vector.broadcast %cst_44 : f32 to vector<8x8x128xf32>
    %c1_45 = arith.constant 1 : index
    %c0_46 = arith.constant 0 : index
    %c0_47 = arith.constant 0 : index
    %26 = vector.load %arg8[%c1_45, %c0_46, %c0_47] : memref<10x24x128xf32, #tpu.memory_space<vmem>>, vector<8x8x128xf32>
    tpu.vector_store %arg8[%c1_45, %c0_46, %c0_47], %25 {strides = array<i32>} : memref<10x24x128xf32, #tpu.memory_space<vmem>>, vector<8x8x128xf32>,
    %cst_48 = arith.constant 0.000000e+00 : f32
    %27 = vector.broadcast %cst_48 : f32 to vector<8x8x128xf32>
    %c1_49 = arith.constant 1 : index
    %c16 = arith.constant 16 : index
    %c0_50 = arith.constant 0 : index
    %28 = vector.load %arg8[%c1_49, %c16, %c0_50] : memref<10x24x128xf32, #tpu.memory_space<vmem>>, vector<8x8x128xf32>
    tpu.vector_store %arg8[%c1_49, %c16, %c0_50], %27 {strides = array<i32>} : memref<10x24x128xf32, #tpu.memory_space<vmem>>, vector<8x8x128xf32>,
    %c0_51 = arith.constant 0 : index
    %c7 = arith.constant 7 : index
    %c0_52 = arith.constant 0 : index
    %29 = vector.load %arg5[%c0_51, %c7, %c0_52] : memref<18x32x128xf32, #tpu.memory_space<vmem>>, vector<16x16x128xf32>
    %30 = vector.shape_cast %29 : vector<16x16x128xf32> to vector<256x128xf32>
    %c0_53 = arith.constant 0 : index
    %c8_54 = arith.constant 8 : index
    %c0_55 = arith.constant 0 : index
    %31 = vector.load %arg5[%c0_53, %c8_54, %c0_55] : memref<18x32x128xf32, #tpu.memory_space<vmem>>, vector<16x16x128xf32>
    %32 = vector.shape_cast %31 : vector<16x16x128xf32> to vector<256x128xf32>
    %c3_i32 = arith.constant 3 : i32
    %33 = tpu.dynamic_rotate %32 by %c3_i32 dim 1 : vector<256x128xf32>, i32 -> vector<256x128xf32>
    %34 = arith.addf %30, %33 : vector<256x128xf32>
    %c0_56 = arith.constant 0 : index
    %c9_57 = arith.constant 9 : index
    %c0_58 = arith.constant 0 : index
    %35 = vector.load %arg5[%c0_56, %c9_57, %c0_58] : memref<18x32x128xf32, #tpu.memory_space<vmem>>, vector<16x16x128xf32>
    %36 = vector.shape_cast %35 : vector<16x16x128xf32> to vector<256x128xf32>
    %c6_i32 = arith.constant 6 : i32
    %37 = tpu.dynamic_rotate %36 by %c6_i32 dim 1 : vector<256x128xf32>, i32 -> vector<256x128xf32>
    %38 = arith.addf %34, %37 : vector<256x128xf32>
    %c1_59 = arith.constant 1 : index
    %c7_60 = arith.constant 7 : index
    %c0_61 = arith.constant 0 : index
    %39 = vector.load %arg5[%c1_59, %c7_60, %c0_61] : memref<18x32x128xf32, #tpu.memory_space<vmem>>, vector<16x16x128xf32>
    %40 = vector.shape_cast %39 : vector<16x16x128xf32> to vector<256x128xf32>
    %c9_i32 = arith.constant 9 : i32
    %41 = tpu.dynamic_rotate %40 by %c9_i32 dim 1 : vector<256x128xf32>, i32 -> vector<256x128xf32>
    %42 = arith.addf %38, %41 : vector<256x128xf32>
    %c1_62 = arith.constant 1 : index
    %c8_63 = arith.constant 8 : index
    %c0_64 = arith.constant 0 : index
    %43 = vector.load %arg5[%c1_62, %c8_63, %c0_64] : memref<18x32x128xf32, #tpu.memory_space<vmem>>, vector<16x16x128xf32>
    %44 = vector.shape_cast %43 : vector<16x16x128xf32> to vector<256x128xf32>
    %c12_i32 = arith.constant 12 : i32
    %45 = tpu.dynamic_rotate %44 by %c12_i32 dim 1 : vector<256x128xf32>, i32 -> vector<256x128xf32>
    %46 = arith.addf %42, %45 : vector<256x128xf32>
    %c1_65 = arith.constant 1 : index
    %c9_66 = arith.constant 9 : index
    %c0_67 = arith.constant 0 : index
    %47 = vector.load %arg5[%c1_65, %c9_66, %c0_67] : memref<18x32x128xf32, #tpu.memory_space<vmem>>, vector<16x16x128xf32>
    %48 = vector.shape_cast %47 : vector<16x16x128xf32> to vector<256x128xf32>
    %c15_i32 = arith.constant 15 : i32
    %49 = tpu.dynamic_rotate %48 by %c15_i32 dim 1 : vector<256x128xf32>, i32 -> vector<256x128xf32>
    %50 = arith.addf %46, %49 : vector<256x128xf32>
    %c2 = arith.constant 2 : index
    %c7_68 = arith.constant 7 : index
    %c0_69 = arith.constant 0 : index
    %51 = vector.load %arg5[%c2, %c7_68, %c0_69] : memref<18x32x128xf32, #tpu.memory_space<vmem>>, vector<16x16x128xf32>
    %52 = vector.shape_cast %51 : vector<16x16x128xf32> to vector<256x128xf32>
    %c18_i32 = arith.constant 18 : i32
    %53 = tpu.dynamic_rotate %52 by %c18_i32 dim 1 : vector<256x128xf32>, i32 -> vector<256x128xf32>
    %54 = arith.addf %50, %53 : vector<256x128xf32>
    %c2_70 = arith.constant 2 : index
    %c8_71 = arith.constant 8 : index
    %c0_72 = arith.constant 0 : index
    %55 = vector.load %arg5[%c2_70, %c8_71, %c0_72] : memref<18x32x128xf32, #tpu.memory_space<vmem>>, vector<16x16x128xf32>
    %56 = vector.shape_cast %55 : vector<16x16x128xf32> to vector<256x128xf32>
    %c21_i32 = arith.constant 21 : i32
    %57 = tpu.dynamic_rotate %56 by %c21_i32 dim 1 : vector<256x128xf32>, i32 -> vector<256x128xf32>
    %58 = arith.addf %54, %57 : vector<256x128xf32>
    %c2_73 = arith.constant 2 : index
    %c9_74 = arith.constant 9 : index
    %c0_75 = arith.constant 0 : index
    %59 = vector.load %arg5[%c2_73, %c9_74, %c0_75] : memref<18x32x128xf32, #tpu.memory_space<vmem>>, vector<16x16x128xf32>
    %60 = vector.shape_cast %59 : vector<16x16x128xf32> to vector<256x128xf32>
    %c24_i32 = arith.constant 24 : i32
    %61 = tpu.dynamic_rotate %60 by %c24_i32 dim 1 : vector<256x128xf32>, i32 -> vector<256x128xf32>
    %62 = arith.addf %58, %61 : vector<256x128xf32>
    %63 = arith.truncf %62 : vector<256x128xf32> to vector<256x128xbf16>
    %c0_76 = arith.constant 0 : index
    %c0_77 = arith.constant 0 : index
    %c0_78 = arith.constant 0 : index
    %64 = vector.load %arg2[%c0_76, %c0_77, %c0_78] : memref<8x128x128xbf16, #tpu.memory_space<vmem>>, vector<1x128x128xbf16>
    %65 = vector.shape_cast %64 : vector<1x128x128xbf16> to vector<128x128xbf16>
    %cst_79 = arith.constant dense<0.000000e+00> : vector<256x128xf32>
    %66 = tpu.matmul %63, %65, %cst_79 {dimension_numbers = #tpu.dot_dimension_numbers<[1], [0], [0], [1], [0, 0, 1, 1], [], []>} : vector<256x128xbf16>, vector<128x128xbf16>, vector<256x128xf32> -> vector<256x128xf32>
    %c0_80 = arith.constant 0 : index
    %c0_81 = arith.constant 0 : index
    %67 = vector.load %arg3[%c0_80, %c0_81] : memref<8x128xf32, #tpu.memory_space<vmem>>, vector<1x128xf32>
    %68 = vector.broadcast %67 : vector<1x128xf32> to vector<256x128xf32>
    %69 = arith.addf %66, %68 : vector<256x128xf32>
    %cst_82 = arith.constant 0.000000e+00 : f32
    %70 = vector.broadcast %cst_82 : f32 to vector<256x128xf32>
    %71 = arith.maximumf %69, %70 : vector<256x128xf32>
    %72 = vector.shape_cast %71 : vector<256x128xf32> to vector<16x16x128xf32>
    %c1_83 = arith.constant 1 : index
    %c8_84 = arith.constant 8 : index
    %c0_85 = arith.constant 0 : index
    %73 = vector.load %arg6[%c1_83, %c8_84, %c0_85] : memref<18x32x128xf32, #tpu.memory_space<vmem>>, vector<16x16x128xf32>
    tpu.vector_store %arg6[%c1_83, %c8_84, %c0_85], %72 {strides = array<i32>} : memref<18x32x128xf32, #tpu.memory_space<vmem>>, vector<16x16x128xf32>,
    %c0_86 = arith.constant 0 : index
    %c7_87 = arith.constant 7 : index
    %c0_88 = arith.constant 0 : index
    %74 = vector.load %arg6[%c0_86, %c7_87, %c0_88] : memref<18x32x128xf32, #tpu.memory_space<vmem>>, vector<16x16x128xf32>
    %75 = vector.shape_cast %74 : vector<16x16x128xf32> to vector<256x128xf32>
    %c0_89 = arith.constant 0 : index
    %c8_90 = arith.constant 8 : index
    %c0_91 = arith.constant 0 : index
    %76 = vector.load %arg6[%c0_89, %c8_90, %c0_91] : memref<18x32x128xf32, #tpu.memory_space<vmem>>, vector<16x16x128xf32>
    %77 = vector.shape_cast %76 : vector<16x16x128xf32> to vector<256x128xf32>
    %c8_i32 = arith.constant 8 : i32
    %78 = tpu.dynamic_rotate %77 by %c8_i32 dim 1 : vector<256x128xf32>, i32 -> vector<256x128xf32>
    %79 = arith.addf %75, %78 : vector<256x128xf32>
    %c0_92 = arith.constant 0 : index
    %c9_93 = arith.constant 9 : index
    %c0_94 = arith.constant 0 : index
    %80 = vector.load %arg6[%c0_92, %c9_93, %c0_94] : memref<18x32x128xf32, #tpu.memory_space<vmem>>, vector<16x16x128xf32>
    %81 = vector.shape_cast %80 : vector<16x16x128xf32> to vector<256x128xf32>
    %c16_i32 = arith.constant 16 : i32
    %82 = tpu.dynamic_rotate %81 by %c16_i32 dim 1 : vector<256x128xf32>, i32 -> vector<256x128xf32>
    %83 = arith.addf %79, %82 : vector<256x128xf32>
    %c1_95 = arith.constant 1 : index
    %c7_96 = arith.constant 7 : index
    %c0_97 = arith.constant 0 : index
    %84 = vector.load %arg6[%c1_95, %c7_96, %c0_97] : memref<18x32x128xf32, #tpu.memory_space<vmem>>, vector<16x16x128xf32>
    %85 = vector.shape_cast %84 : vector<16x16x128xf32> to vector<256x128xf32>
    %c24_i32_98 = arith.constant 24 : i32
    %86 = tpu.dynamic_rotate %85 by %c24_i32_98 dim 1 : vector<256x128xf32>, i32 -> vector<256x128xf32>
    %87 = arith.addf %83, %86 : vector<256x128xf32>
    %c1_99 = arith.constant 1 : index
    %c8_100 = arith.constant 8 : index
    %c0_101 = arith.constant 0 : index
    %88 = vector.load %arg6[%c1_99, %c8_100, %c0_101] : memref<18x32x128xf32, #tpu.memory_space<vmem>>, vector<16x16x128xf32>
    %89 = vector.shape_cast %88 : vector<16x16x128xf32> to vector<256x128xf32>
    %c32_i32 = arith.constant 32 : i32
    %90 = tpu.dynamic_rotate %89 by %c32_i32 dim 1 : vector<256x128xf32>, i32 -> vector<256x128xf32>
    %91 = arith.addf %87, %90 : vector<256x128xf32>
    %c1_102 = arith.constant 1 : index
    %c9_103 = arith.constant 9 : index
    %c0_104 = arith.constant 0 : index
    %92 = vector.load %arg6[%c1_102, %c9_103, %c0_104] : memref<18x32x128xf32, #tpu.memory_space<vmem>>, vector<16x16x128xf32>
    %93 = vector.shape_cast %92 : vector<16x16x128xf32> to vector<256x128xf32>
    %c40_i32 = arith.constant 40 : i32
    %94 = tpu.dynamic_rotate %93 by %c40_i32 dim 1 : vector<256x128xf32>, i32 -> vector<256x128xf32>
    %95 = arith.addf %91, %94 : vector<256x128xf32>
    %c2_105 = arith.constant 2 : index
    %c7_106 = arith.constant 7 : index
    %c0_107 = arith.constant 0 : index
    %96 = vector.load %arg6[%c2_105, %c7_106, %c0_107] : memref<18x32x128xf32, #tpu.memory_space<vmem>>, vector<16x16x128xf32>
    %97 = vector.shape_cast %96 : vector<16x16x128xf32> to vector<256x128xf32>
    %c48_i32 = arith.constant 48 : i32
    %98 = tpu.dynamic_rotate %97 by %c48_i32 dim 1 : vector<256x128xf32>, i32 -> vector<256x128xf32>
    %99 = arith.addf %95, %98 : vector<256x128xf32>
    %c2_108 = arith.constant 2 : index
    %c8_109 = arith.constant 8 : index
    %c0_110 = arith.constant 0 : index
    %100 = vector.load %arg6[%c2_108, %c8_109, %c0_110] : memref<18x32x128xf32, #tpu.memory_space<vmem>>, vector<16x16x128xf32>
    %101 = vector.shape_cast %100 : vector<16x16x128xf32> to vector<256x128xf32>
    %c56_i32 = arith.constant 56 : i32
    %102 = tpu.dynamic_rotate %101 by %c56_i32 dim 1 : vector<256x128xf32>, i32 -> vector<256x128xf32>
    %103 = arith.addf %99, %102 : vector<256x128xf32>
    %c2_111 = arith.constant 2 : index
    %c9_112 = arith.constant 9 : index
    %c0_113 = arith.constant 0 : index
    %104 = vector.load %arg6[%c2_111, %c9_112, %c0_113] : memref<18x32x128xf32, #tpu.memory_space<vmem>>, vector<16x16x128xf32>
    %105 = vector.shape_cast %104 : vector<16x16x128xf32> to vector<256x128xf32>
    %c64_i32 = arith.constant 64 : i32
    %106 = tpu.dynamic_rotate %105 by %c64_i32 dim 1 : vector<256x128xf32>, i32 -> vector<256x128xf32>
    %107 = arith.addf %103, %106 : vector<256x128xf32>
    %108 = arith.truncf %107 : vector<256x128xf32> to vector<256x128xbf16>
    %c1_114 = arith.constant 1 : index
    %c0_115 = arith.constant 0 : index
    %c0_116 = arith.constant 0 : index
    %109 = vector.load %arg2[%c1_114, %c0_115, %c0_116] : memref<8x128x128xbf16, #tpu.memory_space<vmem>>, vector<1x128x128xbf16>
    %110 = vector.shape_cast %109 : vector<1x128x128xbf16> to vector<128x128xbf16>
    %cst_117 = arith.constant dense<0.000000e+00> : vector<256x128xf32>
    %111 = tpu.matmul %108, %110, %cst_117 {dimension_numbers = #tpu.dot_dimension_numbers<[1], [0], [0], [1], [0, 0, 1, 1], [], []>} : vector<256x128xbf16>, vector<128x128xbf16>, vector<256x128xf32> -> vector<256x128xf32>
    %c1_118 = arith.constant 1 : index
    %c0_119 = arith.constant 0 : index
    %112 = vector.load %arg3[%c1_118, %c0_119] : memref<8x128xf32, #tpu.memory_space<vmem>>, vector<1x128xf32>
    %113 = vector.broadcast %112 : vector<1x128xf32> to vector<256x128xf32>
    %114 = arith.addf %111, %113 : vector<256x128xf32>
    %cst_120 = arith.constant 0.000000e+00 : f32
    %115 = vector.broadcast %cst_120 : f32 to vector<256x128xf32>
    %116 = arith.maximumf %114, %115 : vector<256x128xf32>
    %117 = vector.shape_cast %116 : vector<256x128xf32> to vector<16x16x128xf32>
    %c1_121 = arith.constant 1 : index
    %c8_122 = arith.constant 8 : index
    %c0_123 = arith.constant 0 : index
    %118 = vector.load %arg7[%c1_121, %c8_122, %c0_123] : memref<18x32x128xf32, #tpu.memory_space<vmem>>, vector<16x16x128xf32>
    tpu.vector_store %arg7[%c1_121, %c8_122, %c0_123], %117 {strides = array<i32>} : memref<18x32x128xf32, #tpu.memory_space<vmem>>, vector<16x16x128xf32>,
    %c1_124 = arith.constant 1 : index
    %c8_125 = arith.constant 8 : index
    %c0_126 = arith.constant 0 : index
    %119 = vector.load %arg6[%c1_124, %c8_125, %c0_126] : memref<18x32x128xf32, #tpu.memory_space<vmem>>, vector<16x16x128xf32>
    %120 = vector.shape_cast %119 : vector<16x16x128xf32> to vector<256x128xf32>
    %c0_127 = arith.constant 0 : index
    %c7_128 = arith.constant 7 : index
    %c0_129 = arith.constant 0 : index
    %121 = vector.load %arg7[%c0_127, %c7_128, %c0_129] : memref<18x32x128xf32, #tpu.memory_space<vmem>>, vector<16x16x128xf32>
    %122 = vector.shape_cast %121 : vector<16x16x128xf32> to vector<256x128xf32>
    %c0_130 = arith.constant 0 : index
    %c8_131 = arith.constant 8 : index
    %c0_132 = arith.constant 0 : index
    %123 = vector.load %arg7[%c0_130, %c8_131, %c0_132] : memref<18x32x128xf32, #tpu.memory_space<vmem>>, vector<16x16x128xf32>
    %124 = vector.shape_cast %123 : vector<16x16x128xf32> to vector<256x128xf32>
    %c8_i32_133 = arith.constant 8 : i32
    %125 = tpu.dynamic_rotate %124 by %c8_i32_133 dim 1 : vector<256x128xf32>, i32 -> vector<256x128xf32>
    %126 = arith.addf %122, %125 : vector<256x128xf32>
    %c0_134 = arith.constant 0 : index
    %c9_135 = arith.constant 9 : index
    %c0_136 = arith.constant 0 : index
    %127 = vector.load %arg7[%c0_134, %c9_135, %c0_136] : memref<18x32x128xf32, #tpu.memory_space<vmem>>, vector<16x16x128xf32>
    %128 = vector.shape_cast %127 : vector<16x16x128xf32> to vector<256x128xf32>
    %c16_i32_137 = arith.constant 16 : i32
    %129 = tpu.dynamic_rotate %128 by %c16_i32_137 dim 1 : vector<256x128xf32>, i32 -> vector<256x128xf32>
    %130 = arith.addf %126, %129 : vector<256x128xf32>
    %c1_138 = arith.constant 1 : index
    %c7_139 = arith.constant 7 : index
    %c0_140 = arith.constant 0 : index
    %131 = vector.load %arg7[%c1_138, %c7_139, %c0_140] : memref<18x32x128xf32, #tpu.memory_space<vmem>>, vector<16x16x128xf32>
    %132 = vector.shape_cast %131 : vector<16x16x128xf32> to vector<256x128xf32>
    %c24_i32_141 = arith.constant 24 : i32
    %133 = tpu.dynamic_rotate %132 by %c24_i32_141 dim 1 : vector<256x128xf32>, i32 -> vector<256x128xf32>
    %134 = arith.addf %130, %133 : vector<256x128xf32>
    %c1_142 = arith.constant 1 : index
    %c8_143 = arith.constant 8 : index
    %c0_144 = arith.constant 0 : index
    %135 = vector.load %arg7[%c1_142, %c8_143, %c0_144] : memref<18x32x128xf32, #tpu.memory_space<vmem>>, vector<16x16x128xf32>
    %136 = vector.shape_cast %135 : vector<16x16x128xf32> to vector<256x128xf32>
    %c32_i32_145 = arith.constant 32 : i32
    %137 = tpu.dynamic_rotate %136 by %c32_i32_145 dim 1 : vector<256x128xf32>, i32 -> vector<256x128xf32>
    %138 = arith.addf %134, %137 : vector<256x128xf32>
    %c1_146 = arith.constant 1 : index
    %c9_147 = arith.constant 9 : index
    %c0_148 = arith.constant 0 : index
    %139 = vector.load %arg7[%c1_146, %c9_147, %c0_148] : memref<18x32x128xf32, #tpu.memory_space<vmem>>, vector<16x16x128xf32>
    %140 = vector.shape_cast %139 : vector<16x16x128xf32> to vector<256x128xf32>
    %c40_i32_149 = arith.constant 40 : i32
    %141 = tpu.dynamic_rotate %140 by %c40_i32_149 dim 1 : vector<256x128xf32>, i32 -> vector<256x128xf32>
    %142 = arith.addf %138, %141 : vector<256x128xf32>
    %c2_150 = arith.constant 2 : index
    %c7_151 = arith.constant 7 : index
    %c0_152 = arith.constant 0 : index
    %143 = vector.load %arg7[%c2_150, %c7_151, %c0_152] : memref<18x32x128xf32, #tpu.memory_space<vmem>>, vector<16x16x128xf32>
    %144 = vector.shape_cast %143 : vector<16x16x128xf32> to vector<256x128xf32>
    %c48_i32_153 = arith.constant 48 : i32
    %145 = tpu.dynamic_rotate %144 by %c48_i32_153 dim 1 : vector<256x128xf32>, i32 -> vector<256x128xf32>
    %146 = arith.addf %142, %145 : vector<256x128xf32>
    %c2_154 = arith.constant 2 : index
    %c8_155 = arith.constant 8 : index
    %c0_156 = arith.constant 0 : index
    %147 = vector.load %arg7[%c2_154, %c8_155, %c0_156] : memref<18x32x128xf32, #tpu.memory_space<vmem>>, vector<16x16x128xf32>
    %148 = vector.shape_cast %147 : vector<16x16x128xf32> to vector<256x128xf32>
    %c56_i32_157 = arith.constant 56 : i32
    %149 = tpu.dynamic_rotate %148 by %c56_i32_157 dim 1 : vector<256x128xf32>, i32 -> vector<256x128xf32>
    %150 = arith.addf %146, %149 : vector<256x128xf32>
    %c2_158 = arith.constant 2 : index
    %c9_159 = arith.constant 9 : index
    %c0_160 = arith.constant 0 : index
    %151 = vector.load %arg7[%c2_158, %c9_159, %c0_160] : memref<18x32x128xf32, #tpu.memory_space<vmem>>, vector<16x16x128xf32>
    %152 = vector.shape_cast %151 : vector<16x16x128xf32> to vector<256x128xf32>
    %c64_i32_161 = arith.constant 64 : i32
    %153 = tpu.dynamic_rotate %152 by %c64_i32_161 dim 1 : vector<256x128xf32>, i32 -> vector<256x128xf32>
    %154 = arith.addf %150, %153 : vector<256x128xf32>
    %155 = arith.truncf %154 : vector<256x128xf32> to vector<256x128xbf16>
    %c2_162 = arith.constant 2 : index
    %c0_163 = arith.constant 0 : index
    %c0_164 = arith.constant 0 : index
    %156 = vector.load %arg2[%c2_162, %c0_163, %c0_164] : memref<8x128x128xbf16, #tpu.memory_space<vmem>>, vector<1x128x128xbf16>
    %157 = vector.shape_cast %156 : vector<1x128x128xbf16> to vector<128x128xbf16>
    %cst_165 = arith.constant dense<0.000000e+00> : vector<256x128xf32>
    %158 = tpu.matmul %155, %157, %cst_165 {dimension_numbers = #tpu.dot_dimension_numbers<[1], [0], [0], [1], [0, 0, 1, 1], [], []>} : vector<256x128xbf16>, vector<128x128xbf16>, vector<256x128xf32> -> vector<256x128xf32>
    %c2_166 = arith.constant 2 : index
    %c0_167 = arith.constant 0 : index
    %159 = vector.load %arg3[%c2_166, %c0_167] : memref<8x128xf32, #tpu.memory_space<vmem>>, vector<1x128xf32>
    %160 = vector.broadcast %159 : vector<1x128xf32> to vector<256x128xf32>
    %161 = arith.addf %158, %160 : vector<256x128xf32>
    %162 = arith.addf %161, %120 : vector<256x128xf32>
    %cst_168 = arith.constant 0.000000e+00 : f32
    %163 = vector.broadcast %cst_168 : f32 to vector<256x128xf32>
    %164 = arith.maximumf %162, %163 : vector<256x128xf32>
    %165 = vector.shape_cast %164 : vector<256x128xf32> to vector<16x16x128xf32>
    %c1_169 = arith.constant 1 : index
    %c8_170 = arith.constant 8 : index
    %c0_171 = arith.constant 0 : index
    %166 = vector.load %arg5[%c1_169, %c8_170, %c0_171] : memref<18x32x128xf32, #tpu.memory_space<vmem>>, vector<16x16x128xf32>
    tpu.vector_store %arg5[%c1_169, %c8_170, %c0_171], %165 {strides = array<i32>} : memref<18x32x128xf32, #tpu.memory_space<vmem>>, vector<16x16x128xf32>,
    %c0_172 = arith.constant 0 : index
    %c7_173 = arith.constant 7 : index
    %c0_174 = arith.constant 0 : index
    %167 = tpu.strided_load %arg5[%c0_172, %c7_173, %c0_174] {strides = array<i32: 2, 2, 1>} : memref<18x32x128xf32, #tpu.memory_space<vmem>>, vector<8x8x128xf32>
    %168 = vector.shape_cast %167 : vector<8x8x128xf32> to vector<64x128xf32>
    %c0_175 = arith.constant 0 : index
    %c8_176 = arith.constant 8 : index
    %c0_177 = arith.constant 0 : index
    %169 = tpu.strided_load %arg5[%c0_175, %c8_176, %c0_177] {strides = array<i32: 2, 2, 1>} : memref<18x32x128xf32, #tpu.memory_space<vmem>>, vector<8x8x128xf32>
    %170 = vector.shape_cast %169 : vector<8x8x128xf32> to vector<64x128xf32>
    %c8_i32_178 = arith.constant 8 : i32
    %171 = tpu.dynamic_rotate %170 by %c8_i32_178 dim 1 : vector<64x128xf32>, i32 -> vector<64x128xf32>
    %172 = arith.addf %168, %171 : vector<64x128xf32>
    %c0_179 = arith.constant 0 : index
    %c9_180 = arith.constant 9 : index
    %c0_181 = arith.constant 0 : index
    %173 = tpu.strided_load %arg5[%c0_179, %c9_180, %c0_181] {strides = array<i32: 2, 2, 1>} : memref<18x32x128xf32, #tpu.memory_space<vmem>>, vector<8x8x128xf32>
    %174 = vector.shape_cast %173 : vector<8x8x128xf32> to vector<64x128xf32>
    %c16_i32_182 = arith.constant 16 : i32
    %175 = tpu.dynamic_rotate %174 by %c16_i32_182 dim 1 : vector<64x128xf32>, i32 -> vector<64x128xf32>
    %176 = arith.addf %172, %175 : vector<64x128xf32>
    %c1_183 = arith.constant 1 : index
    %c7_184 = arith.constant 7 : index
    %c0_185 = arith.constant 0 : index
    %177 = tpu.strided_load %arg5[%c1_183, %c7_184, %c0_185] {strides = array<i32: 2, 2, 1>} : memref<18x32x128xf32, #tpu.memory_space<vmem>>, vector<8x8x128xf32>
    %178 = vector.shape_cast %177 : vector<8x8x128xf32> to vector<64x128xf32>
    %c24_i32_186 = arith.constant 24 : i32
    %179 = tpu.dynamic_rotate %178 by %c24_i32_186 dim 1 : vector<64x128xf32>, i32 -> vector<64x128xf32>
    %180 = arith.addf %176, %179 : vector<64x128xf32>
    %c1_187 = arith.constant 1 : index
    %c8_188 = arith.constant 8 : index
    %c0_189 = arith.constant 0 : index
    %181 = tpu.strided_load %arg5[%c1_187, %c8_188, %c0_189] {strides = array<i32: 2, 2, 1>} : memref<18x32x128xf32, #tpu.memory_space<vmem>>, vector<8x8x128xf32>
    %182 = vector.shape_cast %181 : vector<8x8x128xf32> to vector<64x128xf32>
    %c32_i32_190 = arith.constant 32 : i32
    %183 = tpu.dynamic_rotate %182 by %c32_i32_190 dim 1 : vector<64x128xf32>, i32 -> vector<64x128xf32>
    %184 = arith.addf %180, %183 : vector<64x128xf32>
    %c1_191 = arith.constant 1 : index
    %c9_192 = arith.constant 9 : index
    %c0_193 = arith.constant 0 : index
    %185 = tpu.strided_load %arg5[%c1_191, %c9_192, %c0_193] {strides = array<i32: 2, 2, 1>} : memref<18x32x128xf32, #tpu.memory_space<vmem>>, vector<8x8x128xf32>
    %186 = vector.shape_cast %185 : vector<8x8x128xf32> to vector<64x128xf32>
    %c40_i32_194 = arith.constant 40 : i32
    %187 = tpu.dynamic_rotate %186 by %c40_i32_194 dim 1 : vector<64x128xf32>, i32 -> vector<64x128xf32>
    %188 = arith.addf %184, %187 : vector<64x128xf32>
    %c2_195 = arith.constant 2 : index
    %c7_196 = arith.constant 7 : index
    %c0_197 = arith.constant 0 : index
    %189 = tpu.strided_load %arg5[%c2_195, %c7_196, %c0_197] {strides = array<i32: 2, 2, 1>} : memref<18x32x128xf32, #tpu.memory_space<vmem>>, vector<8x8x128xf32>
    %190 = vector.shape_cast %189 : vector<8x8x128xf32> to vector<64x128xf32>
    %c48_i32_198 = arith.constant 48 : i32
    %191 = tpu.dynamic_rotate %190 by %c48_i32_198 dim 1 : vector<64x128xf32>, i32 -> vector<64x128xf32>
    %192 = arith.addf %188, %191 : vector<64x128xf32>
    %c2_199 = arith.constant 2 : index
    %c8_200 = arith.constant 8 : index
    %c0_201 = arith.constant 0 : index
    %193 = tpu.strided_load %arg5[%c2_199, %c8_200, %c0_201] {strides = array<i32: 2, 2, 1>} : memref<18x32x128xf32, #tpu.memory_space<vmem>>, vector<8x8x128xf32>
    %194 = vector.shape_cast %193 : vector<8x8x128xf32> to vector<64x128xf32>
    %c56_i32_202 = arith.constant 56 : i32
    %195 = tpu.dynamic_rotate %194 by %c56_i32_202 dim 1 : vector<64x128xf32>, i32 -> vector<64x128xf32>
    %196 = arith.addf %192, %195 : vector<64x128xf32>
    %c2_203 = arith.constant 2 : index
    %c9_204 = arith.constant 9 : index
    %c0_205 = arith.constant 0 : index
    %197 = tpu.strided_load %arg5[%c2_203, %c9_204, %c0_205] {strides = array<i32: 2, 2, 1>} : memref<18x32x128xf32, #tpu.memory_space<vmem>>, vector<8x8x128xf32>
    %198 = vector.shape_cast %197 : vector<8x8x128xf32> to vector<64x128xf32>
    %c64_i32_206 = arith.constant 64 : i32
    %199 = tpu.dynamic_rotate %198 by %c64_i32_206 dim 1 : vector<64x128xf32>, i32 -> vector<64x128xf32>
    %200 = arith.addf %196, %199 : vector<64x128xf32>
    %201 = arith.truncf %200 : vector<64x128xf32> to vector<64x128xbf16>
    %c3 = arith.constant 3 : index
    %c0_207 = arith.constant 0 : index
    %c0_208 = arith.constant 0 : index
    %202 = vector.load %arg2[%c3, %c0_207, %c0_208] : memref<8x128x128xbf16, #tpu.memory_space<vmem>>, vector<1x128x128xbf16>
    %203 = vector.shape_cast %202 : vector<1x128x128xbf16> to vector<128x128xbf16>
    %cst_209 = arith.constant dense<0.000000e+00> : vector<64x128xf32>
    %204 = tpu.matmul %201, %203, %cst_209 {dimension_numbers = #tpu.dot_dimension_numbers<[1], [0], [0], [1], [0, 0, 1, 1], [], []>} : vector<64x128xbf16>, vector<128x128xbf16>, vector<64x128xf32> -> vector<64x128xf32>
    %c3_210 = arith.constant 3 : index
    %c0_211 = arith.constant 0 : index
    %205 = vector.load %arg3[%c3_210, %c0_211] : memref<8x128xf32, #tpu.memory_space<vmem>>, vector<1x128xf32>
    %206 = vector.broadcast %205 : vector<1x128xf32> to vector<64x128xf32>
    %207 = arith.addf %204, %206 : vector<64x128xf32>
    %cst_212 = arith.constant 0.000000e+00 : f32
    %208 = vector.broadcast %cst_212 : f32 to vector<64x128xf32>
    %209 = arith.maximumf %207, %208 : vector<64x128xf32>
    %210 = vector.shape_cast %209 : vector<64x128xf32> to vector<8x8x128xf32>
    %c1_213 = arith.constant 1 : index
    %c8_214 = arith.constant 8 : index
    %c0_215 = arith.constant 0 : index
    %211 = vector.load %arg8[%c1_213, %c8_214, %c0_215] : memref<10x24x128xf32, #tpu.memory_space<vmem>>, vector<8x8x128xf32>
    tpu.vector_store %arg8[%c1_213, %c8_214, %c0_215], %210 {strides = array<i32>} : memref<10x24x128xf32, #tpu.memory_space<vmem>>, vector<8x8x128xf32>,
    %c1_216 = arith.constant 1 : index
    %c8_217 = arith.constant 8 : index
    %c0_218 = arith.constant 0 : index
    %212 = tpu.strided_load %arg5[%c1_216, %c8_217, %c0_218] {strides = array<i32: 2, 2, 1>} : memref<18x32x128xf32, #tpu.memory_space<vmem>>, vector<8x8x128xf32>
    %213 = vector.shape_cast %212 : vector<8x8x128xf32> to vector<64x128xf32>
    %214 = arith.truncf %213 : vector<64x128xf32> to vector<64x128xbf16>
    %c4 = arith.constant 4 : index
    %c0_219 = arith.constant 0 : index
    %c0_220 = arith.constant 0 : index
    %215 = vector.load %arg2[%c4, %c0_219, %c0_220] : memref<8x128x128xbf16, #tpu.memory_space<vmem>>, vector<1x128x128xbf16>
    %216 = vector.shape_cast %215 : vector<1x128x128xbf16> to vector<128x128xbf16>
    %cst_221 = arith.constant dense<0.000000e+00> : vector<64x128xf32>
    %217 = tpu.matmul %214, %216, %cst_221 {dimension_numbers = #tpu.dot_dimension_numbers<[1], [0], [0], [1], [0, 0, 1, 1], [], []>} : vector<64x128xbf16>, vector<128x128xbf16>, vector<64x128xf32> -> vector<64x128xf32>
    %c4_222 = arith.constant 4 : index
    %c0_223 = arith.constant 0 : index
    %218 = vector.load %arg3[%c4_222, %c0_223] : memref<8x128xf32, #tpu.memory_space<vmem>>, vector<1x128xf32>
    %219 = vector.broadcast %218 : vector<1x128xf32> to vector<64x128xf32>
    %220 = arith.addf %217, %219 : vector<64x128xf32>
    %c0_224 = arith.constant 0 : index
    %c7_225 = arith.constant 7 : index
    %c0_226 = arith.constant 0 : index
    %221 = vector.load %arg8[%c0_224, %c7_225, %c0_226] : memref<10x24x128xf32, #tpu.memory_space<vmem>>, vector<8x8x128xf32>
    %222 = vector.shape_cast %221 : vector<8x8x128xf32> to vector<64x128xf32>
    %c0_227 = arith.constant 0 : index
    %c8_228 = arith.constant 8 : index
    %c0_229 = arith.constant 0 : index
    %223 = vector.load %arg8[%c0_227, %c8_228, %c0_229] : memref<10x24x128xf32, #tpu.memory_space<vmem>>, vector<8x8x128xf32>
    %224 = vector.shape_cast %223 : vector<8x8x128xf32> to vector<64x128xf32>
    %c16_i32_230 = arith.constant 16 : i32
    %225 = tpu.dynamic_rotate %224 by %c16_i32_230 dim 1 : vector<64x128xf32>, i32 -> vector<64x128xf32>
    %226 = arith.addf %222, %225 : vector<64x128xf32>
    %c0_231 = arith.constant 0 : index
    %c9_232 = arith.constant 9 : index
    %c0_233 = arith.constant 0 : index
    %227 = vector.load %arg8[%c0_231, %c9_232, %c0_233] : memref<10x24x128xf32, #tpu.memory_space<vmem>>, vector<8x8x128xf32>
    %228 = vector.shape_cast %227 : vector<8x8x128xf32> to vector<64x128xf32>
    %c32_i32_234 = arith.constant 32 : i32
    %229 = tpu.dynamic_rotate %228 by %c32_i32_234 dim 1 : vector<64x128xf32>, i32 -> vector<64x128xf32>
    %230 = arith.addf %226, %229 : vector<64x128xf32>
    %c1_235 = arith.constant 1 : index
    %c7_236 = arith.constant 7 : index
    %c0_237 = arith.constant 0 : index
    %231 = vector.load %arg8[%c1_235, %c7_236, %c0_237] : memref<10x24x128xf32, #tpu.memory_space<vmem>>, vector<8x8x128xf32>
    %232 = vector.shape_cast %231 : vector<8x8x128xf32> to vector<64x128xf32>
    %c48_i32_238 = arith.constant 48 : i32
    %233 = tpu.dynamic_rotate %232 by %c48_i32_238 dim 1 : vector<64x128xf32>, i32 -> vector<64x128xf32>
    %234 = arith.addf %230, %233 : vector<64x128xf32>
    %c1_239 = arith.constant 1 : index
    %c8_240 = arith.constant 8 : index
    %c0_241 = arith.constant 0 : index
    %235 = vector.load %arg8[%c1_239, %c8_240, %c0_241] : memref<10x24x128xf32, #tpu.memory_space<vmem>>, vector<8x8x128xf32>
    %236 = vector.shape_cast %235 : vector<8x8x128xf32> to vector<64x128xf32>
    %c64_i32_242 = arith.constant 64 : i32
    %237 = tpu.dynamic_rotate %236 by %c64_i32_242 dim 1 : vector<64x128xf32>, i32 -> vector<64x128xf32>
    %238 = arith.addf %234, %237 : vector<64x128xf32>
    %c1_243 = arith.constant 1 : index
    %c9_244 = arith.constant 9 : index
    %c0_245 = arith.constant 0 : index
    %239 = vector.load %arg8[%c1_243, %c9_244, %c0_245] : memref<10x24x128xf32, #tpu.memory_space<vmem>>, vector<8x8x128xf32>
    %240 = vector.shape_cast %239 : vector<8x8x128xf32> to vector<64x128xf32>
    %c80_i32 = arith.constant 80 : i32
    %241 = tpu.dynamic_rotate %240 by %c80_i32 dim 1 : vector<64x128xf32>, i32 -> vector<64x128xf32>
    %242 = arith.addf %238, %241 : vector<64x128xf32>
    %c2_246 = arith.constant 2 : index
    %c7_247 = arith.constant 7 : index
    %c0_248 = arith.constant 0 : index
    %243 = vector.load %arg8[%c2_246, %c7_247, %c0_248] : memref<10x24x128xf32, #tpu.memory_space<vmem>>, vector<8x8x128xf32>
    %244 = vector.shape_cast %243 : vector<8x8x128xf32> to vector<64x128xf32>
    %c96_i32 = arith.constant 96 : i32
    %245 = tpu.dynamic_rotate %244 by %c96_i32 dim 1 : vector<64x128xf32>, i32 -> vector<64x128xf32>
    %246 = arith.addf %242, %245 : vector<64x128xf32>
    %c2_249 = arith.constant 2 : index
    %c8_250 = arith.constant 8 : index
    %c0_251 = arith.constant 0 : index
    %247 = vector.load %arg8[%c2_249, %c8_250, %c0_251] : memref<10x24x128xf32, #tpu.memory_space<vmem>>, vector<8x8x128xf32>
    %248 = vector.shape_cast %247 : vector<8x8x128xf32> to vector<64x128xf32>
    %c112_i32 = arith.constant 112 : i32
    %249 = tpu.dynamic_rotate %248 by %c112_i32 dim 1 : vector<64x128xf32>, i32 -> vector<64x128xf32>
    %250 = arith.addf %246, %249 : vector<64x128xf32>
    %251 = arith.truncf %250 : vector<64x128xf32> to vector<64x128xbf16>
    %c5 = arith.constant 5 : index
    %c0_252 = arith.constant 0 : index
    %c0_253 = arith.constant 0 : index
    %252 = vector.load %arg2[%c5, %c0_252, %c0_253] : memref<8x128x128xbf16, #tpu.memory_space<vmem>>, vector<1x128x128xbf16>
    %253 = vector.shape_cast %252 : vector<1x128x128xbf16> to vector<128x128xbf16>
    %cst_254 = arith.constant dense<0.000000e+00> : vector<64x128xf32>
    %254 = tpu.matmul %251, %253, %cst_254 {dimension_numbers = #tpu.dot_dimension_numbers<[1], [0], [0], [1], [0, 0, 1, 1], [], []>} : vector<64x128xbf16>, vector<128x128xbf16>, vector<64x128xf32> -> vector<64x128xf32>
    %c2_255 = arith.constant 2 : index
    %c9_256 = arith.constant 9 : index
    %c0_257 = arith.constant 0 : index
    %255 = vector.load %arg8[%c2_255, %c9_256, %c0_257] : memref<10x24x128xf32, #tpu.memory_space<vmem>>, vector<8x8x128xf32>
    %256 = vector.shape_cast %255 : vector<8x8x128xf32> to vector<64x128xf32>
    %257 = arith.truncf %256 : vector<64x128xf32> to vector<64x128xbf16>
    %c6 = arith.constant 6 : index
    %c0_258 = arith.constant 0 : index
    %c0_259 = arith.constant 0 : index
    %258 = vector.load %arg2[%c6, %c0_258, %c0_259] : memref<8x128x128xbf16, #tpu.memory_space<vmem>>, vector<1x128x128xbf16>
    %259 = vector.shape_cast %258 : vector<1x128x128xbf16> to vector<128x128xbf16>
    %cst_260 = arith.constant dense<0.000000e+00> : vector<64x128xf32>
    %260 = tpu.matmul %257, %259, %cst_260 {dimension_numbers = #tpu.dot_dimension_numbers<[1], [0], [0], [1], [0, 0, 1, 1], [], []>} : vector<64x128xbf16>, vector<128x128xbf16>, vector<64x128xf32> -> vector<64x128xf32>
    %261 = arith.addf %254, %260 : vector<64x128xf32>
    %c5_261 = arith.constant 5 : index
    %c0_262 = arith.constant 0 : index
    %262 = vector.load %arg3[%c5_261, %c0_262] : memref<8x128xf32, #tpu.memory_space<vmem>>, vector<1x128xf32>
    %263 = vector.broadcast %262 : vector<1x128xf32> to vector<64x128xf32>
    %264 = arith.addf %261, %263 : vector<64x128xf32>
    %265 = arith.addf %264, %220 : vector<64x128xf32>
    %cst_263 = arith.constant 0.000000e+00 : f32
    %266 = vector.broadcast %cst_263 : f32 to vector<64x128xf32>
    %267 = arith.maximumf %265, %266 : vector<64x128xf32>
    %cst_264 = arith.constant dense<0.000000e+00> : vector<128xf32>
    %268 = vector.multi_reduction <add>, %267, %cst_264 [0] : vector<64x128xf32> to vector<128xf32>
    %269 = vector.shape_cast %268 : vector<128xf32> to vector<1x128xf32>
    %cst_265 = arith.constant 6.400000e+01 : f32
    %270 = vector.broadcast %cst_265 : f32 to vector<1x128xf32>
    %271 = arith.divf %269, %270 : vector<1x128xf32>
    %272 = arith.truncf %271 : vector<1x128xf32> to vector<1x128xbf16>
    %c7_266 = arith.constant 7 : index
    %c0_267 = arith.constant 0 : index
    %c0_268 = arith.constant 0 : index
    %273 = vector.load %arg2[%c7_266, %c0_267, %c0_268] : memref<8x128x128xbf16, #tpu.memory_space<vmem>>, vector<1x128x128xbf16>
    %274 = vector.shape_cast %273 : vector<1x128x128xbf16> to vector<128x128xbf16>
    %cst_269 = arith.constant dense<0.000000e+00> : vector<1x128xf32>
    %275 = tpu.matmul %272, %274, %cst_269 {dimension_numbers = #tpu.dot_dimension_numbers<[1], [0], [0], [1], [0, 0, 1, 1], [], []>} : vector<1x128xbf16>, vector<128x128xbf16>, vector<1x128xf32> -> vector<1x128xf32>
    %c6_270 = arith.constant 6 : index
    %c0_271 = arith.constant 0 : index
    %276 = vector.load %arg3[%c6_270, %c0_271] : memref<8x128xf32, #tpu.memory_space<vmem>>, vector<1x128xf32>
    %277 = arith.addf %275, %276 : vector<1x128xf32>
    %278 = vector.shape_cast %277 : vector<1x128xf32> to vector<1x1x128xf32>
    %c0_272 = arith.constant 0 : index
    %c0_273 = arith.constant 0 : index
    %c0_274 = arith.constant 0 : index
    %279 = vector.load %arg4[%c0_272, %c0_273, %c0_274] : memref<1x1x128xf32, #tpu.memory_space<vmem>>, vector<1x1x128xf32>
    tpu.vector_store %arg4[%c0_272, %c0_273, %c0_274], %278 {strides = array<i32>} : memref<1x1x128xf32, #tpu.memory_space<vmem>>, vector<1x1x128xf32>,
    return
  }
  func.func @transform_0(%arg0: i32) -> (i32, i32, i32, i32) {
    %c0_i32 = arith.constant 0 : i32
    %c0_i32_0 = arith.constant 0 : i32
    %c0_i32_1 = arith.constant 0 : i32
    %c0_i32_2 = arith.constant 0 : i32
    return %arg0, %c0_i32, %c0_i32_0, %c0_i32_1 : i32, i32, i32, i32
  }
  func.func @transform_1(%arg0: i32) -> (i32, i32, i32) {
    %c0_i32 = arith.constant 0 : i32
    %c0_i32_0 = arith.constant 0 : i32
    %c0_i32_1 = arith.constant 0 : i32
    %c0_i32_2 = arith.constant 0 : i32
    return %c0_i32, %c0_i32_0, %c0_i32_1 : i32, i32, i32
  }
  func.func @transform_2(%arg0: i32) -> (i32, i32) {
    %c0_i32 = arith.constant 0 : i32
    %c0_i32_0 = arith.constant 0 : i32
    %c0_i32_1 = arith.constant 0 : i32
    return %c0_i32, %c0_i32_0 : i32, i32
  }
  func.func @transform_3(%arg0: i32) -> (i32, i32, i32) {
    %c0_i32 = arith.constant 0 : i32
    %c0_i32_0 = arith.constant 0 : i32
    %c0_i32_1 = arith.constant 0 : i32
    return %arg0, %c0_i32, %c0_i32_0 : i32, i32, i32
  }
}

</mosaic_0001>

<bundles_post_ra>
// kernel: wrapped_resnet_forward.1
= control target key start
LH: loop header
LB: loop body
LE: loop exit
PB: predicated region body
PF: predicated region fallthrough
CT: control target
= control target key end

     0   :  { %8 = vsyncpa [#allocation7], 0  ;;  %s11542_s0 = inlined_call_operand.vmem [shape: f32[2,16,16,3], index: 0, kind: input, shape index: {}]   ;;  %s11543_s1 = inlined_call_operand.vmem [shape: bf16[8,128,128], index: 1, kind: input, shape index: {}]   ;;  %s11544_s2 = inlined_call_operand.vmem [shape: f32[8,128], index: 2, kind: input, shape index: {}]   ;;  %s11545_s3 = inlined_call_operand.hbm [shape: f32[2,1,128], index: 3, kind: output, shape index: {}]  }
   0x1   :  { %10 = vsyncpa [#allocation7 + $0x1], 0  ;;  %s6967_s12 = smov 0   ;;  %s6969_s13 = smov 0  }
   0x2   :  { %s6971_s14 = smov 0   ;;  %s6973_s15 = smov 0  }
   0x3 LB: > { %s6988_s16 = sadd.s32 4294967295, %s6924_s15   ;;  %s5997_s17 = sadd.s32 4294967294, %s6924_s15   ;;  %s6924_s15 = sphi %s6973_s15, %s11728_s15   ;;  %s6920_s14 = sphi %s6971_s14, %s11727_s14   ;;  %s6916_s13 = sphi %s6969_s13, %s11726_s13   ;;  %s6912_s12 = sphi %s6967_s12, %s11725_s12  }
   0x4   : > { %s6992_s18 = sadd.s32 1, %s6924_s15   ;;  %s91_s19 = sadd.s32 1, %s6920_s14 }
   0x5   : > { %s88_s20 = ssub.s32 %s6924_s15, %s6992_s18  ;;  %p101_p0 = scmp.ne.s32.totalorder %s6920_s14, %s6916_s13 }
   0x6   : > { %p89_p1 = scmp.eq.s32.totalorder %s88_s20, 0  ;;  %p102_p2 = scmp.eq.s32.totalorder %s6988_s16, 1 }
   0x7   : > { %p107_p3 = scmp.ne.s32.totalorder %s6916_s13, %s6912_s12  ;;  %p108_p4 = scmp.eq.s32.totalorder %s5997_s17, 1 }
   0x8   : > { %s7003_s21 = scalar_select %p89_p1, %s6920_s14, %s91_s19  }
   0x9   : > { %p7005_p5 = por %p102_p2, %p101_p0  ;;  %p7009_p6 = por %p108_p4, %p107_p3 }
   0xa   : > { %p6000_p7 = scmp.ge.s32.totalorder %s6924_s15, 1  ;;  %p140_p8 = scmp.lt.s32.totalorder %s6924_s15, 3 }
   0xc   : > { %p141_p9 = pnand %p6000_p7, %p140_p8 }
   0xe   : > { %144 = sbr.rel (%p141_p9) target bundleno = 3023 (0xbcf), region = 32 }
  0x15   : > { %v6926_v0 = vmov 0.0   ;;  %p163_p10 = scmp.lt.s32.totalorder %s6988_s16, 1  ;;  %s6927_s24 = smov 3   ;;  %vm274_vm0 = vcmask 23552   ;;  %v6760_v32 = vld [vmem:[%s11543_s1] sm:$0xff]   ;;  %v6761_v35 = vld [vmem:[%s11543_s1 + $0x8] sm:$0xff]  }
  0x16   : > { %170 = vst [vmem:[#allocation2 + $0x8] sm:$0xff] %v6926_v0  ;;  %171 = vst [vmem:[#allocation2 + $0x10] sm:$0xff] %v6926_v0  ;;  %6686 = vrot.lane.b32.xlu0 %v6926_v0, %s6927_s24  ;;  %s6928_s30 = smov 6   ;;  %s6929_s4 = smov 9   ;;  %6318 = vmatprep.subr.bf16.mxu0 %v6760_v32  ;;  %v6762_v38 = vld [vmem:[%s11543_s1 + $0x10] sm:$0xff]   ;;  %v6763_v39 = vld [vmem:[%s11543_s1 + $0x18] sm:$0xff]  }
  0x17   : > { %172 = vst [vmem:[#allocation2 + $0x18] sm:$0xff] %v6926_v0  ;;  %169 = vst [vmem:[#allocation2] sm:$0xff] %v6926_v0  ;;  %s164_s25 = scalar_select %p163_p10, %s6988_s16, 1  ;;  %6319 = vmatpush3.bf16.msra.mxu0 %v6760_v32  ;;  %v6764_v42 = vld [vmem:[%s11543_s1 + $0x20] sm:$0xff]   ;;  %v6765_v45 = vld [vmem:[%s11543_s1 + $0x28] sm:$0xff]   ;;  %vm6945_vm1 = vmmov 0  }
  0x18   : > { %173 = vst [vmem:[#allocation2 + $0x20] sm:$0xff] %v6926_v0  ;;  %174 = vst [vmem:[#allocation2 + $0x28] sm:$0xff] %v6926_v0  ;;  %s6930_s5 = smov 12   ;;  %s6931_s6 = smov 15   ;;  %6320 = vmatprep.subr.bf16.mxu0 %v6761_v35  ;;  %v6766_v46 = vld [vmem:[%s11543_s1 + $0x30] sm:$0xff]   ;;  %v6767_v47 = vld [vmem:[%s11543_s1 + $0x38] sm:$0xff]  }
  0x19   : > { %175 = vst [vmem:[#allocation2 + $0x30] sm:$0xff] %v6926_v0  ;;  %176 = vst [vmem:[#allocation2 + $0x38] sm:$0xff] %v6926_v0  ;;  %s6188_s26 = sshll.u32 %s164_s25, 8  ;;  %s6932_s9 = smov 18  }
  0x1a   : > { %177 = vst [vmem:[#allocation2 + $0x40] sm:$0xff] %v6926_v0  ;;  %178 = vst [vmem:[#allocation2 + $0x48] sm:$0xff] %v6926_v0  ;;  %s7196_s29 = scalar_lea.vmem %s11542_s0, %s6188_s26  ;;  %s6933_s28 = smov 21  }
  0x1b   : > { %179 = vst [vmem:[#allocation2 + $0x50] sm:$0xff] %v6926_v0  ;;  %180 = vst [vmem:[#allocation2 + $0x58] sm:$0xff] %v6926_v0  ;;  %v242_v1 = vld [vmem:[%s7196_s29 + $0x8] sm:$0xff]  ;;  %v241_v2 = vld [vmem:[%s7196_s29] sm:$0xff]  ;;  %6321 = vmatpush3.bf16.msra.mxu0 %v6761_v35  ;;  %s6934_s20 = smov 24   ;;  %s6940_s17 = smov 56  }
  0x1c   : > { %181 = vst [vmem:[#allocation2 + $0x60] sm:$0xff] %v6926_v0  ;;  %182 = vst [vmem:[#allocation2 + $0x68] sm:$0xff] %v6926_v0  ;;  %v243_v3 = vld [vmem:[%s7196_s29 + $0x10] sm:$0xff]  ;;  %v244_v6 = vld [vmem:[%s7196_s29 + $0x18] sm:$0xff]  ;;  %6322 = vmatprep.subr.bf16.mxu0 %v6762_v38  ;;  %s6941_s8 = smov 64   ;;  %s6944_s26 = smov 112  }
  0x1d   : > { %183 = vst [vmem:[#allocation2 + $0x70] sm:$0xff] %v6926_v0  ;;  %184 = vst [vmem:[#allocation2 + $0x78] sm:$0xff] %v6926_v0  ;;  %v575_v4 = vld [vmem:[#allocation2 + $0x9] sm:$0xff]  ;;  %v245_v9 = vld [vmem:[%s7196_s29 + $0x20] sm:$0xff]  ;;  %s6946_s11 = smov [#allocation6]  }
  0x1e   : > { %185 = vst [vmem:[#allocation2 + $0x80] sm:$0xff] %v6926_v0  ;;  %186 = vst [vmem:[#allocation2 + $0x88] sm:$0xff] %v6926_v0  ;;  %v576_v5 = vld [vmem:[#allocation2 + $0x11] sm:$0xff]  ;;  %v246_v8 = vld [vmem:[%s7196_s29 + $0x28] sm:$0xff]  ;;  %s6866_s19 = sshll.u32 %s6946_s11, 4  ;;  %s6867_s19 = int_to_ptr.vmem [resolvable:$false] %s6866_s19 }
  0x1f   : > { %187 = vst [vmem:[#allocation2 + $0x90] sm:$0xff] %v6926_v0  ;;  %188 = vst [vmem:[#allocation2 + $0x98] sm:$0xff] %v6926_v0  ;;  %v6690_v7 = vpack.i.bf16 %v576_v5, %v575_v4  ;;  %v247_v10 = vld [vmem:[%s7196_s29 + $0x30] sm:$0xff]  ;;  %v248_v11 = vld [vmem:[%s7196_s29 + $0x38] sm:$0xff]  ;;  %6323 = vmatpush3.bf16.msra.mxu0 %v6762_v38  ;;  %s6868_s25 = scalar_lea.vmem %s6867_s19, 32 }
  0x20   : > { %189 = vst [vmem:[#allocation2 + $0xa0] sm:$0xff] %v6926_v0  ;;  %190 = vst [vmem:[#allocation2 + $0xa8] sm:$0xff] %v6926_v0  ;;  %v250_v12 = vld [vmem:[%s7196_s29 + $0x48] sm:$0xff]  ;;  %v249_v13 = vld [vmem:[%s7196_s29 + $0x40] sm:$0xff]  ;;  %6324 = vmatprep.subr.bf16.mxu0 %v6763_v39 }
  0x21   : > { %191 = vst [vmem:[#allocation2 + $0xb0] sm:$0xff] %v6926_v0  ;;  %192 = vst [vmem:[#allocation2 + $0xb8] sm:$0xff] %v6926_v0  ;;  %6691 = vrot.lane.b32.xlu1 %v6690_v7, %s6928_s30  ;;  %v251_v14 = vld [vmem:[%s7196_s29 + $0x50] sm:$0xff]  ;;  %v252_v15 = vld [vmem:[%s7196_s29 + $0x58] sm:$0xff] }
  0x22   : > { %193 = vst [vmem:[#allocation2 + $0xc0] sm:$0xff] %v6926_v0  ;;  %194 = vst [vmem:[#allocation2 + $0xc8] sm:$0xff] %v6926_v0  ;;  %v254_v26 = vld [vmem:[%s7196_s29 + $0x68] sm:$0xff]  ;;  %v253_v27 = vld [vmem:[%s7196_s29 + $0x60] sm:$0xff] }
  0x23   : > { %195 = vst [vmem:[#allocation2 + $0xd0] sm:$0xff] %v6926_v0  ;;  %196 = vst [vmem:[#allocation2 + $0xd8] sm:$0xff] %v6926_v0  ;;  %v255_v40 = vld [vmem:[%s7196_s29 + $0x70] sm:$0xff]  ;;  %v256_v41 = vld [vmem:[%s7196_s29 + $0x78] sm:$0xff]  ;;  %6325 = vmatpush3.bf16.msra.mxu0 %v6763_v39 }
  0x24   : > { %197 = vst [vmem:[#allocation2 + $0xe0] sm:$0xff] %v6926_v0  ;;  %198 = vst [vmem:[#allocation2 + $0xe8] sm:$0xff] %v6926_v0  ;;  %6326 = vmatprep.subr.bf16.mxu0 %v6764_v42  ;;  %v258_v50 = vld [vmem:[%s7196_s29 + $0x88] sm:$0xff]  ;;  %v257_v51 = vld [vmem:[%s7196_s29 + $0x80] sm:$0xff] }
  0x25   : > { %199 = vst [vmem:[#allocation2 + $0xf0] sm:$0xff] %v6926_v0  ;;  %200 = vst [vmem:[#allocation2 + $0xf8] sm:$0xff] %v6926_v0 }
  0x26   : > { %201 = vst [vmem:[#allocation2 + $0x100] sm:$0xff] %v6926_v0  ;;  %202 = vst [vmem:[#allocation2 + $0x108] sm:$0xff] %v6926_v0 }
  0x27   : > { %203 = vst [vmem:[#allocation2 + $0x110] sm:$0xff] %v6926_v0  ;;  %204 = vst [vmem:[#allocation2 + $0x118] sm:$0xff] %v6926_v0  ;;  %6327 = vmatpush3.bf16.msra.mxu0 %v6764_v42 }
  0x28   : > { %205 = vst [vmem:[#allocation2 + $0x120] sm:$0xff] %v6926_v0  ;;  %206 = vst [vmem:[#allocation2 + $0x128] sm:$0xff] %v6926_v0  ;;  %6328 = vmatprep.subr.bf16.mxu0 %v6765_v45 }
  0x29   : > { %207 = vst [vmem:[#allocation2 + $0x130] sm:$0xff] %v6926_v0  ;;  %208 = vst [vmem:[#allocation2 + $0x138] sm:$0xff] %v6926_v0 }
  0x2a   : > { %209 = vst [vmem:[#allocation2 + $0x140] sm:$0xff] %v6926_v0  ;;  %210 = vst [vmem:[#allocation2 + $0x148] sm:$0xff] %v6926_v0 }
  0x2b   : > { %211 = vst [vmem:[#allocation2 + $0x150] sm:$0xff] %v6926_v0  ;;  %212 = vst [vmem:[#allocation2 + $0x158] sm:$0xff] %v6926_v0  ;;  %6329 = vmatpush3.bf16.msra.mxu0 %v6765_v45 }
  0x2c   : > { %213 = vst [vmem:[#allocation2 + $0x160] sm:$0xff] %v6926_v0  ;;  %214 = vst [vmem:[#allocation2 + $0x168] sm:$0xff] %v6926_v0  ;;  %6330 = vmatprep.subr.bf16.mxu0 %v6766_v46 }
  0x2d   : > { %215 = vst [vmem:[#allocation2 + $0x170] sm:$0xff] %v6926_v0  ;;  %216 = vst [vmem:[#allocation2 + $0x178] sm:$0xff] %v6926_v0 }
  0x2e   : > { %217 = vst [vmem:[#allocation2 + $0x180] sm:$0xff] %v6926_v0  ;;  %218 = vst [vmem:[#allocation2 + $0x188] sm:$0xff] %v6926_v0 }
  0x2f   : > { %219 = vst [vmem:[#allocation2 + $0x190] sm:$0xff] %v6926_v0  ;;  %220 = vst [vmem:[#allocation2 + $0x198] sm:$0xff] %v6926_v0  ;;  %6331 = vmatpush3.bf16.msra.mxu0 %v6766_v46 }
  0x30   : > { %221 = vst [vmem:[#allocation2 + $0x1a0] sm:$0xff] %v6926_v0  ;;  %222 = vst [vmem:[#allocation2 + $0x1a8] sm:$0xff] %v6926_v0  ;;  %6332 = vmatprep.subr.bf16.mxu0 %v6767_v47 }
  0x31   : > { %223 = vst [vmem:[#allocation2 + $0x1b0] sm:$0xff] %v6926_v0  ;;  %224 = vst [vmem:[#allocation2 + $0x1b8] sm:$0xff] %v6926_v0 }
  0x32   : > { %225 = vst [vmem:[#allocation2 + $0x1c0] sm:$0xff] %v6926_v0  ;;  %226 = vst [vmem:[#allocation2 + $0x1c8] sm:$0xff] %v6926_v0 }
  0x33   : > { %227 = vst [vmem:[#allocation2 + $0x1d0] sm:$0xff] %v6926_v0  ;;  %228 = vst [vmem:[#allocation2 + $0x1d8] sm:$0xff] %v6926_v0  ;;  %6333 = vmatpush3.bf16.msra.mxu0 %v6767_v47 }
  0x34   : > { %229 = vst [vmem:[#allocation2 + $0x1e0] sm:$0xff] %v6926_v0  ;;  %230 = vst [vmem:[#allocation2 + $0x1e8] sm:$0xff] %v6926_v0 }
  0x35   : > { %231 = vst [vmem:[#allocation2 + $0x1f0] sm:$0xff] %v6926_v0  ;;  %232 = vst [vmem:[#allocation2 + $0x1f8] sm:$0xff] %v6926_v0 }
  0x36   : > { %233 = vst [vmem:[#allocation2 + $0x200] sm:$0xff] %v6926_v0  ;;  %234 = vst [vmem:[#allocation2 + $0x208] sm:$0xff] %v6926_v0 }
  0x37   : > { %235 = vst [vmem:[#allocation2 + $0x210] sm:$0xff] %v6926_v0  ;;  %236 = vst [vmem:[#allocation2 + $0x218] sm:$0xff] %v6926_v0 }
  0x38   : > { %237 = vst [vmem:[#allocation2 + $0x220] sm:$0xff] %v6926_v0  ;;  %238 = vst [vmem:[#allocation2 + $0x228] sm:$0xff] %v6926_v0 }
  0x39   : > { %239 = vst [vmem:[#allocation2 + $0x230] sm:$0xff] %v6926_v0  ;;  %240 = vst [vmem:[#allocation2 + $0x238] sm:$0xff] %v6926_v0 }
  0x3a   : > { %307 = vst [vmem:[#allocation3] sm:$0xff] %v6926_v0  ;;  %308 = vst [vmem:[#allocation3 + $0x8] sm:$0xff] %v6926_v0 }
  0x3b   : > { %309 = vst [vmem:[#allocation3 + $0x10] sm:$0xff] %v6926_v0  ;;  %310 = vst [vmem:[#allocation3 + $0x18] sm:$0xff] %v6926_v0 }
  0x3c   : > { %312 = vst [vmem:[#allocation3 + $0x220] sm:$0xff] %v6926_v0  ;;  %313 = vst [vmem:[#allocation3 + $0x228] sm:$0xff] %v6926_v0 }
  0x3d   : > { %314 = vst [vmem:[#allocation3 + $0x230] sm:$0xff] %v6926_v0  ;;  %315 = vst [vmem:[#allocation3 + $0x238] sm:$0xff] %v6926_v0 }
  0x3e   : > { %317 = vst [vmem:[#allocation3 + $0x20] sm:$0xff] %v6926_v0  ;;  %318 = vst [vmem:[#allocation3 + $0x40] sm:$0xff] %v6926_v0 }
  0x3f   : > { %319 = vst [vmem:[#allocation3 + $0x60] sm:$0xff] %v6926_v0  ;;  %320 = vst [vmem:[#allocation3 + $0x80] sm:$0xff] %v6926_v0 }
  0x40   : > { %321 = vst [vmem:[#allocation3 + $0xa0] sm:$0xff] %v6926_v0  ;;  %322 = vst [vmem:[#allocation3 + $0xc0] sm:$0xff] %v6926_v0 }
  0x41   : > { %323 = vst [vmem:[#allocation3 + $0xe0] sm:$0xff] %v6926_v0  ;;  %324 = vst [vmem:[#allocation3 + $0x100] sm:$0xff] %v6926_v0 }
  0x42   : > { %325 = vst [vmem:[#allocation3 + $0x120] sm:$0xff] %v6926_v0  ;;  %326 = vst [vmem:[#allocation3 + $0x140] sm:$0xff] %v6926_v0 }
  0x43   : > { %327 = vst [vmem:[#allocation3 + $0x160] sm:$0xff] %v6926_v0  ;;  %328 = vst [vmem:[#allocation3 + $0x180] sm:$0xff] %v6926_v0 }
  0x44   : > { %329 = vst [vmem:[#allocation3 + $0x1a0] sm:$0xff] %v6926_v0  ;;  %330 = vst [vmem:[#allocation3 + $0x1c0] sm:$0xff] %v6926_v0 }
  0x45   : > { %331 = vst [vmem:[#allocation3 + $0x1e0] sm:$0xff] %v6926_v0  ;;  %332 = vst [vmem:[#allocation3 + $0x200] sm:$0xff] %v6926_v0 }
  0x46   : > { %333 = vst [vmem:[#allocation3 + $0x38] sm:$0xff] %v6926_v0  ;;  %334 = vst [vmem:[#allocation3 + $0x58] sm:$0xff] %v6926_v0 }
  0x47   : > { %335 = vst [vmem:[#allocation3 + $0x78] sm:$0xff] %v6926_v0  ;;  %336 = vst [vmem:[#allocation3 + $0x98] sm:$0xff] %v6926_v0 }
  0x48   : > { %337 = vst [vmem:[#allocation3 + $0xb8] sm:$0xff] %v6926_v0  ;;  %338 = vst [vmem:[#allocation3 + $0xd8] sm:$0xff] %v6926_v0 }
  0x49   : > { %339 = vst [vmem:[#allocation3 + $0xf8] sm:$0xff] %v6926_v0  ;;  %340 = vst [vmem:[#allocation3 + $0x118] sm:$0xff] %v6926_v0 }
  0x4a   : > { %341 = vst [vmem:[#allocation3 + $0x138] sm:$0xff] %v6926_v0  ;;  %342 = vst [vmem:[#allocation3 + $0x158] sm:$0xff] %v6926_v0 }
  0x4b   : > { %343 = vst [vmem:[#allocation3 + $0x178] sm:$0xff] %v6926_v0  ;;  %344 = vst [vmem:[#allocation3 + $0x198] sm:$0xff] %v6926_v0 }
  0x4c   : > { %345 = vst [vmem:[#allocation3 + $0x1b8] sm:$0xff] %v6926_v0  ;;  %346 = vst [vmem:[#allocation3 + $0x1d8] sm:$0xff] %v6926_v0 }
  0x4d   : > { %347 = vst [vmem:[#allocation3 + $0x1f8] sm:$0xff] %v6926_v0  ;;  %348 = vst [vmem:[#allocation3 + $0x218] sm:$0xff] %v6926_v0 }
  0x4e   : > { %349 = vst [vmem:[#allocation4] sm:$0xff] %v6926_v0  ;;  %350 = vst [vmem:[#allocation4 + $0x8] sm:$0xff] %v6926_v0 }
  0x4f   : > { %351 = vst [vmem:[#allocation4 + $0x10] sm:$0xff] %v6926_v0  ;;  %352 = vst [vmem:[#allocation4 + $0x18] sm:$0xff] %v6926_v0 }
  0x50   : > { %354 = vst [vmem:[#allocation4 + $0x220] sm:$0xff] %v6926_v0  ;;  %355 = vst [vmem:[#allocation4 + $0x228] sm:$0xff] %v6926_v0 }
  0x51   : > { %356 = vst [vmem:[#allocation4 + $0x230] sm:$0xff] %v6926_v0  ;;  %357 = vst [vmem:[#allocation4 + $0x238] sm:$0xff] %v6926_v0 }
  0x52   : > { %359 = vst [vmem:[#allocation4 + $0x20] sm:$0xff] %v6926_v0  ;;  %360 = vst [vmem:[#allocation4 + $0x40] sm:$0xff] %v6926_v0 }
  0x53   : > { %361 = vst [vmem:[#allocation4 + $0x60] sm:$0xff] %v6926_v0  ;;  %362 = vst [vmem:[#allocation4 + $0x80] sm:$0xff] %v6926_v0 }
  0x54   : > { %363 = vst [vmem:[#allocation4 + $0xa0] sm:$0xff] %v6926_v0  ;;  %364 = vst [vmem:[#allocation4 + $0xc0] sm:$0xff] %v6926_v0 }
  0x55   : > { %365 = vst [vmem:[#allocation4 + $0xe0] sm:$0xff] %v6926_v0  ;;  %366 = vst [vmem:[#allocation4 + $0x100] sm:$0xff] %v6926_v0 }
  0x56   : > { %367 = vst [vmem:[#allocation4 + $0x120] sm:$0xff] %v6926_v0  ;;  %368 = vst [vmem:[#allocation4 + $0x140] sm:$0xff] %v6926_v0 }
  0x57   : > { %369 = vst [vmem:[#allocation4 + $0x160] sm:$0xff] %v6926_v0  ;;  %370 = vst [vmem:[#allocation4 + $0x180] sm:$0xff] %v6926_v0 }
  0x58   : > { %371 = vst [vmem:[#allocation4 + $0x1a0] sm:$0xff] %v6926_v0  ;;  %372 = vst [vmem:[#allocation4 + $0x1c0] sm:$0xff] %v6926_v0 }
  0x59   : > { %373 = vst [vmem:[#allocation4 + $0x1e0] sm:$0xff] %v6926_v0  ;;  %374 = vst [vmem:[#allocation4 + $0x200] sm:$0xff] %v6926_v0 }
  0x5a   : > { %375 = vst [vmem:[#allocation4 + $0x38] sm:$0xff] %v6926_v0  ;;  %376 = vst [vmem:[#allocation4 + $0x58] sm:$0xff] %v6926_v0 }
  0x5b   : > { %377 = vst [vmem:[#allocation4 + $0x78] sm:$0xff] %v6926_v0  ;;  %378 = vst [vmem:[#allocation4 + $0x98] sm:$0xff] %v6926_v0 }
  0x5c   : > { %379 = vst [vmem:[#allocation4 + $0xb8] sm:$0xff] %v6926_v0  ;;  %380 = vst [vmem:[#allocation4 + $0xd8] sm:$0xff] %v6926_v0 }
  0x5d   : > { %381 = vst [vmem:[#allocation4 + $0xf8] sm:$0xff] %v6926_v0  ;;  %382 = vst [vmem:[#allocation4 + $0x118] sm:$0xff] %v6926_v0 }
  0x5e   : > { %383 = vst [vmem:[#allocation4 + $0x138] sm:$0xff] %v6926_v0  ;;  %384 = vst [vmem:[#allocation4 + $0x158] sm:$0xff] %v6926_v0 }
  0x5f   : > { %385 = vst [vmem:[#allocation4 + $0x178] sm:$0xff] %v6926_v0  ;;  %386 = vst [vmem:[#allocation4 + $0x198] sm:$0xff] %v6926_v0 }
  0x60   : > { %387 = vst [vmem:[#allocation4 + $0x1b8] sm:$0xff] %v6926_v0  ;;  %388 = vst [vmem:[#allocation4 + $0x1d8] sm:$0xff] %v6926_v0 }
  0x61   : > { %389 = vst [vmem:[#allocation4 + $0x1f8] sm:$0xff] %v6926_v0  ;;  %390 = vst [vmem:[#allocation4 + $0x218] sm:$0xff] %v6926_v0 }
  0x62   : > { %391 = vst [vmem:[#allocation5] sm:$0xff] %v6926_v0  ;;  %392 = vst [vmem:[#allocation5 + $0x8] sm:$0xff] %v6926_v0 }
  0x63   : > { %393 = vst [vmem:[#allocation5 + $0x10] sm:$0xff] %v6926_v0  ;;  %395 = vst [vmem:[#allocation5 + $0xd8] sm:$0xff] %v6926_v0 }
  0x64   : > { %396 = vst [vmem:[#allocation5 + $0xe0] sm:$0xff] %v6926_v0  ;;  %397 = vst [vmem:[#allocation5 + $0xe8] sm:$0xff] %v6926_v0 }
  0x65   : > { %399 = vst [vmem:[#allocation5 + $0x18] sm:$0xff] %v6926_v0  ;;  %400 = vst [vmem:[#allocation5 + $0x30] sm:$0xff] %v6926_v0 }
  0x66   : > { %401 = vst [vmem:[#allocation5 + $0x48] sm:$0xff] %v6926_v0  ;;  %402 = vst [vmem:[#allocation5 + $0x60] sm:$0xff] %v6926_v0 }
  0x67   : > { %403 = vst [vmem:[#allocation5 + $0x78] sm:$0xff] %v6926_v0  ;;  %404 = vst [vmem:[#allocation5 + $0x90] sm:$0xff] %v6926_v0 }
  0x68   : > { %405 = vst [vmem:[#allocation5 + $0xa8] sm:$0xff] %v6926_v0  ;;  %406 = vst [vmem:[#allocation5 + $0xc0] sm:$0xff] %v6926_v0 }
  0x69   : > { %407 = vst [vmem:[#allocation5 + $0x28] sm:$0xff] %v6926_v0  ;;  %408 = vst [vmem:[#allocation5 + $0x40] sm:$0xff] %v6926_v0 }
  0x6a   : > { %409 = vst [vmem:[#allocation5 + $0x58] sm:$0xff] %v6926_v0  ;;  %410 = vst [vmem:[#allocation5 + $0x70] sm:$0xff] %v6926_v0 }
  0x6b   : > { %411 = vst [vmem:[#allocation5 + $0x88] sm:$0xff] %v6926_v0  ;;  %412 = vst [vmem:[#allocation5 + $0xa0] sm:$0xff] %v6926_v0 }
  0x6c   : > { %413 = vst [vmem:[#allocation5 + $0xb8] sm:$0xff] %v6926_v0  ;;  %414 = vst [vmem:[#allocation5 + $0xd0] sm:$0xff] %v6926_v0 }
  0x6d   : > { %276 = vst.msk [vmem:[#allocation2 + $0x30] sm:$0xff] %vm274_vm0, %v242_v1  ;;  %275 = vst.msk [vmem:[#allocation2 + $0x28] sm:$0xff] %vm274_vm0, %v241_v2  ;;  %v259_v2 = vld [vmem:[%s7196_s29 + $0x90] sm:$0xff] }
  0x6e   : > { %277 = vst.msk [vmem:[#allocation2 + $0x48] sm:$0xff] %vm274_vm0, %v243_v3  ;;  %278 = vst.msk [vmem:[#allocation2 + $0x50] sm:$0xff] %vm274_vm0, %v244_v6  ;;  %v260_v3 = vld [vmem:[%s7196_s29 + $0x98] sm:$0xff] }
  0x6f   : > { %280 = vst.msk [vmem:[#allocation2 + $0x70] sm:$0xff] %vm274_vm0, %v246_v8  ;;  %279 = vst.msk [vmem:[#allocation2 + $0x68] sm:$0xff] %vm274_vm0, %v245_v9 }
  0x70   : > { %281 = vst.msk [vmem:[#allocation2 + $0x88] sm:$0xff] %vm274_vm0, %v247_v10  ;;  %282 = vst.msk [vmem:[#allocation2 + $0x90] sm:$0xff] %vm274_vm0, %v248_v11 }
  0x71   : > { %284 = vst.msk [vmem:[#allocation2 + $0xb0] sm:$0xff] %vm274_vm0, %v250_v12  ;;  %283 = vst.msk [vmem:[#allocation2 + $0xa8] sm:$0xff] %vm274_vm0, %v249_v13 }
  0x72   : > { %285 = vst.msk [vmem:[#allocation2 + $0xc8] sm:$0xff] %vm274_vm0, %v251_v14  ;;  %286 = vst.msk [vmem:[#allocation2 + $0xd0] sm:$0xff] %vm274_vm0, %v252_v15 }
  0x73   : > { %288 = vst.msk [vmem:[#allocation2 + $0xf0] sm:$0xff] %vm274_vm0, %v254_v26  ;;  %287 = vst.msk [vmem:[#allocation2 + $0xe8] sm:$0xff] %vm274_vm0, %v253_v27 }
  0x74   : > { %v450_v16 = vld [vmem:[#allocation2 + $0x30] sm:$0xff]  ;;  %v449_v17 = vld [vmem:[#allocation2 + $0x28] sm:$0xff]  ;;  %289 = vst.msk [vmem:[#allocation2 + $0x108] sm:$0xff] %vm274_vm0, %v255_v40  ;;  %290 = vst.msk [vmem:[#allocation2 + $0x110] sm:$0xff] %vm274_vm0, %v256_v41 }
  0x75   : > { %485 = vrot.lane.b32.xlu1 %v450_v16, %s6927_s24  ;;  %483 = vrot.lane.b32.xlu0 %v449_v17, %s6927_s24  ;;  %v578_v18 = vld [vmem:[#allocation2 + $0x31] sm:$0xff]  ;;  %v577_v19 = vld [vmem:[#allocation2 + $0x29] sm:$0xff]  ;;  %292 = vst.msk [vmem:[#allocation2 + $0x130] sm:$0xff] %vm274_vm0, %v258_v50  ;;  %291 = vst.msk [vmem:[#allocation2 + $0x128] sm:$0xff] %vm274_vm0, %v257_v51 }
  0x76   : > { %v7227_v20 = vld [vmem:[#allocation2 + $0x2f] sm:$0xff]  ;;  %v7229_v21 = vld [vmem:[#allocation2 + $0x27] sm:$0xff]  ;;  %293 = vst.msk [vmem:[#allocation2 + $0x148] sm:$0xff] %vm274_vm0, %v259_v2  ;;  %294 = vst.msk [vmem:[#allocation2 + $0x150] sm:$0xff] %vm274_vm0, %v260_v3 }
  0x77   : > { %v7235_v22 = vld [vmem:[#allocation2 + $0x4f] sm:$0xff]  ;;  %v7237_v23 = vld [vmem:[#allocation2 + $0x47] sm:$0xff] }
  0x78   : > { %v834_v24 = vld [vmem:[#allocation2 + $0x50] sm:$0xff]  ;;  %v833_v25 = vld [vmem:[#allocation2 + $0x48] sm:$0xff] }
  0x79   : > { %613 = vrot.lane.b32.xlu1 %v578_v18, %s6928_s30  ;;  %611 = vrot.lane.b32.xlu0 %v577_v19, %s6928_s30  ;;  %v454_v28 = vld [vmem:[#allocation2 + $0x70] sm:$0xff]  ;;  %v453_v29 = vld [vmem:[#allocation2 + $0x68] sm:$0xff] }
  0x7a   : > { %v962_v30 = vld [vmem:[#allocation2 + $0x51] sm:$0xff]  ;;  %v961_v31 = vld [vmem:[#allocation2 + $0x49] sm:$0xff] }
  0x7b   : > { %v7264_v33 = vld [vmem:[#allocation2 + $0x71] sm:$0xff]  ;;  %v581_v34 = vld [vmem:[#allocation2 + $0x69] sm:$0xff] }
  0x7c   : > { %v7273_v36 = vld [vmem:[#allocation2 + $0x6f] sm:$0xff]  ;;  %v7278_v37 = vld [vmem:[#allocation2 + $0x67] sm:$0xff] }
  0x7d   : > { %737 = vrot.lane.b32.xlu1 %v7227_v20, %s6929_s4  ;;  %735 = vrot.lane.b32.xlu0 %v7229_v21, %s6929_s4  ;;  %v7303_v43 = vld [vmem:[#allocation2 + $0x8f] sm:$0xff]  ;;  %v7305_v44 = vld [vmem:[#allocation2 + $0x87] sm:$0xff] }
  0x7e   : > { %v838_v48 = vld [vmem:[#allocation2 + $0x90] sm:$0xff]  ;;  %v837_v49 = vld [vmem:[#allocation2 + $0x88] sm:$0xff] }
  0x7f   : > { %v458_v52 = vld [vmem:[#allocation2 + $0xb0] sm:$0xff]  ;;  %v457_v53 = vld [vmem:[#allocation2 + $0xa8] sm:$0xff] }
  0x80   : > { %v966_v54 = vld [vmem:[#allocation2 + $0x91] sm:$0xff]  ;;  %v965_v55 = vld [vmem:[#allocation2 + $0x89] sm:$0xff] }
  0x81   : > { %741 = vrot.lane.b32.xlu1 %v7235_v22, %s6929_s4  ;;  %739 = vrot.lane.b32.xlu0 %v7237_v23, %s6929_s4  ;;  %v586_v57 = vld [vmem:[#allocation2 + $0xb1] sm:$0xff]  ;;  %v585_v58 = vld [vmem:[#allocation2 + $0xa9] sm:$0xff] }
  0x82   : > { %v7356_v60 = vld [vmem:[#allocation2 + $0xaf] sm:$0xff]  ;;  %v7358_v61 = vld [vmem:[#allocation2 + $0xa7] sm:$0xff] }
  0x83   : > { %11609 = vst [vmem:[#allocation9_spill] sm:$0xff] %v7356_v60  ;;  %11610 = vst [vmem:[#allocation10_spill] sm:$0xff] %v7358_v61  ;;  %v7386_v6 = vld [vmem:[#allocation2 + $0xcf] sm:$0xff]  ;;  %v7388_v7 = vld [vmem:[#allocation2 + $0xc7] sm:$0xff] }
  0x84   : > { %11611 = vst [vmem:[#allocation11_spill] sm:$0xff] %v7386_v6  ;;  %11612 = vst [vmem:[#allocation12_spill] sm:$0xff] %v7388_v7  ;;  %v7452_v32 = vld [vmem:[#allocation2 + $0xf0] sm:$0xff] }
  0x85   : > { %865 = vrot.lane.b32.xlu1 %v450_v16, %s6930_s5  ;;  %863 = vrot.lane.b32.xlu0 %v449_v17, %s6930_s5  ;;  %v7416_v16 = vld [vmem:[#allocation2 + $0xd0] sm:$0xff]  ;;  %v7418_v17 = vld [vmem:[#allocation2 + $0xc8] sm:$0xff] }
  0x86   : > { %v7460_v38 = vld [vmem:[#allocation2 + $0xd1] sm:$0xff]  ;;  %v7462_v39 = vld [vmem:[#allocation2 + $0xc9] sm:$0xff] }
  0x87   : > { %v7488_v50 = vld [vmem:[#allocation2 + $0xf1] sm:$0xff]  ;;  %v7490_v51 = vld [vmem:[#allocation2 + $0xe9] sm:$0xff] }
  0x88   : > { %v7352_v59 = vpop.permute.xlu0 %6686 }
  0x89   : > { %869 = vrot.lane.b32.xlu1 %v834_v24, %s6930_s5  ;;  %867 = vrot.lane.b32.xlu0 %v833_v25, %s6930_s5 }
  0x8d   : > { %489 = vrot.lane.b32.xlu1 %v834_v24, %s6927_s24  ;;  %487 = vrot.lane.b32.xlu0 %v833_v25, %s6927_s24 }
  0x91   : > { %993 = vrot.lane.b32.xlu1 %v578_v18, %s6931_s6  ;;  %991 = vrot.lane.b32.xlu0 %v577_v19, %s6931_s6 }
  0x93   : > { %v7350_v56 = vpop.permute.xlu1 %6691 }
  0x95   : > { %493 = vrot.lane.b32.xlu1 %v454_v28, %s6927_s24  ;;  %491 = vrot.lane.b32.xlu0 %v453_v29, %s6927_s24 }
  0x99   : > { %997 = vrot.lane.b32.xlu1 %v962_v30, %s6931_s6  ;;  %995 = vrot.lane.b32.xlu0 %v961_v31, %s6931_s6 }
  0x9d   : > { %617 = vrot.lane.b32.xlu1 %v962_v30, %s6928_s30  ;;  %615 = vrot.lane.b32.xlu0 %v961_v31, %s6928_s30 }
  0xa1   : > { %1122 = vrot.lane.b32.xlu1 %v7235_v22, %s6932_s9  ;;  %1120 = vrot.lane.b32.xlu0 %v7237_v23, %s6932_s9 }
  0xa5   : > { %621 = vrot.lane.b32.xlu1 %v7264_v33, %s6928_s30  ;;  %619 = vrot.lane.b32.xlu0 %v581_v34, %s6928_s30 }
  0xa9   : > { %1126 = vrot.lane.b32.xlu1 %v7273_v36, %s6932_s9  ;;  %1124 = vrot.lane.b32.xlu0 %v7278_v37, %s6932_s9 }
  0xad   : > { %745 = vrot.lane.b32.xlu1 %v7273_v36, %s6929_s4  ;;  %743 = vrot.lane.b32.xlu0 %v7278_v37, %s6929_s4 }
  0xb1   : > { %1250 = vrot.lane.b32.xlu1 %v834_v24, %s6933_s28  ;;  %1248 = vrot.lane.b32.xlu0 %v833_v25, %s6933_s28 }
  0xb5   : > { %749 = vrot.lane.b32.xlu1 %v7303_v43, %s6929_s4  ;;  %747 = vrot.lane.b32.xlu0 %v7305_v44, %s6929_s4 }
  0xb9   : > { %1254 = vrot.lane.b32.xlu1 %v454_v28, %s6933_s28  ;;  %1252 = vrot.lane.b32.xlu0 %v453_v29, %s6933_s28 }
  0xbd   : > { %873 = vrot.lane.b32.xlu1 %v454_v28, %s6930_s5  ;;  %871 = vrot.lane.b32.xlu0 %v453_v29, %s6930_s5  ;;  %v262_v28 = vld [vmem:[%s7196_s29 + $0xa8] sm:$0xff]  ;;  %v261_v29 = vld [vmem:[%s7196_s29 + $0xa0] sm:$0xff] }
  0xbe   : > { %296 = vst.msk [vmem:[#allocation2 + $0x170] sm:$0xff] %vm274_vm0, %v262_v28  ;;  %295 = vst.msk [vmem:[#allocation2 + $0x168] sm:$0xff] %vm274_vm0, %v261_v29 }
  0xc1   : > { %1378 = vrot.lane.b32.xlu1 %v962_v30, %s6934_s20  ;;  %1376 = vrot.lane.b32.xlu0 %v961_v31, %s6934_s20 }
  0xc5   : > { %877 = vrot.lane.b32.xlu1 %v838_v48, %s6930_s5  ;;  %875 = vrot.lane.b32.xlu0 %v837_v49, %s6930_s5 }
  0xc9   : > { %1382 = vrot.lane.b32.xlu1 %v7264_v33, %s6934_s20  ;;  %1380 = vrot.lane.b32.xlu0 %v581_v34, %s6934_s20 }
  0xcd   : > { %497 = vrot.lane.b32.xlu1 %v838_v48, %s6927_s24  ;;  %495 = vrot.lane.b32.xlu0 %v837_v49, %s6927_s24 }
  0xd1   : > { %1001 = vrot.lane.b32.xlu1 %v7264_v33, %s6931_s6  ;;  %999 = vrot.lane.b32.xlu0 %v581_v34, %s6931_s6  ;;  %v7454_v33 = vld [vmem:[#allocation2 + $0xe8] sm:$0xff] }
  0xd5   : > { %501 = vrot.lane.b32.xlu1 %v458_v52, %s6927_s24  ;;  %499 = vrot.lane.b32.xlu0 %v457_v53, %s6927_s24 }
  0xd9   : > { %1005 = vrot.lane.b32.xlu1 %v966_v54, %s6931_s6  ;;  %1003 = vrot.lane.b32.xlu0 %v965_v55, %s6931_s6 }
  0xdd   : > { %625 = vrot.lane.b32.xlu1 %v966_v54, %s6928_s30  ;;  %623 = vrot.lane.b32.xlu0 %v965_v55, %s6928_s30 }
  0xe1   : > { %1130 = vrot.lane.b32.xlu1 %v7303_v43, %s6932_s9  ;;  %1128 = vrot.lane.b32.xlu0 %v7305_v44, %s6932_s9 }
  0xe5   : > { %629 = vrot.lane.b32.xlu1 %v586_v57, %s6928_s30  ;;  %627 = vrot.lane.b32.xlu0 %v585_v58, %s6928_s30 }
  0xe7   : > { %v7360_v62 = vpop.permute.xlu1 %485  ;;  %v7362_v63 = vpop.permute.xlu0 %483 }
  0xe9   : > { %1134 = vrot.lane.b32.xlu1 %v7356_v60, %s6932_s9  ;;  %1132 = vrot.lane.b32.xlu0 %v7358_v61, %s6932_s9 }
  0xeb   : > { %v7368_v0 = vpop.permute.xlu1 %613  ;;  %v7370_v1 = vpop.permute.xlu0 %611 }
  0xed   : > { %753 = vrot.lane.b32.xlu1 %v7356_v60, %s6929_s4  ;;  %751 = vrot.lane.b32.xlu0 %v7358_v61, %s6929_s4  ;;  %v263_v60 = vld [vmem:[%s7196_s29 + $0xb0] sm:$0xff] }
  0xee   : > { %297 = vst.msk [vmem:[#allocation2 + $0x188] sm:$0xff] %vm274_vm0, %v263_v60 }
  0xef   : > { %v7380_v4 = vpop.permute.xlu1 %737  ;;  %v7382_v5 = vpop.permute.xlu0 %735 }
  0xf1   : > { %1258 = vrot.lane.b32.xlu1 %v838_v48, %s6933_s28  ;;  %1256 = vrot.lane.b32.xlu0 %v837_v49, %s6933_s28  ;;  %v415_v48 = vld [vmem:[#allocation2 + $0x7] sm:$0xff]  ;;  %v416_v49 = vld [vmem:[#allocation2 + $0xf] sm:$0xff] }
  0xf3   : > { %v7390_v8 = vpop.permute.xlu1 %741  ;;  %v7392_v9 = vpop.permute.xlu0 %739 }
  0xf5   : > { %757 = vrot.lane.b32.xlu1 %v7386_v6, %s6929_s4  ;;  %755 = vrot.lane.b32.xlu0 %v7388_v7, %s6929_s4 }
  0xf7   : > { %v7398_v10 = vpop.permute.xlu1 %865  ;;  %v7400_v11 = vpop.permute.xlu0 %863 }
  0xf9   : > { %1262 = vrot.lane.b32.xlu1 %v458_v52, %s6933_s28  ;;  %1260 = vrot.lane.b32.xlu0 %v457_v53, %s6933_s28 }
  0xfb   : > { %v7404_v12 = vpop.permute.xlu1 %869  ;;  %v7406_v13 = vpop.permute.xlu0 %867 }
  0xfd   : > { %881 = vrot.lane.b32.xlu1 %v458_v52, %s6930_s5  ;;  %879 = vrot.lane.b32.xlu0 %v457_v53, %s6930_s5 }
  0xff   : > { %v7410_v14 = vpop.permute.xlu1 %489  ;;  %v7412_v15 = vpop.permute.xlu0 %487 }
 0x101   : > { %1386 = vrot.lane.b32.xlu1 %v966_v54, %s6934_s20  ;;  %1384 = vrot.lane.b32.xlu0 %v965_v55, %s6934_s20  ;;  %v6832_v54 = vadd.low.f32.bf16 %v415_v48, %v7352_v59  ;;  %v6833_v55 = vadd.high.f32.bf16 %v416_v49, %v7352_v59 }
 0x103   : > { %v7420_v18 = vpop.permute.xlu1 %993  ;;  %v7422_v19 = vpop.permute.xlu0 %991  ;;  %v6834_v28 = vadd.high.f32.bf16 %v6833_v55, %v7350_v56  ;;  %v6835_v59 = vadd.low.f32.bf16 %v6832_v54, %v7350_v56  ;;  %v264_v55 = vld [vmem:[%s7196_s29 + $0xb8] sm:$0xff]  ;;  %v546_v56 = vadd.f32 %v7227_v20, %v7360_v62 }
 0x104   : > { %298 = vst.msk [vmem:[#allocation2 + $0x190] sm:$0xff] %vm274_vm0, %v264_v55 }
 0x105   : > { %885 = vrot.lane.b32.xlu1 %v7416_v16, %s6930_s5  ;;  %883 = vrot.lane.b32.xlu0 %v7418_v17, %s6930_s5  ;;  %v800_v29 = vadd.f32 %v6834_v28, %v7380_v4  ;;  %v799_v48 = vadd.f32 %v6835_v59, %v7382_v5  ;;  %v545_v4 = vadd.f32 %v7229_v21, %v7362_v63  ;;  %v7542_v63 = vld [vmem:[#allocation2 + $0x10f] sm:$0xff] }
 0x106   : > { %v674_v28 = vadd.f32 %v7368_v0, %v546_v56 }
 0x107   : > { %v7428_v24 = vpop.permute.xlu1 %493  ;;  %v7430_v25 = vpop.permute.xlu0 %491  ;;  %v927_v61 = vadd.f32 %v7400_v11, %v799_v48  ;;  %v673_v60 = vadd.f32 %v7370_v1, %v545_v4 }
 0x108   : > { %v802_v20 = vadd.f32 %v7390_v8, %v674_v28  ;;  %v266_v28 = vld [vmem:[%s7196_s29 + $0xc8] sm:$0xff] }
 0x109   : > { %1390 = vrot.lane.b32.xlu1 %v586_v57, %s6934_s20  ;;  %1388 = vrot.lane.b32.xlu0 %v585_v58, %s6934_s20  ;;  %v801_v21 = vadd.f32 %v7392_v9, %v673_v60  ;;  %v265_v60 = vld [vmem:[%s7196_s29 + $0xc0] sm:$0xff]  ;;  %300 = vst.msk [vmem:[#allocation2 + $0x1b0] sm:$0xff] %vm274_vm0, %v266_v28 }
 0x10a   : > { %299 = vst.msk [vmem:[#allocation2 + $0x1a8] sm:$0xff] %vm274_vm0, %v265_v60 }
 0x10b   : > { %v7434_v26 = vpop.permute.xlu1 %997  ;;  %v7436_v27 = vpop.permute.xlu0 %995 }
 0x10d   : > { %505 = vrot.lane.b32.xlu1 %v7416_v16, %s6927_s24  ;;  %503 = vrot.lane.b32.xlu0 %v7418_v17, %s6927_s24 }
 0x10f   : > { %v7446_v30 = vpop.permute.xlu1 %617  ;;  %v7448_v31 = vpop.permute.xlu0 %615 }
 0x111   : > { %1009 = vrot.lane.b32.xlu1 %v586_v57, %s6931_s6  ;;  %1007 = vrot.lane.b32.xlu0 %v585_v58, %s6931_s6  ;;  %v7498_v57 = vld [vmem:[#allocation2 + $0xef] sm:$0xff]  ;;  %v7500_v58 = vld [vmem:[#allocation2 + $0xe7] sm:$0xff] }
 0x113   : > { %v1123_v34 = vpop.permute.xlu1 %1122  ;;  %v1121_v35 = vpop.permute.xlu0 %1120 }
 0x115   : > { %509 = vrot.lane.b32.xlu1 %v7452_v32, %s6927_s24  ;;  %507 = vrot.lane.b32.xlu0 %v7454_v33, %s6927_s24 }
 0x117   : > { %v7464_v40 = vpop.permute.xlu1 %621  ;;  %v7466_v41 = vpop.permute.xlu0 %619 }
 0x119   : > { %1013 = vrot.lane.b32.xlu1 %v7460_v38, %s6931_s6  ;;  %1011 = vrot.lane.b32.xlu0 %v7462_v39, %s6931_s6 }
 0x11b   : > { %v7472_v42 = vpop.permute.xlu1 %1126  ;;  %v7474_v45 = vpop.permute.xlu0 %1124 }
 0x11d   : > { %633 = vrot.lane.b32.xlu1 %v7460_v38, %s6928_s30  ;;  %631 = vrot.lane.b32.xlu0 %v7462_v39, %s6928_s30 }
 0x11f   : > { %v7480_v46 = vpop.permute.xlu1 %745  ;;  %v7482_v47 = vpop.permute.xlu0 %743 }
 0x121   : > { %1138 = vrot.lane.b32.xlu1 %v7386_v6, %s6932_s9  ;;  %1136 = vrot.lane.b32.xlu0 %v7388_v7, %s6932_s9  ;;  %v928_v6 = vadd.f32 %v7398_v10, %v800_v29  ;;  %v1055_v10 = vadd.f32 %v7422_v19, %v927_v61  ;;  %v929_v19 = vadd.f32 %v7406_v13, %v801_v21  ;;  %v7618_v21 = vld [vmem:[#allocation2 + $0x128] sm:$0xff] }
 0x123   : > { %v1251_v52 = vpop.permute.xlu1 %1250  ;;  %v1249_v53 = vpop.permute.xlu0 %1248  ;;  %v1056_v5 = vadd.f32 %v7420_v18, %v928_v6  ;;  %v1184_v29 = vadd.f32 %v1121_v35, %v1055_v10  ;;  %v7544_v6 = vld [vmem:[#allocation2 + $0x107] sm:$0xff]  ;;  %v930_v18 = vadd.f32 %v7404_v12, %v802_v20  ;;  %v1057_v9 = vadd.f32 %v7436_v27, %v929_v19  ;;  %v7616_v20 = vld [vmem:[#allocation2 + $0x130] sm:$0xff] }
 0x124   : > { %11613 = vst [vmem:[#allocation13_spill] sm:$0xff] %v7544_v6 }
 0x125   : > { %637 = vrot.lane.b32.xlu1 %v7488_v50, %s6928_s30  ;;  %635 = vrot.lane.b32.xlu0 %v7490_v51, %s6928_s30  ;;  %v1185_v59 = vadd.f32 %v1123_v34, %v1056_v5  ;;  %v1312_v62 = vadd.f32 %v1249_v53, %v1184_v29  ;;  %v1058_v8 = vadd.f32 %v7434_v26, %v930_v18 }
 0x126   : > { %v1186_v13 = vadd.f32 %v7474_v45, %v1057_v9  ;;  %v7654_v9 = vld [vmem:[#allocation2 + $0x129] sm:$0xff] }
 0x127   : > { %v7502_v2 = vpop.permute.xlu1 %749  ;;  %v7504_v3 = vpop.permute.xlu0 %747  ;;  %v1313_v61 = vadd.f32 %v1251_v52, %v1185_v59  ;;  %v1187_v12 = vadd.f32 %v7472_v42, %v1058_v8  ;;  %v7652_v8 = vld [vmem:[#allocation2 + $0x131] sm:$0xff] }
 0x129   : > { %1142 = vrot.lane.b32.xlu1 %v7498_v57, %s6932_s9  ;;  %1140 = vrot.lane.b32.xlu0 %v7500_v58, %s6932_s9 }
 0x12b   : > { %v1255_v49 = vpop.permute.xlu1 %1254  ;;  %v1253_v7 = vpop.permute.xlu0 %1252 }
 0x12c   : > { %v1315_v53 = vadd.f32 %v1255_v49, %v1187_v12  ;;  %v1314_v26 = vadd.f32 %v1253_v7, %v1186_v13  ;;  %v7576_v7 = vld [vmem:[#allocation2 + $0x110] sm:$0xff]  ;;  %v548_v13 = vadd.f32 %v7235_v22, %v7410_v14 }
 0x12d   : > { %761 = vrot.lane.b32.xlu1 %v7498_v57, %s6929_s4  ;;  %759 = vrot.lane.b32.xlu0 %v7500_v58, %s6929_s4 }
 0x12f   : > { %v7530_v11 = vpop.permute.xlu1 %873  ;;  %v7532_v54 = vpop.permute.xlu0 %871 }
 0x131   : > { %1266 = vrot.lane.b32.xlu1 %v7416_v16, %s6933_s28  ;;  %1264 = vrot.lane.b32.xlu0 %v7418_v17, %s6933_s28 }
 0x133   : > { %v1379_v0 = vpop.permute.xlu1 %1378  ;;  %v1377_v1 = vpop.permute.xlu0 %1376 }
 0x134   : > { %v1441_v16 = vadd.f32 %v1379_v0, %v1313_v61  ;;  %v1440_v34 = vadd.f32 %v1377_v1, %v1312_v62  ;;  %v7624_v0 = vld [vmem:[#allocation2 + $0x111] sm:$0xff]  ;;  %v7626_v1 = vld [vmem:[#allocation2 + $0x109] sm:$0xff] }
 0x135   : > { %765 = vrot.lane.b32.xlu1 %v7542_v63, %s6929_s4  ;;  %763 = vrot.lane.b32.xlu0 %v7544_v6, %s6929_s4 }
 0x136   : > { %v1472_v17 = vpack.c.bf16 %v1441_v16, %v1440_v34 }
 0x137   : > { %v7554_v35 = vpop.permute.xlu1 %877  ;;  %v7556_v52 = vpop.permute.xlu0 %875 }
 0x138   : > { %6334 = vmatprep.mubr.bf16.mxu0 %v1472_v17 }
 0x139   : > { %1270 = vrot.lane.b32.xlu1 %v7452_v32, %s6933_s28  ;;  %1268 = vrot.lane.b32.xlu0 %v7454_v33, %s6933_s28 }
 0x13b   : > { %v1383_v48 = vpop.permute.xlu1 %1382  ;;  %v1381_v27 = vpop.permute.xlu0 %1380 }
 0x13c   : > { %v1443_v55 = vadd.f32 %v1383_v48, %v1315_v53  ;;  %v1442_v56 = vadd.f32 %v1381_v27, %v1314_v26  ;;  %v547_v53 = vadd.f32 %v7237_v23, %v7412_v15  ;;  %v7664_v26 = vld [vmem:[#allocation2 + $0x12f] sm:$0xff]  ;;  %v7666_v48 = vld [vmem:[#allocation2 + $0x127] sm:$0xff] }
 0x13d   : > { %889 = vrot.lane.b32.xlu1 %v7452_v32, %s6930_s5  ;;  %887 = vrot.lane.b32.xlu0 %v7454_v33, %s6930_s5  ;;  %v7578_v32 = vld [vmem:[#allocation2 + $0x108] sm:$0xff] }
 0x13e   : > { %v1473_v42 = vpack.c.bf16 %v1443_v55, %v1442_v56  ;;  %v676_v56 = vadd.f32 %v7446_v30, %v548_v13  ;;  %v268_v30 = vld [vmem:[%s7196_s29 + $0xd8] sm:$0xff] }
 0x13f   : > { %v7568_v45 = vpop.permute.xlu1 %497  ;;  %v7570_v4 = vpop.permute.xlu0 %495  ;;  %302 = vst.msk [vmem:[#allocation2 + $0x1d0] sm:$0xff] %vm274_vm0, %v268_v30 }
 0x140   : > { %6335 = vmatmul.mubr.bf16.vlgmr.msra.gmra.mrb[0].mxu0 %v1473_v42  ;;  %v675_v42 = vadd.f32 %v7448_v31, %v547_v53  ;;  %v804_v22 = vadd.f32 %v7480_v46, %v676_v56  ;;  %v550_v31 = vadd.f32 %v7273_v36, %v7428_v24  ;;  %v549_v46 = vadd.f32 %v7278_v37, %v7430_v25 }
 0x141   : > { %1394 = vrot.lane.b32.xlu1 %v7460_v38, %s6934_s20  ;;  %1392 = vrot.lane.b32.xlu0 %v7462_v39, %s6934_s20 }
 0x142   : > { %v803_v23 = vadd.f32 %v7482_v47, %v675_v42  ;;  %v932_v28 = vadd.f32 %v7530_v11, %v804_v22  ;;  %v678_v53 = vadd.f32 %v7464_v40, %v550_v31 }
 0x143   : > { %v7580_v49 = vpop.permute.xlu1 %1001  ;;  %v7582_v33 = vpop.permute.xlu0 %999 }
 0x144   : > { %v931_v60 = vadd.f32 %v7532_v54, %v803_v23  ;;  %v1060_v47 = vadd.f32 %v7580_v49, %v932_v28  ;;  %v806_v36 = vadd.f32 %v7502_v2, %v678_v53  ;;  %v7708_v49 = vld [vmem:[#allocation2 + $0x14f] sm:$0xff]  ;;  %v269_v53 = vld [vmem:[%s7196_s29 + $0xe0] sm:$0xff] }
 0x145   : > { %893 = vrot.lane.b32.xlu1 %v7576_v7, %s6930_s5  ;;  %891 = vrot.lane.b32.xlu0 %v7578_v32, %s6930_s5  ;;  %303 = vst.msk [vmem:[#allocation2 + $0x1e8] sm:$0xff] %vm274_vm0, %v269_v53  ;;  %v11615_v53 = vld [vmem:[#allocation9_spill] sm:$0xff] }
 0x146   : > { %v1059_v11 = vadd.f32 %v7582_v33, %v931_v60  ;;  %v7710_v33 = vld [vmem:[#allocation2 + $0x147] sm:$0xff] }
 0x147   : > { %v7588_v5 = vpop.permute.xlu1 %501  ;;  %v7590_v38 = vpop.permute.xlu0 %499 }
 0x149   : > { %1398 = vrot.lane.b32.xlu1 %v7488_v50, %s6934_s20  ;;  %1396 = vrot.lane.b32.xlu0 %v7490_v51, %s6934_s20 }
 0x14b   : > { %v7596_v39 = vpop.permute.xlu1 %1005  ;;  %v7598_v10 = vpop.permute.xlu0 %1003 }
 0x14d   : > { %513 = vrot.lane.b32.xlu1 %v7576_v7, %s6927_s24  ;;  %511 = vrot.lane.b32.xlu0 %v7578_v32, %s6927_s24 }
 0x14f   : > { %v7608_v59 = vpop.permute.xlu1 %625  ;;  %v7610_v29 = vpop.permute.xlu0 %623 }
 0x151   : > { %1017 = vrot.lane.b32.xlu1 %v7488_v50, %s6931_s6  ;;  %1015 = vrot.lane.b32.xlu0 %v7490_v51, %s6931_s6 }
 0x153   : > { %v1131_v61 = vpop.permute.xlu1 %1130  ;;  %v1129_v62 = vpop.permute.xlu0 %1128 }
 0x154   : > { %v1189_v56 = vadd.f32 %v1131_v61, %v1060_v47  ;;  %v1188_v42 = vadd.f32 %v1129_v62, %v1059_v11  ;;  %v934_v61 = vadd.f32 %v7554_v35, %v806_v36  ;;  %v270_v11 = vld [vmem:[%s7196_s29 + $0xe8] sm:$0xff] }
 0x155   : > { %517 = vrot.lane.b32.xlu1 %v7616_v20, %s6927_s24  ;;  %515 = vrot.lane.b32.xlu0 %v7618_v21, %s6927_s24  ;;  %304 = vst.msk [vmem:[#allocation2 + $0x1f0] sm:$0xff] %vm274_vm0, %v270_v11  ;;  %v7784_v36 = vld [vmem:[#allocation2 + $0x168] sm:$0xff] }
 0x156   : > { %v1062_v2 = vadd.f32 %v7596_v39, %v934_v61 }
 0x157   : > { %v7628_v50 = vpop.permute.xlu1 %629  ;;  %v7630_v18 = vpop.permute.xlu0 %627 }
 0x159   : > { %1021 = vrot.lane.b32.xlu1 %v7624_v0, %s6931_s6  ;;  %1019 = vrot.lane.b32.xlu0 %v7626_v1, %s6931_s6 }
 0x15b   : > { %v7636_v51 = vpop.permute.xlu1 %1134  ;;  %v7638_v19 = vpop.permute.xlu0 %1132 }
 0x15c   : > { %v1191_v35 = vadd.f32 %v7636_v51, %v1062_v2  ;;  %v7820_v2 = vld [vmem:[#allocation2 + $0x169] sm:$0xff] }
 0x15d   : > { %641 = vrot.lane.b32.xlu1 %v7624_v0, %s6928_s30  ;;  %639 = vrot.lane.b32.xlu0 %v7626_v1, %s6928_s30 }
 0x15f   : > { %v7644_v16 = vpop.permute.xlu1 %753  ;;  %v7646_v34 = vpop.permute.xlu0 %751 }
 0x161   : > { %1146 = vrot.lane.b32.xlu1 %v7542_v63, %s6932_s9  ;;  %1144 = vrot.lane.b32.xlu0 %v7544_v6, %s6932_s9  ;;  %v267_v6 = vld [vmem:[%s7196_s29 + $0xd0] sm:$0xff] }
 0x162   : > { %301 = vst.msk [vmem:[#allocation2 + $0x1c8] sm:$0xff] %vm274_vm0, %v267_v6  ;;  %v677_v6 = vadd.f32 %v7466_v41, %v549_v46 }
 0x163   : > { %v1259_v17 = vpop.permute.xlu1 %1258  ;;  %v1257_v12 = vpop.permute.xlu0 %1256 }
 0x164   : > { %v805_v37 = vadd.f32 %v7504_v3, %v677_v6  ;;  %v1317_v24 = vadd.f32 %v1259_v17, %v1189_v56  ;;  %v1316_v25 = vadd.f32 %v1257_v12, %v1188_v42  ;;  %v7782_v42 = vld [vmem:[#allocation2 + $0x170] sm:$0xff] }
 0x165   : > { %645 = vrot.lane.b32.xlu1 %v7652_v8, %s6928_s30  ;;  %643 = vrot.lane.b32.xlu0 %v7654_v9, %s6928_s30 }
 0x166   : > { %v933_v62 = vadd.f32 %v7556_v52, %v805_v37 }
 0x167   : > { %v7668_v27 = vpop.permute.xlu1 %757  ;;  %v7670_v55 = vpop.permute.xlu0 %755 }
 0x168   : > { %v1061_v3 = vadd.f32 %v7598_v10, %v933_v62 }
 0x169   : > { %1150 = vrot.lane.b32.xlu1 %v7664_v26, %s6932_s9  ;;  %1148 = vrot.lane.b32.xlu0 %v7666_v48, %s6932_s9 }
 0x16a   : > { %v1190_v52 = vadd.f32 %v7638_v19, %v1061_v3 }
 0x16b   : > { %v1263_v14 = vpop.permute.xlu1 %1262  ;;  %v1261_v15 = vpop.permute.xlu0 %1260 }
 0x16c   : > { %v1319_v23 = vadd.f32 %v1263_v14, %v1191_v35  ;;  %v1318_v39 = vadd.f32 %v1261_v15, %v1190_v52  ;;  %v7742_v14 = vld [vmem:[#allocation2 + $0x150] sm:$0xff]  ;;  %v552_v35 = vadd.f32 %v7303_v43, %v7568_v45  ;;  %v551_v52 = vadd.f32 %v7305_v44, %v7570_v4 }
 0x16d   : > { %769 = vrot.lane.b32.xlu1 %v7664_v26, %s6929_s4  ;;  %767 = vrot.lane.b32.xlu0 %v7666_v48, %s6929_s4 }
 0x16f   : > { %v7696_v54 = vpop.permute.xlu1 %881  ;;  %v7698_v13 = vpop.permute.xlu0 %879 }
 0x171   : > { %1274 = vrot.lane.b32.xlu1 %v7576_v7, %s6933_s28  ;;  %1272 = vrot.lane.b32.xlu0 %v7578_v32, %s6933_s28 }
 0x173   : > { %v1387_v40 = vpop.permute.xlu1 %1386  ;;  %v1385_v41 = vpop.permute.xlu0 %1384 }
 0x174   : > { %v1445_v7 = vadd.f32 %v1387_v40, %v1317_v24  ;;  %v1444_v22 = vadd.f32 %v1385_v41, %v1316_v25  ;;  %v7790_v25 = vld [vmem:[#allocation2 + $0x151] sm:$0xff]  ;;  %v7792_v40 = vld [vmem:[#allocation2 + $0x149] sm:$0xff] }
 0x175   : > { %773 = vrot.lane.b32.xlu1 %v7708_v49, %s6929_s4  ;;  %771 = vrot.lane.b32.xlu0 %v7710_v33, %s6929_s4 }
 0x176   : > { %v1474_v32 = vpack.c.bf16 %v1445_v7, %v1444_v22  ;;  %v7818_v22 = vld [vmem:[#allocation2 + $0x171] sm:$0xff] }
 0x177   : > { %v7720_v17 = vpop.permute.xlu1 %885  ;;  %v7722_v12 = vpop.permute.xlu0 %883 }
 0x178   : > { %6338 = vmatprep.mubr.bf16.mxu0 %v1474_v32 }
 0x179   : > { %1278 = vrot.lane.b32.xlu1 %v7616_v20, %s6933_s28  ;;  %1276 = vrot.lane.b32.xlu0 %v7618_v21, %s6933_s28 }
 0x17b   : > { %v1391_v28 = vpop.permute.xlu1 %1390  ;;  %v1389_v10 = vpop.permute.xlu0 %1388 }
 0x17c   : > { %v1447_v60 = vadd.f32 %v1391_v28, %v1319_v23  ;;  %v1446_v30 = vadd.f32 %v1389_v10, %v1318_v39  ;;  %v7830_v23 = vld [vmem:[#allocation2 + $0x16f] sm:$0xff]  ;;  %v7832_v39 = vld [vmem:[#allocation2 + $0x167] sm:$0xff] }
 0x17d   : > { %897 = vrot.lane.b32.xlu1 %v7616_v20, %s6930_s5  ;;  %895 = vrot.lane.b32.xlu0 %v7618_v21, %s6930_s5  ;;  %v7744_v20 = vld [vmem:[#allocation2 + $0x148] sm:$0xff]  ;;  %11614 = vst [vmem:[#allocation14_spill] sm:$0xff] %v7832_v39 }
 0x17e   : > { %v1475_v51 = vpack.c.bf16 %v1447_v60, %v1446_v30  ;;  %v680_v60 = vadd.f32 %v7608_v59, %v552_v35  ;;  %v679_v30 = vadd.f32 %v7610_v29, %v551_v52  ;;  %v271_v59 = vld [vmem:[%s7196_s29 + $0xf0] sm:$0xff]  ;;  %v272_v29 = vld [vmem:[%s7196_s29 + $0xf8] sm:$0xff]  ;;  %v554_v35 = vadd.f32 %v11615_v53, %v7588_v5  ;;  %s6942_s29 = smov 80  }
 0x17f   : > { %v7734_v19 = vpop.permute.xlu1 %505  ;;  %v7736_v31 = vpop.permute.xlu0 %503  ;;  %305 = vst.msk [vmem:[#allocation2 + $0x208] sm:$0xff] %vm274_vm0, %v271_v59  ;;  %306 = vst.msk [vmem:[#allocation2 + $0x210] sm:$0xff] %vm274_vm0, %v272_v29  ;;  %v7876_v59 = vld [vmem:[#allocation2 + $0x187] sm:$0xff] }
 0x180   : > { %6339 = vmatmul.mubr.bf16.gmra.mrb[4].mxu0 %v1475_v51  ;;  %v808_v43 = vadd.f32 %v7644_v16, %v680_v60  ;;  %v807_v44 = vadd.f32 %v7646_v34, %v679_v30  ;;  %v11616_v16 = vld [vmem:[#allocation10_spill] sm:$0xff]  ;;  %v682_v30 = vadd.f32 %v7628_v50, %v554_v35 }
 0x181   : > { %1402 = vrot.lane.b32.xlu1 %v7624_v0, %s6934_s20  ;;  %1400 = vrot.lane.b32.xlu0 %v7626_v1, %s6934_s20  ;;  %v553_v34 = vadd.f32 %v11616_v16, %v7590_v38  ;;  %11618 = vst [vmem:[#allocation10_spill] sm:$0xff] %v7876_v59 }
 0x182   : > { %v936_v51 = vadd.f32 %v7696_v54, %v808_v43  ;;  %v935_v11 = vadd.f32 %v7698_v13, %v807_v44  ;;  %v810_v38 = vadd.f32 %v7668_v27, %v682_v30 }
 0x183   : > { %v7746_v15 = vpop.permute.xlu1 %1009  ;;  %v7748_v21 = vpop.permute.xlu0 %1007  ;;  %v681_v43 = vadd.f32 %v7630_v18, %v553_v34 }
 0x184   : > { %v1064_v52 = vadd.f32 %v7746_v15, %v936_v51  ;;  %v1063_v54 = vadd.f32 %v7748_v21, %v935_v11  ;;  %v7874_v11 = vld [vmem:[#allocation2 + $0x18f] sm:$0xff] }
 0x185   : > { %901 = vrot.lane.b32.xlu1 %v7742_v14, %s6930_s5  ;;  %899 = vrot.lane.b32.xlu0 %v7744_v20, %s6930_s5  ;;  %v809_v15 = vadd.f32 %v7670_v55, %v681_v43  ;;  %11617 = vst [vmem:[#allocation9_spill] sm:$0xff] %v7874_v11 }
 0x187   : > { %v7754_v0 = vpop.permute.xlu1 %509  ;;  %v7756_v46 = vpop.permute.xlu0 %507 }
 0x189   : > { %1406 = vrot.lane.b32.xlu1 %v7652_v8, %s6934_s20  ;;  %1404 = vrot.lane.b32.xlu0 %v7654_v9, %s6934_s20 }
 0x18b   : > { %v7762_v1 = vpop.permute.xlu1 %1013  ;;  %v7764_v47 = vpop.permute.xlu0 %1011 }
 0x18d   : > { %521 = vrot.lane.b32.xlu1 %v7742_v14, %s6927_s24  ;;  %519 = vrot.lane.b32.xlu0 %v7744_v20, %s6927_s24 }
 0x18f   : > { %v7774_v6 = vpop.permute.xlu1 %633  ;;  %v7776_v56 = vpop.permute.xlu0 %631 }
 0x191   : > { %1025 = vrot.lane.b32.xlu1 %v7652_v8, %s6931_s6  ;;  %1023 = vrot.lane.b32.xlu0 %v7654_v9, %s6931_s6 }
 0x193   : > { %v1139_v37 = vpop.permute.xlu1 %1138  ;;  %v1137_v24 = vpop.permute.xlu0 %1136 }
 0x194   : > { %v1193_v5 = vadd.f32 %v1139_v37, %v1064_v52  ;;  %v1192_v44 = vadd.f32 %v1137_v24, %v1063_v54  ;;  %v938_v37 = vadd.f32 %v7720_v17, %v810_v38  ;;  %v937_v24 = vadd.f32 %v7722_v12, %v809_v15  ;;  %v7942_v38 = vld [vmem:[#allocation2 + $0x1a8] sm:$0xff] }
 0x195   : > { %525 = vrot.lane.b32.xlu1 %v7782_v42, %s6927_s24  ;;  %523 = vrot.lane.b32.xlu0 %v7784_v36, %s6927_s24 }
 0x196   : > { %v1066_v27 = vadd.f32 %v7762_v1, %v938_v37  ;;  %v1065_v55 = vadd.f32 %v7764_v47, %v937_v24 }
 0x197   : > { %v7794_v8 = vpop.permute.xlu1 %637  ;;  %v7796_v41 = vpop.permute.xlu0 %635 }
 0x199   : > { %1029 = vrot.lane.b32.xlu1 %v7790_v25, %s6931_s6  ;;  %1027 = vrot.lane.b32.xlu0 %v7792_v40, %s6931_s6 }
 0x19b   : > { %v7802_v9 = vpop.permute.xlu1 %1142  ;;  %v7804_v61 = vpop.permute.xlu0 %1140 }
 0x19c   : > { %v1195_v17 = vadd.f32 %v7802_v9, %v1066_v27  ;;  %v1194_v12 = vadd.f32 %v7804_v61, %v1065_v55  ;;  %v7978_v27 = vld [vmem:[#allocation2 + $0x1a9] sm:$0xff] }
 0x19d   : > { %649 = vrot.lane.b32.xlu1 %v7790_v25, %s6928_s30  ;;  %647 = vrot.lane.b32.xlu0 %v7792_v40, %s6928_s30 }
 0x19f   : > { %v7810_v62 = vpop.permute.xlu1 %761  ;;  %v7812_v7 = vpop.permute.xlu0 %759 }
 0x1a1   : > { %1154 = vrot.lane.b32.xlu1 %v7708_v49, %s6932_s9  ;;  %1152 = vrot.lane.b32.xlu0 %v7710_v33, %s6932_s9 }
 0x1a3   : > { %v1267_v3 = vpop.permute.xlu1 %1266  ;;  %v1265_v32 = vpop.permute.xlu0 %1264 }
 0x1a4   : > { %v1321_v21 = vadd.f32 %v1267_v3, %v1193_v5  ;;  %v1320_v51 = vadd.f32 %v1265_v32, %v1192_v44  ;;  %v7940_v44 = vld [vmem:[#allocation2 + $0x1b0] sm:$0xff] }
 0x1a5   : > { %653 = vrot.lane.b32.xlu1 %v7818_v22, %s6928_s30  ;;  %651 = vrot.lane.b32.xlu0 %v7820_v2, %s6928_s30 }
 0x1a7   : > { %v7834_v28 = vpop.permute.xlu1 %765  ;;  %v7836_v10 = vpop.permute.xlu0 %763 }
 0x1a9   : > { %1158 = vrot.lane.b32.xlu1 %v7830_v23, %s6932_s9  ;;  %1156 = vrot.lane.b32.xlu0 %v7832_v39, %s6932_s9 }
 0x1ab   : > { %v1271_v45 = vpop.permute.xlu1 %1270  ;;  %v1269_v4 = vpop.permute.xlu0 %1268 }
 0x1ac   : > { %v1323_v53 = vadd.f32 %v1271_v45, %v1195_v17  ;;  %v1322_v1 = vadd.f32 %v1269_v4, %v1194_v12  ;;  %v7908_v45 = vld [vmem:[#allocation2 + $0x190] sm:$0xff]  ;;  %v7910_v4 = vld [vmem:[#allocation2 + $0x188] sm:$0xff] }
 0x1ad   : > { %777 = vrot.lane.b32.xlu1 %v7830_v23, %s6929_s4  ;;  %775 = vrot.lane.b32.xlu0 %v7832_v39, %s6929_s4  ;;  %v11619_v17 = vld [vmem:[#allocation11_spill] sm:$0xff] }
 0x1ae   : > { %v556_v12 = vadd.f32 %v11619_v17, %v7734_v19 }
 0x1af   : > { %v7862_v13 = vpop.permute.xlu1 %889  ;;  %v7864_v60 = vpop.permute.xlu0 %887 }
 0x1b1   : > { %1282 = vrot.lane.b32.xlu1 %v7742_v14, %s6933_s28  ;;  %1280 = vrot.lane.b32.xlu0 %v7744_v20, %s6933_s28 }
 0x1b3   : > { %v1395_v50 = vpop.permute.xlu1 %1394  ;;  %v1393_v18 = vpop.permute.xlu0 %1392 }
 0x1b4   : > { %v1449_v14 = vadd.f32 %v1395_v50, %v1321_v21  ;;  %v1448_v29 = vadd.f32 %v1393_v18, %v1320_v51  ;;  %v7948_v51 = vld [vmem:[#allocation2 + $0x191] sm:$0xff]  ;;  %v7950_v50 = vld [vmem:[#allocation2 + $0x189] sm:$0xff] }
 0x1b5   : > { %781 = vrot.lane.b32.xlu1 %v7874_v11, %s6929_s4  ;;  %779 = vrot.lane.b32.xlu0 %v7876_v59, %s6929_s4 }
 0x1b6   : > { %v1476_v20 = vpack.c.bf16 %v1449_v14, %v1448_v29  ;;  %v7976_v29 = vld [vmem:[#allocation2 + $0x1b1] sm:$0xff] }
 0x1b7   : > { %v7886_v3 = vpop.permute.xlu1 %893  ;;  %v7888_v32 = vpop.permute.xlu0 %891 }
 0x1b8   : > { %6342 = vmatprep.mubr.bf16.mxu0 %v1476_v20 }
 0x1b9   : > { %1286 = vrot.lane.b32.xlu1 %v7782_v42, %s6933_s28  ;;  %1284 = vrot.lane.b32.xlu0 %v7784_v36, %s6933_s28 }
 0x1bb   : > { %v1399_v35 = vpop.permute.xlu1 %1398  ;;  %v1397_v47 = vpop.permute.xlu0 %1396 }
 0x1bc   : > { %v1451_v16 = vadd.f32 %v1399_v35, %v1323_v53  ;;  %v1450_v34 = vadd.f32 %v1397_v47, %v1322_v1  ;;  %v11620_v53 = vld [vmem:[#allocation12_spill] sm:$0xff] }
 0x1bd   : > { %905 = vrot.lane.b32.xlu1 %v7782_v42, %s6930_s5  ;;  %903 = vrot.lane.b32.xlu0 %v7784_v36, %s6930_s5  ;;  %v555_v1 = vadd.f32 %v11620_v53, %v7736_v31  ;;  %v7988_v35 = vld [vmem:[#allocation2 + $0x1af] sm:$0xff]  ;;  %v7990_v47 = vld [vmem:[#allocation2 + $0x1a7] sm:$0xff] }
 0x1be   : > { %v1477_v9 = vpack.c.bf16 %v1451_v16, %v1450_v34  ;;  %11621 = vst [vmem:[#allocation11_spill] sm:$0xff] %v7988_v35  ;;  %11622 = vst [vmem:[#allocation12_spill] sm:$0xff] %v7990_v47 }
 0x1bf   : > { %v7900_v61 = vpop.permute.xlu1 %513  ;;  %v7902_v52 = vpop.permute.xlu0 %511 }
 0x1c0   : > { %6343 = vmatmul.mubr.bf16.gmra.mrb[8].mxu0 %v1477_v9  ;;  %v684_v9 = vadd.f32 %v7774_v6, %v556_v12  ;;  %v558_v6 = vadd.f32 %v7498_v57, %v7754_v0 }
 0x1c1   : > { %1410 = vrot.lane.b32.xlu1 %v7790_v25, %s6934_s20  ;;  %1408 = vrot.lane.b32.xlu0 %v7792_v40, %s6934_s20 }
 0x1c2   : > { %v812_v19 = vadd.f32 %v7810_v62, %v684_v9 }
 0x1c3   : > { %v1018_v42 = vpop.permute.xlu1 %1017  ;;  %v1016_v54 = vpop.permute.xlu0 %1015 }
 0x1c5   : > { %909 = vrot.lane.b32.xlu1 %v7908_v45, %s6930_s5  ;;  %907 = vrot.lane.b32.xlu0 %v7910_v4, %s6930_s5 }
 0x1c7   : > { %v7916_v36 = vpop.permute.xlu1 %517  ;;  %v7918_v30 = vpop.permute.xlu0 %515 }
 0x1c9   : > { %1414 = vrot.lane.b32.xlu1 %v7818_v22, %s6934_s20  ;;  %1412 = vrot.lane.b32.xlu0 %v7820_v2, %s6934_s20 }
 0x1cb   : > { %v7924_v25 = vpop.permute.xlu1 %1021  ;;  %v7926_v40 = vpop.permute.xlu0 %1019 }
 0x1cd   : > { %529 = vrot.lane.b32.xlu1 %v7908_v45, %s6927_s24  ;;  %527 = vrot.lane.b32.xlu0 %v7910_v4, %s6927_s24 }
 0x1cf   : > { %v7932_v43 = vpop.permute.xlu1 %641  ;;  %v7934_v5 = vpop.permute.xlu0 %639 }
 0x1d1   : > { %1033 = vrot.lane.b32.xlu1 %v7818_v22, %s6931_s6  ;;  %1031 = vrot.lane.b32.xlu0 %v7820_v2, %s6931_s6 }
 0x1d3   : > { %v1147_v15 = vpop.permute.xlu1 %1146  ;;  %v1145_v21 = vpop.permute.xlu0 %1144 }
 0x1d5   : > { %533 = vrot.lane.b32.xlu1 %v7940_v44, %s6927_s24  ;;  %531 = vrot.lane.b32.xlu0 %v7942_v38, %s6927_s24 }
 0x1d7   : > { %v7952_v22 = vpop.permute.xlu1 %645  ;;  %v7954_v18 = vpop.permute.xlu0 %643 }
 0x1d9   : > { %1037 = vrot.lane.b32.xlu1 %v7948_v51, %s6931_s6  ;;  %1035 = vrot.lane.b32.xlu0 %v7950_v50, %s6931_s6 }
 0x1db   : > { %v7960_v2 = vpop.permute.xlu1 %1150  ;;  %v7962_v37 = vpop.permute.xlu0 %1148 }
 0x1dd   : > { %657 = vrot.lane.b32.xlu1 %v7948_v51, %s6928_s30  ;;  %655 = vrot.lane.b32.xlu0 %v7950_v50, %s6928_s30 }
 0x1df   : > { %v7968_v24 = vpop.permute.xlu1 %769  ;;  %v7970_v14 = vpop.permute.xlu0 %767 }
 0x1e1   : > { %1162 = vrot.lane.b32.xlu1 %v7874_v11, %s6932_s9  ;;  %1160 = vrot.lane.b32.xlu0 %v7876_v59, %s6932_s9  ;;  %v683_v59 = vadd.f32 %v7776_v56, %v555_v1  ;;  %v940_v11 = vadd.f32 %v7862_v13, %v812_v19  ;;  %v557_v56 = vadd.f32 %v7500_v58, %v7756_v46 }
 0x1e2   : > { %v686_v13 = vadd.f32 %v7794_v8, %v558_v6 }
 0x1e3   : > { %v1275_v55 = vpop.permute.xlu1 %1274  ;;  %v1273_v20 = vpop.permute.xlu0 %1272  ;;  %v811_v31 = vadd.f32 %v7812_v7, %v683_v59  ;;  %v1068_v62 = vadd.f32 %v1018_v42, %v940_v11  ;;  %v8028_v11 = vld [vmem:[#allocation2 + $0x1c7] sm:$0xff] }
 0x1e4   : > { %v814_v57 = vadd.f32 %v7834_v28, %v686_v13  ;;  %11624 = vst [vmem:[#allocation16_spill] sm:$0xff] %v8028_v11 }
 0x1e5   : > { %661 = vrot.lane.b32.xlu1 %v7976_v29, %s6928_s30  ;;  %659 = vrot.lane.b32.xlu0 %v7978_v27, %s6928_s30  ;;  %v939_v39 = vadd.f32 %v7864_v60, %v811_v31  ;;  %v685_v60 = vadd.f32 %v7796_v41, %v557_v56  ;;  %v1197_v1 = vadd.f32 %v1147_v15, %v1068_v62 }
 0x1e6   : > { %v942_v42 = vadd.f32 %v7886_v3, %v814_v57  ;;  %v8103_v57 = vld [vmem:[#allocation2 + $0x1e8] sm:$0xff] }
 0x1e7   : > { %v7992_v16 = vpop.permute.xlu1 %773  ;;  %v7994_v34 = vpop.permute.xlu0 %771  ;;  %v1067_v7 = vadd.f32 %v1016_v54, %v939_v39  ;;  %v813_v58 = vadd.f32 %v7836_v10, %v685_v60  ;;  %v1325_v0 = vadd.f32 %v1275_v55, %v1197_v1  ;;  %v8026_v39 = vld [vmem:[#allocation2 + $0x1cf] sm:$0xff]  ;;  %v8099_v1 = vld [vmem:[%s11544_s2] ss:$0 sm:$0xff] }
 0x1e8   : > { %11623 = vst [vmem:[#allocation15_spill] sm:$0xff] %v8026_v39  ;;  %v1070_v28 = vadd.f32 %v7924_v25, %v942_v42  ;;  %v8115_v42 = vld [vmem:[#allocation2 + $0x1d1] sm:$0xff] }
 0x1e9   : > { %1166 = vrot.lane.b32.xlu1 %v7988_v35, %s6932_s9  ;;  %1164 = vrot.lane.b32.xlu0 %v7990_v47, %s6932_s9  ;;  %v1196_v9 = vadd.f32 %v1145_v21, %v1067_v7  ;;  %v941_v54 = vadd.f32 %v7888_v32, %v813_v58 }
 0x1ea   : > { %v1199_v3 = vadd.f32 %v7960_v2, %v1070_v28 }
 0x1eb   : > { %v1279_v17 = vpop.permute.xlu1 %1278  ;;  %v1277_v53 = vpop.permute.xlu0 %1276  ;;  %v1324_v46 = vadd.f32 %v1273_v20, %v1196_v9  ;;  %v1069_v10 = vadd.f32 %v7926_v40, %v941_v54  ;;  %v8101_v9 = vld [vmem:[#allocation2 + $0x1f0] sm:$0xff] }
 0x1ec   : > { %v1327_v20 = vadd.f32 %v1279_v17, %v1199_v3  ;;  %v8060_v17 = vld [vmem:[#allocation2 + $0x1d0] sm:$0xff] }
 0x1ed   : > { %785 = vrot.lane.b32.xlu1 %v7988_v35, %s6929_s4  ;;  %783 = vrot.lane.b32.xlu0 %v7990_v47, %s6929_s4  ;;  %v1198_v32 = vadd.f32 %v7962_v37, %v1069_v10  ;;  %v8117_v54 = vld [vmem:[#allocation2 + $0x1c9] sm:$0xff] }
 0x1ef   : > { %v8014_v59 = vpop.permute.xlu1 %897  ;;  %v8016_v12 = vpop.permute.xlu0 %895  ;;  %v1326_v25 = vadd.f32 %v1277_v53, %v1198_v32  ;;  %v8062_v53 = vld [vmem:[#allocation2 + $0x1c8] sm:$0xff] }
 0x1f1   : > { %1290 = vrot.lane.b32.xlu1 %v7908_v45, %s6933_s28  ;;  %1288 = vrot.lane.b32.xlu0 %v7910_v4, %s6933_s28 }
 0x1f3   : > { %v1403_v8 = vpop.permute.xlu1 %1402  ;;  %v1401_v41 = vpop.permute.xlu0 %1400 }
 0x1f4   : > { %v1453_v45 = vadd.f32 %v1403_v8, %v1325_v0  ;;  %v1452_v15 = vadd.f32 %v1401_v41, %v1324_v46 }
 0x1f5   : > { %789 = vrot.lane.b32.xlu1 %v8026_v39, %s6929_s4  ;;  %787 = vrot.lane.b32.xlu0 %v8028_v11, %s6929_s4 }
 0x1f6   : > { %v1478_v4 = vpack.c.bf16 %v1453_v45, %v1452_v15 }
 0x1f7   : > { %v8038_v21 = vpop.permute.xlu1 %901  ;;  %v8040_v55 = vpop.permute.xlu0 %899 }
 0x1f8   : > { %6346 = vmatprep.mubr.bf16.mxu0 %v1478_v4 }
 0x1f9   : > { %1294 = vrot.lane.b32.xlu1 %v7940_v44, %s6933_s28  ;;  %1292 = vrot.lane.b32.xlu0 %v7942_v38, %s6933_s28 }
 0x1fb   : > { %v1407_v19 = vpop.permute.xlu1 %1406  ;;  %v1405_v40 = vpop.permute.xlu0 %1404 }
 0x1fc   : > { %v1455_v31 = vadd.f32 %v1407_v19, %v1327_v20  ;;  %v1454_v6 = vadd.f32 %v1405_v40, %v1326_v25 }
 0x1fd   : > { %913 = vrot.lane.b32.xlu1 %v7940_v44, %s6930_s5  ;;  %911 = vrot.lane.b32.xlu0 %v7942_v38, %s6930_s5 }
 0x1fe   : > { %v1479_v2 = vpack.c.bf16 %v1455_v31, %v1454_v6 }
 0x1ff   : > { %v8052_v37 = vpop.permute.xlu1 %521  ;;  %v8054_v56 = vpop.permute.xlu0 %519 }
 0x200   : > { %6347 = vmatmul.mubr.bf16.gmra.mrb[12].mxu0 %v1479_v2  ;;  %v8157_v2 = vld [vmem:[#allocation2 + $0x1f1] sm:$0xff] }
 0x201   : > { %1418 = vrot.lane.b32.xlu1 %v7948_v51, %s6934_s20  ;;  %1416 = vrot.lane.b32.xlu0 %v7950_v50, %s6934_s20 }
 0x203   : > { %v8064_v44 = vpop.permute.xlu1 %1025  ;;  %v8066_v62 = vpop.permute.xlu0 %1023 }
 0x205   : > { %917 = vrot.lane.b32.xlu1 %v8060_v17, %s6930_s5  ;;  %915 = vrot.lane.b32.xlu0 %v8062_v53, %s6930_s5 }
 0x207   : > { %v8072_v38 = vpop.permute.xlu1 %525  ;;  %v8074_v51 = vpop.permute.xlu0 %523 }
 0x209   : > { %1422 = vrot.lane.b32.xlu1 %v7976_v29, %s6934_s20  ;;  %1420 = vrot.lane.b32.xlu0 %v7978_v27, %s6934_s20 }
 0x20b   : > { %v8080_v50 = vpop.permute.xlu1 %1029  ;;  %v8082_v7 = vpop.permute.xlu0 %1027 }
 0x20d   : > { %537 = vrot.lane.b32.xlu1 %v8060_v17, %s6927_s24  ;;  %535 = vrot.lane.b32.xlu0 %v8062_v53, %s6927_s24 }
 0x20f   : > { %v8088_v13 = vpop.permute.xlu1 %649  ;;  %v8090_v60 = vpop.permute.xlu0 %647 }
 0x211   : > { %1041 = vrot.lane.b32.xlu1 %v7976_v29, %s6931_s6  ;;  %1039 = vrot.lane.b32.xlu0 %v7978_v27, %s6931_s6 }
 0x213   : > { %v8105_v58 = vpop.permute.xlu1 %1154  ;;  %v8107_v0 = vpop.permute.xlu0 %1152 }
 0x214   : > { %v6336_v46 = vpop.f32.mrb[0].mxu0 }
 0x215   : > { %v1600_v8 = vadd.f32 %v6336_v46, %v8099_v1  ;;  %v1591_v29 = vpop.f32.mrb[1].mxu0  ;;  %541 = vrot.lane.b32.xlu1 %v8101_v9, %s6927_s24  ;;  %539 = vrot.lane.b32.xlu0 %v8103_v57, %s6927_s24  ;;  %v8159_v46 = vld [vmem:[#allocation2 + $0x1e9] sm:$0xff]  ;;  %s6935_s24 = smov 8  }
 0x216   : > { %v1592_v27 = vadd.f32 %v8099_v1, %v1591_v29  ;;  %v6337_v41 = vpop.f32.mrb[2].mxu0 }
 0x217   : > { %v8119_v45 = vmax.f32 %v1600_v8, 0.0  ;;  %v1603_v15 = vadd.f32 %v6337_v41, %v8099_v1  ;;  %v1594_v28 = vpop.f32.mrb[3].mxu0  ;;  %v8122_v10 = vpop.permute.xlu1 %653  ;;  %v8167_v41 = vld [vmem:[#allocation2 + $0x1ef] sm:$0xff] }
 0x218   : > { %v8124_v4 = vmax.f32 %v1592_v27, 0.0  ;;  %v1595_v3 = vadd.f32 %v8099_v1, %v1594_v28  ;;  %v8127_v32 = vpop.permute.xlu0 %651  ;;  %v560_v27 = vadd.f32 %v7542_v63, %v7900_v61  ;;  %v11626_v28 = vld [vmem:[#allocation13_spill] sm:$0xff] }
 0x219   : > { %1752 = vst [vmem:[#allocation3 + $0x48] sm:$0xff] %v8119_v45  ;;  %v8130_v20 = vmax.f32 %v1603_v15, 0.0  ;;  %1045 = vrot.lane.b32.xlu1 %v8115_v42, %s6931_s6  ;;  %1043 = vrot.lane.b32.xlu0 %v8117_v54, %s6931_s6  ;;  %v8169_v15 = vld [vmem:[#allocation2 + $0x1e7] sm:$0xff] }
 0x21a   : > { %1750 = vst [vmem:[#allocation3 + $0x28] sm:$0xff] %v8124_v4  ;;  %v8137_v25 = vmax.f32 %v1595_v3, 0.0  ;;  %v559_v3 = vadd.f32 %v11626_v28, %v7902_v52 }
 0x21b   : > { %11625 = vst [vmem:[#allocation17_spill] sm:$0xff] %v8130_v20  ;;  %1753 = vst [vmem:[#allocation3 + $0x50] sm:$0xff] %v8130_v20  ;;  %v8140_v19 = vpop.permute.xlu1 %1158 }
 0x21c   : > { %1751 = vst [vmem:[#allocation3 + $0x30] sm:$0xff] %v8137_v25  ;;  %v8143_v40 = vpop.permute.xlu0 %1156  ;;  %v687_v35 = vadd.f32 %v7934_v5, %v559_v3  ;;  %v562_v5 = vadd.f32 %v7664_v26, %v7916_v36  ;;  %v8210_v36 = vld [vmem:[#allocation2 + $0x20f] sm:$0xff] }
 0x21d   : > { %665 = vrot.lane.b32.xlu1 %v8115_v42, %s6928_s30  ;;  %663 = vrot.lane.b32.xlu0 %v8117_v54, %s6928_s30 }
 0x21e   : > { %v815_v61 = vadd.f32 %v7970_v14, %v687_v35 }
 0x21f   : > { %v8149_v31 = vpop.permute.xlu1 %777 }
 0x220   : > { %v8151_v6 = vpop.permute.xlu0 %775 }
 0x221   : > { %1170 = vrot.lane.b32.xlu1 %v8026_v39, %s6932_s9  ;;  %1168 = vrot.lane.b32.xlu0 %v8028_v11, %s6932_s9  ;;  %v688_v39 = vadd.f32 %v7932_v43, %v560_v27  ;;  %v943_v43 = vadd.f32 %v8016_v12, %v815_v61 }
 0x223   : > { %v1283_v8 = vpop.permute.xlu1 %1282  ;;  %v816_v63 = vadd.f32 %v7968_v24, %v688_v39  ;;  %v561_v24 = vadd.f32 %v7666_v48, %v7918_v30  ;;  %v1071_v14 = vadd.f32 %v8066_v62, %v943_v43  ;;  %v8212_v30 = vld [vmem:[#allocation2 + $0x207] sm:$0xff] }
 0x224   : > { %v1281_v29 = vpop.permute.xlu0 %1280 }
 0x225   : > { %669 = vrot.lane.b32.xlu1 %v8157_v2, %s6928_s30  ;;  %667 = vrot.lane.b32.xlu0 %v8159_v46, %s6928_s30  ;;  %v944_v52 = vadd.f32 %v8014_v59, %v816_v63  ;;  %v690_v59 = vadd.f32 %v7952_v22, %v562_v5  ;;  %v689_v3 = vadd.f32 %v7954_v18, %v561_v24  ;;  %s6936_s30 = smov 16  }
 0x226   : > { %v1200_v63 = vadd.f32 %v8107_v0, %v1071_v14  ;;  %v861_v14 = vld [vmem:[#allocation2 + $0x208] sm:$0xff] }
 0x227   : > { %v8173_v11 = vpop.permute.xlu1 %781  ;;  %v1072_v27 = vadd.f32 %v8064_v44, %v944_v52  ;;  %v818_v26 = vadd.f32 %v7992_v16, %v690_v59  ;;  %v817_v22 = vadd.f32 %v7994_v34, %v689_v3 }
 0x228   : > { %v8176_v47 = vpop.permute.xlu0 %779  ;;  %v1328_v44 = vadd.f32 %v1281_v29, %v1200_v63  ;;  %v989_v63 = vld [vmem:[#allocation2 + $0x209] sm:$0xff] }
 0x229   : > { %1174 = vrot.lane.b32.xlu1 %v8167_v41, %s6932_s9  ;;  %1172 = vrot.lane.b32.xlu0 %v8169_v15, %s6932_s9  ;;  %v1201_v12 = vadd.f32 %v8105_v58, %v1072_v27  ;;  %v946_v18 = vadd.f32 %v8038_v21, %v818_v26 }
 0x22b   : > { %v1287_v20 = vpop.permute.xlu1 %1286  ;;  %v1329_v48 = vadd.f32 %v1283_v8, %v1201_v12  ;;  %v1074_v16 = vadd.f32 %v8080_v50, %v946_v18  ;;  %v990_v12 = vld [vmem:[#allocation2 + $0x211] sm:$0xff] }
 0x22c   : > { %v1285_v28 = vpop.permute.xlu0 %1284 }
 0x22d   : > { %793 = vrot.lane.b32.xlu1 %v8167_v41, %s6929_s4  ;;  %791 = vrot.lane.b32.xlu0 %v8169_v15, %s6929_s4  ;;  %v1203_v21 = vadd.f32 %v8140_v19, %v1074_v16 }
 0x22f   : > { %v8197_v35 = vpop.permute.xlu1 %905  ;;  %v1331_v52 = vadd.f32 %v1287_v20, %v1203_v21  ;;  %v862_v20 = vld [vmem:[#allocation2 + $0x210] sm:$0xff] }
 0x230   : > { %v8201_v39 = vpop.permute.xlu0 %903 }
 0x231   : > { %1298 = vrot.lane.b32.xlu1 %v8060_v17, %s6933_s28  ;;  %1296 = vrot.lane.b32.xlu0 %v8062_v53, %s6933_s28  ;;  %v945_v17 = vadd.f32 %v8040_v55, %v817_v22 }
 0x233   : > { %v1411_v62 = vpop.permute.xlu1 %1410  ;;  %v1073_v53 = vadd.f32 %v8082_v7, %v945_v17 }
 0x234   : > { %v1457_v58 = vadd.f32 %v1411_v62, %v1329_v48  ;;  %v1409_v0 = vpop.permute.xlu0 %1408  ;;  %v1119_v62 = vld [vmem:[#allocation2 + $0x22f] sm:$0xff] }
 0x235   : > { %v1456_v61 = vadd.f32 %v1409_v0, %v1328_v44  ;;  %797 = vrot.lane.b32.xlu1 %v8210_v36, %s6929_s4  ;;  %795 = vrot.lane.b32.xlu0 %v8212_v30, %s6929_s4  ;;  %v1202_v55 = vadd.f32 %v8143_v40, %v1073_v53  ;;  %v1118_v44 = vld [vmem:[#allocation2 + $0x227] sm:$0xff]  ;;  %s6937_s4 = smov 32  }
 0x236   : > { %v6695_v53 = vpack.i.bf16 %v1119_v62, %v1118_v44 }
 0x237   : > { %v1480_v34 = vpack.c.bf16 %v1457_v58, %v1456_v61  ;;  %v8223_v8 = vpop.permute.xlu1 %909  ;;  %v1330_v50 = vadd.f32 %v1285_v28, %v1202_v55 }
 0x238   : > { %v8226_v29 = vpop.permute.xlu0 %907 }
 0x239   : > { %6350 = vmatprep.mubr.bf16.mxu0 %v1480_v34  ;;  %1302 = vrot.lane.b32.xlu1 %v8101_v9, %s6933_s28 }
 0x23a   : > { %1300 = vrot.lane.b32.xlu0 %v8103_v57, %s6933_s28 }
 0x23b   : > { %v1415_v43 = vpop.permute.xlu1 %1414 }
 0x23c   : > { %v1459_v7 = vadd.f32 %v1415_v43, %v1331_v52  ;;  %v1413_v5 = vpop.permute.xlu0 %1412 }
 0x23d   : > { %v1458_v27 = vadd.f32 %v1413_v5, %v1330_v50  ;;  %921 = vrot.lane.b32.xlu1 %v8101_v9, %s6930_s5 }
 0x23e   : > { %919 = vrot.lane.b32.xlu0 %v8103_v57, %s6930_s5 }
 0x23f   : > { %v1481_v19 = vpack.c.bf16 %v1459_v7, %v1458_v27  ;;  %v8237_v40 = vpop.permute.xlu1 %529 }
 0x240   : > { %v8239_v24 = vpop.permute.xlu0 %527 }
 0x241   : > { %6351 = vmatmul.mubr.bf16.gmra.mrb[16].mxu0 %v1481_v19  ;;  %1426 = vrot.lane.b32.xlu1 %v8115_v42, %s6934_s20  ;;  %v1374_v19 = vld [vmem:[#allocation2 + $0x229] sm:$0xff] }
 0x242   : > { %1424 = vrot.lane.b32.xlu0 %v8117_v54, %s6934_s20 }
 0x243   : > { %v8245_v28 = vpop.permute.xlu1 %1033 }
 0x244   : > { %v8247_v9 = vpop.permute.xlu0 %1031 }
 0x245   : > { %925 = vrot.lane.b32.xlu1 %v862_v20, %s6930_s5 }
 0x246   : > { %923 = vrot.lane.b32.xlu0 %v861_v14, %s6930_s5  ;;  %s6938_s5 = smov 40  }
 0x247   : > { %v8251_v57 = vpop.permute.xlu1 %533 }
 0x248   : > { %v8253_v59 = vpop.permute.xlu0 %531 }
 0x249   : > { %1430 = vrot.lane.b32.xlu1 %v8157_v2, %s6934_s20 }
 0x24a   : > { %1428 = vrot.lane.b32.xlu0 %v8159_v46, %s6934_s20 }
 0x24b   : > { %v8259_v42 = vpop.permute.xlu1 %1037 }
 0x24c   : > { %v8261_v54 = vpop.permute.xlu0 %1035 }
 0x24d   : > { %1049 = vrot.lane.b32.xlu1 %v8157_v2, %s6931_s6 }
 0x24e   : > { %1047 = vrot.lane.b32.xlu0 %v8159_v46, %s6931_s6 }
 0x24f   : > { %v8267_v3 = vpop.permute.xlu1 %657 }
 0x250   : > { %v8269_v26 = vpop.permute.xlu0 %655 }
 0x251   : > { %1053 = vrot.lane.b32.xlu1 %v990_v12, %s6931_s6 }
 0x252   : > { %1051 = vrot.lane.b32.xlu0 %v989_v63, %s6931_s6  ;;  %s6939_s6 = smov 48  }
 0x253   : > { %v8273_v48 = vpop.permute.xlu1 %1162  ;;  %v6340_v22 = vpop.f32.mrb[4].mxu0 }
 0x254   : > { %v8275_v18 = vpop.permute.xlu0 %1160  ;;  %v1616_v2 = vadd.f32 %v6340_v22, %v8099_v1  ;;  %v1607_v46 = vpop.f32.mrb[5].mxu0 }
 0x255   : > { %v1608_v58 = vadd.f32 %v8099_v1, %v1607_v46  ;;  %1178 = vrot.lane.b32.xlu1 %v8210_v36, %s6932_s9  ;;  %v6341_v0 = vpop.f32.mrb[6].mxu0  ;;  %v564_v46 = vadd.f32 %v7708_v49, %v8052_v37 }
 0x256   : > { %v8281_v17 = vmax.f32 %v1616_v2, 0.0  ;;  %1176 = vrot.lane.b32.xlu0 %v8212_v30, %s6932_s9  ;;  %v1619_v61 = vadd.f32 %v6341_v0, %v8099_v1  ;;  %v1610_v16 = vpop.f32.mrb[7].mxu0  ;;  %v6824_v30 = vld [vmem:[#allocation2 + $0x8] sm:$0xff] }
 0x257   : > { %v8286_v34 = vmax.f32 %v1608_v58, 0.0  ;;  %v1611_v21 = vadd.f32 %v8099_v1, %v1610_v16  ;;  %v8289_v55 = vpop.permute.xlu1 %661  ;;  %v6700_v43 = vpack.i.bf16 %v6824_v30, %v6824_v30  ;;  %v1942_v0 = vld [vmem:[#allocation3 + $0x9] sm:$0xff] }
 0x258   : > { %1756 = vst [vmem:[#allocation3 + $0x88] sm:$0xff] %v8281_v17  ;;  %v8292_v52 = vmax.f32 %v1619_v61, 0.0  ;;  %v8294_v36 = vpop.permute.xlu0 %659 }
 0x259   : > { %1754 = vst [vmem:[#allocation3 + $0x68] sm:$0xff] %v8286_v34  ;;  %v8297_v50 = vmax.f32 %v1611_v21, 0.0  ;;  %1304 = vrot.lane.b32.xlu1 %v861_v14, %s6933_s28  ;;  %v1375_v14 = vld [vmem:[#allocation2 + $0x231] sm:$0xff] }
 0x25a   : > { %1757 = vst [vmem:[#allocation3 + $0x90] sm:$0xff] %v8292_v52  ;;  %6696 = vrot.lane.b32.xlu0 %v6695_v53, %s6932_s9  ;;  %v6705_v44 = vpack.i.bf16 %v1375_v14, %v1374_v19 }
 0x25b   : > { %1755 = vst [vmem:[#allocation3 + $0x70] sm:$0xff] %v8297_v50  ;;  %v8303_v7 = vpop.permute.xlu1 %1166 }
 0x25c   : > { %v8305_v5 = vpop.permute.xlu0 %1164 }
 0x25d   : > { %6701 = vrot.lane.b32.xlu1 %v6700_v43, %s6933_s28 }
 0x25e   : > { %1306 = vrot.lane.b32.xlu0 %v862_v20, %s6933_s28  ;;  %v563_v20 = vadd.f32 %v7710_v33, %v8054_v56  ;;  %s6185_s28 = sshll.u32 %s6988_s16, 4 }
 0x25f   : > { %v8309_v27 = vpop.permute.xlu1 %785 }
 0x260   : > { %v8311_v22 = vpop.permute.xlu0 %783  ;;  %v691_v16 = vadd.f32 %v8090_v60, %v563_v20  ;;  %v566_v60 = vadd.f32 %v7830_v23, %v8072_v38 }
 0x261   : > { %1434 = vrot.lane.b32.xlu1 %v990_v12, %s6934_s20  ;;  %v1943_v12 = vld [vmem:[#allocation3 + $0x11] sm:$0xff] }
 0x262   : > { %1432 = vrot.lane.b32.xlu0 %v989_v63, %s6934_s20  ;;  %v692_v63 = vadd.f32 %v8088_v13, %v564_v46  ;;  %v6715_v37 = vpack.i.bf16 %v1943_v12, %v1942_v0  ;;  %v819_v33 = vadd.f32 %v8151_v6, %v691_v16  ;;  %v1944_v13 = vld [vmem:[#allocation3 + $0x29] sm:$0xff]  ;;  %v694_v14 = vadd.f32 %v8122_v10, %v566_v60 }
 0x263   : > { %v1291_v62 = vpop.permute.xlu1 %1290  ;;  %v8349_v46 = vld [vmem:[#allocation3 + $0x27] sm:$0xff] }
 0x264   : > { %v1289_v2 = vpop.permute.xlu0 %1288  ;;  %v820_v49 = vadd.f32 %v8149_v31, %v692_v63  ;;  %v947_v30 = vadd.f32 %v8201_v39, %v819_v33  ;;  %11628 = vst [vmem:[#allocation13_spill] sm:$0xff] %v8349_v46 }
 0x265   : > { %6711 = vrot.lane.b32.xlu1 %v6700_v43, %s6935_s24  ;;  %v11627_v43 = vld [vmem:[#allocation14_spill] sm:$0xff] }
 0x266   : > { %6706 = vrot.lane.b32.xlu0 %v6705_v44, %s6934_s20  ;;  %v948_v53 = vadd.f32 %v8197_v35, %v820_v49  ;;  %v565_v6 = vadd.f32 %v11627_v43, %v8074_v51  ;;  %v1075_v19 = vadd.f32 %v8247_v9, %v947_v30  ;;  %v1945_v51 = vld [vmem:[#allocation3 + $0x31] sm:$0xff] }
 0x267   : > { %v8321_v58 = vpop.permute.xlu1 %789 }
 0x268   : > { %v8324_v61 = vpop.permute.xlu0 %787  ;;  %v1076_v31 = vadd.f32 %v8245_v28, %v948_v53  ;;  %v693_v23 = vadd.f32 %v8127_v32, %v565_v6  ;;  %v1204_v38 = vadd.f32 %v8275_v18, %v1075_v19  ;;  %v822_v28 = vadd.f32 %v8173_v11, %v694_v14  ;;  %v8359_v32 = vld [vmem:[#allocation3 + $0x47] sm:$0xff]  ;;  %v8364_v11 = vld [vmem:[#allocation3 + $0x2f] sm:$0xff] }
 0x269   : > { %1852 = vrot.lane.b32.xlu1 %v8137_v25, %s6935_s24  ;;  %11629 = vst [vmem:[#allocation14_spill] sm:$0xff] %v8359_v32 }
 0x26a   : > { %1850 = vrot.lane.b32.xlu0 %v8124_v4, %s6935_s24  ;;  %v1205_v39 = vadd.f32 %v8273_v48, %v1076_v31  ;;  %v821_v10 = vadd.f32 %v8176_v47, %v693_v23  ;;  %v1332_v48 = vadd.f32 %v1289_v2, %v1204_v38  ;;  %v950_v0 = vadd.f32 %v8223_v8, %v822_v28  ;;  %v8424_v38 = vld [vmem:[#allocation3 + $0x51] sm:$0xff] }
 0x26b   : > { %v1295_v56 = vpop.permute.xlu1 %1294 }
 0x26c   : > { %v1293_v21 = vpop.permute.xlu0 %1292  ;;  %v1333_v9 = vadd.f32 %v1291_v62, %v1205_v39  ;;  %v949_v18 = vadd.f32 %v8226_v29, %v821_v10  ;;  %v1078_v62 = vadd.f32 %v8259_v42, %v950_v0  ;;  %v8378_v42 = vld [vmem:[#allocation3 + $0x4f] sm:$0xff] }
 0x26d   : > { %1978 = vrot.lane.b32.xlu1 %v1944_v13, %s6936_s30  ;;  %11630 = vst [vmem:[#allocation18_spill] sm:$0xff] %v8378_v42  ;;  %v8412_v39 = vld [vmem:[#allocation3 + $0x49] sm:$0xff] }
 0x26e   : > { %6716 = vrot.lane.b32.xlu0 %v6715_v37, %s6936_s30  ;;  %v1077_v47 = vadd.f32 %v8261_v54, %v949_v18  ;;  %v1207_v49 = vadd.f32 %v8303_v7, %v1078_v62 }
 0x26f   : > { %v8343_v35 = vpop.permute.xlu1 %913 }
 0x270   : > { %v8347_v44 = vpop.permute.xlu0 %911  ;;  %v1206_v29 = vadd.f32 %v8305_v5, %v1077_v47  ;;  %v1335_v33 = vadd.f32 %v1295_v56, %v1207_v49  ;;  %v11631_v56 = vld [vmem:[#allocation17_spill] sm:$0xff] }
 0x271   : > { %2102 = vrot.lane.b32.xlu1 %v8349_v46, %s6934_s20  ;;  %v8512_v46 = vld [vmem:[#allocation3 + $0x87] sm:$0xff] }
 0x272   : > { %1980 = vrot.lane.b32.xlu0 %v1945_v51, %s6936_s30  ;;  %v1334_v54 = vadd.f32 %v1293_v21, %v1206_v29 }
 0x273   : > { %v1419_v20 = vpop.permute.xlu1 %1418 }
 0x274   : > { %v1461_v12 = vadd.f32 %v1419_v20, %v1333_v9  ;;  %v1417_v63 = vpop.permute.xlu0 %1416 }
 0x275   : > { %v1460_v16 = vadd.f32 %v1417_v63, %v1332_v48  ;;  %2106 = vrot.lane.b32.xlu1 %v8359_v32, %s6934_s20 }
 0x276   : > { %2104 = vrot.lane.b32.xlu0 %v8364_v11, %s6934_s20 }
 0x277   : > { %v1482_v8 = vpack.c.bf16 %v1461_v12, %v1460_v16  ;;  %v8370_v2 = vpop.permute.xlu1 %917 }
 0x278   : > { %v8373_v37 = vpop.permute.xlu0 %915 }
 0x279   : > { %6354 = vmatprep.mubr.bf16.mxu0 %v1482_v8  ;;  %2230 = vrot.lane.b32.xlu1 %v8124_v4, %s6937_s4  ;;  %v6768_v8 = vld [vmem:[%s11543_s1 + $0x40] sm:$0xff]  }
 0x27a   : > { %2108 = vrot.lane.b32.xlu0 %v8378_v42, %s6934_s20  ;;  %6366 = vmatprep.subr.bf16.mxu0 %v6768_v8 }
 0x27b   : > { %v1423_v53 = vpop.permute.xlu1 %1422  ;;  %6367 = vmatpush3.bf16.msra.mxu0 %v6768_v8  ;;  %6578 = vmatprep.subr.bf16.mxu1 %v6768_v8 }
 0x27c   : > { %v1463_v30 = vadd.f32 %v1423_v53, %v1335_v33  ;;  %v1421_v60 = vpop.permute.xlu0 %1420  ;;  %v8454_v33 = vld [vmem:[#allocation3 + $0x69] sm:$0xff]  ;;  %6586 = vmatpush3.bf16.msra.mxu1 %v6768_v8 }
 0x27d   : > { %v1462_v7 = vadd.f32 %v1421_v60, %v1334_v54  ;;  %2234 = vrot.lane.b32.xlu1 %v8119_v45, %s6937_s4 }
 0x27e   : > { %2232 = vrot.lane.b32.xlu0 %v8137_v25, %s6937_s4 }
 0x27f   : > { %v1483_v5 = vpack.c.bf16 %v1463_v30, %v1462_v7  ;;  %v8386_v31 = vpop.permute.xlu1 %537  ;;  %v6769_v30 = vld [vmem:[%s11543_s1 + $0x48] sm:$0xff]  }
 0x280   : > { %v8388_v4 = vpop.permute.xlu0 %535  ;;  %v8472_v7 = vld [vmem:[#allocation3 + $0x67] sm:$0xff]  ;;  %6368 = vmatprep.subr.bf16.mxu0 %v6769_v30  ;;  %6579 = vmatprep.subr.bf16.mxu1 %v6769_v30 }
 0x281   : > { %6355 = vmatmul.mubr.bf16.gmra.mrb[20].mxu0 %v1483_v5  ;;  %1854 = vrot.lane.b32.xlu1 %v8119_v45, %s6935_s24  ;;  %11632 = vst [vmem:[#allocation17_spill] sm:$0xff] %v8472_v7  ;;  %v8476_v5 = vld [vmem:[#allocation3 + $0x71] sm:$0xff] }
 0x282   : > { %2236 = vrot.lane.b32.xlu0 %v11631_v56, %s6937_s4  ;;  %6369 = vmatpush3.bf16.msra.mxu0 %v6769_v30 }
 0x283   : > { %v8394_v21 = vpop.permute.xlu1 %1041  ;;  %6587 = vmatpush3.bf16.msra.mxu1 %v6769_v30  ;;  %v11634_v30 = vld [vmem:[#allocation10_spill] sm:$0xff] }
 0x284   : > { %v8396_v43 = vpop.permute.xlu0 %1039 }
 0x285   : > { %2358 = vrot.lane.b32.xlu1 %v1944_v13, %s6938_s5 }
 0x286   : > { %1856 = vrot.lane.b32.xlu0 %v11631_v56, %s6935_s24 }
 0x287   : > { %v8401_v25 = vpop.permute.xlu1 %541 }
 0x288   : > { %v8403_v6 = vpop.permute.xlu0 %539 }
 0x289   : > { %1858 = vrot.lane.b32.xlu1 %v8286_v34, %s6935_s24 }
 0x28a   : > { %2360 = vrot.lane.b32.xlu0 %v1945_v51, %s6938_s5 }
 0x28b   : > { %v8408_v19 = vpop.permute.xlu1 %1045 }
 0x28c   : > { %v8410_v14 = vpop.permute.xlu0 %1043 }
 0x28d   : > { %2362 = vrot.lane.b32.xlu1 %v8412_v39, %s6938_s5 }
 0x28e   : > { %1860 = vrot.lane.b32.xlu0 %v8297_v50, %s6935_s24 }
 0x28f   : > { %v8418_v13 = vpop.permute.xlu1 %665 }
 0x290   : > { %v8420_v23 = vpop.permute.xlu0 %663 }
 0x291   : > { %1982 = vrot.lane.b32.xlu1 %v8412_v39, %s6936_s30 }
 0x292   : > { %2364 = vrot.lane.b32.xlu0 %v8424_v38, %s6938_s5 }
 0x293   : > { %v8428_v51 = vpop.permute.xlu1 %1170  ;;  %v6344_v28 = vpop.f32.mrb[8].mxu0 }
 0x294   : > { %v8430_v9 = vpop.permute.xlu0 %1168  ;;  %v1632_v10 = vadd.f32 %v6344_v28, %v8099_v1  ;;  %v1623_v48 = vpop.f32.mrb[9].mxu0 }
 0x295   : > { %v1624_v20 = vadd.f32 %v8099_v1, %v1623_v48  ;;  %v6345_v0 = vpop.f32.mrb[10].mxu0  ;;  %2487 = vrot.lane.b32.xlu1 %v8359_v32, %s6939_s6 }
 0x296   : > { %v8436_v12 = vmax.f32 %v1632_v10, 0.0  ;;  %v1635_v63 = vadd.f32 %v6345_v0, %v8099_v1  ;;  %1984 = vrot.lane.b32.xlu0 %v8424_v38, %s6936_s30  ;;  %v1626_v18 = vpop.f32.mrb[11].mxu0  ;;  %v6770_v10 = vld [vmem:[%s11543_s1 + $0x50] sm:$0xff]  }
 0x297   : > { %v8441_v16 = vmax.f32 %v1624_v20, 0.0  ;;  %v1627_v62 = vadd.f32 %v8099_v1, %v1626_v18  ;;  %v8444_v47 = vpop.permute.xlu1 %669  ;;  %v8489_v20 = vld [vmem:[#allocation3 + $0x6f] sm:$0xff]  ;;  %6370 = vmatprep.subr.bf16.mxu0 %v6770_v10  ;;  %6580 = vmatprep.subr.bf16.mxu1 %v6770_v10 }
 0x298   : > { %1760 = vst [vmem:[#allocation3 + $0xc8] sm:$0xff] %v8436_v12  ;;  %v8450_v49 = vmax.f32 %v1635_v63, 0.0  ;;  %v8452_v29 = vpop.permute.xlu0 %667  ;;  %6371 = vmatpush3.bf16.msra.mxu0 %v6770_v10  ;;  %v6771_v63 = vld [vmem:[%s11543_s1 + $0x58] sm:$0xff]   ;;  %6588 = vmatpush3.bf16.msra.mxu1 %v6770_v10  ;;  %v6772_v10 = vld [vmem:[%s11543_s1 + $0x60] sm:$0xff]  }
 0x299   : > { %1758 = vst [vmem:[#allocation3 + $0xa8] sm:$0xff] %v8441_v16  ;;  %v8457_v54 = vmax.f32 %v1627_v62, 0.0  ;;  %1986 = vrot.lane.b32.xlu1 %v8454_v33, %s6936_s30  ;;  %6372 = vmatprep.subr.bf16.mxu0 %v6771_v63  ;;  %v11633_v62 = vld [vmem:[#allocation9_spill] sm:$0xff] }
 0x29a   : > { %1761 = vst [vmem:[#allocation3 + $0xd0] sm:$0xff] %v8450_v49  ;;  %2489 = vrot.lane.b32.xlu0 %v8378_v42, %s6939_s6  ;;  %v568_v8 = vadd.f32 %v11633_v62, %v8237_v40  ;;  %6581 = vmatprep.subr.bf16.mxu1 %v6771_v63 }
 0x29b   : > { %1759 = vst [vmem:[#allocation3 + $0xb0] sm:$0xff] %v8457_v54  ;;  %v8465_v53 = vpop.permute.xlu1 %1174 }
 0x29c   : > { %v8470_v60 = vpop.permute.xlu0 %1172  ;;  %6373 = vmatpush3.bf16.msra.mxu0 %v6771_v63  ;;  %6589 = vmatpush3.bf16.msra.mxu1 %v6771_v63 }
 0x29d   : > { %2491 = vrot.lane.b32.xlu1 %v8472_v7, %s6939_s6  ;;  %6374 = vmatprep.subr.bf16.mxu0 %v6772_v10 }
 0x29e   : > { %1988 = vrot.lane.b32.xlu0 %v8476_v5, %s6936_s30  ;;  %6582 = vmatprep.subr.bf16.mxu1 %v6772_v10 }
 0x29f   : > { %v8480_v28 = vpop.permute.xlu1 %793 }
 0x2a0   : > { %v8485_v48 = vpop.permute.xlu0 %791  ;;  %6375 = vmatpush3.bf16.msra.mxu0 %v6772_v10  ;;  %6590 = vmatpush3.bf16.msra.mxu1 %v6772_v10 }
 0x2a1   : > { %2110 = vrot.lane.b32.xlu1 %v8472_v7, %s6934_s20  ;;  %v567_v7 = vadd.f32 %v11634_v30, %v8239_v24 }
 0x2a2   : > { %2493 = vrot.lane.b32.xlu0 %v8489_v20, %s6939_s6 }
 0x2a3   : > { %v1299_v0 = vpop.permute.xlu1 %1298  ;;  %v695_v40 = vadd.f32 %v8269_v26, %v567_v7 }
 0x2a4   : > { %v1297_v18 = vpop.permute.xlu0 %1296 }
 0x2a5   : > { %2615 = vrot.lane.b32.xlu1 %v8119_v45, %s6940_s17  ;;  %v696_v45 = vadd.f32 %v8267_v3, %v568_v8  ;;  %v823_v62 = vadd.f32 %v8311_v22, %v695_v40  ;;  %v6773_v8 = vld [vmem:[%s11543_s1 + $0x68] sm:$0xff]   ;;  %v6774_v40 = vld [vmem:[%s11543_s1 + $0x70] sm:$0xff]  }
 0x2a6   : > { %2112 = vrot.lane.b32.xlu0 %v8489_v20, %s6934_s20  ;;  %6376 = vmatprep.subr.bf16.mxu0 %v6773_v8  ;;  %v11636_v22 = vld [vmem:[#allocation11_spill] sm:$0xff] }
 0x2a7   : > { %v8504_v42 = vpop.permute.xlu1 %797  ;;  %v824_v24 = vadd.f32 %v8309_v27, %v696_v45  ;;  %v951_v63 = vadd.f32 %v8347_v44, %v823_v62  ;;  %v8528_v27 = vld [vmem:[#allocation3 + $0x8f] sm:$0xff]  ;;  %6377 = vmatpush3.bf16.msra.mxu0 %v6773_v8  ;;  %6583 = vmatprep.subr.bf16.mxu1 %v6773_v8 }
 0x2a8   : > { %v8510_v32 = vpop.permute.xlu0 %795  ;;  %11635 = vst [vmem:[#allocation9_spill] sm:$0xff] %v8528_v27  ;;  %6591 = vmatpush3.bf16.msra.mxu1 %v6773_v8  ;;  %6378 = vmatprep.subr.bf16.mxu0 %v6774_v40 }
 0x2a9   : > { %2114 = vrot.lane.b32.xlu1 %v8512_v46, %s6934_s20  ;;  %v952_v26 = vadd.f32 %v8343_v35, %v824_v24  ;;  %v11637_v35 = vld [vmem:[#allocation12_spill] sm:$0xff]  ;;  %v1079_v44 = vadd.f32 %v8396_v43, %v951_v63  ;;  %6584 = vmatprep.subr.bf16.mxu1 %v6774_v40 }
 0x2aa   : > { %2617 = vrot.lane.b32.xlu0 %v11631_v56, %s6940_s17  ;;  %v570_v56 = vadd.f32 %v11636_v22, %v8251_v57  ;;  %v569_v10 = vadd.f32 %v11637_v35, %v8253_v59 }
 0x2ab   : > { %v1303_v3 = vpop.permute.xlu1 %1302  ;;  %v1080_v30 = vadd.f32 %v8394_v21, %v952_v26  ;;  %v1208_v59 = vadd.f32 %v8430_v9, %v1079_v44  ;;  %6379 = vmatpush3.bf16.msra.mxu0 %v6774_v40 }
 0x2ac   : > { %v1301_v7 = vpop.permute.xlu0 %1300  ;;  %v698_v57 = vadd.f32 %v8289_v55, %v570_v56  ;;  %v697_v62 = vadd.f32 %v8294_v36, %v569_v10  ;;  %v6775_v36 = vld [vmem:[%s11543_s1 + $0x78] sm:$0xff]   ;;  %6592 = vmatpush3.bf16.msra.mxu1 %v6774_v40 }
 0x2ad   : > { %2619 = vrot.lane.b32.xlu1 %v8286_v34, %s6940_s17  ;;  %v1209_v21 = vadd.f32 %v8428_v51, %v1080_v30  ;;  %v1336_v51 = vadd.f32 %v1297_v18, %v1208_v59  ;;  %6380 = vmatprep.subr.bf16.mxu0 %v6775_v36 }
 0x2ae   : > { %2116 = vrot.lane.b32.xlu0 %v8528_v27, %s6934_s20  ;;  %v826_v43 = vadd.f32 %v8321_v58, %v698_v57  ;;  %v825_v55 = vadd.f32 %v8324_v61, %v697_v62  ;;  %6585 = vmatprep.subr.bf16.mxu1 %v6775_v36  ;;  %v11639_v57 = vld [vmem:[#allocation16_spill] sm:$0xff] }
 0x2af   : > { %v8538_v45 = vpop.permute.xlu1 %921  ;;  %v1337_v26 = vadd.f32 %v1299_v0, %v1209_v21  ;;  %6381 = vmatpush3.bf16.msra.mxu0 %v6775_v36  ;;  %v571_v21 = vadd.f32 %v11639_v57, %v8388_v4  ;;  %v573_v4 = vadd.f32 %v8169_v15, %v8403_v6 }
 0x2b0   : > { %v8545_v24 = vpop.permute.xlu0 %919  ;;  %v954_v9 = vadd.f32 %v8370_v2, %v826_v43  ;;  %v953_v58 = vadd.f32 %v8373_v37, %v825_v55  ;;  %6593 = vmatpush3.bf16.msra.mxu1 %v6775_v36 }
 0x2b1   : > { %2238 = vrot.lane.b32.xlu1 %v8286_v34, %s6937_s4 }
 0x2b2   : > { %2621 = vrot.lane.b32.xlu0 %v8297_v50, %s6940_s17  ;;  %v1082_v61 = vadd.f32 %v8408_v19, %v954_v9  ;;  %v1081_v18 = vadd.f32 %v8410_v14, %v953_v58 }
 0x2b3   : > { %v1427_v63 = vpop.permute.xlu1 %1426 }
 0x2b4   : > { %v1465_v34 = vadd.f32 %v1427_v63, %v1337_v26  ;;  %v1425_v8 = vpop.permute.xlu0 %1424  ;;  %v1211_v56 = vadd.f32 %v8465_v53, %v1082_v61  ;;  %v1210_v30 = vadd.f32 %v8470_v60, %v1081_v18  ;;  %v699_v26 = vadd.f32 %v8420_v23, %v571_v21  ;;  %v8599_v63 = vld [vmem:[#allocation3 + $0x89] sm:$0xff] }
 0x2b5   : > { %v1464_v0 = vadd.f32 %v1425_v8, %v1336_v51  ;;  %2743 = vrot.lane.b32.xlu1 %v8412_v39, %s6941_s8  ;;  %v574_v23 = vadd.f32 %v8167_v41, %v8401_v25 }
 0x2b6   : > { %2240 = vrot.lane.b32.xlu0 %v8297_v50, %s6937_s4  ;;  %v1339_v19 = vadd.f32 %v1303_v3, %v1211_v56  ;;  %v1338_v50 = vadd.f32 %v1301_v7, %v1210_v30  ;;  %v11638_v7 = vld [vmem:[#allocation15_spill] sm:$0xff] }
 0x2b7   : > { %v1484_v2 = vpack.c.bf16 %v1465_v34, %v1464_v0  ;;  %v926_v22 = vpop.permute.xlu1 %925  ;;  %v572_v40 = vadd.f32 %v11638_v7, %v8386_v31  ;;  %v827_v31 = vadd.f32 %v8485_v48, %v699_v26  ;;  %v702_v15 = vadd.f32 %v8444_v47, %v574_v23  ;;  %v8647_v26 = vld [vmem:[#allocation3 + $0xa7] sm:$0xff] }
 0x2b8   : > { %v924_v37 = vpop.permute.xlu0 %923  ;;  %11640 = vst [vmem:[#allocation10_spill] sm:$0xff] %v8647_v26 }
 0x2b9   : > { %6358 = vmatprep.mubr.bf16.mxu0 %v1484_v2  ;;  %2242 = vrot.lane.b32.xlu1 %v8281_v17, %s6937_s4  ;;  %v700_v59 = vadd.f32 %v8418_v13, %v572_v40  ;;  %v955_v36 = vadd.f32 %v8545_v24, %v827_v31  ;;  %v830_v41 = vadd.f32 %v8504_v42, %v702_v15  ;;  %v8614_v24 = vld [vmem:[#allocation3 + $0x91] sm:$0xff]  ;;  %v1952_v40 = vld [vmem:[#allocation3 + $0xa9] sm:$0xff] }
 0x2ba   : > { %2745 = vrot.lane.b32.xlu0 %v8424_v38, %s6941_s8 }
 0x2bb   : > { %v1431_v39 = vpop.permute.xlu1 %1430  ;;  %v958_v47 = vadd.f32 %v926_v22, %v830_v41 }
 0x2bc   : > { %v1467_v14 = vadd.f32 %v1431_v39, %v1339_v19  ;;  %v1429_v35 = vpop.permute.xlu0 %1428 }
 0x2bd   : > { %v1466_v10 = vadd.f32 %v1429_v35, %v1338_v50  ;;  %2747 = vrot.lane.b32.xlu1 %v8454_v33, %s6941_s8 }
 0x2be   : > { %2244 = vrot.lane.b32.xlu0 %v8292_v52, %s6937_s4 }
 0x2bf   : > { %v1485_v53 = vpack.c.bf16 %v1467_v14, %v1466_v10  ;;  %v1050_v60 = vpop.permute.xlu1 %1049 }
 0x2c0   : > { %v1048_v44 = vpop.permute.xlu0 %1047 }
 0x2c1   : > { %6359 = vmatmul.mubr.bf16.gmra.mrb[24].mxu0 %v1485_v53  ;;  %1862 = vrot.lane.b32.xlu1 %v8281_v17, %s6935_s24  ;;  %v1083_v6 = vadd.f32 %v1048_v44, %v955_v36 }
 0x2c2   : > { %2749 = vrot.lane.b32.xlu0 %v8476_v5, %s6941_s8 }
 0x2c3   : > { %v1054_v38 = vpop.permute.xlu1 %1053 }
 0x2c4   : > { %v1052_v3 = vpop.permute.xlu0 %1051  ;;  %v1086_v30 = vadd.f32 %v1054_v38, %v958_v47 }
 0x2c5   : > { %2366 = vrot.lane.b32.xlu1 %v8454_v33, %s6938_s5  ;;  %v828_v33 = vadd.f32 %v8480_v28, %v700_v59 }
 0x2c6   : > { %1864 = vrot.lane.b32.xlu0 %v8292_v52, %s6935_s24 }
 0x2c7   : > { %v1179_v62 = vpop.permute.xlu1 %1178  ;;  %v956_v51 = vadd.f32 %v8538_v45, %v828_v33  ;;  %v1953_v33 = vld [vmem:[#allocation3 + $0xb1] sm:$0xff] }
 0x2c8   : > { %v1177_v43 = vpop.permute.xlu0 %1176 }
 0x2c9   : > { %1866 = vrot.lane.b32.xlu1 %v8441_v16, %s6935_s24  ;;  %v1084_v28 = vadd.f32 %v1050_v60, %v956_v51  ;;  %v1212_v25 = vadd.f32 %v1177_v43, %v1083_v6  ;;  %v8658_v51 = vld [vmem:[#allocation3 + $0xaf] sm:$0xff] }
 0x2ca   : > { %2368 = vrot.lane.b32.xlu0 %v8476_v5, %s6938_s5  ;;  %v701_v5 = vadd.f32 %v8452_v29, %v573_v4  ;;  %11641 = vst [vmem:[#allocation11_spill] sm:$0xff] %v8658_v51 }
 0x2cb   : > { %v1305_v55 = vpop.permute.xlu1 %1304  ;;  %v1213_v9 = vadd.f32 %v1179_v62, %v1084_v28  ;;  %v8674_v28 = vld [vmem:[#allocation3 + $0xc7] sm:$0xff] }
 0x2cc   : > { %v6697_v13 = vpop.permute.xlu0 %6696  ;;  %v829_v45 = vadd.f32 %v8510_v32, %v701_v5  ;;  %v1340_v58 = vadd.f32 %v1305_v55, %v1212_v25  ;;  %11642 = vst [vmem:[#allocation12_spill] sm:$0xff] %v8674_v28 }
 0x2cd   : > { %2370 = vrot.lane.b32.xlu1 %v8599_v63, %s6938_s5  ;;  %v6837_v10 = vadd.high.f32.bf16 %v1086_v30, %v6697_v13 }
 0x2ce   : > { %1868 = vrot.lane.b32.xlu0 %v8457_v54, %s6935_s24  ;;  %v957_v29 = vadd.f32 %v924_v37, %v829_v45 }
 0x2cf   : > { %v6702_v48 = vpop.permute.xlu1 %6701 }
 0x2d0   : > { %v1307_v34 = vpop.permute.xlu0 %1306  ;;  %v1085_v32 = vadd.f32 %v1052_v3, %v957_v29  ;;  %v6839_v57 = vadd.high.f32.bf16 %v6837_v10, %v6702_v48 }
 0x2d1   : > { %1990 = vrot.lane.b32.xlu1 %v8599_v63, %s6936_s30  ;;  %v1341_v8 = vadd.f32 %v1307_v34, %v1213_v9 }
 0x2d2   : > { %2372 = vrot.lane.b32.xlu0 %v8614_v24, %s6938_s5  ;;  %v6836_v37 = vadd.low.f32.bf16 %v1085_v32, %v6697_v13 }
 0x2d3   : > { %v1435_v0 = vpop.permute.xlu1 %1434  ;;  %v6348_v61 = vpop.f32.mrb[12].mxu0 }
 0x2d4   : > { %v1469_v18 = vadd.f32 %v1435_v0, %v1341_v8  ;;  %v1433_v2 = vpop.permute.xlu0 %1432  ;;  %v1648_v42 = vadd.f32 %v6348_v61, %v8099_v1  ;;  %v1639_v56 = vpop.f32.mrb[13].mxu0  ;;  %v6838_v3 = vadd.low.f32.bf16 %v6836_v37, %v6702_v48  ;;  %v8746_v61 = vld [vmem:[#allocation3 + $0xc9] sm:$0xff] }
 0x2d5   : > { %v1468_v19 = vadd.f32 %v1433_v2, %v1340_v58  ;;  %v1640_v50 = vadd.f32 %v8099_v1, %v1639_v56  ;;  %v6349_v39 = vpop.f32.mrb[14].mxu0  ;;  %2495 = vrot.lane.b32.xlu1 %v8512_v46, %s6939_s6  ;;  %v8758_v2 = vld [vmem:[#allocation3 + $0xd1] sm:$0xff] }
 0x2d6   : > { %v8622_v14 = vmax.f32 %v1648_v42, 0.0  ;;  %v1651_v22 = vadd.f32 %v6349_v39, %v8099_v1  ;;  %1992 = vrot.lane.b32.xlu0 %v8614_v24, %s6936_s30  ;;  %v1642_v35 = vpop.f32.mrb[15].mxu0 }
 0x2d7   : > { %v1486_v53 = vpack.c.bf16 %v1469_v18, %v1468_v19  ;;  %v8627_v60 = vmax.f32 %v1640_v50, 0.0  ;;  %v1643_v44 = vadd.f32 %v8099_v1, %v1642_v35  ;;  %v8630_v38 = vpop.permute.xlu1 %6711  ;;  %v8769_v19 = vld [vmem:[%s11544_s2] ss:$0 sm:$0xff] }
 0x2d8   : > { %1764 = vst [vmem:[#allocation3 + $0x108] sm:$0xff] %v8622_v14  ;;  %v8633_v46 = vmax.f32 %v1651_v22, 0.0  ;;  %v6707_v7 = vpop.permute.xlu0 %6706 }
 0x2d9   : > { %1762 = vst [vmem:[#allocation3 + $0xe8] sm:$0xff] %v8627_v60  ;;  %v8636_v21 = vmax.f32 %v1643_v44, 0.0  ;;  %6362 = vmatprep.mubr.bf16.mxu0 %v1486_v53  ;;  %1994 = vrot.lane.b32.xlu1 %v1952_v40, %s6936_s30  ;;  %v6840_v1 = vadd.low.f32.bf16 %v6838_v3, %v6707_v7  ;;  %v6841_v62 = vadd.high.f32.bf16 %v6839_v57, %v6707_v7 }
 0x2da   : > { %1765 = vst [vmem:[#allocation3 + $0x110] sm:$0xff] %v8633_v46  ;;  %2497 = vrot.lane.b32.xlu0 %v8528_v27, %s6939_s6 }
 0x2db   : > { %1763 = vst [vmem:[#allocation3 + $0xf0] sm:$0xff] %v8636_v21  ;;  %v8643_v59 = vpop.permute.xlu1 %1852  ;;  %v1487_v31 = vpack.c.bf16 %v6841_v62, %v6840_v1  ;;  %v1782_v62 = vld [vmem:[#allocation3 + $0x7] sm:$0xff] }
 0x2dc   : > { %v8645_v43 = vpop.permute.xlu0 %1850 }
 0x2dd   : > { %2499 = vrot.lane.b32.xlu1 %v8647_v26, %s6939_s6  ;;  %6363 = vmatmul.mubr.bf16.gmra.mrb[28].mxu0 %v1487_v31 }
 0x2de   : > { %1996 = vrot.lane.b32.xlu0 %v1953_v33, %s6936_s30 }
 0x2df   : > { %v8652_v55 = vpop.permute.xlu1 %1978 }
 0x2e0   : > { %v8654_v4 = vpop.permute.xlu0 %6716 }
 0x2e1   : > { %2118 = vrot.lane.b32.xlu1 %v8647_v26, %s6934_s20 }
 0x2e2   : > { %2501 = vrot.lane.b32.xlu0 %v8658_v51, %s6939_s6  ;;  %v8785_v57 = vld [vmem:[#allocation3 + $0xe9] sm:$0xff] }
 0x2e3   : > { %v8662_v13 = vpop.permute.xlu1 %2102 }
 0x2e4   : > { %v8664_v23 = vpop.permute.xlu0 %1980 }
 0x2e5   : > { %2623 = vrot.lane.b32.xlu1 %v8281_v17, %s6940_s17  ;;  %v8686_v17 = vld [vmem:[#allocation3 + $0xcf] sm:$0xff] }
 0x2e6   : > { %2120 = vrot.lane.b32.xlu0 %v8658_v51, %s6934_s20  ;;  %11643 = vst [vmem:[#allocation15_spill] sm:$0xff] %v8686_v17 }
 0x2e7   : > { %v8670_v36 = vpop.permute.xlu1 %2106 }
 0x2e8   : > { %v8672_v5 = vpop.permute.xlu0 %2104 }
 0x2e9   : > { %2122 = vrot.lane.b32.xlu1 %v8674_v28, %s6934_s20 }
 0x2ea   : > { %2625 = vrot.lane.b32.xlu0 %v8292_v52, %s6940_s17 }
 0x2eb   : > { %v8680_v15 = vpop.permute.xlu1 %2230 }
 0x2ec   : > { %v8682_v6 = vpop.permute.xlu0 %2108 }
 0x2ed   : > { %2627 = vrot.lane.b32.xlu1 %v8441_v16, %s6940_s17 }
 0x2ee   : > { %2124 = vrot.lane.b32.xlu0 %v8686_v17, %s6934_s20 }
 0x2ef   : > { %v8690_v48 = vpop.permute.xlu1 %2234 }
 0x2f0   : > { %v8692_v45 = vpop.permute.xlu0 %2232 }
 0x2f1   : > { %2246 = vrot.lane.b32.xlu1 %v8441_v16, %s6937_s4 }
 0x2f2   : > { %2629 = vrot.lane.b32.xlu0 %v8457_v54, %s6940_s17 }
 0x2f3   : > { %v8698_v52 = vpop.permute.xlu1 %1854 }
 0x2f4   : > { %v8700_v9 = vpop.permute.xlu0 %2236 }
 0x2f5   : > { %2751 = vrot.lane.b32.xlu1 %v8599_v63, %s6941_s8 }
 0x2f6   : > { %2248 = vrot.lane.b32.xlu0 %v8457_v54, %s6937_s4 }
 0x2f7   : > { %v8706_v34 = vpop.permute.xlu1 %2358 }
 0x2f8   : > { %v8708_v41 = vpop.permute.xlu0 %1856 }
 0x2f9   : > { %2250 = vrot.lane.b32.xlu1 %v8436_v12, %s6937_s4 }
 0x2fa   : > { %2753 = vrot.lane.b32.xlu0 %v8614_v24, %s6941_s8 }
 0x2fb   : > { %v8714_v16 = vpop.permute.xlu1 %1858 }
 0x2fc   : > { %v8716_v25 = vpop.permute.xlu0 %2360 }
 0x2fd   : > { %2755 = vrot.lane.b32.xlu1 %v1952_v40, %s6941_s8 }
 0x2fe   : > { %2252 = vrot.lane.b32.xlu0 %v8450_v49, %s6937_s4 }
 0x2ff   : > { %v8721_v54 = vpop.permute.xlu1 %2362 }
 0x300   : > { %v8723_v63 = vpop.permute.xlu0 %1860 }
 0x301   : > { %1870 = vrot.lane.b32.xlu1 %v8436_v12, %s6935_s24 }
 0x302   : > { %2757 = vrot.lane.b32.xlu0 %v1953_v33, %s6941_s8 }
 0x303   : > { %v8728_v29 = vpop.permute.xlu1 %1982 }
 0x304   : > { %v8730_v24 = vpop.permute.xlu0 %2364 }
 0x305   : > { %2374 = vrot.lane.b32.xlu1 %v1952_v40, %s6938_s5 }
 0x306   : > { %1872 = vrot.lane.b32.xlu0 %v8450_v49, %s6935_s24 }
 0x307   : > { %v8735_v8 = vpop.permute.xlu1 %2487 }
 0x308   : > { %v8737_v47 = vpop.permute.xlu0 %1984 }
 0x309   : > { %1874 = vrot.lane.b32.xlu1 %v8627_v60, %s6935_s24 }
 0x30a   : > { %2376 = vrot.lane.b32.xlu0 %v1953_v33, %s6938_s5 }
 0x30b   : > { %v8742_v58 = vpop.permute.xlu1 %1986 }
 0x30c   : > { %v8744_v0 = vpop.permute.xlu0 %2489 }
 0x30d   : > { %2378 = vrot.lane.b32.xlu1 %v8746_v61, %s6938_s5 }
 0x30e   : > { %1876 = vrot.lane.b32.xlu0 %v8636_v21, %s6935_s24 }
 0x30f   : > { %v8752_v32 = vpop.permute.xlu1 %2491 }
 0x310   : > { %v8754_v18 = vpop.permute.xlu0 %1988 }
 0x311   : > { %1998 = vrot.lane.b32.xlu1 %v8746_v61, %s6936_s30 }
 0x312   : > { %2380 = vrot.lane.b32.xlu0 %v8758_v2, %s6938_s5 }
 0x313   : > { %v8762_v42 = vpop.permute.xlu1 %2110 }
 0x314   : > { %v6352_v56 = vpop.f32.mrb[16].mxu0  ;;  %v8764_v30 = vpop.permute.xlu0 %2493 }
 0x315   : > { %v1664_v50 = vadd.f32 %v8769_v19, %v6352_v56  ;;  %v1655_v39 = vpop.f32.mrb[17].mxu0  ;;  %2503 = vrot.lane.b32.xlu1 %v8674_v28, %s6939_s6  ;;  %v1783_v56 = vld [vmem:[#allocation3 + $0xf] sm:$0xff] }
 0x316   : > { %v1656_v37 = vadd.f32 %v8769_v19, %v1655_v39  ;;  %v6353_v22 = vpop.f32.mrb[18].mxu0  ;;  %2000 = vrot.lane.b32.xlu0 %v8758_v2, %s6936_s30  ;;  %v8801_v39 = vld [vmem:[#allocation3 + $0xe7] sm:$0xff] }
 0x317   : > { %v8777_v35 = vmax.f32 %v1664_v50, 0.0  ;;  %v1667_v10 = vadd.f32 %v8769_v19, %v6353_v22  ;;  %v1658_v53 = vpop.f32.mrb[19].mxu0  ;;  %v2616_v44 = vpop.permute.xlu1 %2615  ;;  %11644 = vst [vmem:[#allocation16_spill] sm:$0xff] %v8801_v39  ;;  %v8806_v22 = vld [vmem:[#allocation3 + $0xf1] sm:$0xff] }
 0x318   : > { %v8780_v3 = vmax.f32 %v1656_v37, 0.0  ;;  %v1659_v7 = vadd.f32 %v8769_v19, %v1658_v53  ;;  %v8783_v40 = vpop.permute.xlu0 %2112  ;;  %v6842_v37 = vadd.low.f32.bf16 %v1782_v62, %v8630_v38  ;;  %v8817_v62 = vld [vmem:[#allocation3 + $0xef] sm:$0xff] }
 0x319   : > { %1768 = vst [vmem:[#allocation3 + $0x148] sm:$0xff] %v8777_v35  ;;  %v8788_v1 = vmax.f32 %v1667_v10, 0.0  ;;  %2002 = vrot.lane.b32.xlu1 %v8785_v57, %s6936_s30  ;;  %v6843_v10 = vadd.high.f32.bf16 %v1783_v56, %v8630_v38  ;;  %11645 = vst [vmem:[#allocation19_spill] sm:$0xff] %v8817_v62 }
 0x31a   : > { %1766 = vst [vmem:[#allocation3 + $0x128] sm:$0xff] %v8780_v3  ;;  %v8793_v33 = vmax.f32 %v1659_v7, 0.0  ;;  %2505 = vrot.lane.b32.xlu0 %v8686_v17, %s6939_s6  ;;  %v6844_v53 = vadd.low.f32.bf16 %v6842_v37, %v8654_v4 }
 0x31b   : > { %1769 = vst [vmem:[#allocation3 + $0x150] sm:$0xff] %v8788_v1  ;;  %v8798_v31 = vpop.permute.xlu1 %2114  ;;  %v6845_v28 = vadd.high.f32.bf16 %v6843_v10, %v8654_v4  ;;  %v1913_v4 = vadd.f32 %v8364_v11, %v8643_v59 }
 0x31c   : > { %1767 = vst [vmem:[#allocation3 + $0x130] sm:$0xff] %v8793_v33  ;;  %v2618_v50 = vpop.permute.xlu0 %2617  ;;  %v2166_v51 = vadd.f32 %v6844_v53, %v8662_v13  ;;  %v11646_v13 = vld [vmem:[#allocation13_spill] sm:$0xff] }
 0x31d   : > { %2507 = vrot.lane.b32.xlu1 %v8801_v39, %s6939_s6  ;;  %v2167_v26 = vadd.f32 %v6845_v28, %v8672_v5  ;;  %v1912_v10 = vadd.f32 %v11646_v13, %v8645_v43 }
 0x31e   : > { %2004 = vrot.lane.b32.xlu0 %v8806_v22, %s6936_s30  ;;  %v2294_v37 = vadd.f32 %v8680_v15, %v2166_v51  ;;  %v2041_v15 = vadd.f32 %v8664_v23, %v1913_v4  ;;  %v8857_v4 = vld [vmem:[#allocation3 + $0x10f] sm:$0xff] }
 0x31f   : > { %v2620_v7 = vpop.permute.xlu1 %2619  ;;  %v2295_v27 = vadd.f32 %v8692_v45, %v2167_v26  ;;  %v8839_v26 = vld [vmem:[#allocation3 + $0x107] sm:$0xff]  ;;  %11648 = vst [vmem:[#allocation20_spill] sm:$0xff] %v8857_v4 }
 0x320   : > { %v8812_v17 = vpop.permute.xlu0 %2116  ;;  %v2422_v5 = vadd.f32 %v8706_v34, %v2294_v37  ;;  %11647 = vst [vmem:[#allocation13_spill] sm:$0xff] %v8839_v26  ;;  %v2169_v59 = vadd.f32 %v8682_v6, %v2041_v15 }
 0x321   : > { %2126 = vrot.lane.b32.xlu1 %v8801_v39, %s6934_s20  ;;  %v2423_v28 = vadd.f32 %v8716_v25, %v2295_v27 }
 0x322   : > { %2509 = vrot.lane.b32.xlu0 %v8817_v62, %s6939_s6  ;;  %v2551_v45 = vadd.f32 %v8735_v8, %v2422_v5  ;;  %v2297_v8 = vadd.f32 %v8700_v9, %v2169_v59 }
 0x323   : > { %v8823_v38 = vpop.permute.xlu1 %2238  ;;  %v2552_v11 = vadd.f32 %v8744_v0, %v2423_v28 }
 0x324   : > { %v2622_v56 = vpop.permute.xlu0 %2621  ;;  %v2679_v43 = vadd.f32 %v2616_v44, %v2551_v45 }
 0x325   : > { %2631 = vrot.lane.b32.xlu1 %v8436_v12, %s6940_s17  ;;  %v2040_v12 = vadd.f32 %v8652_v55, %v1912_v10  ;;  %v2680_v34 = vadd.f32 %v2618_v50, %v2552_v11 }
 0x326   : > { %2128 = vrot.lane.b32.xlu0 %v8817_v62, %s6934_s20  ;;  %v8989_v62 = vld [vmem:[#allocation3 + $0x12f] sm:$0xff] }
 0x327   : > { %v2744_v53 = vpop.permute.xlu1 %2743  ;;  %v2168_v27 = vadd.f32 %v8670_v36, %v2040_v12  ;;  %v2425_v36 = vadd.f32 %v8730_v24, %v2297_v8 }
 0x328   : > { %v8837_v51 = vpop.permute.xlu0 %2240  ;;  %v2807_v0 = vadd.f32 %v2744_v53, %v2679_v43 }
 0x329   : > { %2130 = vrot.lane.b32.xlu1 %v8839_v26, %s6934_s20  ;;  %v2296_v23 = vadd.f32 %v8690_v48, %v2168_v27  ;;  %v2554_v9 = vadd.f32 %v8764_v30, %v2425_v36  ;;  %v8921_v27 = vld [vmem:[#allocation3 + $0x109] sm:$0xff] }
 0x32a   : > { %2633 = vrot.lane.b32.xlu0 %v8450_v49, %s6940_s17 }
 0x32b   : > { %v8851_v25 = vpop.permute.xlu1 %2242  ;;  %v2424_v49 = vadd.f32 %v8721_v54, %v2296_v23  ;;  %v2682_v10 = vadd.f32 %v2622_v56, %v2554_v9 }
 0x32c   : > { %v2746_v55 = vpop.permute.xlu0 %2745 }
 0x32d   : > { %v2808_v37 = vadd.f32 %v2746_v55, %v2680_v34  ;;  %2635 = vrot.lane.b32.xlu1 %v8627_v60, %s6940_s17  ;;  %v2553_v48 = vadd.f32 %v8752_v32, %v2424_v49 }
 0x32e   : > { %2132 = vrot.lane.b32.xlu0 %v8857_v4, %s6934_s20 }
 0x32f   : > { %v2839_v6 = vpack.c.bf16 %v2808_v37, %v2807_v0  ;;  %v2748_v44 = vpop.permute.xlu1 %2747  ;;  %v2681_v13 = vadd.f32 %v2620_v7, %v2553_v48 }
 0x330   : > { %v8863_v50 = vpop.permute.xlu0 %2244 }
 0x331   : > { %6382 = vmatprep.mubr.bf16.mxu0 %v2839_v6  ;;  %2254 = vrot.lane.b32.xlu1 %v8627_v60, %s6937_s4  ;;  %v2809_v5 = vadd.f32 %v2748_v44, %v2681_v13 }
 0x332   : > { %2637 = vrot.lane.b32.xlu0 %v8636_v21, %s6940_s17 }
 0x333   : > { %v8871_v54 = vpop.permute.xlu1 %1862 }
 0x334   : > { %v2750_v24 = vpop.permute.xlu0 %2749 }
 0x335   : > { %v2810_v28 = vadd.f32 %v2750_v24, %v2682_v10  ;;  %2759 = vrot.lane.b32.xlu1 %v8746_v61, %s6941_s8  ;;  %v8955_v10 = vld [vmem:[#allocation3 + $0x129] sm:$0xff] }
 0x336   : > { %2256 = vrot.lane.b32.xlu0 %v8636_v21, %s6937_s4 }
 0x337   : > { %v2840_v32 = vpack.c.bf16 %v2810_v28, %v2809_v5  ;;  %v8877_v30 = vpop.permute.xlu1 %2366 }
 0x338   : > { %v8879_v60 = vpop.permute.xlu0 %1864 }
 0x339   : > { %6383 = vmatmul.mubr.bf16.vlgmr.msra.gmra.mrb[32].mxu0 %v2840_v32  ;;  %2258 = vrot.lane.b32.xlu1 %v8622_v14, %s6937_s4 }
 0x33a   : > { %2761 = vrot.lane.b32.xlu0 %v8758_v2, %s6941_s8 }
 0x33b   : > { %v8885_v7 = vpop.permute.xlu1 %1866 }
 0x33c   : > { %v8887_v56 = vpop.permute.xlu0 %2368 }
 0x33d   : > { %2763 = vrot.lane.b32.xlu1 %v8785_v57, %s6941_s8 }
 0x33e   : > { %2260 = vrot.lane.b32.xlu0 %v8633_v46, %s6937_s4 }
 0x33f   : > { %v8893_v21 = vpop.permute.xlu1 %2370 }
 0x340   : > { %v8895_v61 = vpop.permute.xlu0 %1868 }
 0x341   : > { %1878 = vrot.lane.b32.xlu1 %v8622_v14, %s6935_s24 }
 0x342   : > { %2765 = vrot.lane.b32.xlu0 %v8806_v22, %s6941_s8 }
 0x343   : > { %v8901_v2 = vpop.permute.xlu1 %1990 }
 0x344   : > { %v8903_v53 = vpop.permute.xlu0 %2372 }
 0x345   : > { %2382 = vrot.lane.b32.xlu1 %v8785_v57, %s6938_s5 }
 0x346   : > { %1880 = vrot.lane.b32.xlu0 %v8633_v46, %s6935_s24 }
 0x347   : > { %v8909_v12 = vpop.permute.xlu1 %2495 }
 0x348   : > { %v8911_v15 = vpop.permute.xlu0 %1992 }
 0x349   : > { %1882 = vrot.lane.b32.xlu1 %v8780_v3, %s6935_s24 }
 0x34a   : > { %2384 = vrot.lane.b32.xlu0 %v8806_v22, %s6938_s5  ;;  %v8933_v22 = vld [vmem:[#allocation3 + $0x111] sm:$0xff] }
 0x34b   : > { %v8917_v45 = vpop.permute.xlu1 %1994 }
 0x34c   : > { %v8919_v11 = vpop.permute.xlu0 %2497 }
 0x34d   : > { %2386 = vrot.lane.b32.xlu1 %v8921_v27, %s6938_s5 }
 0x34e   : > { %1884 = vrot.lane.b32.xlu0 %v8793_v33, %s6935_s24 }
 0x34f   : > { %v8927_v57 = vpop.permute.xlu1 %2499 }
 0x350   : > { %v8929_v59 = vpop.permute.xlu0 %1996 }
 0x351   : > { %2006 = vrot.lane.b32.xlu1 %v8921_v27, %s6936_s30 }
 0x352   : > { %2388 = vrot.lane.b32.xlu0 %v8933_v22, %s6938_s5 }
 0x353   : > { %v8937_v43 = vpop.permute.xlu1 %2118 }
 0x354   : > { %v6356_v34 = vpop.f32.mrb[20].mxu0  ;;  %v8939_v55 = vpop.permute.xlu0 %2501 }
 0x355   : > { %v1680_v23 = vadd.f32 %v8769_v19, %v6356_v34  ;;  %v1671_v8 = vpop.f32.mrb[21].mxu0  ;;  %2511 = vrot.lane.b32.xlu1 %v8839_v26, %s6939_s6  ;;  %v8971_v34 = vld [vmem:[#allocation3 + $0x127] sm:$0xff] }
 0x356   : > { %v1672_v0 = vadd.f32 %v8769_v19, %v1671_v8  ;;  %v6357_v37 = vpop.f32.mrb[22].mxu0  ;;  %2008 = vrot.lane.b32.xlu0 %v8933_v22, %s6936_s30  ;;  %v11649_v8 = vld [vmem:[#allocation14_spill] sm:$0xff] }
 0x357   : > { %v8947_v49 = vmax.f32 %v1680_v23, 0.0  ;;  %v1683_v36 = vadd.f32 %v8769_v19, %v6357_v37  ;;  %v1674_v6 = vpop.f32.mrb[23].mxu0  ;;  %v2624_v44 = vpop.permute.xlu1 %2623  ;;  %v8975_v23 = vld [vmem:[#allocation3 + $0x131] sm:$0xff]  ;;  %v11650_v37 = vld [vmem:[#allocation18_spill] sm:$0xff]  ;;  %11651 = vst [vmem:[#allocation14_spill] sm:$0xff] %v8989_v62 }
 0x358   : > { %v8950_v48 = vmax.f32 %v1672_v0, 0.0  ;;  %v1675_v9 = vadd.f32 %v8769_v19, %v1674_v6  ;;  %v8953_v13 = vpop.permute.xlu0 %2120  ;;  %v1914_v0 = vadd.f32 %v11649_v8, %v8698_v52 }
 0x359   : > { %1772 = vst [vmem:[#allocation3 + $0x188] sm:$0xff] %v8947_v49  ;;  %v8958_v24 = vmax.f32 %v1683_v36, 0.0  ;;  %2010 = vrot.lane.b32.xlu1 %v8955_v10, %s6936_s30  ;;  %v1915_v36 = vadd.f32 %v11650_v37, %v8708_v41 }
 0x35a   : > { %1770 = vst [vmem:[#allocation3 + $0x168] sm:$0xff] %v8950_v48  ;;  %v8963_v5 = vmax.f32 %v1675_v9, 0.0  ;;  %2513 = vrot.lane.b32.xlu0 %v8857_v4, %s6939_s6  ;;  %v2042_v4 = vadd.f32 %v8728_v29, %v1914_v0 }
 0x35b   : > { %1773 = vst [vmem:[#allocation3 + $0x190] sm:$0xff] %v8958_v24  ;;  %v8968_v28 = vpop.permute.xlu1 %2122  ;;  %v2043_v26 = vadd.f32 %v8737_v47, %v1915_v36  ;;  %v11652_v47 = vld [vmem:[#allocation17_spill] sm:$0xff] }
 0x35c   : > { %1771 = vst [vmem:[#allocation3 + $0x170] sm:$0xff] %v8963_v5  ;;  %v2626_v32 = vpop.permute.xlu0 %2625  ;;  %v2170_v52 = vadd.f32 %v8762_v42, %v2042_v4  ;;  %v1916_v0 = vadd.f32 %v11652_v47, %v8714_v16  ;;  %v1917_v42 = vadd.f32 %v8489_v20, %v8723_v63 }
 0x35d   : > { %2515 = vrot.lane.b32.xlu1 %v8971_v34, %s6939_s6  ;;  %v2171_v8 = vadd.f32 %v8783_v40, %v2043_v26 }
 0x35e   : > { %2012 = vrot.lane.b32.xlu0 %v8975_v23, %s6936_s30  ;;  %v2298_v39 = vadd.f32 %v8823_v38, %v2170_v52  ;;  %v2045_v36 = vadd.f32 %v8754_v18, %v1917_v42 }
 0x35f   : > { %v2628_v6 = vpop.permute.xlu1 %2627  ;;  %v2299_v29 = vadd.f32 %v8837_v51, %v2171_v8  ;;  %v9011_v51 = vld [vmem:[#allocation3 + $0x147] sm:$0xff] }
 0x360   : > { %v8983_v9 = vpop.permute.xlu0 %2124  ;;  %v2426_v40 = vadd.f32 %v8877_v30, %v2298_v39  ;;  %11653 = vst [vmem:[#allocation18_spill] sm:$0xff] %v9011_v51  ;;  %v2173_v63 = vadd.f32 %v8812_v17, %v2045_v36 }
 0x361   : > { %2134 = vrot.lane.b32.xlu1 %v8971_v34, %s6934_s20  ;;  %v2427_v26 = vadd.f32 %v8887_v56, %v2299_v29  ;;  %v9029_v29 = vld [vmem:[#allocation3 + $0x14f] sm:$0xff] }
 0x362   : > { %2517 = vrot.lane.b32.xlu0 %v8989_v62, %s6939_s6  ;;  %v2555_v52 = vadd.f32 %v8909_v12, %v2426_v40  ;;  %v2301_v12 = vadd.f32 %v8863_v50, %v2173_v63  ;;  %11654 = vst [vmem:[#allocation17_spill] sm:$0xff] %v9029_v29 }
 0x363   : > { %v8995_v41 = vpop.permute.xlu1 %2246  ;;  %v2556_v16 = vadd.f32 %v8919_v11, %v2427_v26 }
 0x364   : > { %v2630_v37 = vpop.permute.xlu0 %2629  ;;  %v2683_v39 = vadd.f32 %v2624_v44, %v2555_v52  ;;  %v2429_v17 = vadd.f32 %v8903_v53, %v2301_v12 }
 0x365   : > { %2639 = vrot.lane.b32.xlu1 %v8622_v14, %s6940_s17  ;;  %v2044_v14 = vadd.f32 %v8742_v58, %v1916_v0  ;;  %v2684_v30 = vadd.f32 %v2626_v32, %v2556_v16  ;;  %v9093_v16 = vld [vmem:[#allocation3 + $0x149] sm:$0xff] }
 0x366   : > { %2136 = vrot.lane.b32.xlu0 %v8989_v62, %s6934_s20  ;;  %v2558_v50 = vadd.f32 %v8939_v55, %v2429_v17 }
 0x367   : > { %v2752_v4 = vpop.permute.xlu1 %2751  ;;  %v2172_v20 = vadd.f32 %v8798_v31, %v2044_v14 }
 0x368   : > { %v9009_v38 = vpop.permute.xlu0 %2248  ;;  %v2811_v11 = vadd.f32 %v2752_v4, %v2683_v39  ;;  %v2686_v0 = vadd.f32 %v2630_v37, %v2558_v50 }
 0x369   : > { %2138 = vrot.lane.b32.xlu1 %v9011_v51, %s6934_s20  ;;  %v2300_v18 = vadd.f32 %v8851_v25, %v2172_v20 }
 0x36a   : > { %2641 = vrot.lane.b32.xlu0 %v8633_v46, %s6940_s17 }
 0x36b   : > { %v9023_v56 = vpop.permute.xlu1 %2250  ;;  %v2428_v46 = vadd.f32 %v8893_v21, %v2300_v18 }
 0x36c   : > { %v2754_v58 = vpop.permute.xlu0 %2753 }
 0x36d   : > { %v2812_v8 = vadd.f32 %v2754_v58, %v2684_v30  ;;  %2643 = vrot.lane.b32.xlu1 %v8780_v3, %s6940_s17  ;;  %v2557_v25 = vadd.f32 %v8927_v57, %v2428_v46 }
 0x36e   : > { %2140 = vrot.lane.b32.xlu0 %v9029_v29, %s6934_s20 }
 0x36f   : > { %v2841_v31 = vpack.c.bf16 %v2812_v8, %v2811_v11  ;;  %v2756_v44 = vpop.permute.xlu1 %2755  ;;  %v2685_v47 = vadd.f32 %v2628_v6, %v2557_v25 }
 0x370   : > { %v9035_v32 = vpop.permute.xlu0 %2252 }
 0x371   : > { %6386 = vmatprep.mubr.bf16.mxu0 %v2841_v31  ;;  %2262 = vrot.lane.b32.xlu1 %v8780_v3, %s6937_s4  ;;  %v2813_v42 = vadd.f32 %v2756_v44, %v2685_v47  ;;  %v9127_v47 = vld [vmem:[#allocation3 + $0x169] sm:$0xff] }
 0x372   : > { %2645 = vrot.lane.b32.xlu0 %v8793_v33, %s6940_s17 }
 0x373   : > { %v9043_v21 = vpop.permute.xlu1 %1870 }
 0x374   : > { %v2758_v53 = vpop.permute.xlu0 %2757 }
 0x375   : > { %v2814_v40 = vadd.f32 %v2758_v53, %v2686_v0  ;;  %2767 = vrot.lane.b32.xlu1 %v8921_v27, %s6941_s8 }
 0x376   : > { %2264 = vrot.lane.b32.xlu0 %v8793_v33, %s6937_s4 }
 0x377   : > { %v2842_v57 = vpack.c.bf16 %v2814_v40, %v2813_v42  ;;  %v9049_v55 = vpop.permute.xlu1 %2374 }
 0x378   : > { %v9051_v3 = vpop.permute.xlu0 %1872 }
 0x379   : > { %6387 = vmatmul.mubr.bf16.gmra.mrb[36].mxu0 %v2842_v57  ;;  %2266 = vrot.lane.b32.xlu1 %v8777_v35, %s6937_s4  ;;  %v9143_v57 = vld [vmem:[#allocation3 + $0x167] sm:$0xff] }
 0x37a   : > { %2769 = vrot.lane.b32.xlu0 %v8933_v22, %s6941_s8 }
 0x37b   : > { %v9057_v6 = vpop.permute.xlu1 %1874 }
 0x37c   : > { %v9059_v37 = vpop.permute.xlu0 %2376 }
 0x37d   : > { %2771 = vrot.lane.b32.xlu1 %v8955_v10, %s6941_s8 }
 0x37e   : > { %2268 = vrot.lane.b32.xlu0 %v8788_v1, %s6937_s4 }
 0x37f   : > { %v9065_v33 = vpop.permute.xlu1 %2378 }
 0x380   : > { %v9067_v27 = vpop.permute.xlu0 %1876 }
 0x381   : > { %1886 = vrot.lane.b32.xlu1 %v8777_v35, %s6935_s24 }
 0x382   : > { %2773 = vrot.lane.b32.xlu0 %v8975_v23, %s6941_s8 }
 0x383   : > { %v9073_v22 = vpop.permute.xlu1 %1998 }
 0x384   : > { %v9075_v26 = vpop.permute.xlu0 %2380 }
 0x385   : > { %2390 = vrot.lane.b32.xlu1 %v8955_v10, %s6938_s5 }
 0x386   : > { %1888 = vrot.lane.b32.xlu0 %v8788_v1, %s6935_s24 }
 0x387   : > { %v9081_v4 = vpop.permute.xlu1 %2503 }
 0x388   : > { %v9083_v14 = vpop.permute.xlu0 %2000 }
 0x389   : > { %1890 = vrot.lane.b32.xlu1 %v8950_v48, %s6935_s24 }
 0x38a   : > { %2392 = vrot.lane.b32.xlu0 %v8975_v23, %s6938_s5  ;;  %v9105_v23 = vld [vmem:[#allocation3 + $0x151] sm:$0xff] }
 0x38b   : > { %v9089_v36 = vpop.permute.xlu1 %2002 }
 0x38c   : > { %v9091_v52 = vpop.permute.xlu0 %2505 }
 0x38d   : > { %2394 = vrot.lane.b32.xlu1 %v9093_v16, %s6938_s5 }
 0x38e   : > { %1892 = vrot.lane.b32.xlu0 %v8963_v5, %s6935_s24 }
 0x38f   : > { %v9099_v10 = vpop.permute.xlu1 %2507 }
 0x390   : > { %v9101_v20 = vpop.permute.xlu0 %2004 }
 0x391   : > { %2014 = vrot.lane.b32.xlu1 %v9093_v16, %s6936_s30 }
 0x392   : > { %2396 = vrot.lane.b32.xlu0 %v9105_v23, %s6938_s5 }
 0x393   : > { %v9109_v63 = vpop.permute.xlu1 %2126 }
 0x394   : > { %v6360_v39 = vpop.f32.mrb[24].mxu0  ;;  %v9111_v30 = vpop.permute.xlu0 %2509 }
 0x395   : > { %v1696_v58 = vadd.f32 %v8769_v19, %v6360_v39  ;;  %v1687_v18 = vpop.f32.mrb[25].mxu0  ;;  %2519 = vrot.lane.b32.xlu1 %v9011_v51, %s6939_s6  ;;  %v9147_v39 = vld [vmem:[#allocation3 + $0x171] sm:$0xff] }
 0x396   : > { %v1688_v12 = vadd.f32 %v8769_v19, %v1687_v18  ;;  %v6361_v11 = vpop.f32.mrb[26].mxu0  ;;  %2016 = vrot.lane.b32.xlu0 %v9105_v23, %s6936_s30  ;;  %v9160_v51 = vld [vmem:[#allocation3 + $0x16f] sm:$0xff] }
 0x397   : > { %v9119_v8 = vmax.f32 %v1696_v58, 0.0  ;;  %v1699_v46 = vadd.f32 %v8769_v19, %v6361_v11  ;;  %v1690_v17 = vpop.f32.mrb[27].mxu0  ;;  %v2632_v31 = vpop.permute.xlu1 %2631  ;;  %v6826_v58 = vld [vmem:[#allocation3 + $0x87] sm:$0xff] }
 0x398   : > { %v9122_v44 = vmax.f32 %v1688_v12, 0.0  ;;  %v1691_v25 = vadd.f32 %v8769_v19, %v1690_v17  ;;  %v9125_v50 = vpop.permute.xlu0 %2128  ;;  %v1918_v18 = vadd.f32 %v6826_v58, %v8871_v54  ;;  %v11655_v12 = vld [vmem:[#allocation9_spill] sm:$0xff] }
 0x399   : > { %1776 = vst [vmem:[#allocation3 + $0x1c8] sm:$0xff] %v9119_v8  ;;  %v9130_v0 = vmax.f32 %v1699_v46, 0.0  ;;  %2018 = vrot.lane.b32.xlu1 %v9127_v47, %s6936_s30  ;;  %v1919_v11 = vadd.f32 %v11655_v12, %v8879_v60  ;;  %11656 = vst [vmem:[#allocation9_spill] sm:$0xff] %v9160_v51 }
 0x39a   : > { %1774 = vst [vmem:[#allocation3 + $0x1a8] sm:$0xff] %v9122_v44  ;;  %v9135_v53 = vmax.f32 %v1691_v25, 0.0  ;;  %2521 = vrot.lane.b32.xlu0 %v9029_v29, %s6939_s6  ;;  %v2046_v25 = vadd.f32 %v8901_v2, %v1918_v18 }
 0x39b   : > { %1777 = vst [vmem:[#allocation3 + $0x1d0] sm:$0xff] %v9130_v0  ;;  %v9140_v42 = vpop.permute.xlu1 %2130  ;;  %v2047_v29 = vadd.f32 %v8911_v15, %v1919_v11  ;;  %v11657_v15 = vld [vmem:[#allocation10_spill] sm:$0xff] }
 0x39c   : > { %1775 = vst [vmem:[#allocation3 + $0x1b0] sm:$0xff] %v9135_v53  ;;  %v2634_v40 = vpop.permute.xlu0 %2633  ;;  %v2174_v54 = vadd.f32 %v8937_v43, %v2046_v25  ;;  %v1920_v18 = vadd.f32 %v11657_v15, %v8885_v7  ;;  %v11658_v43 = vld [vmem:[#allocation11_spill] sm:$0xff] }
 0x39d   : > { %2523 = vrot.lane.b32.xlu1 %v9143_v57, %s6939_s6  ;;  %v2175_v58 = vadd.f32 %v8953_v13, %v2047_v29  ;;  %v1921_v11 = vadd.f32 %v11658_v43, %v8895_v61 }
 0x39e   : > { %2020 = vrot.lane.b32.xlu0 %v9147_v39, %s6936_s30  ;;  %v2302_v62 = vadd.f32 %v8995_v41, %v2174_v54 }
 0x39f   : > { %v2636_v46 = vpop.permute.xlu1 %2635  ;;  %v2303_v2 = vadd.f32 %v9009_v38, %v2175_v58  ;;  %v9182_v38 = vld [vmem:[#allocation3 + $0x187] sm:$0xff]  ;;  %v2049_v54 = vadd.f32 %v8929_v59, %v1921_v11 }
 0x3a0   : > { %v9154_v17 = vpop.permute.xlu0 %2132  ;;  %v2430_v13 = vadd.f32 %v9049_v55, %v2302_v62  ;;  %11659 = vst [vmem:[#allocation10_spill] sm:$0xff] %v9182_v38 }
 0x3a1   : > { %2142 = vrot.lane.b32.xlu1 %v9143_v57, %s6934_s20  ;;  %v2431_v29 = vadd.f32 %v9059_v37, %v2303_v2  ;;  %v2177_v61 = vadd.f32 %v8983_v9, %v2049_v54 }
 0x3a2   : > { %2525 = vrot.lane.b32.xlu0 %v9160_v51, %s6939_s6  ;;  %v2559_v58 = vadd.f32 %v9081_v4, %v2430_v13 }
 0x3a3   : > { %v9166_v60 = vpop.permute.xlu1 %2254  ;;  %v2560_v7 = vadd.f32 %v9091_v52, %v2431_v29  ;;  %v2305_v4 = vadd.f32 %v9035_v32, %v2177_v61 }
 0x3a4   : > { %v2638_v12 = vpop.permute.xlu0 %2637  ;;  %v2687_v55 = vadd.f32 %v2632_v31, %v2559_v58 }
 0x3a5   : > { %2647 = vrot.lane.b32.xlu1 %v8777_v35, %s6940_s17  ;;  %v2048_v35 = vadd.f32 %v8917_v45, %v1920_v18  ;;  %v2688_v37 = vadd.f32 %v2634_v40, %v2560_v7  ;;  %v9200_v18 = vld [vmem:[#allocation3 + $0x18f] sm:$0xff] }
 0x3a6   : > { %2144 = vrot.lane.b32.xlu0 %v9160_v51, %s6934_s20  ;;  %11660 = vst [vmem:[#allocation11_spill] sm:$0xff] %v9200_v18 }
 0x3a7   : > { %v2760_v25 = vpop.permute.xlu1 %2759  ;;  %v2176_v62 = vadd.f32 %v8968_v28, %v2048_v35  ;;  %v2433_v28 = vadd.f32 %v9075_v26, %v2305_v4 }
 0x3a8   : > { %v9180_v41 = vpop.permute.xlu0 %2256  ;;  %v2815_v52 = vadd.f32 %v2760_v25, %v2687_v55 }
 0x3a9   : > { %2146 = vrot.lane.b32.xlu1 %v9182_v38, %s6934_s20  ;;  %v2304_v59 = vadd.f32 %v9023_v56, %v2176_v62  ;;  %v2562_v32 = vadd.f32 %v9111_v30, %v2433_v28 }
 0x3aa   : > { %2649 = vrot.lane.b32.xlu0 %v8788_v1, %s6940_s17 }
 0x3ab   : > { %v9194_v2 = vpop.permute.xlu1 %2258  ;;  %v2432_v1 = vadd.f32 %v9065_v33, %v2304_v59  ;;  %v2690_v33 = vadd.f32 %v2638_v12, %v2562_v32 }
 0x3ac   : > { %v2762_v45 = vpop.permute.xlu0 %2761 }
 0x3ad   : > { %v2816_v15 = vadd.f32 %v2762_v45, %v2688_v37  ;;  %2651 = vrot.lane.b32.xlu1 %v8950_v48, %s6940_s17  ;;  %v2561_v56 = vadd.f32 %v9099_v10, %v2432_v1 }
 0x3ae   : > { %2148 = vrot.lane.b32.xlu0 %v9200_v18, %s6934_s20 }
 0x3af   : > { %v2843_v9 = vpack.c.bf16 %v2816_v15, %v2815_v52  ;;  %v2764_v31 = vpop.permute.xlu1 %2763  ;;  %v2689_v11 = vadd.f32 %v2636_v46, %v2561_v56  ;;  %v9286_v56 = vld [vmem:[#allocation3 + $0x191] sm:$0xff] }
 0x3b0   : > { %v9206_v40 = vpop.permute.xlu0 %2260  ;;  %v6364_v43 = vpop.f32.mrb[28].mxu0 }
 0x3b1   : > { %6390 = vmatprep.mubr.bf16.mxu0 %v2843_v9  ;;  %2270 = vrot.lane.b32.xlu1 %v8950_v48, %s6937_s4  ;;  %v1712_v26 = vadd.f32 %v8769_v19, %v6364_v43  ;;  %v1703_v13 = vpop.f32.mrb[29].mxu0  ;;  %v2817_v30 = vadd.f32 %v2764_v31, %v2689_v11  ;;  %v9274_v9 = vld [vmem:[#allocation3 + $0x189] sm:$0xff] }
 0x3b2   : > { %2653 = vrot.lane.b32.xlu0 %v8963_v5, %s6940_s17  ;;  %v1704_v25 = vadd.f32 %v8769_v19, %v1703_v13  ;;  %v6365_v10 = vpop.f32.mrb[30].mxu0 }
 0x3b3   : > { %v9215_v29 = vpop.permute.xlu1 %1878  ;;  %v9218_v54 = vmax.f32 %v1712_v26, 0.0  ;;  %v1715_v48 = vadd.f32 %v8769_v19, %v6365_v10  ;;  %v1706_v7 = vpop.f32.mrb[31].mxu0  ;;  %v9312_v10 = vld [vmem:[#allocation3 + $0x1b1] sm:$0xff] }
 0x3b4   : > { %v2766_v35 = vpop.permute.xlu0 %2765  ;;  %v9223_v46 = vmax.f32 %v1704_v25, 0.0  ;;  %v1707_v12 = vadd.f32 %v8769_v19, %v1706_v7  ;;  %v9308_v25 = vld [vmem:[#allocation3 + $0x1a7] sm:$0xff] }
 0x3b5   : > { %v2818_v58 = vadd.f32 %v2766_v35, %v2690_v33  ;;  %2775 = vrot.lane.b32.xlu1 %v9093_v16, %s6941_s8  ;;  %1780 = vst [vmem:[#allocation3 + $0x208] sm:$0xff] %v9218_v54  ;;  %v9229_v62 = vmax.f32 %v1715_v48, 0.0  ;;  %v9300_v33 = vld [vmem:[#allocation3 + $0x1a9] sm:$0xff]  ;;  %11661 = vst [vmem:[#allocation21_spill] sm:$0xff] %v9308_v25 }
 0x3b6   : > { %2272 = vrot.lane.b32.xlu0 %v8963_v5, %s6937_s4  ;;  %1778 = vst [vmem:[#allocation3 + $0x1e8] sm:$0xff] %v9223_v46  ;;  %v9234_v37 = vmax.f32 %v1707_v12, 0.0  ;;  %v11662_v35 = vld [vmem:[#allocation12_spill] sm:$0xff]  ;;  %v11663_v48 = vld [vmem:[#allocation15_spill] sm:$0xff] }
 0x3b7   : > { %v2844_v61 = vpack.c.bf16 %v2818_v58, %v2817_v30  ;;  %v9231_v55 = vpop.permute.xlu1 %2382  ;;  %1781 = vst [vmem:[#allocation3 + $0x210] sm:$0xff] %v9229_v62  ;;  %v1922_v30 = vadd.f32 %v11662_v35, %v9043_v21  ;;  %v1923_v58 = vadd.f32 %v11663_v48, %v9051_v3 }
 0x3b8   : > { %v9236_v45 = vpop.permute.xlu0 %1880  ;;  %1779 = vst [vmem:[#allocation3 + $0x1f0] sm:$0xff] %v9234_v37 }
 0x3b9   : > { %6391 = vmatmul.mubr.bf16.gmra.mrb[40].mxu0 %v2844_v61  ;;  %2274 = vrot.lane.b32.xlu1 %v8947_v49, %s6937_s4  ;;  %v2050_v61 = vadd.f32 %v9073_v22, %v1922_v30 }
 0x3ba   : > { %2777 = vrot.lane.b32.xlu0 %v9105_v23, %s6941_s8 }
 0x3bb   : > { %v9244_v19 = vpop.permute.xlu1 %1882  ;;  %v2178_v21 = vadd.f32 %v9109_v63, %v2050_v61  ;;  %v11666_v63 = vld [vmem:[#allocation19_spill] sm:$0xff] }
 0x3bc   : > { %v2385_v5 = vpop.permute.xlu0 %2384 }
 0x3bd   : > { %2779 = vrot.lane.b32.xlu1 %v9127_v47, %s6941_s8  ;;  %v2306_v51 = vadd.f32 %v9166_v60, %v2178_v21  ;;  %v9347_v60 = vld [vmem:[#allocation3 + $0x1c7] sm:$0xff] }
 0x3be   : > { %2276 = vrot.lane.b32.xlu0 %v8958_v24, %s6937_s4  ;;  %11667 = vst [vmem:[#allocation15_spill] sm:$0xff] %v9347_v60 }
 0x3bf   : > { %v9250_v16 = vpop.permute.xlu1 %2386 }
 0x3c0   : > { %v9252_v59 = vpop.permute.xlu0 %1884 }
 0x3c1   : > { %1894 = vrot.lane.b32.xlu1 %v8947_v49, %s6935_s24 }
 0x3c2   : > { %2781 = vrot.lane.b32.xlu0 %v9147_v39, %s6941_s8 }
 0x3c3   : > { %v9258_v23 = vpop.permute.xlu1 %2006 }
 0x3c4   : > { %v9260_v4 = vpop.permute.xlu0 %2388 }
 0x3c5   : > { %2398 = vrot.lane.b32.xlu1 %v9127_v47, %s6938_s5 }
 0x3c6   : > { %1896 = vrot.lane.b32.xlu0 %v8958_v24, %s6935_s24 }
 0x3c7   : > { %v2512_v52 = vpop.permute.xlu1 %2511 }
 0x3c8   : > { %v9266_v15 = vpop.permute.xlu0 %2008 }
 0x3c9   : > { %1898 = vrot.lane.b32.xlu1 %v9122_v44, %s6935_s24 }
 0x3ca   : > { %2400 = vrot.lane.b32.xlu0 %v9147_v39, %s6938_s5 }
 0x3cb   : > { %v9272_v1 = vpop.permute.xlu1 %2010 }
 0x3cc   : > { %v2514_v28 = vpop.permute.xlu0 %2513 }
 0x3cd   : > { %2402 = vrot.lane.b32.xlu1 %v9274_v9, %s6938_s5 }
 0x3ce   : > { %1900 = vrot.lane.b32.xlu0 %v9135_v53, %s6935_s24 }
 0x3cf   : > { %v9280_v47 = vpop.permute.xlu1 %2515 }
 0x3d0   : > { %v9282_v31 = vpop.permute.xlu0 %2012 }
 0x3d1   : > { %2022 = vrot.lane.b32.xlu1 %v9274_v9, %s6936_s30 }
 0x3d2   : > { %2404 = vrot.lane.b32.xlu0 %v9286_v56, %s6938_s5 }
 0x3d3   : > { %v9290_v39 = vpop.permute.xlu1 %2134 }
 0x3d4   : > { %v9292_v32 = vpop.permute.xlu0 %2517 }
 0x3d5   : > { %2527 = vrot.lane.b32.xlu1 %v9182_v38, %s6939_s6  ;;  %v9326_v38 = vld [vmem:[#allocation3 + $0x1af] sm:$0xff] }
 0x3d6   : > { %2024 = vrot.lane.b32.xlu0 %v9286_v56, %s6936_s30  ;;  %11664 = vst [vmem:[#allocation12_spill] sm:$0xff] %v9326_v38 }
 0x3d7   : > { %v2640_v43 = vpop.permute.xlu1 %2639 }
 0x3d8   : > { %v9298_v11 = vpop.permute.xlu0 %2136 }
 0x3d9   : > { %2026 = vrot.lane.b32.xlu1 %v9300_v33, %s6936_s30 }
 0x3da   : > { %2529 = vrot.lane.b32.xlu0 %v9200_v18, %s6939_s6  ;;  %v2051_v18 = vadd.f32 %v9083_v14, %v1923_v58  ;;  %v11665_v14 = vld [vmem:[#allocation16_spill] sm:$0xff]  ;;  %v1925_v58 = vadd.f32 %v11666_v63, %v9067_v27 }
 0x3db   : > { %v9306_v26 = vpop.permute.xlu1 %2138  ;;  %v1924_v30 = vadd.f32 %v11665_v14, %v9057_v6  ;;  %v9363_v14 = vld [vmem:[#allocation3 + $0x1cf] sm:$0xff] }
 0x3dc   : > { %v2642_v13 = vpop.permute.xlu0 %2641  ;;  %v2179_v35 = vadd.f32 %v9125_v50, %v2051_v18  ;;  %v2434_v50 = vadd.f32 %v9231_v55, %v2306_v51  ;;  %11668 = vst [vmem:[#allocation16_spill] sm:$0xff] %v9363_v14 }
 0x3dd   : > { %2531 = vrot.lane.b32.xlu1 %v9308_v25, %s6939_s6 }
 0x3de   : > { %2028 = vrot.lane.b32.xlu0 %v9312_v10, %s6936_s30  ;;  %v2307_v22 = vadd.f32 %v9180_v41, %v2179_v35  ;;  %v2052_v41 = vadd.f32 %v9089_v36, %v1924_v30  ;;  %v2563_v21 = vadd.f32 %v2512_v52, %v2434_v50 }
 0x3df   : > { %v2644_v7 = vpop.permute.xlu1 %2643 }
 0x3e0   : > { %v9320_v12 = vpop.permute.xlu0 %2140  ;;  %v2435_v18 = vadd.f32 %v2385_v5, %v2307_v22  ;;  %v2180_v51 = vadd.f32 %v9140_v42, %v2052_v41  ;;  %v2691_v27 = vadd.f32 %v2640_v43, %v2563_v21 }
 0x3e1   : > { %2150 = vrot.lane.b32.xlu1 %v9308_v25, %s6934_s20 }
 0x3e2   : > { %2533 = vrot.lane.b32.xlu0 %v9326_v38, %s6939_s6  ;;  %v2564_v35 = vadd.f32 %v2514_v28, %v2435_v18  ;;  %v2308_v36 = vadd.f32 %v9194_v2, %v2180_v51  ;;  %v9432_v51 = vld [vmem:[#allocation3 + $0x1c9] sm:$0xff] }
 0x3e3   : > { %v9332_v3 = vpop.permute.xlu1 %2262 }
 0x3e4   : > { %v2646_v48 = vpop.permute.xlu0 %2645  ;;  %v2692_v55 = vadd.f32 %v2642_v13, %v2564_v35 }
 0x3e5   : > { %2655 = vrot.lane.b32.xlu1 %v8947_v49, %s6940_s17  ;;  %v2053_v49 = vadd.f32 %v9101_v20, %v1925_v58 }
 0x3e6   : > { %2152 = vrot.lane.b32.xlu0 %v9326_v38, %s6934_s20  ;;  %v9500_v38 = vld [vmem:[#allocation3 + $0x1ef] sm:$0xff] }
 0x3e7   : > { %v2768_v61 = vpop.permute.xlu1 %2767  ;;  %v2181_v6 = vadd.f32 %v9154_v17, %v2053_v49  ;;  %v9426_v49 = vld [vmem:[%s11544_s2 + $0x1] ss:$0 sm:$0xff] }
 0x3e8   : > { %v9345_v25 = vpop.permute.xlu0 %2264  ;;  %v2819_v52 = vadd.f32 %v2768_v61, %v2691_v27 }
 0x3e9   : > { %2154 = vrot.lane.b32.xlu1 %v9347_v60, %s6934_s20  ;;  %v2309_v20 = vadd.f32 %v9206_v40, %v2181_v6 }
 0x3ea   : > { %2657 = vrot.lane.b32.xlu0 %v8958_v24, %s6940_s17  ;;  %v2436_v24 = vadd.f32 %v9250_v16, %v2308_v36 }
 0x3eb   : > { %v9357_v5 = vpop.permute.xlu1 %2266  ;;  %v2437_v42 = vadd.f32 %v9260_v4, %v2309_v20 }
 0x3ec   : > { %v2770_v22 = vpop.permute.xlu0 %2769  ;;  %v2565_v2 = vadd.f32 %v9280_v47, %v2436_v24 }
 0x3ed   : > { %v2820_v28 = vadd.f32 %v2770_v22, %v2692_v55  ;;  %2659 = vrot.lane.b32.xlu1 %v9122_v44, %s6940_s17  ;;  %v2566_v40 = vadd.f32 %v9292_v32, %v2437_v42 }
 0x3ee   : > { %2156 = vrot.lane.b32.xlu0 %v9363_v14, %s6934_s20  ;;  %v2693_v30 = vadd.f32 %v2644_v7, %v2565_v2 }
 0x3ef   : > { %v2845_v17 = vpack.c.bf16 %v2820_v28, %v2819_v52  ;;  %v2772_v43 = vpop.permute.xlu1 %2771  ;;  %v2694_v63 = vadd.f32 %v2646_v48, %v2566_v40 }
 0x3f0   : > { %v9369_v13 = vpop.permute.xlu0 %2268  ;;  %v2821_v58 = vadd.f32 %v2772_v43, %v2693_v30  ;;  %v9455_v43 = vld [vmem:[#allocation3 + $0x1d1] sm:$0xff] }
 0x3f1   : > { %6394 = vmatprep.mubr.bf16.mxu0 %v2845_v17  ;;  %2278 = vrot.lane.b32.xlu1 %v9122_v44, %s6937_s4 }
 0x3f2   : > { %2661 = vrot.lane.b32.xlu0 %v9135_v53, %s6940_s17 }
 0x3f3   : > { %v9377_v16 = vpop.permute.xlu1 %1886 }
 0x3f4   : > { %v2774_v4 = vpop.permute.xlu0 %2773 }
 0x3f5   : > { %v2822_v50 = vadd.f32 %v2774_v4, %v2694_v63  ;;  %2783 = vrot.lane.b32.xlu1 %v9274_v9, %s6941_s8 }
 0x3f6   : > { %2280 = vrot.lane.b32.xlu0 %v9135_v53, %s6937_s4 }
 0x3f7   : > { %v2846_v47 = vpack.c.bf16 %v2822_v50, %v2821_v58  ;;  %v9383_v32 = vpop.permute.xlu1 %2390  ;;  %v9474_v58 = vld [vmem:[#allocation3 + $0x1e9] sm:$0xff] }
 0x3f8   : > { %v9385_v44 = vpop.permute.xlu0 %1888 }
 0x3f9   : > { %6395 = vmatmul.mubr.bf16.gmra.mrb[44].mxu0 %v2846_v47  ;;  %2282 = vrot.lane.b32.xlu1 %v9119_v8, %s6937_s4 }
 0x3fa   : > { %2785 = vrot.lane.b32.xlu0 %v9286_v56, %s6941_s8 }
 0x3fb   : > { %v9391_v7 = vpop.permute.xlu1 %1890 }
 0x3fc   : > { %v9393_v48 = vpop.permute.xlu0 %2392 }
 0x3fd   : > { %2787 = vrot.lane.b32.xlu1 %v9300_v33, %s6941_s8 }
 0x3fe   : > { %2284 = vrot.lane.b32.xlu0 %v9130_v0, %s6937_s4 }
 0x3ff   : > { %v9399_v53 = vpop.permute.xlu1 %2394 }
 0x400   : > { %v9401_v9 = vpop.permute.xlu0 %1892 }
 0x401   : > { %1902 = vrot.lane.b32.xlu1 %v9119_v8, %s6935_s24 }
 0x402   : > { %2789 = vrot.lane.b32.xlu0 %v9312_v10, %s6941_s8 }
 0x403   : > { %v9407_v56 = vpop.permute.xlu1 %2014 }
 0x404   : > { %v9409_v18 = vpop.permute.xlu0 %2396 }
 0x405   : > { %2406 = vrot.lane.b32.xlu1 %v9300_v33, %s6938_s5 }
 0x406   : > { %1904 = vrot.lane.b32.xlu0 %v9130_v0, %s6935_s24 }
 0x407   : > { %v9415_v61 = vpop.permute.xlu1 %2519 }
 0x408   : > { %v9417_v41 = vpop.permute.xlu0 %2016 }
 0x409   : > { %1906 = vrot.lane.b32.xlu1 %v9223_v46, %s6935_s24 }
 0x40a   : > { %2408 = vrot.lane.b32.xlu0 %v9312_v10, %s6938_s5 }
 0x40b   : > { %v9428_v21 = vpop.permute.xlu1 %2018 }
 0x40c   : > { %v9430_v33 = vpop.permute.xlu0 %2521  ;;  %v6384_v35 = vpop.f32.mrb[32].mxu0 }
 0x40d   : > { %v2968_v6 = vadd.f32 %v6384_v35, %v9426_v49  ;;  %v2959_v27 = vpop.f32.mrb[33].mxu0  ;;  %2410 = vrot.lane.b32.xlu1 %v9432_v51, %s6938_s5  ;;  %v9482_v35 = vld [vmem:[#allocation3 + $0x1e7] sm:$0xff] }
 0x40e   : > { %v2960_v10 = vadd.f32 %v9426_v49, %v2959_v27  ;;  %1908 = vrot.lane.b32.xlu0 %v9234_v37, %s6935_s24  ;;  %v6385_v55 = vpop.f32.mrb[34].mxu0  ;;  %v11670_v27 = vld [vmem:[#allocation13_spill] sm:$0xff] }
 0x40f   : > { %v9440_v22 = vmax.f32 %v2968_v6, 0.0  ;;  %v2971_v36 = vadd.f32 %v6385_v55, %v9426_v49  ;;  %v2962_v20 = vpop.f32.mrb[35].mxu0  ;;  %v9443_v52 = vpop.permute.xlu1 %2523  ;;  %v9486_v6 = vld [vmem:[#allocation3 + $0x1f1] sm:$0xff] }
 0x410   : > { %v9445_v28 = vmax.f32 %v2960_v10, 0.0  ;;  %v2963_v24 = vadd.f32 %v9426_v49, %v2962_v20  ;;  %v9448_v42 = vpop.permute.xlu0 %2020  ;;  %v1926_v10 = vadd.f32 %v11670_v27, %v9215_v29  ;;  %v11671_v55 = vld [vmem:[#allocation20_spill] sm:$0xff] }
 0x411   : > { %11669 = vst [vmem:[#allocation19_spill] sm:$0xff] %v9440_v22  ;;  %3120 = vst [vmem:[#allocation4 + $0x48] sm:$0xff] %v9440_v22  ;;  %v9451_v17 = vmax.f32 %v2971_v36, 0.0  ;;  %2030 = vrot.lane.b32.xlu1 %v9432_v51, %s6936_s30  ;;  %v1927_v36 = vadd.f32 %v11671_v55, %v9236_v45 }
 0x412   : > { %3118 = vst [vmem:[#allocation4 + $0x28] sm:$0xff] %v9445_v28  ;;  %v9458_v2 = vmax.f32 %v2963_v24, 0.0  ;;  %2412 = vrot.lane.b32.xlu0 %v9455_v43, %s6938_s5 }
 0x413   : > { %3121 = vst [vmem:[#allocation4 + $0x50] sm:$0xff] %v9451_v17  ;;  %v9463_v40 = vpop.permute.xlu1 %2142 }
 0x414   : > { %3119 = vst [vmem:[#allocation4 + $0x30] sm:$0xff] %v9458_v2  ;;  %v9466_v30 = vpop.permute.xlu0 %2525 }
 0x415   : > { %2535 = vrot.lane.b32.xlu1 %v9347_v60, %s6939_s6  ;;  %v2055_v60 = vadd.f32 %v9266_v15, %v1927_v36  ;;  %v1928_v15 = vadd.f32 %v8971_v34, %v9244_v19 }
 0x416   : > { %2032 = vrot.lane.b32.xlu0 %v9455_v43, %s6936_s30 }
 0x417   : > { %v2648_v63 = vpop.permute.xlu1 %2647  ;;  %v2183_v27 = vadd.f32 %v9298_v11, %v2055_v60  ;;  %v2056_v36 = vadd.f32 %v9272_v1, %v1928_v15 }
 0x418   : > { %v9472_v4 = vpop.permute.xlu0 %2144 }
 0x419   : > { %2034 = vrot.lane.b32.xlu1 %v9474_v58, %s6936_s30  ;;  %v2184_v34 = vadd.f32 %v9306_v26, %v2056_v36  ;;  %v2485_v36 = vld [vmem:[#allocation3 + $0x227] sm:$0xff] }
 0x41a   : > { %2537 = vrot.lane.b32.xlu0 %v9363_v14, %s6939_s6  ;;  %v2054_v14 = vadd.f32 %v9258_v23, %v1926_v10  ;;  %v2311_v23 = vadd.f32 %v9345_v25, %v2183_v27  ;;  %v2100_v25 = vld [vmem:[#allocation3 + $0x207] sm:$0xff] }
 0x41b   : > { %v9480_v50 = vpop.permute.xlu1 %2146 }
 0x41c   : > { %v2650_v47 = vpop.permute.xlu0 %2649  ;;  %v2182_v29 = vadd.f32 %v9290_v39, %v2054_v14  ;;  %v11672_v39 = vld [vmem:[#allocation14_spill] sm:$0xff]  ;;  %v2439_v60 = vadd.f32 %v9393_v48, %v2311_v23  ;;  %v2101_v23 = vld [vmem:[#allocation3 + $0x20f] sm:$0xff] }
 0x41d   : > { %2539 = vrot.lane.b32.xlu1 %v9482_v35, %s6939_s6  ;;  %v1929_v14 = vadd.f32 %v11672_v39, %v9252_v59 }
 0x41e   : > { %2036 = vrot.lane.b32.xlu0 %v9486_v6, %s6936_s30  ;;  %v2310_v22 = vadd.f32 %v9332_v3, %v2182_v29  ;;  %v2568_v27 = vadd.f32 %v9430_v33, %v2439_v60 }
 0x41f   : > { %v2652_v20 = vpop.permute.xlu1 %2651 }
 0x420   : > { %v9494_v24 = vpop.permute.xlu0 %2148  ;;  %v2438_v11 = vadd.f32 %v9383_v32, %v2310_v22  ;;  %v2696_v32 = vadd.f32 %v2650_v47, %v2568_v27 }
 0x421   : > { %2158 = vrot.lane.b32.xlu1 %v9482_v35, %s6934_s20 }
 0x422   : > { %2541 = vrot.lane.b32.xlu0 %v9500_v38, %s6939_s6  ;;  %v2567_v29 = vadd.f32 %v9415_v61, %v2438_v11 }
 0x423   : > { %v9506_v45 = vpop.permute.xlu1 %2270 }
 0x424   : > { %v2654_v55 = vpop.permute.xlu0 %2653  ;;  %v2695_v59 = vadd.f32 %v2648_v63, %v2567_v29 }
 0x425   : > { %2663 = vrot.lane.b32.xlu1 %v9119_v8, %s6940_s17  ;;  %v2057_v8 = vadd.f32 %v9282_v31, %v1929_v14  ;;  %v2312_v31 = vadd.f32 %v9357_v5, %v2184_v34 }
 0x426   : > { %2160 = vrot.lane.b32.xlu0 %v9500_v38, %s6934_s20 }
 0x427   : > { %v2776_v10 = vpop.permute.xlu1 %2775  ;;  %v2185_v19 = vadd.f32 %v9320_v12, %v2057_v8  ;;  %v2486_v8 = vld [vmem:[#allocation3 + $0x22f] sm:$0xff] }
 0x428   : > { %v9520_v3 = vpop.permute.xlu0 %2272  ;;  %v2823_v22 = vadd.f32 %v2776_v10, %v2695_v59  ;;  %v2356_v10 = vld [vmem:[#allocation3 + $0x209] sm:$0xff]  ;;  %v6720_v34 = vpack.i.bf16 %v2486_v8, %v2485_v36  ;;  %v3343_v8 = vld [vmem:[#allocation4 + $0x11] sm:$0xff] }
 0x429   : > { %2162 = vrot.lane.b32.xlu1 %v2100_v25, %s6934_s20  ;;  %v2313_v61 = vadd.f32 %v9369_v13, %v2185_v19  ;;  %v3342_v36 = vld [vmem:[#allocation4 + $0x9] sm:$0xff] }
 0x42a   : > { %2665 = vrot.lane.b32.xlu0 %v9130_v0, %s6940_s17  ;;  %v2440_v0 = vadd.f32 %v9399_v53, %v2312_v31 }
 0x42b   : > { %v9531_v48 = vpop.permute.xlu1 %2274  ;;  %v2441_v26 = vadd.f32 %v9409_v18, %v2313_v61 }
 0x42c   : > { %v2778_v1 = vpop.permute.xlu0 %2777  ;;  %v2569_v5 = vadd.f32 %v9443_v52, %v2440_v0 }
 0x42d   : > { %v2824_v33 = vadd.f32 %v2778_v1, %v2696_v32  ;;  %2667 = vrot.lane.b32.xlu1 %v9223_v46, %s6940_s17  ;;  %v2570_v13 = vadd.f32 %v9466_v30, %v2441_v26 }
 0x42e   : > { %2164 = vrot.lane.b32.xlu0 %v2101_v23, %s6934_s20  ;;  %v2697_v15 = vadd.f32 %v2652_v20, %v2569_v5 }
 0x42f   : > { %v2780_v12 = vpop.permute.xlu1 %2779  ;;  %v2847_v63 = vpack.c.bf16 %v2824_v33, %v2823_v22  ;;  %v2698_v39 = vadd.f32 %v2654_v55, %v2570_v13  ;;  %v9619_v13 = vld [vmem:[#allocation2 + $0x8] sm:$0xff] }
 0x430   : > { %v9540_v47 = vpop.permute.xlu0 %2276  ;;  %v2825_v14 = vadd.f32 %v2780_v12, %v2697_v15  ;;  %v6725_v15 = vpack.i.bf16 %v9619_v13, %v9619_v13 }
 0x431   : > { %6398 = vmatprep.mubr.bf16.mxu1 %v2847_v63  ;;  %2286 = vrot.lane.b32.xlu1 %v9223_v46, %s6937_s4 }
 0x432   : > { %2669 = vrot.lane.b32.xlu0 %v9234_v37, %s6940_s17 }
 0x433   : > { %v9548_v53 = vpop.permute.xlu1 %1894 }
 0x434   : > { %v2782_v18 = vpop.permute.xlu0 %2781 }
 0x435   : > { %v2826_v11 = vadd.f32 %v2782_v18, %v2698_v39  ;;  %2791 = vrot.lane.b32.xlu1 %v9432_v51, %s6941_s8  ;;  %v2741_v39 = vld [vmem:[#allocation3 + $0x229] sm:$0xff]  ;;  %v2742_v18 = vld [vmem:[#allocation3 + $0x231] sm:$0xff] }
 0x436   : > { %2288 = vrot.lane.b32.xlu0 %v9234_v37, %s6937_s4 }
 0x437   : > { %v2848_v52 = vpack.c.bf16 %v2826_v11, %v2825_v14  ;;  %v9554_v30 = vpop.permute.xlu1 %2398  ;;  %v6730_v11 = vpack.i.bf16 %v2742_v18, %v2741_v39 }
 0x438   : > { %v9556_v46 = vpop.permute.xlu0 %1896 }
 0x439   : > { %6399 = vmatmul.mubr.bf16.vlgmr.msra.gmra.mrb[0].mxu1 %v2848_v52  ;;  %2290 = vrot.lane.b32.xlu1 %v9218_v54, %s6937_s4 }
 0x43a   : > { %2793 = vrot.lane.b32.xlu0 %v9455_v43, %s6941_s8 }
 0x43b   : > { %v9562_v20 = vpop.permute.xlu1 %1898 }
 0x43c   : > { %v9564_v55 = vpop.permute.xlu0 %2400 }
 0x43d   : > { %2795 = vrot.lane.b32.xlu1 %v9474_v58, %s6941_s8 }
 0x43e   : > { %2292 = vrot.lane.b32.xlu0 %v9229_v62, %s6937_s4 }
 0x43f   : > { %v9570_v37 = vpop.permute.xlu1 %2402 }
 0x440   : > { %v9572_v51 = vpop.permute.xlu0 %1900 }
 0x441   : > { %2414 = vrot.lane.b32.xlu1 %v9474_v58, %s6938_s5  ;;  %v2357_v58 = vld [vmem:[#allocation3 + $0x211] sm:$0xff] }
 0x442   : > { %2797 = vrot.lane.b32.xlu0 %v9486_v6, %s6941_s8 }
 0x443   : > { %v9578_v43 = vpop.permute.xlu1 %2022 }
 0x444   : > { %v9580_v60 = vpop.permute.xlu0 %2404 }
 0x445   : > { %2418 = vrot.lane.b32.xlu1 %v2356_v10, %s6938_s5 }
 0x446   : > { %2416 = vrot.lane.b32.xlu0 %v9486_v6, %s6938_s5 }
 0x447   : > { %v9585_v29 = vpop.permute.xlu1 %2527 }
 0x448   : > { %v9587_v27 = vpop.permute.xlu0 %2024 }
 0x449   : > { %2543 = vrot.lane.b32.xlu1 %v2100_v25, %s6939_s6 }
 0x44a   : > { %2420 = vrot.lane.b32.xlu0 %v2357_v58, %s6938_s5 }
 0x44b   : > { %v9591_v19 = vpop.permute.xlu1 %2026 }
 0x44c   : > { %v9593_v59 = vpop.permute.xlu0 %2529  ;;  %v6388_v32 = vpop.f32.mrb[36].mxu0 }
 0x44d   : > { %v2984_v1 = vadd.f32 %v6388_v32, %v9426_v49  ;;  %v2975_v6 = vpop.f32.mrb[37].mxu0  ;;  %6721 = vrot.lane.b32.xlu1 %v6720_v34, %s6939_s6 }
 0x44e   : > { %v2976_v31 = vadd.f32 %v9426_v49, %v2975_v6  ;;  %2545 = vrot.lane.b32.xlu0 %v2101_v23, %s6939_s6  ;;  %v6389_v61 = vpop.f32.mrb[38].mxu0 }
 0x44f   : > { %v9599_v25 = vmax.f32 %v2984_v1, 0.0  ;;  %v2987_v22 = vadd.f32 %v6389_v61, %v9426_v49  ;;  %v2978_v33 = vpop.f32.mrb[39].mxu0  ;;  %v9602_v0 = vpop.permute.xlu1 %2531  ;;  %v6740_v1 = vpack.i.bf16 %v3343_v8, %v3342_v36 }
 0x450   : > { %v9604_v26 = vmax.f32 %v2976_v31, 0.0  ;;  %v2979_v12 = vadd.f32 %v9426_v49, %v2978_v33  ;;  %v9607_v63 = vpop.permute.xlu0 %2028  ;;  %v11674_v31 = vld [vmem:[#allocation17_spill] sm:$0xff] }
 0x451   : > { %3124 = vst [vmem:[#allocation4 + $0x88] sm:$0xff] %v9599_v25  ;;  %v9610_v5 = vmax.f32 %v2987_v22, 0.0  ;;  %2673 = vrot.lane.b32.xlu1 %v9229_v62, %s6940_s17  ;;  %v1931_v61 = vadd.f32 %v11674_v31, %v9385_v44  ;;  %v3345_v44 = vld [vmem:[#allocation4 + $0x31] sm:$0xff] }
 0x452   : > { %3122 = vst [vmem:[#allocation4 + $0x68] sm:$0xff] %v9604_v26  ;;  %v9615_v23 = vmax.f32 %v2979_v12, 0.0  ;;  %2671 = vrot.lane.b32.xlu0 %v9218_v54, %s6940_s17 }
 0x453   : > { %3125 = vst [vmem:[#allocation4 + $0x90] sm:$0xff] %v9610_v5  ;;  %v9624_v14 = vpop.permute.xlu1 %2150  ;;  %v2059_v12 = vadd.f32 %v9417_v41, %v1931_v61  ;;  %v1932_v41 = vadd.f32 %v9143_v57, %v9391_v7  ;;  %v9673_v7 = vld [vmem:[#allocation4 + $0x27] sm:$0xff] }
 0x454   : > { %3123 = vst [vmem:[#allocation4 + $0x70] sm:$0xff] %v9615_v23  ;;  %v9627_v62 = vpop.permute.xlu0 %2533  ;;  %11677 = vst [vmem:[#allocation20_spill] sm:$0xff] %v9673_v7 }
 0x455   : > { %2799 = vrot.lane.b32.xlu1 %v2356_v10, %s6941_s8  ;;  %v11673_v10 = vld [vmem:[#allocation18_spill] sm:$0xff]  ;;  %v2187_v39 = vadd.f32 %v9472_v4, %v2059_v12 }
 0x456   : > { %6726 = vrot.lane.b32.xlu0 %v6725_v15, %s6940_s17  ;;  %v1930_v6 = vadd.f32 %v11673_v10, %v9377_v16 }
 0x457   : > { %v2656_v54 = vpop.permute.xlu1 %2655  ;;  %v2315_v36 = vadd.f32 %v9520_v3, %v2187_v39  ;;  %v2060_v3 = vadd.f32 %v9428_v21, %v1932_v41 }
 0x458   : > { %v9631_v52 = vpop.permute.xlu0 %2152 }
 0x459   : > { %6731 = vrot.lane.b32.xlu1 %v6730_v11, %s6941_s8 }
 0x45a   : > { %2801 = vrot.lane.b32.xlu0 %v2357_v58, %s6941_s8  ;;  %v2058_v58 = vadd.f32 %v9407_v56, %v1930_v6  ;;  %v3344_v56 = vld [vmem:[#allocation4 + $0x29] sm:$0xff] }
 0x45b   : > { %v9635_v34 = vpop.permute.xlu1 %2154 }
 0x45c   : > { %v2658_v32 = vpop.permute.xlu0 %2657 }
 0x45d   : > { %3250 = vrot.lane.b32.xlu1 %v9445_v28, %s6935_s24 }
 0x45e   : > { %6736 = vrot.lane.b32.xlu0 %v6725_v15, %s6935_s24  ;;  %v2186_v15 = vadd.f32 %v9463_v40, %v2058_v58  ;;  %v11675_v40 = vld [vmem:[#allocation9_spill] sm:$0xff] }
 0x45f   : > { %v2660_v22 = vpop.permute.xlu1 %2659  ;;  %v1933_v8 = vadd.f32 %v11675_v40, %v9401_v9  ;;  %v2188_v9 = vadd.f32 %v9480_v50, %v2060_v3 }
 0x460   : > { %v9644_v33 = vpop.permute.xlu0 %2156  ;;  %v2314_v11 = vadd.f32 %v9506_v45, %v2186_v15  ;;  %v9667_v45 = vld [vmem:[#allocation4 + $0x2f] sm:$0xff] }
 0x461   : > { %6741 = vrot.lane.b32.xlu1 %v6740_v1, %s6936_s30  ;;  %v2443_v1 = vadd.f32 %v9564_v55, %v2315_v36  ;;  %11676 = vst [vmem:[#allocation13_spill] sm:$0xff] %v9667_v45  ;;  %v2061_v31 = vadd.f32 %v9448_v42, %v1933_v8 }
 0x462   : > { %3252 = vrot.lane.b32.xlu0 %v9458_v2, %s6935_s24  ;;  %v2442_v4 = vadd.f32 %v9554_v30, %v2314_v11  ;;  %v9687_v11 = vld [vmem:[#allocation4 + $0x47] sm:$0xff] }
 0x463   : > { %v9653_v16 = vpop.permute.xlu1 %2278  ;;  %v2572_v57 = vadd.f32 %v9593_v59, %v2443_v1  ;;  %v2189_v30 = vadd.f32 %v9494_v24, %v2061_v31  ;;  %v2316_v59 = vadd.f32 %v9531_v48, %v2188_v9  ;;  %11679 = vst [vmem:[#allocation18_spill] sm:$0xff] %v9687_v11 }
 0x464   : > { %v2662_v18 = vpop.permute.xlu0 %2661  ;;  %v2571_v61 = vadd.f32 %v9585_v29, %v2442_v4  ;;  %v9683_v29 = vld [vmem:[#allocation4 + $0x4f] sm:$0xff] }
 0x465   : > { %3380 = vrot.lane.b32.xlu1 %v3345_v44, %s6936_s30  ;;  %v2700_v21 = vadd.f32 %v2658_v32, %v2572_v57  ;;  %11678 = vst [vmem:[#allocation14_spill] sm:$0xff] %v9683_v29  ;;  %v2317_v12 = vadd.f32 %v9540_v47, %v2189_v30  ;;  %v2444_v50 = vadd.f32 %v9570_v37, %v2316_v59  ;;  %v9737_v57 = vld [vmem:[#allocation4 + $0x49] sm:$0xff]  ;;  %v6776_v30 = vld [vmem:[%s11543_s1 + $0x80] sm:$0xff]  }
 0x466   : > { %3378 = vrot.lane.b32.xlu0 %v3344_v56, %s6936_s30  ;;  %v2699_v55 = vadd.f32 %v2656_v54, %v2571_v61  ;;  %v9735_v61 = vld [vmem:[#allocation4 + $0x51] sm:$0xff]  ;;  %6414 = vmatprep.subr.bf16.mxu0 %v6776_v30 }
 0x467   : > { %v2784_v10 = vpop.permute.xlu1 %2783  ;;  %v2445_v24 = vadd.f32 %v9580_v60, %v2317_v12  ;;  %v2573_v48 = vadd.f32 %v9602_v0, %v2444_v50  ;;  %v11680_v0 = vld [vmem:[#allocation19_spill] sm:$0xff]  ;;  %6415 = vmatpush3.bf16.msra.mxu0 %v6776_v30  ;;  %v6778_v30 = vld [vmem:[%s11543_s1 + $0x90] sm:$0xff]  }
 0x468   : > { %v9665_v6 = vpop.permute.xlu0 %2280  ;;  %v2827_v15 = vadd.f32 %v2784_v10, %v2699_v55 }
 0x469   : > { %3504 = vrot.lane.b32.xlu1 %v9667_v45, %s6934_s20  ;;  %v2574_v47 = vadd.f32 %v9627_v62, %v2445_v24  ;;  %v2701_v41 = vadd.f32 %v2660_v22, %v2573_v48  ;;  %v9835_v45 = vld [vmem:[#allocation4 + $0x8f] sm:$0xff] }
 0x46a   : > { %3502 = vrot.lane.b32.xlu0 %v9673_v7, %s6934_s20 }
 0x46b   : > { %v9681_v58 = vpop.permute.xlu1 %2282  ;;  %v2702_v40 = vadd.f32 %v2662_v18, %v2574_v47 }
 0x46c   : > { %v2786_v42 = vpop.permute.xlu0 %2785 }
 0x46d   : > { %v2828_v39 = vadd.f32 %v2786_v42, %v2700_v21  ;;  %3508 = vrot.lane.b32.xlu1 %v9683_v29, %s6934_s20 }
 0x46e   : > { %3506 = vrot.lane.b32.xlu0 %v9687_v11, %s6934_s20 }
 0x46f   : > { %v2849_v54 = vpack.c.bf16 %v2828_v39, %v2827_v15  ;;  %v2788_v32 = vpop.permute.xlu1 %2787 }
 0x470   : > { %v9695_v36 = vpop.permute.xlu0 %2284  ;;  %v2829_v8 = vadd.f32 %v2788_v32, %v2701_v41  ;;  %v6777_v32 = vld [vmem:[%s11543_s1 + $0x88] sm:$0xff]  }
 0x471   : > { %6402 = vmatprep.mubr.bf16.mxu1 %v2849_v54  ;;  %3632 = vrot.lane.b32.xlu1 %v9458_v2, %s6937_s4 }
 0x472   : > { %3630 = vrot.lane.b32.xlu0 %v9445_v28, %s6937_s4  ;;  %6416 = vmatprep.subr.bf16.mxu0 %v6777_v32 }
 0x473   : > { %v9703_v37 = vpop.permute.xlu1 %1902  ;;  %6417 = vmatpush3.bf16.msra.mxu0 %v6777_v32 }
 0x474   : > { %v2790_v60 = vpop.permute.xlu0 %2789  ;;  %6418 = vmatprep.subr.bf16.mxu0 %v6778_v30 }
 0x475   : > { %v2830_v4 = vadd.f32 %v2790_v60, %v2702_v40  ;;  %3636 = vrot.lane.b32.xlu1 %v9451_v17, %s6937_s4  ;;  %v9777_v40 = vld [vmem:[#allocation4 + $0x71] sm:$0xff] }
 0x476   : > { %3634 = vrot.lane.b32.xlu0 %v11680_v0, %s6937_s4 }
 0x477   : > { %v2850_v62 = vpack.c.bf16 %v2830_v4, %v2829_v8  ;;  %v9709_v1 = vpop.permute.xlu1 %2406  ;;  %v9782_v8 = vld [vmem:[#allocation4 + $0x69] sm:$0xff]  ;;  %6419 = vmatpush3.bf16.msra.mxu0 %v6778_v30  ;;  %v11684_v30 = vld [vmem:[#allocation10_spill] sm:$0xff] }
 0x478   : > { %v9711_v2 = vpop.permute.xlu0 %1904 }
 0x479   : > { %6403 = vmatmul.mubr.bf16.gmra.mrb[4].mxu1 %v2850_v62  ;;  %3256 = vrot.lane.b32.xlu1 %v9451_v17, %s6935_s24 }
 0x47a   : > { %3254 = vrot.lane.b32.xlu0 %v11680_v0, %s6935_s24 }
 0x47b   : > { %v9717_v28 = vpop.permute.xlu1 %1906 }
 0x47c   : > { %v9719_v22 = vpop.permute.xlu0 %2408 }
 0x47d   : > { %3760 = vrot.lane.b32.xlu1 %v3345_v44, %s6938_s5 }
 0x47e   : > { %3758 = vrot.lane.b32.xlu0 %v3344_v56, %s6938_s5 }
 0x47f   : > { %v9723_v18 = vpop.permute.xlu1 %2410 }
 0x480   : > { %v9725_v10 = vpop.permute.xlu0 %1908 }
 0x481   : > { %3260 = vrot.lane.b32.xlu1 %v9615_v23, %s6935_s24 }
 0x482   : > { %3258 = vrot.lane.b32.xlu0 %v9604_v26, %s6935_s24 }
 0x483   : > { %v9731_v3 = vpop.permute.xlu1 %2030 }
 0x484   : > { %v9733_v31 = vpop.permute.xlu0 %2412 }
 0x485   : > { %3764 = vrot.lane.b32.xlu1 %v9735_v61, %s6938_s5 }
 0x486   : > { %3762 = vrot.lane.b32.xlu0 %v9737_v57, %s6938_s5 }
 0x487   : > { %v9743_v44 = vpop.permute.xlu1 %2535 }
 0x488   : > { %v9745_v56 = vpop.permute.xlu0 %2032 }
 0x489   : > { %3384 = vrot.lane.b32.xlu1 %v9735_v61, %s6936_s30 }
 0x48a   : > { %3382 = vrot.lane.b32.xlu0 %v9737_v57, %s6936_s30 }
 0x48b   : > { %v9751_v9 = vpop.permute.xlu1 %2034 }
 0x48c   : > { %v9756_v55 = vpop.permute.xlu0 %2537  ;;  %v6392_v21 = vpop.f32.mrb[40].mxu0 }
 0x48d   : > { %v3000_v42 = vadd.f32 %v6392_v21, %v9426_v49  ;;  %v2991_v59 = vpop.f32.mrb[41].mxu0  ;;  %3889 = vrot.lane.b32.xlu1 %v9683_v29, %s6939_s6  ;;  %v6781_v29 = vld [vmem:[%s11543_s1 + $0xa8] sm:$0xff]  }
 0x48e   : > { %v2992_v12 = vadd.f32 %v9426_v49, %v2991_v59  ;;  %v6393_v15 = vpop.f32.mrb[42].mxu0  ;;  %3887 = vrot.lane.b32.xlu0 %v9687_v11, %s6939_s6  ;;  %v9802_v59 = vld [vmem:[#allocation4 + $0x67] sm:$0xff] }
 0x48f   : > { %v9764_v39 = vmax.f32 %v3000_v42, 0.0  ;;  %v3003_v50 = vadd.f32 %v6393_v15, %v9426_v49  ;;  %v2994_v24 = vpop.f32.mrb[43].mxu0  ;;  %v9767_v54 = vpop.permute.xlu1 %2539  ;;  %v9800_v42 = vld [vmem:[#allocation4 + $0x6f] sm:$0xff]  ;;  %11683 = vst [vmem:[#allocation19_spill] sm:$0xff] %v9802_v59  ;;  %v6779_v15 = vld [vmem:[%s11543_s1 + $0x98] sm:$0xff]  }
 0x490   : > { %v9772_v48 = vmax.f32 %v2992_v12, 0.0  ;;  %v2995_v47 = vadd.f32 %v9426_v49, %v2994_v24  ;;  %v9775_v41 = vpop.permute.xlu0 %2036  ;;  %11682 = vst [vmem:[#allocation9_spill] sm:$0xff] %v9800_v42  ;;  %6420 = vmatprep.subr.bf16.mxu0 %v6779_v15 }
 0x491   : > { %11681 = vst [vmem:[#allocation17_spill] sm:$0xff] %v9764_v39  ;;  %3128 = vst [vmem:[#allocation4 + $0xc8] sm:$0xff] %v9764_v39  ;;  %v9780_v60 = vmax.f32 %v3003_v50, 0.0  ;;  %3388 = vrot.lane.b32.xlu1 %v9777_v40, %s6936_s30  ;;  %6421 = vmatpush3.bf16.msra.mxu0 %v6779_v15  ;;  %v9839_v39 = vld [vmem:[#allocation4 + $0x87] sm:$0xff] }
 0x492   : > { %3126 = vst [vmem:[#allocation4 + $0xa8] sm:$0xff] %v9772_v48  ;;  %v9787_v4 = vmax.f32 %v2995_v47, 0.0  ;;  %3386 = vrot.lane.b32.xlu0 %v9782_v8, %s6936_s30  ;;  %v6780_v47 = vld [vmem:[%s11543_s1 + $0xa0] sm:$0xff]  }
 0x493   : > { %3129 = vst [vmem:[#allocation4 + $0xd0] sm:$0xff] %v9780_v60  ;;  %v9792_v62 = vpop.permute.xlu1 %2158  ;;  %6422 = vmatprep.subr.bf16.mxu0 %v6780_v47 }
 0x494   : > { %3127 = vst [vmem:[#allocation4 + $0xb0] sm:$0xff] %v9787_v4  ;;  %v9798_v21 = vpop.permute.xlu0 %2541 }
 0x495   : > { %3893 = vrot.lane.b32.xlu1 %v9800_v42, %s6939_s6  ;;  %6423 = vmatpush3.bf16.msra.mxu0 %v6780_v47 }
 0x496   : > { %3891 = vrot.lane.b32.xlu0 %v9802_v59, %s6939_s6  ;;  %6424 = vmatprep.subr.bf16.mxu0 %v6781_v29 }
 0x497   : > { %v2664_v12 = vpop.permute.xlu1 %2663 }
 0x498   : > { %v9811_v50 = vpop.permute.xlu0 %2160 }
 0x499   : > { %3512 = vrot.lane.b32.xlu1 %v9800_v42, %s6934_s20  ;;  %v1934_v42 = vadd.f32 %v11684_v30, %v9548_v53  ;;  %6425 = vmatpush3.bf16.msra.mxu0 %v6781_v29 }
 0x49a   : > { %3510 = vrot.lane.b32.xlu0 %v9802_v59, %s6934_s20  ;;  %v11685_v59 = vld [vmem:[#allocation11_spill] sm:$0xff] }
 0x49b   : > { %v9817_v24 = vpop.permute.xlu1 %2162  ;;  %v1935_v15 = vadd.f32 %v11685_v59, %v9556_v46 }
 0x49c   : > { %v2666_v32 = vpop.permute.xlu0 %2665 }
 0x49d   : > { %4017 = vrot.lane.b32.xlu1 %v9451_v17, %s6940_s17  ;;  %v2062_v17 = vadd.f32 %v9578_v43, %v1934_v42  ;;  %v6782_v43 = vld [vmem:[%s11543_s1 + $0xb0] sm:$0xff]  }
 0x49e   : > { %4015 = vrot.lane.b32.xlu0 %v11680_v0, %s6940_s17  ;;  %v2063_v0 = vadd.f32 %v9587_v27, %v1935_v15  ;;  %6426 = vmatprep.subr.bf16.mxu0 %v6782_v43 }
 0x49f   : > { %v2668_v11 = vpop.permute.xlu1 %2667  ;;  %v2190_v53 = vadd.f32 %v9624_v14, %v2062_v17  ;;  %v11686_v14 = vld [vmem:[#allocation21_spill] sm:$0xff]  ;;  %6427 = vmatpush3.bf16.msra.mxu0 %v6782_v43 }
 0x4a0   : > { %v9833_v7 = vpop.permute.xlu0 %2164  ;;  %v2191_v46 = vadd.f32 %v9631_v52, %v2063_v0  ;;  %v1936_v30 = vadd.f32 %v11686_v14, %v9562_v20  ;;  %v11687_v52 = vld [vmem:[#allocation12_spill] sm:$0xff] }
 0x4a1   : > { %3516 = vrot.lane.b32.xlu1 %v9835_v45, %s6934_s20  ;;  %v2318_v42 = vadd.f32 %v9653_v16, %v2190_v53  ;;  %v1937_v29 = vadd.f32 %v11687_v52, %v9572_v51  ;;  %v11688_v52 = vld [vmem:[#allocation15_spill] sm:$0xff] }
 0x4a2   : > { %3514 = vrot.lane.b32.xlu0 %v9839_v39, %s6934_s20  ;;  %v2319_v47 = vadd.f32 %v9665_v6, %v2191_v46  ;;  %v6783_v6 = vld [vmem:[%s11543_s1 + $0xb8] sm:$0xff]   ;;  %v2064_v0 = vadd.f32 %v9591_v19, %v1936_v30 }
 0x4a3   : > { %v9847_v59 = vpop.permute.xlu1 %2286  ;;  %v2446_v15 = vadd.f32 %v9709_v1, %v2318_v42  ;;  %v2065_v20 = vadd.f32 %v9607_v63, %v1937_v29  ;;  %6428 = vmatprep.subr.bf16.mxu0 %v6783_v6  ;;  %v1938_v29 = vadd.f32 %v11688_v52, %v9703_v37 }
 0x4a4   : > { %v2670_v27 = vpop.permute.xlu0 %2669  ;;  %v2447_v17 = vadd.f32 %v9719_v22, %v2319_v47  ;;  %v2192_v1 = vadd.f32 %v9635_v34, %v2064_v0  ;;  %6429 = vmatpush3.bf16.msra.mxu0 %v6783_v6  ;;  %v1940_v6 = vadd.f32 %v9482_v35, %v9717_v28  ;;  %v1941_v0 = vadd.f32 %v9500_v38, %v9725_v10 }
 0x4a5   : > { %4021 = vrot.lane.b32.xlu1 %v9615_v23, %s6940_s17  ;;  %v2575_v46 = vadd.f32 %v9743_v44, %v2446_v15  ;;  %v2193_v22 = vadd.f32 %v9644_v33, %v2065_v20  ;;  %6558 = vmatprep.subr.bf16.mxu0 %v9619_v13  ;;  %v11689_v15 = vld [vmem:[#allocation16_spill] sm:$0xff] }
 0x4a6   : > { %4019 = vrot.lane.b32.xlu0 %v9604_v26, %s6940_s17  ;;  %v2576_v51 = vadd.f32 %v9756_v55, %v2447_v17  ;;  %v2320_v44 = vadd.f32 %v9681_v58, %v2192_v1  ;;  %v1939_v17 = vadd.f32 %v11689_v15, %v9711_v2  ;;  %v2068_v37 = vadd.f32 %v9751_v9, %v1940_v6 }
 0x4a7   : > { %v2792_v16 = vpop.permute.xlu1 %2791  ;;  %v2703_v19 = vadd.f32 %v2664_v12, %v2575_v46  ;;  %v2321_v55 = vadd.f32 %v9695_v36, %v2193_v22  ;;  %v2066_v46 = vadd.f32 %v9731_v3, %v1938_v29  ;;  %v3353_v29 = vld [vmem:[#allocation4 + $0xb1] sm:$0xff] }
 0x4a8   : > { %v9868_v53 = vpop.permute.xlu0 %2288  ;;  %v2704_v43 = vadd.f32 %v2666_v32, %v2576_v51  ;;  %v2196_v28 = vadd.f32 %v9817_v24, %v2068_v37 }
 0x4a9   : > { %3640 = vrot.lane.b32.xlu1 %v9615_v23, %s6937_s4  ;;  %v2831_v23 = vadd.f32 %v2792_v16, %v2703_v19  ;;  %v2449_v34 = vadd.f32 %v9733_v31, %v2321_v55  ;;  %v2194_v35 = vadd.f32 %v9792_v62, %v2066_v46  ;;  %v9972_v46 = vld [vmem:[#allocation4 + $0xa7] sm:$0xff] }
 0x4aa   : > { %3638 = vrot.lane.b32.xlu0 %v9604_v26, %s6937_s4  ;;  %v2448_v26 = vadd.f32 %v9723_v18, %v2320_v44  ;;  %11691 = vst [vmem:[#allocation11_spill] sm:$0xff] %v9972_v46 }
 0x4ab   : > { %v2291_v42 = vpop.permute.xlu1 %2290  ;;  %v2578_v58 = vadd.f32 %v9798_v21, %v2449_v34  ;;  %v2322_v51 = vadd.f32 %v9847_v59, %v2194_v35 }
 0x4ac   : > { %v2794_v63 = vpop.permute.xlu0 %2793  ;;  %v2577_v13 = vadd.f32 %v9767_v54, %v2448_v26  ;;  %v2324_v62 = vadd.f32 %v2291_v42, %v2196_v28  ;;  %v9998_v28 = vld [vmem:[#allocation4 + $0xcf] sm:$0xff] }
 0x4ad   : > { %v2832_v47 = vadd.f32 %v2794_v63, %v2704_v43  ;;  %4145 = vrot.lane.b32.xlu1 %v9735_v61, %s6941_s8  ;;  %v2706_v61 = vadd.f32 %v2670_v27, %v2578_v58  ;;  %11692 = vst [vmem:[#allocation21_spill] sm:$0xff] %v9998_v28 }
 0x4ae   : > { %4143 = vrot.lane.b32.xlu0 %v9737_v57, %s6941_s8  ;;  %v2705_v36 = vadd.f32 %v2668_v11, %v2577_v13 }
 0x4af   : > { %v2851_v33 = vpack.c.bf16 %v2832_v47, %v2831_v23  ;;  %v2796_v12 = vpop.permute.xlu1 %2795 }
 0x4b0   : > { %v2293_v32 = vpop.permute.xlu0 %2292  ;;  %v2833_v14 = vadd.f32 %v2796_v12, %v2705_v36 }
 0x4b1   : > { %6406 = vmatprep.mubr.bf16.mxu1 %v2851_v33  ;;  %3644 = vrot.lane.b32.xlu1 %v9610_v5, %s6937_s4 }
 0x4b2   : > { %3642 = vrot.lane.b32.xlu0 %v9599_v25, %s6937_s4 }
 0x4b3   : > { %v2415_v57 = vpop.permute.xlu1 %2414 }
 0x4b4   : > { %v2798_v18 = vpop.permute.xlu0 %2797 }
 0x4b5   : > { %v2834_v31 = vadd.f32 %v2798_v18, %v2706_v61  ;;  %4149 = vrot.lane.b32.xlu1 %v9777_v40, %s6941_s8 }
 0x4b6   : > { %4147 = vrot.lane.b32.xlu0 %v9782_v8, %s6941_s8 }
 0x4b7   : > { %v2852_v54 = vpack.c.bf16 %v2834_v31, %v2833_v14  ;;  %v2419_v21 = vpop.permute.xlu1 %2418 }
 0x4b8   : > { %v2417_v30 = vpop.permute.xlu0 %2416  ;;  %v2452_v22 = vadd.f32 %v2419_v21, %v2324_v62 }
 0x4b9   : > { %6407 = vmatmul.mubr.bf16.gmra.mrb[8].mxu1 %v2852_v54  ;;  %3264 = vrot.lane.b32.xlu1 %v9610_v5, %s6935_s24 }
 0x4ba   : > { %3262 = vrot.lane.b32.xlu0 %v9599_v25, %s6935_s24 }
 0x4bb   : > { %v2544_v11 = vpop.permute.xlu1 %2543 }
 0x4bc   : > { %v2421_v27 = vpop.permute.xlu0 %2420 }
 0x4bd   : > { %3768 = vrot.lane.b32.xlu1 %v9777_v40, %s6938_s5  ;;  %v2067_v40 = vadd.f32 %v9745_v56, %v1939_v17  ;;  %v9926_v56 = vld [vmem:[#allocation4 + $0x91] sm:$0xff] }
 0x4be   : > { %3766 = vrot.lane.b32.xlu0 %v9782_v8, %s6938_s5  ;;  %v2069_v8 = vadd.f32 %v9775_v41, %v1941_v0  ;;  %v9930_v41 = vld [vmem:[#allocation4 + $0x89] sm:$0xff] }
 0x4bf   : > { %v6722_v16 = vpop.permute.xlu1 %6721  ;;  %v2195_v2 = vadd.f32 %v9811_v50, %v2067_v40  ;;  %v2450_v50 = vadd.f32 %v2415_v57, %v2322_v51 }
 0x4c0   : > { %v2546_v20 = vpop.permute.xlu0 %2545  ;;  %v2197_v10 = vadd.f32 %v9833_v7, %v2069_v8 }
 0x4c1   : > { %3268 = vrot.lane.b32.xlu1 %v9787_v4, %s6935_s24  ;;  %v2323_v9 = vadd.f32 %v9868_v53, %v2195_v2  ;;  %v2579_v63 = vadd.f32 %v2544_v11, %v2450_v50  ;;  %v6846_v53 = vadd.low.f32.bf16 %v2452_v22, %v6722_v16 }
 0x4c2   : > { %3266 = vrot.lane.b32.xlu0 %v9772_v48, %s6935_s24  ;;  %v2325_v1 = vadd.f32 %v2293_v32, %v2197_v10  ;;  %v10000_v10 = vld [vmem:[#allocation4 + $0xc7] sm:$0xff] }
 0x4c3   : > { %v2674_v38 = vpop.permute.xlu1 %2673  ;;  %v2451_v24 = vadd.f32 %v2417_v30, %v2323_v9  ;;  %11693 = vst [vmem:[#allocation12_spill] sm:$0xff] %v10000_v10 }
 0x4c4   : > { %v2672_v3 = vpop.permute.xlu0 %2671  ;;  %v2453_v19 = vadd.f32 %v2421_v27, %v2325_v1 }
 0x4c5   : > { %3772 = vrot.lane.b32.xlu1 %v9926_v56, %s6938_s5  ;;  %v2580_v59 = vadd.f32 %v2546_v20, %v2451_v24  ;;  %v2707_v55 = vadd.f32 %v2672_v3, %v2579_v63  ;;  %v9970_v20 = vld [vmem:[#allocation4 + $0xaf] sm:$0xff] }
 0x4c6   : > { %3770 = vrot.lane.b32.xlu0 %v9930_v41, %s6938_s5  ;;  %v6847_v44 = vadd.high.f32.bf16 %v2453_v19, %v6722_v16  ;;  %v3352_v16 = vld [vmem:[#allocation4 + $0xa9] sm:$0xff]  ;;  %11690 = vst [vmem:[#allocation10_spill] sm:$0xff] %v9970_v20 }
 0x4c7   : > { %v2800_v7 = vpop.permute.xlu1 %2799  ;;  %v2708_v42 = vadd.f32 %v2674_v38, %v2580_v59 }
 0x4c8   : > { %v6727_v43 = vpop.permute.xlu0 %6726  ;;  %v2835_v12 = vadd.f32 %v2800_v7, %v2707_v55 }
 0x4c9   : > { %3392 = vrot.lane.b32.xlu1 %v9926_v56, %s6936_s30  ;;  %v6848_v47 = vadd.high.f32.bf16 %v6847_v44, %v6727_v43  ;;  %v6849_v26 = vadd.low.f32.bf16 %v6846_v53, %v6727_v43  ;;  %v10070_v53 = vld [vmem:[#allocation4 + $0xd1] sm:$0xff]  ;;  %v10072_v44 = vld [vmem:[#allocation4 + $0xc9] sm:$0xff] }
 0x4ca   : > { %3390 = vrot.lane.b32.xlu0 %v9930_v41, %s6936_s30 }
 0x4cb   : > { %v6732_v23 = vpop.permute.xlu1 %6731 }
 0x4cc   : > { %v2802_v34 = vpop.permute.xlu0 %2801  ;;  %v6396_v33 = vpop.f32.mrb[44].mxu0  ;;  %v6850_v36 = vadd.low.f32.bf16 %v6849_v26, %v6732_v23  ;;  %v6851_v61 = vadd.high.f32.bf16 %v6848_v47, %v6732_v23 }
 0x4cd   : > { %v2836_v32 = vadd.f32 %v2802_v34, %v2708_v42  ;;  %v3016_v13 = vadd.f32 %v6396_v33, %v9426_v49  ;;  %v3007_v58 = vpop.f32.mrb[45].mxu0  ;;  %3897 = vrot.lane.b32.xlu1 %v9835_v45, %s6939_s6  ;;  %v10093_v34 = vld [vmem:[%s11544_s2 + $0x1] ss:$0 sm:$0xff] }
 0x4ce   : > { %v3008_v57 = vadd.f32 %v9426_v49, %v3007_v58  ;;  %v6397_v18 = vpop.f32.mrb[46].mxu0  ;;  %3895 = vrot.lane.b32.xlu0 %v9839_v39, %s6939_s6  ;;  %v2854_v15 = vpack.c.bf16 %v6851_v61, %v6850_v36  ;;  %v3183_v58 = vld [vmem:[#allocation4 + $0xf] sm:$0xff] }
 0x4cf   : > { %v2853_v14 = vpack.c.bf16 %v2836_v32, %v2835_v12  ;;  %v9946_v31 = vmax.f32 %v3016_v13, 0.0  ;;  %v3019_v54 = vadd.f32 %v6397_v18, %v9426_v49  ;;  %v3010_v21 = vpop.f32.mrb[47].mxu0  ;;  %v9949_v30 = vpop.permute.xlu1 %3250 }
 0x4d0   : > { %v9951_v11 = vmax.f32 %v3008_v57, 0.0  ;;  %v3011_v27 = vadd.f32 %v9426_v49, %v3010_v21  ;;  %v9954_v52 = vpop.permute.xlu0 %6736 }
 0x4d1   : > { %3132 = vst [vmem:[#allocation4 + $0x108] sm:$0xff] %v9946_v31  ;;  %v9957_v17 = vmax.f32 %v3019_v54, 0.0  ;;  %6410 = vmatprep.mubr.bf16.mxu1 %v2853_v14  ;;  %3396 = vrot.lane.b32.xlu1 %v3353_v29, %s6936_s30  ;;  %v3182_v14 = vld [vmem:[#allocation4 + $0x7] sm:$0xff] }
 0x4d2   : > { %3130 = vst [vmem:[#allocation4 + $0xe8] sm:$0xff] %v9951_v11  ;;  %v9961_v6 = vmax.f32 %v3011_v27, 0.0  ;;  %3394 = vrot.lane.b32.xlu0 %v3352_v16, %s6936_s30  ;;  %6411 = vmatmul.mubr.bf16.gmra.mrb[12].mxu1 %v2854_v15 }
 0x4d3   : > { %3133 = vst [vmem:[#allocation4 + $0x110] sm:$0xff] %v9957_v17  ;;  %v9965_v49 = vpop.permute.xlu1 %6741 }
 0x4d4   : > { %3131 = vst [vmem:[#allocation4 + $0xf0] sm:$0xff] %v9961_v6  ;;  %v9968_v0 = vpop.permute.xlu0 %3252 }
 0x4d5   : > { %3901 = vrot.lane.b32.xlu1 %v9970_v20, %s6939_s6 }
 0x4d6   : > { %3899 = vrot.lane.b32.xlu0 %v9972_v46, %s6939_s6 }
 0x4d7   : > { %v9978_v40 = vpop.permute.xlu1 %3380 }
 0x4d8   : > { %v9980_v37 = vpop.permute.xlu0 %3378 }
 0x4d9   : > { %3520 = vrot.lane.b32.xlu1 %v9970_v20, %s6934_s20 }
 0x4da   : > { %3518 = vrot.lane.b32.xlu0 %v9972_v46, %s6934_s20 }
 0x4db   : > { %v9986_v8 = vpop.permute.xlu1 %3504 }
 0x4dc   : > { %v9988_v35 = vpop.permute.xlu0 %3502 }
 0x4dd   : > { %4025 = vrot.lane.b32.xlu1 %v9610_v5, %s6940_s17 }
 0x4de   : > { %4023 = vrot.lane.b32.xlu0 %v9599_v25, %s6940_s17 }
 0x4df   : > { %v9994_v2 = vpop.permute.xlu1 %3508 }
 0x4e0   : > { %v9996_v38 = vpop.permute.xlu0 %3506 }
 0x4e1   : > { %3524 = vrot.lane.b32.xlu1 %v9998_v28, %s6934_s20 }
 0x4e2   : > { %3522 = vrot.lane.b32.xlu0 %v10000_v10, %s6934_s20 }
 0x4e3   : > { %v10006_v3 = vpop.permute.xlu1 %3632 }
 0x4e4   : > { %v10008_v5 = vpop.permute.xlu0 %3630 }
 0x4e5   : > { %4029 = vrot.lane.b32.xlu1 %v9787_v4, %s6940_s17 }
 0x4e6   : > { %4027 = vrot.lane.b32.xlu0 %v9772_v48, %s6940_s17 }
 0x4e7   : > { %v10014_v25 = vpop.permute.xlu1 %3636 }
 0x4e8   : > { %v10016_v51 = vpop.permute.xlu0 %3634 }
 0x4e9   : > { %3648 = vrot.lane.b32.xlu1 %v9787_v4, %s6937_s4  ;;  %v11694_v4 = vld [vmem:[#allocation17_spill] sm:$0xff] }
 0x4ea   : > { %3646 = vrot.lane.b32.xlu0 %v9772_v48, %s6937_s4 }
 0x4eb   : > { %v10022_v9 = vpop.permute.xlu1 %3256 }
 0x4ec   : > { %v10024_v62 = vpop.permute.xlu0 %3254 }
 0x4ed   : > { %4153 = vrot.lane.b32.xlu1 %v9926_v56, %s6941_s8 }
 0x4ee   : > { %4151 = vrot.lane.b32.xlu0 %v9930_v41, %s6941_s8 }
 0x4ef   : > { %v10030_v1 = vpop.permute.xlu1 %3760 }
 0x4f0   : > { %v10032_v50 = vpop.permute.xlu0 %3758 }
 0x4f1   : > { %3652 = vrot.lane.b32.xlu1 %v9780_v60, %s6937_s4 }
 0x4f2   : > { %3650 = vrot.lane.b32.xlu0 %v11694_v4, %s6937_s4 }
 0x4f3   : > { %v10038_v48 = vpop.permute.xlu1 %3260 }
 0x4f4   : > { %v10040_v24 = vpop.permute.xlu0 %3258 }
 0x4f5   : > { %4157 = vrot.lane.b32.xlu1 %v3353_v29, %s6941_s8 }
 0x4f6   : > { %4155 = vrot.lane.b32.xlu0 %v3352_v16, %s6941_s8 }
 0x4f7   : > { %v10044_v56 = vpop.permute.xlu1 %3764 }
 0x4f8   : > { %v10046_v41 = vpop.permute.xlu0 %3762 }
 0x4f9   : > { %3272 = vrot.lane.b32.xlu1 %v9780_v60, %s6935_s24 }
 0x4fa   : > { %3270 = vrot.lane.b32.xlu0 %v11694_v4, %s6935_s24 }
 0x4fb   : > { %v10052_v7 = vpop.permute.xlu1 %3384 }
 0x4fc   : > { %v10054_v22 = vpop.permute.xlu0 %3382 }
 0x4fd   : > { %3776 = vrot.lane.b32.xlu1 %v3353_v29, %s6938_s5  ;;  %v10107_v29 = vld [vmem:[#allocation4 + $0xf1] sm:$0xff] }
 0x4fe   : > { %3774 = vrot.lane.b32.xlu0 %v3352_v16, %s6938_s5  ;;  %v10112_v16 = vld [vmem:[#allocation4 + $0xe9] sm:$0xff] }
 0x4ff   : > { %v10058_v19 = vpop.permute.xlu1 %3889 }
 0x500   : > { %v10060_v43 = vpop.permute.xlu0 %3887 }
 0x501   : > { %3276 = vrot.lane.b32.xlu1 %v9961_v6, %s6935_s24 }
 0x502   : > { %3274 = vrot.lane.b32.xlu0 %v9951_v11, %s6935_s24 }
 0x503   : > { %v10066_v63 = vpop.permute.xlu1 %3388 }
 0x504   : > { %v10068_v59 = vpop.permute.xlu0 %3386 }
 0x505   : > { %3780 = vrot.lane.b32.xlu1 %v10070_v53, %s6938_s5 }
 0x506   : > { %3778 = vrot.lane.b32.xlu0 %v10072_v44, %s6938_s5 }
 0x507   : > { %v10078_v42 = vpop.permute.xlu1 %3893 }
 0x508   : > { %v10080_v55 = vpop.permute.xlu0 %3891 }
 0x509   : > { %3400 = vrot.lane.b32.xlu1 %v10070_v53, %s6936_s30 }
 0x50a   : > { %3398 = vrot.lane.b32.xlu0 %v10072_v44, %s6936_s30 }
 0x50b   : > { %v10086_v23 = vpop.permute.xlu1 %3512 }
 0x50c   : > { %v6400_v47 = vpop.f32.mrb[0].mxu1  ;;  %v10088_v26 = vpop.permute.xlu0 %3510 }
 0x50d   : > { %v3032_v33 = vadd.f32 %v10093_v34, %v6400_v47  ;;  %v3023_v12 = vpop.f32.mrb[1].mxu1  ;;  %3905 = vrot.lane.b32.xlu1 %v9998_v28, %s6939_s6  ;;  %v6852_v47 = vadd.high.f32.bf16 %v3183_v58, %v9954_v52  ;;  %v10130_v58 = vld [vmem:[#allocation4 + $0xef] sm:$0xff] }
 0x50e   : > { %v3024_v32 = vadd.f32 %v10093_v34, %v3023_v12  ;;  %v6401_v13 = vpop.f32.mrb[2].mxu1  ;;  %3903 = vrot.lane.b32.xlu0 %v10000_v10, %s6939_s6  ;;  %v6853_v12 = vadd.low.f32.bf16 %v3182_v14, %v9954_v52  ;;  %11695 = vst [vmem:[#allocation15_spill] sm:$0xff] %v10130_v58 }
 0x50f   : > { %v10101_v36 = vmax.f32 %v3032_v33, 0.0  ;;  %v3035_v61 = vadd.f32 %v10093_v34, %v6401_v13  ;;  %v3026_v57 = vpop.f32.mrb[3].mxu1  ;;  %v4018_v18 = vpop.permute.xlu1 %4017  ;;  %v6854_v13 = vadd.high.f32.bf16 %v6852_v47, %v9965_v49 }
 0x510   : > { %v10104_v54 = vmax.f32 %v3024_v32, 0.0  ;;  %v3027_v21 = vadd.f32 %v10093_v34, %v3026_v57  ;;  %v4016_v27 = vpop.permute.xlu0 %4015  ;;  %v6855_v57 = vadd.low.f32.bf16 %v6853_v12, %v9965_v49  ;;  %v11697_v49 = vld [vmem:[#allocation13_spill] sm:$0xff] }
 0x511   : > { %3136 = vst [vmem:[#allocation4 + $0x148] sm:$0xff] %v10101_v36  ;;  %v10110_v15 = vmax.f32 %v3035_v61, 0.0  ;;  %3404 = vrot.lane.b32.xlu1 %v10107_v29, %s6936_s30  ;;  %v3567_v52 = vadd.f32 %v6854_v13, %v9986_v8  ;;  %v3313_v12 = vadd.f32 %v11697_v49, %v9968_v0  ;;  %v11698_v8 = vld [vmem:[#allocation20_spill] sm:$0xff] }
 0x512   : > { %3134 = vst [vmem:[#allocation4 + $0x128] sm:$0xff] %v10104_v54  ;;  %v10118_v33 = vmax.f32 %v3027_v21, 0.0  ;;  %3402 = vrot.lane.b32.xlu0 %v10112_v16, %s6936_s30  ;;  %v10133_v21 = vld [vmem:[#allocation4 + $0xe7] sm:$0xff]  ;;  %v3566_v14 = vadd.f32 %v6855_v57, %v9988_v35  ;;  %v3312_v35 = vadd.f32 %v11698_v8, %v9949_v30 }
 0x513   : > { %3137 = vst [vmem:[#allocation4 + $0x150] sm:$0xff] %v10110_v15  ;;  %v10124_v32 = vpop.permute.xlu1 %3516  ;;  %11696 = vst [vmem:[#allocation16_spill] sm:$0xff] %v10133_v21  ;;  %v3695_v10 = vadd.f32 %v10006_v3, %v3567_v52 }
 0x514   : > { %3135 = vst [vmem:[#allocation4 + $0x130] sm:$0xff] %v10118_v33  ;;  %v10128_v61 = vpop.permute.xlu0 %3514  ;;  %v3694_v46 = vadd.f32 %v10008_v5, %v3566_v14  ;;  %v3441_v5 = vadd.f32 %v9978_v40, %v3313_v12  ;;  %v3440_v0 = vadd.f32 %v9980_v37, %v3312_v35  ;;  %v10168_v37 = vld [vmem:[#allocation4 + $0x10f] sm:$0xff] }
 0x515   : > { %3909 = vrot.lane.b32.xlu1 %v10130_v58, %s6939_s6  ;;  %v3823_v20 = vadd.f32 %v10030_v1, %v3695_v10  ;;  %11699 = vst [vmem:[#allocation17_spill] sm:$0xff] %v10168_v37 }
 0x516   : > { %3907 = vrot.lane.b32.xlu0 %v10133_v21, %s6939_s6  ;;  %v3822_v13 = vadd.f32 %v10032_v50, %v3694_v46  ;;  %v3569_v1 = vadd.f32 %v9994_v2, %v3441_v5  ;;  %v3568_v46 = vadd.f32 %v9996_v38, %v3440_v0 }
 0x517   : > { %v4022_v47 = vpop.permute.xlu1 %4021  ;;  %v3952_v57 = vadd.f32 %v10058_v19, %v3823_v20 }
 0x518   : > { %v4020_v28 = vpop.permute.xlu0 %4019  ;;  %v3951_v10 = vadd.f32 %v10060_v43, %v3822_v13  ;;  %v3697_v20 = vadd.f32 %v10014_v25, %v3569_v1  ;;  %v3696_v43 = vadd.f32 %v10016_v51, %v3568_v46 }
 0x519   : > { %3528 = vrot.lane.b32.xlu1 %v10130_v58, %s6934_s20  ;;  %v4080_v30 = vadd.f32 %v4018_v18, %v3952_v57 }
 0x51a   : > { %3526 = vrot.lane.b32.xlu0 %v10133_v21, %s6934_s20  ;;  %v4079_v40 = vadd.f32 %v4016_v27, %v3951_v10  ;;  %v3825_v2 = vadd.f32 %v10044_v56, %v3697_v20  ;;  %v3824_v38 = vadd.f32 %v10046_v41, %v3696_v43 }
 0x51b   : > { %v10153_v3 = vpop.permute.xlu1 %3640 }
 0x51c   : > { %v10157_v52 = vpop.permute.xlu0 %3638  ;;  %v3954_v18 = vadd.f32 %v10078_v42, %v3825_v2  ;;  %v3953_v51 = vadd.f32 %v10080_v55, %v3824_v38 }
 0x51d   : > { %4033 = vrot.lane.b32.xlu1 %v9780_v60, %s6940_s17  ;;  %v10171_v60 = vld [vmem:[#allocation4 + $0x107] sm:$0xff] }
 0x51e   : > { %4031 = vrot.lane.b32.xlu0 %v11694_v4, %s6940_s17  ;;  %11700 = vst [vmem:[#allocation13_spill] sm:$0xff] %v10171_v60  ;;  %v4082_v12 = vadd.f32 %v4022_v47, %v3954_v18  ;;  %v4081_v56 = vadd.f32 %v4020_v28, %v3953_v51 }
 0x51f   : > { %v4146_v50 = vpop.permute.xlu1 %4145 }
 0x520   : > { %v4144_v19 = vpop.permute.xlu0 %4143  ;;  %v4208_v14 = vadd.f32 %v4146_v50, %v4080_v30 }
 0x521   : > { %v4207_v49 = vadd.f32 %v4144_v19, %v4079_v40  ;;  %3532 = vrot.lane.b32.xlu1 %v10168_v37, %s6934_s20  ;;  %v10245_v40 = vld [vmem:[#allocation4 + $0x111] sm:$0xff] }
 0x522   : > { %3530 = vrot.lane.b32.xlu0 %v10171_v60, %s6934_s20 }
 0x523   : > { %v4239_v25 = vpack.c.bf16 %v4208_v14, %v4207_v49  ;;  %v10179_v4 = vpop.permute.xlu1 %3644 }
 0x524   : > { %v10182_v27 = vpop.permute.xlu0 %3642 }
 0x525   : > { %6430 = vmatprep.mubr.bf16.mxu0 %v4239_v25  ;;  %4037 = vrot.lane.b32.xlu1 %v9961_v6, %s6940_s17 }
 0x526   : > { %4035 = vrot.lane.b32.xlu0 %v9951_v11, %s6940_s17 }
 0x527   : > { %v4150_v8 = vpop.permute.xlu1 %4149 }
 0x528   : > { %v4148_v41 = vpop.permute.xlu0 %4147  ;;  %v4210_v35 = vadd.f32 %v4150_v8, %v4082_v12 }
 0x529   : > { %v4209_v13 = vadd.f32 %v4148_v41, %v4081_v56  ;;  %3656 = vrot.lane.b32.xlu1 %v9961_v6, %s6937_s4 }
 0x52a   : > { %3654 = vrot.lane.b32.xlu0 %v9951_v11, %s6937_s4 }
 0x52b   : > { %v4240_v42 = vpack.c.bf16 %v4210_v35, %v4209_v13  ;;  %v10193_v55 = vpop.permute.xlu1 %3264  ;;  %v10277_v35 = vld [vmem:[#allocation4 + $0x131] sm:$0xff] }
 0x52c   : > { %v10195_v5 = vpop.permute.xlu0 %3262 }
 0x52d   : > { %6431 = vmatmul.mubr.bf16.vlgmr.msra.gmra.mrb[48].mxu0 %v4240_v42  ;;  %4161 = vrot.lane.b32.xlu1 %v10070_v53, %s6941_s8  ;;  %v10282_v42 = vld [vmem:[#allocation4 + $0x129] sm:$0xff] }
 0x52e   : > { %4159 = vrot.lane.b32.xlu0 %v10072_v44, %s6941_s8 }
 0x52f   : > { %v10201_v28 = vpop.permute.xlu1 %3768 }
 0x530   : > { %v10203_v47 = vpop.permute.xlu0 %3766 }
 0x531   : > { %3660 = vrot.lane.b32.xlu1 %v9957_v17, %s6937_s4 }
 0x532   : > { %3658 = vrot.lane.b32.xlu0 %v9946_v31, %s6937_s4 }
 0x533   : > { %v10209_v11 = vpop.permute.xlu1 %3268 }
 0x534   : > { %v10211_v6 = vpop.permute.xlu0 %3266 }
 0x535   : > { %4165 = vrot.lane.b32.xlu1 %v10107_v29, %s6941_s8 }
 0x536   : > { %4163 = vrot.lane.b32.xlu0 %v10112_v16, %s6941_s8 }
 0x537   : > { %v10217_v53 = vpop.permute.xlu1 %3772 }
 0x538   : > { %v10219_v44 = vpop.permute.xlu0 %3770 }
 0x539   : > { %3280 = vrot.lane.b32.xlu1 %v9957_v17, %s6935_s24 }
 0x53a   : > { %3278 = vrot.lane.b32.xlu0 %v9946_v31, %s6935_s24 }
 0x53b   : > { %v10225_v57 = vpop.permute.xlu1 %3392 }
 0x53c   : > { %v10227_v0 = vpop.permute.xlu0 %3390 }
 0x53d   : > { %3784 = vrot.lane.b32.xlu1 %v10107_v29, %s6938_s5  ;;  %v10247_v29 = vld [vmem:[#allocation4 + $0x109] sm:$0xff] }
 0x53e   : > { %3782 = vrot.lane.b32.xlu0 %v10112_v16, %s6938_s5 }
 0x53f   : > { %v10233_v10 = vpop.permute.xlu1 %3897 }
 0x540   : > { %v10235_v1 = vpop.permute.xlu0 %3895 }
 0x541   : > { %3284 = vrot.lane.b32.xlu1 %v10118_v33, %s6935_s24 }
 0x542   : > { %3282 = vrot.lane.b32.xlu0 %v10104_v54, %s6935_s24 }
 0x543   : > { %v10241_v30 = vpop.permute.xlu1 %3396 }
 0x544   : > { %v10243_v46 = vpop.permute.xlu0 %3394 }
 0x545   : > { %3788 = vrot.lane.b32.xlu1 %v10245_v40, %s6938_s5 }
 0x546   : > { %3786 = vrot.lane.b32.xlu0 %v10247_v29, %s6938_s5 }
 0x547   : > { %v10253_v16 = vpop.permute.xlu1 %3901 }
 0x548   : > { %v10255_v50 = vpop.permute.xlu0 %3899 }
 0x549   : > { %3408 = vrot.lane.b32.xlu1 %v10245_v40, %s6936_s30 }
 0x54a   : > { %3406 = vrot.lane.b32.xlu0 %v10247_v29, %s6936_s30 }
 0x54b   : > { %v10261_v20 = vpop.permute.xlu1 %3520 }
 0x54c   : > { %v6404_v19 = vpop.f32.mrb[4].mxu1  ;;  %v10263_v14 = vpop.permute.xlu0 %3518 }
 0x54d   : > { %v3048_v43 = vadd.f32 %v10093_v34, %v6404_v19  ;;  %v3039_v49 = vpop.f32.mrb[5].mxu1  ;;  %3913 = vrot.lane.b32.xlu1 %v10168_v37, %s6939_s6  ;;  %v11701_v19 = vld [vmem:[#allocation14_spill] sm:$0xff] }
 0x54e   : > { %v3040_v2 = vadd.f32 %v10093_v34, %v3039_v49  ;;  %v6405_v38 = vpop.f32.mrb[6].mxu1  ;;  %3911 = vrot.lane.b32.xlu0 %v10171_v60, %s6939_s6 }
 0x54f   : > { %v10271_v25 = vmax.f32 %v3048_v43, 0.0  ;;  %v3051_v18 = vadd.f32 %v10093_v34, %v6405_v38  ;;  %v3042_v51 = vpop.f32.mrb[7].mxu1  ;;  %v4026_v12 = vpop.permute.xlu1 %4025  ;;  %v3315_v43 = vadd.f32 %v11701_v19, %v10022_v9  ;;  %v10302_v9 = vld [vmem:[#allocation4 + $0x12f] sm:$0xff]  ;;  %v10305_v19 = vld [vmem:[#allocation4 + $0x127] sm:$0xff] }
 0x550   : > { %v10274_v56 = vmax.f32 %v3040_v2, 0.0  ;;  %v3043_v8 = vadd.f32 %v10093_v34, %v3042_v51  ;;  %v4024_v41 = vpop.permute.xlu0 %4023  ;;  %v11702_v2 = vld [vmem:[#allocation18_spill] sm:$0xff] }
 0x551   : > { %3140 = vst [vmem:[#allocation4 + $0x188] sm:$0xff] %v10271_v25  ;;  %v10280_v13 = vmax.f32 %v3051_v18, 0.0  ;;  %3412 = vrot.lane.b32.xlu1 %v10277_v35, %s6936_s30  ;;  %v3314_v38 = vadd.f32 %v11702_v2, %v10024_v62  ;;  %v3443_v51 = vadd.f32 %v10052_v7, %v3315_v43 }
 0x552   : > { %3138 = vst [vmem:[#allocation4 + $0x168] sm:$0xff] %v10274_v56  ;;  %v10289_v49 = vmax.f32 %v3043_v8, 0.0  ;;  %3410 = vrot.lane.b32.xlu0 %v10282_v42, %s6936_s30 }
 0x553   : > { %3141 = vst [vmem:[#allocation4 + $0x190] sm:$0xff] %v10280_v13  ;;  %v10296_v18 = vpop.permute.xlu1 %3524  ;;  %v3442_v8 = vadd.f32 %v10054_v22, %v3314_v38  ;;  %v3571_v62 = vadd.f32 %v10086_v23, %v3443_v51  ;;  %v11703_v22 = vld [vmem:[#allocation9_spill] sm:$0xff]  ;;  %v11704_v23 = vld [vmem:[#allocation19_spill] sm:$0xff] }
 0x554   : > { %3139 = vst [vmem:[#allocation4 + $0x170] sm:$0xff] %v10289_v49  ;;  %v10300_v60 = vpop.permute.xlu0 %3522  ;;  %v3317_v38 = vadd.f32 %v11703_v22, %v10038_v48 }
 0x555   : > { %3917 = vrot.lane.b32.xlu1 %v10302_v9, %s6939_s6  ;;  %v3570_v7 = vadd.f32 %v10088_v26, %v3442_v8  ;;  %v3699_v2 = vadd.f32 %v10153_v3, %v3571_v62  ;;  %v3316_v26 = vadd.f32 %v11704_v23, %v10040_v24 }
 0x556   : > { %3915 = vrot.lane.b32.xlu0 %v10305_v19, %s6939_s6 }
 0x557   : > { %v4030_v43 = vpop.permute.xlu1 %4029  ;;  %v3698_v21 = vadd.f32 %v10157_v52, %v3570_v7  ;;  %v3827_v58 = vadd.f32 %v10201_v28, %v3699_v2  ;;  %v3445_v52 = vadd.f32 %v10066_v63, %v3317_v38  ;;  %v3444_v48 = vadd.f32 %v10068_v59, %v3316_v26  ;;  %v10340_v59 = vld [vmem:[#allocation4 + $0x14f] sm:$0xff] }
 0x558   : > { %v4028_v37 = vpop.permute.xlu0 %4027  ;;  %11705 = vst [vmem:[#allocation20_spill] sm:$0xff] %v10340_v59 }
 0x559   : > { %3536 = vrot.lane.b32.xlu1 %v10302_v9, %s6934_s20  ;;  %v3826_v51 = vadd.f32 %v10203_v47, %v3698_v21  ;;  %v3956_v8 = vadd.f32 %v10233_v10, %v3827_v58  ;;  %v3573_v7 = vadd.f32 %v10124_v32, %v3445_v52  ;;  %v3572_v21 = vadd.f32 %v10128_v61, %v3444_v48 }
 0x55a   : > { %3534 = vrot.lane.b32.xlu0 %v10305_v19, %s6934_s20 }
 0x55b   : > { %v10325_v3 = vpop.permute.xlu1 %3648  ;;  %v3955_v28 = vadd.f32 %v10235_v1, %v3826_v51  ;;  %v4084_v24 = vadd.f32 %v4026_v12, %v3956_v8  ;;  %v3701_v58 = vadd.f32 %v10179_v4, %v3573_v7  ;;  %v3700_v1 = vadd.f32 %v10182_v27, %v3572_v21 }
 0x55c   : > { %v10329_v62 = vpop.permute.xlu0 %3646 }
 0x55d   : > { %4041 = vrot.lane.b32.xlu1 %v9957_v17, %s6940_s17  ;;  %v4083_v63 = vadd.f32 %v4024_v41, %v3955_v28  ;;  %v10343_v17 = vld [vmem:[#allocation4 + $0x147] sm:$0xff]  ;;  %v3828_v32 = vadd.f32 %v10219_v44, %v3700_v1 }
 0x55e   : > { %4039 = vrot.lane.b32.xlu0 %v9946_v31, %s6940_s17  ;;  %11706 = vst [vmem:[#allocation14_spill] sm:$0xff] %v10343_v17  ;;  %v3829_v31 = vadd.f32 %v10217_v53, %v3701_v58 }
 0x55f   : > { %v4154_v47 = vpop.permute.xlu1 %4153  ;;  %v3957_v27 = vadd.f32 %v10255_v50, %v3828_v32 }
 0x560   : > { %v4152_v10 = vpop.permute.xlu0 %4151  ;;  %v4212_v2 = vadd.f32 %v4154_v47, %v4084_v24  ;;  %v3958_v12 = vadd.f32 %v10253_v16, %v3829_v31 }
 0x561   : > { %v4211_v22 = vadd.f32 %v4152_v10, %v4083_v63  ;;  %3540 = vrot.lane.b32.xlu1 %v10340_v59, %s6934_s20  ;;  %v4085_v53 = vadd.f32 %v4028_v37, %v3957_v27  ;;  %v10417_v63 = vld [vmem:[#allocation4 + $0x151] sm:$0xff] }
 0x562   : > { %3538 = vrot.lane.b32.xlu0 %v10343_v17, %s6934_s20  ;;  %v4086_v38 = vadd.f32 %v4030_v43, %v3958_v12 }
 0x563   : > { %v4241_v61 = vpack.c.bf16 %v4212_v2, %v4211_v22  ;;  %v10351_v4 = vpop.permute.xlu1 %3652 }
 0x564   : > { %v10354_v41 = vpop.permute.xlu0 %3650 }
 0x565   : > { %6434 = vmatprep.mubr.bf16.mxu0 %v4241_v61  ;;  %4045 = vrot.lane.b32.xlu1 %v10118_v33, %s6940_s17 }
 0x566   : > { %4043 = vrot.lane.b32.xlu0 %v10104_v54, %s6940_s17 }
 0x567   : > { %v4158_v23 = vpop.permute.xlu1 %4157 }
 0x568   : > { %v4156_v44 = vpop.permute.xlu0 %4155  ;;  %v4214_v26 = vadd.f32 %v4158_v23, %v4086_v38 }
 0x569   : > { %v4213_v51 = vadd.f32 %v4156_v44, %v4085_v53  ;;  %3664 = vrot.lane.b32.xlu1 %v10118_v33, %s6937_s4 }
 0x56a   : > { %3662 = vrot.lane.b32.xlu0 %v10104_v54, %s6937_s4 }
 0x56b   : > { %v4242_v16 = vpack.c.bf16 %v4214_v26, %v4213_v51  ;;  %v10365_v50 = vpop.permute.xlu1 %3272  ;;  %v10449_v26 = vld [vmem:[#allocation4 + $0x171] sm:$0xff] }
 0x56c   : > { %v10367_v52 = vpop.permute.xlu0 %3270 }
 0x56d   : > { %6435 = vmatmul.mubr.bf16.gmra.mrb[52].mxu0 %v4242_v16  ;;  %4169 = vrot.lane.b32.xlu1 %v10245_v40, %s6941_s8  ;;  %v10454_v16 = vld [vmem:[#allocation4 + $0x169] sm:$0xff] }
 0x56e   : > { %4167 = vrot.lane.b32.xlu0 %v10247_v29, %s6941_s8 }
 0x56f   : > { %v10373_v37 = vpop.permute.xlu1 %3776 }
 0x570   : > { %v10375_v43 = vpop.permute.xlu0 %3774 }
 0x571   : > { %3668 = vrot.lane.b32.xlu1 %v10110_v15, %s6937_s4 }
 0x572   : > { %3666 = vrot.lane.b32.xlu0 %v10101_v36, %s6937_s4 }
 0x573   : > { %v10381_v54 = vpop.permute.xlu1 %3276 }
 0x574   : > { %v10383_v33 = vpop.permute.xlu0 %3274 }
 0x575   : > { %4173 = vrot.lane.b32.xlu1 %v10277_v35, %s6941_s8 }
 0x576   : > { %4171 = vrot.lane.b32.xlu0 %v10282_v42, %s6941_s8 }
 0x577   : > { %v10389_v40 = vpop.permute.xlu1 %3780 }
 0x578   : > { %v10391_v29 = vpop.permute.xlu0 %3778 }
 0x579   : > { %3288 = vrot.lane.b32.xlu1 %v10110_v15, %s6935_s24 }
 0x57a   : > { %3286 = vrot.lane.b32.xlu0 %v10101_v36, %s6935_s24 }
 0x57b   : > { %v10397_v8 = vpop.permute.xlu1 %3400 }
 0x57c   : > { %v10399_v48 = vpop.permute.xlu0 %3398 }
 0x57d   : > { %3792 = vrot.lane.b32.xlu1 %v10277_v35, %s6938_s5  ;;  %v10419_v35 = vld [vmem:[#allocation4 + $0x149] sm:$0xff] }
 0x57e   : > { %3790 = vrot.lane.b32.xlu0 %v10282_v42, %s6938_s5 }
 0x57f   : > { %v10405_v28 = vpop.permute.xlu1 %3905 }
 0x580   : > { %v10407_v7 = vpop.permute.xlu0 %3903 }
 0x581   : > { %3292 = vrot.lane.b32.xlu1 %v10289_v49, %s6935_s24 }
 0x582   : > { %3290 = vrot.lane.b32.xlu0 %v10274_v56, %s6935_s24 }
 0x583   : > { %v10413_v24 = vpop.permute.xlu1 %3404 }
 0x584   : > { %v10415_v21 = vpop.permute.xlu0 %3402 }
 0x585   : > { %3796 = vrot.lane.b32.xlu1 %v10417_v63, %s6938_s5 }
 0x586   : > { %3794 = vrot.lane.b32.xlu0 %v10419_v35, %s6938_s5 }
 0x587   : > { %v10425_v42 = vpop.permute.xlu1 %3909 }
 0x588   : > { %v10427_v47 = vpop.permute.xlu0 %3907 }
 0x589   : > { %3416 = vrot.lane.b32.xlu1 %v10417_v63, %s6936_s30 }
 0x58a   : > { %3414 = vrot.lane.b32.xlu0 %v10419_v35, %s6936_s30 }
 0x58b   : > { %v10433_v58 = vpop.permute.xlu1 %3528 }
 0x58c   : > { %v6408_v10 = vpop.f32.mrb[8].mxu1  ;;  %v10435_v2 = vpop.permute.xlu0 %3526 }
 0x58d   : > { %v3064_v1 = vadd.f32 %v10093_v34, %v6408_v10  ;;  %v3055_v22 = vpop.f32.mrb[9].mxu1  ;;  %3921 = vrot.lane.b32.xlu1 %v10340_v59, %s6939_s6  ;;  %v3319_v10 = vadd.f32 %v9835_v45, %v10193_v55  ;;  %v10474_v45 = vld [vmem:[#allocation4 + $0x16f] sm:$0xff] }
 0x58e   : > { %v3056_v31 = vadd.f32 %v10093_v34, %v3055_v22  ;;  %v6409_v32 = vpop.f32.mrb[10].mxu1  ;;  %3919 = vrot.lane.b32.xlu0 %v10343_v17, %s6939_s6  ;;  %v3318_v22 = vadd.f32 %v9839_v39, %v10195_v5 }
 0x58f   : > { %v10443_v61 = vmax.f32 %v3064_v1, 0.0  ;;  %v3067_v12 = vadd.f32 %v10093_v34, %v6409_v32  ;;  %v3058_v27 = vpop.f32.mrb[11].mxu1  ;;  %v4034_v38 = vpop.permute.xlu1 %4033  ;;  %v3447_v32 = vadd.f32 %v10225_v57, %v3319_v10 }
 0x590   : > { %v10446_v53 = vmax.f32 %v3056_v31, 0.0  ;;  %v3059_v23 = vadd.f32 %v10093_v34, %v3058_v27  ;;  %v4032_v44 = vpop.permute.xlu0 %4031  ;;  %v3446_v55 = vadd.f32 %v10227_v0, %v3318_v22  ;;  %v10477_v27 = vld [vmem:[#allocation4 + $0x167] sm:$0xff]  ;;  %v11708_v0 = vld [vmem:[#allocation10_spill] sm:$0xff] }
 0x591   : > { %3144 = vst [vmem:[#allocation4 + $0x1c8] sm:$0xff] %v10443_v61  ;;  %v10452_v51 = vmax.f32 %v3067_v12, 0.0  ;;  %3420 = vrot.lane.b32.xlu1 %v10449_v26, %s6936_s30  ;;  %11707 = vst [vmem:[#allocation18_spill] sm:$0xff] %v10477_v27  ;;  %v3575_v39 = vadd.f32 %v10261_v20, %v3447_v32  ;;  %v3321_v22 = vadd.f32 %v11708_v0, %v10209_v11  ;;  %v11709_v20 = vld [vmem:[#allocation11_spill] sm:$0xff] }
 0x592   : > { %3142 = vst [vmem:[#allocation4 + $0x1a8] sm:$0xff] %v10446_v53  ;;  %v10461_v1 = vmax.f32 %v3059_v23, 0.0  ;;  %3418 = vrot.lane.b32.xlu0 %v10454_v16, %s6936_s30  ;;  %v3574_v5 = vadd.f32 %v10263_v14, %v3446_v55  ;;  %v3320_v14 = vadd.f32 %v11709_v20, %v10211_v6 }
 0x593   : > { %3145 = vst [vmem:[#allocation4 + $0x1d0] sm:$0xff] %v10452_v51  ;;  %v10468_v31 = vpop.permute.xlu1 %3532  ;;  %v3703_v23 = vadd.f32 %v10325_v3, %v3575_v39 }
 0x594   : > { %3143 = vst [vmem:[#allocation4 + $0x1b0] sm:$0xff] %v10461_v1  ;;  %v10472_v12 = vpop.permute.xlu0 %3530  ;;  %v3702_v17 = vadd.f32 %v10329_v62, %v3574_v5  ;;  %v3449_v62 = vadd.f32 %v10241_v30, %v3321_v22  ;;  %v3448_v11 = vadd.f32 %v10243_v46, %v3320_v14  ;;  %v10512_v46 = vld [vmem:[#allocation4 + $0x18f] sm:$0xff] }
 0x595   : > { %3925 = vrot.lane.b32.xlu1 %v10474_v45, %s6939_s6  ;;  %v3831_v59 = vadd.f32 %v10373_v37, %v3703_v23  ;;  %11710 = vst [vmem:[#allocation9_spill] sm:$0xff] %v10512_v46 }
 0x596   : > { %3923 = vrot.lane.b32.xlu0 %v10477_v27, %s6939_s6  ;;  %v3830_v32 = vadd.f32 %v10375_v43, %v3702_v17  ;;  %v3577_v5 = vadd.f32 %v10296_v18, %v3449_v62  ;;  %v3576_v17 = vadd.f32 %v10300_v60, %v3448_v11 }
 0x597   : > { %v4038_v57 = vpop.permute.xlu1 %4037  ;;  %v3960_v55 = vadd.f32 %v10405_v28, %v3831_v59 }
 0x598   : > { %v4036_v10 = vpop.permute.xlu0 %4035  ;;  %v3959_v37 = vadd.f32 %v10407_v7, %v3830_v32  ;;  %v3705_v59 = vadd.f32 %v10351_v4, %v3577_v5  ;;  %v3704_v7 = vadd.f32 %v10354_v41, %v3576_v17 }
 0x599   : > { %3544 = vrot.lane.b32.xlu1 %v10474_v45, %s6934_s20  ;;  %v4088_v6 = vadd.f32 %v4034_v38, %v3960_v55 }
 0x59a   : > { %3542 = vrot.lane.b32.xlu0 %v10477_v27, %s6934_s20  ;;  %v4087_v30 = vadd.f32 %v4032_v44, %v3959_v37  ;;  %v3832_v60 = vadd.f32 %v10391_v29, %v3704_v7 }
 0x59b   : > { %v10497_v3 = vpop.permute.xlu1 %3656 }
 0x59c   : > { %v10501_v39 = vpop.permute.xlu0 %3654  ;;  %v3961_v41 = vadd.f32 %v10427_v47, %v3832_v60 }
 0x59d   : > { %4049 = vrot.lane.b32.xlu1 %v10110_v15, %s6940_s17  ;;  %v10515_v15 = vld [vmem:[#allocation4 + $0x187] sm:$0xff] }
 0x59e   : > { %4047 = vrot.lane.b32.xlu0 %v10101_v36, %s6940_s17  ;;  %11711 = vst [vmem:[#allocation19_spill] sm:$0xff] %v10515_v15  ;;  %v3833_v36 = vadd.f32 %v10389_v40, %v3705_v59  ;;  %v4089_v14 = vadd.f32 %v4036_v10, %v3961_v41  ;;  %v10597_v41 = vld [vmem:[#allocation4 + $0x191] sm:$0xff] }
 0x59f   : > { %v4162_v43 = vpop.permute.xlu1 %4161 }
 0x5a0   : > { %v4160_v28 = vpop.permute.xlu0 %4159  ;;  %v4216_v23 = vadd.f32 %v4162_v43, %v4088_v6  ;;  %v3962_v38 = vadd.f32 %v10425_v42, %v3833_v36 }
 0x5a1   : > { %v4215_v0 = vadd.f32 %v4160_v28, %v4087_v30  ;;  %3548 = vrot.lane.b32.xlu1 %v10512_v46, %s6934_s20 }
 0x5a2   : > { %3546 = vrot.lane.b32.xlu0 %v10515_v15, %s6934_s20  ;;  %v4090_v40 = vadd.f32 %v4038_v57, %v3962_v38 }
 0x5a3   : > { %v4243_v18 = vpack.c.bf16 %v4216_v23, %v4215_v0  ;;  %v10523_v4 = vpop.permute.xlu1 %3660 }
 0x5a4   : > { %v10526_v44 = vpop.permute.xlu0 %3658 }
 0x5a5   : > { %6438 = vmatprep.mubr.bf16.mxu0 %v4243_v18  ;;  %v6412_v22 = vpop.f32.mrb[12].mxu1  ;;  %4053 = vrot.lane.b32.xlu1 %v10289_v49, %s6940_s17 }
 0x5a6   : > { %v3080_v20 = vadd.f32 %v10093_v34, %v6412_v22  ;;  %4051 = vrot.lane.b32.xlu0 %v10274_v56, %s6940_s17  ;;  %v3071_v29 = vpop.f32.mrb[13].mxu1  ;;  %v10599_v22 = vld [vmem:[#allocation4 + $0x189] sm:$0xff] }
 0x5a7   : > { %v3072_v32 = vadd.f32 %v10093_v34, %v3071_v29  ;;  %v6413_v42 = vpop.f32.mrb[14].mxu1  ;;  %v4166_v62 = vpop.permute.xlu1 %4165 }
 0x5a8   : > { %v10535_v55 = vmax.f32 %v3080_v20, 0.0  ;;  %v3083_v47 = vadd.f32 %v10093_v34, %v6413_v42  ;;  %v4164_v11 = vpop.permute.xlu0 %4163  ;;  %v4218_v37 = vadd.f32 %v4166_v62, %v4090_v40  ;;  %v3074_v5 = vpop.f32.mrb[15].mxu1  ;;  %v10621_v42 = vld [vmem:[#allocation4 + $0x1a9] sm:$0xff]  ;;  %v11712_v62 = vld [vmem:[#allocation21_spill] sm:$0xff] }
 0x5a9   : > { %v10538_v6 = vmax.f32 %v3072_v32, 0.0  ;;  %v4217_v57 = vadd.f32 %v4164_v11, %v4089_v14  ;;  %v3075_v17 = vadd.f32 %v10093_v34, %v3074_v5  ;;  %3672 = vrot.lane.b32.xlu1 %v10289_v49, %s6937_s4  ;;  %v10619_v32 = vld [vmem:[#allocation4 + $0x1b1] sm:$0xff] }
 0x5aa   : > { %3148 = vst [vmem:[#allocation4 + $0x208] sm:$0xff] %v10535_v55  ;;  %v10544_v10 = vmax.f32 %v3083_v47, 0.0  ;;  %3670 = vrot.lane.b32.xlu0 %v10274_v56, %s6937_s4  ;;  %v3323_v47 = vadd.f32 %v11712_v62, %v10365_v50  ;;  %v11713_v11 = vld [vmem:[#allocation12_spill] sm:$0xff] }
 0x5ab   : > { %3146 = vst [vmem:[#allocation4 + $0x1e8] sm:$0xff] %v10538_v6  ;;  %v4244_v30 = vpack.c.bf16 %v4218_v37, %v4217_v57  ;;  %v10549_v43 = vmax.f32 %v3075_v17, 0.0  ;;  %v10551_v59 = vpop.permute.xlu1 %3280  ;;  %v3322_v37 = vadd.f32 %v11713_v11, %v10367_v52 }
 0x5ac   : > { %3149 = vst [vmem:[#allocation4 + $0x210] sm:$0xff] %v10544_v10  ;;  %v10554_v34 = vpop.permute.xlu0 %3278  ;;  %v3451_v57 = vadd.f32 %v10397_v8, %v3323_v47 }
 0x5ad   : > { %3147 = vst [vmem:[#allocation4 + $0x1f0] sm:$0xff] %v10549_v43  ;;  %6439 = vmatmul.mubr.bf16.gmra.mrb[56].mxu0 %v4244_v30  ;;  %4177 = vrot.lane.b32.xlu1 %v10417_v63, %s6941_s8  ;;  %v10636_v30 = vld [vmem:[#allocation4 + $0x1af] sm:$0xff] }
 0x5ae   : > { %4175 = vrot.lane.b32.xlu0 %v10419_v35, %s6941_s8  ;;  %11714 = vst [vmem:[#allocation10_spill] sm:$0xff] %v10636_v30  ;;  %v3579_v50 = vadd.f32 %v10433_v58, %v3451_v57  ;;  %v11716_v58 = vld [vmem:[#allocation16_spill] sm:$0xff] }
 0x5af   : > { %v3785_v56 = vpop.permute.xlu1 %3784  ;;  %v3324_v57 = vadd.f32 %v11716_v58, %v10383_v33 }
 0x5b0   : > { %v3783_v49 = vpop.permute.xlu0 %3782  ;;  %v3707_v8 = vadd.f32 %v10497_v3, %v3579_v50 }
 0x5b1   : > { %3676 = vrot.lane.b32.xlu1 %v10280_v13, %s6937_s4 }
 0x5b2   : > { %3674 = vrot.lane.b32.xlu0 %v10271_v25, %s6937_s4  ;;  %v3835_v27 = vadd.f32 %v3785_v56, %v3707_v8 }
 0x5b3   : > { %v10565_v28 = vpop.permute.xlu1 %3284 }
 0x5b4   : > { %v10567_v23 = vpop.permute.xlu0 %3282 }
 0x5b5   : > { %4181 = vrot.lane.b32.xlu1 %v10449_v26, %s6941_s8 }
 0x5b6   : > { %4179 = vrot.lane.b32.xlu0 %v10454_v16, %s6941_s8 }
 0x5b7   : > { %v10573_v63 = vpop.permute.xlu1 %3788 }
 0x5b8   : > { %v10575_v35 = vpop.permute.xlu0 %3786 }
 0x5b9   : > { %3296 = vrot.lane.b32.xlu1 %v10280_v13, %s6935_s24 }
 0x5ba   : > { %3294 = vrot.lane.b32.xlu0 %v10271_v25, %s6935_s24 }
 0x5bb   : > { %v10581_v7 = vpop.permute.xlu1 %3408 }
 0x5bc   : > { %v10583_v0 = vpop.permute.xlu0 %3406 }
 0x5bd   : > { %3800 = vrot.lane.b32.xlu1 %v10449_v26, %s6938_s5 }
 0x5be   : > { %3798 = vrot.lane.b32.xlu0 %v10454_v16, %s6938_s5 }
 0x5bf   : > { %v3914_v36 = vpop.permute.xlu1 %3913 }
 0x5c0   : > { %v3912_v60 = vpop.permute.xlu0 %3911  ;;  %v3964_v50 = vadd.f32 %v3914_v36, %v3835_v27 }
 0x5c1   : > { %3300 = vrot.lane.b32.xlu1 %v10461_v1, %s6935_s24 }
 0x5c2   : > { %3298 = vrot.lane.b32.xlu0 %v10446_v53, %s6935_s24 }
 0x5c3   : > { %v10593_v18 = vpop.permute.xlu1 %3412 }
 0x5c4   : > { %v10595_v38 = vpop.permute.xlu0 %3410 }
 0x5c5   : > { %3804 = vrot.lane.b32.xlu1 %v10597_v41, %s6938_s5 }
 0x5c6   : > { %3802 = vrot.lane.b32.xlu0 %v10599_v22, %s6938_s5 }
 0x5c7   : > { %v3918_v26 = vpop.permute.xlu1 %3917 }
 0x5c8   : > { %v10605_v16 = vpop.permute.xlu0 %3915 }
 0x5c9   : > { %3424 = vrot.lane.b32.xlu1 %v10597_v41, %s6936_s30 }
 0x5ca   : > { %3422 = vrot.lane.b32.xlu0 %v10599_v22, %s6936_s30 }
 0x5cb   : > { %v10611_v40 = vpop.permute.xlu1 %3536 }
 0x5cc   : > { %v10613_v20 = vpop.permute.xlu0 %3534 }
 0x5cd   : > { %3929 = vrot.lane.b32.xlu1 %v10512_v46, %s6939_s6  ;;  %v10639_v46 = vld [vmem:[#allocation4 + $0x1a7] sm:$0xff] }
 0x5ce   : > { %3927 = vrot.lane.b32.xlu0 %v10515_v15, %s6939_s6  ;;  %v3450_v15 = vadd.f32 %v10399_v48, %v3322_v37  ;;  %v11715_v48 = vld [vmem:[#allocation15_spill] sm:$0xff] }
 0x5cf   : > { %v4042_v29 = vpop.permute.xlu1 %4041  ;;  %v3325_v37 = vadd.f32 %v11715_v48, %v10381_v54 }
 0x5d0   : > { %v4040_v14 = vpop.permute.xlu0 %4039  ;;  %v3578_v52 = vadd.f32 %v10435_v2, %v3450_v15  ;;  %v4092_v56 = vadd.f32 %v4042_v29, %v3964_v50  ;;  %v10737_v50 = vld [vmem:[%s11544_s2 + $0x2] ss:$0 sm:$0xff] }
 0x5d1   : > { %3428 = vrot.lane.b32.xlu1 %v10619_v32, %s6936_s30  ;;  %v3453_v3 = vadd.f32 %v10413_v24, %v3325_v37 }
 0x5d2   : > { %3426 = vrot.lane.b32.xlu0 %v10621_v42, %s6936_s30  ;;  %v3706_v11 = vadd.f32 %v10501_v39, %v3578_v52  ;;  %v3452_v52 = vadd.f32 %v10415_v21, %v3324_v57 }
 0x5d3   : > { %v10631_v5 = vpop.permute.xlu1 %3540  ;;  %v3581_v54 = vadd.f32 %v10468_v31, %v3453_v3 }
 0x5d4   : > { %v10634_v17 = vpop.permute.xlu0 %3538  ;;  %v3834_v2 = vadd.f32 %v3783_v49, %v3706_v11  ;;  %v3580_v33 = vadd.f32 %v10472_v12, %v3452_v52  ;;  %v10670_v11 = vld [vmem:[#allocation4 + $0x1cf] sm:$0xff] }
 0x5d5   : > { %3933 = vrot.lane.b32.xlu1 %v10636_v30, %s6939_s6  ;;  %v3709_v24 = vadd.f32 %v10523_v4, %v3581_v54 }
 0x5d6   : > { %3931 = vrot.lane.b32.xlu0 %v10639_v46, %s6939_s6  ;;  %v3708_v21 = vadd.f32 %v10526_v44, %v3580_v33 }
 0x5d7   : > { %v4046_v62 = vpop.permute.xlu1 %4045 }
 0x5d8   : > { %v4044_v47 = vpop.permute.xlu0 %4043  ;;  %v3836_v31 = vadd.f32 %v10575_v35, %v3708_v21 }
 0x5d9   : > { %3552 = vrot.lane.b32.xlu1 %v10636_v30, %s6934_s20  ;;  %v3963_v30 = vadd.f32 %v3912_v60, %v3834_v2 }
 0x5da   : > { %3550 = vrot.lane.b32.xlu0 %v10639_v46, %s6934_s20  ;;  %v3965_v44 = vadd.f32 %v10605_v16, %v3836_v31  ;;  %v3153_v31 = vld [vmem:[#allocation3 + $0x50] sm:$0xff] }
 0x5db   : > { %v10657_v15 = vpop.permute.xlu1 %3664  ;;  %v4091_v49 = vadd.f32 %v4040_v14, %v3963_v30 }
 0x5dc   : > { %v10660_v39 = vpop.permute.xlu0 %3662 }
 0x5dd   : > { %4057 = vrot.lane.b32.xlu1 %v10280_v13, %s6940_s17  ;;  %v10673_v13 = vld [vmem:[#allocation4 + $0x1c7] sm:$0xff] }
 0x5de   : > { %4055 = vrot.lane.b32.xlu0 %v10271_v25, %s6940_s17  ;;  %v3837_v25 = vadd.f32 %v10573_v63, %v3709_v24  ;;  %v4093_v63 = vadd.f32 %v4044_v47, %v3965_v44  ;;  %v10755_v44 = vld [vmem:[#allocation4 + $0x1d1] sm:$0xff] }
 0x5df   : > { %v4170_v8 = vpop.permute.xlu1 %4169 }
 0x5e0   : > { %v4168_v27 = vpop.permute.xlu0 %4167  ;;  %v4220_v36 = vadd.f32 %v4170_v8, %v4092_v56  ;;  %v3966_v29 = vadd.f32 %v3918_v26, %v3837_v25 }
 0x5e1   : > { %v4219_v60 = vadd.f32 %v4168_v27, %v4091_v49  ;;  %3556 = vrot.lane.b32.xlu1 %v10670_v11, %s6934_s20  ;;  %v3150_v27 = vld [vmem:[#allocation3 + $0x28] sm:$0xff] }
 0x5e2   : > { %3554 = vrot.lane.b32.xlu0 %v10673_v13, %s6934_s20  ;;  %v4094_v30 = vadd.f32 %v4046_v62, %v3966_v29 }
 0x5e3   : > { %v4245_v12 = vpack.c.bf16 %v4220_v36, %v4219_v60  ;;  %v10681_v4 = vpop.permute.xlu1 %3668 }
 0x5e4   : > { %v10683_v14 = vpop.permute.xlu0 %3666 }
 0x5e5   : > { %6442 = vmatprep.mubr.bf16.mxu0 %v4245_v12  ;;  %4061 = vrot.lane.b32.xlu1 %v10461_v1, %s6940_s17 }
 0x5e6   : > { %4059 = vrot.lane.b32.xlu0 %v10446_v53, %s6940_s17 }
 0x5e7   : > { %v4174_v48 = vpop.permute.xlu1 %4173 }
 0x5e8   : > { %v4172_v37 = vpop.permute.xlu0 %4171  ;;  %v4222_v35 = vadd.f32 %v4174_v48, %v4094_v30  ;;  %v3151_v48 = vld [vmem:[#allocation3 + $0x30] sm:$0xff] }
 0x5e9   : > { %v4221_v58 = vadd.f32 %v4172_v37, %v4093_v63  ;;  %3680 = vrot.lane.b32.xlu1 %v10461_v1, %s6937_s4  ;;  %v10757_v37 = vld [vmem:[#allocation4 + $0x1c9] sm:$0xff] }
 0x5ea   : > { %3678 = vrot.lane.b32.xlu0 %v10446_v53, %s6937_s4 }
 0x5eb   : > { %v4246_v26 = vpack.c.bf16 %v4222_v35, %v4221_v58  ;;  %v10694_v16 = vpop.permute.xlu1 %3288 }
 0x5ec   : > { %v10696_v57 = vpop.permute.xlu0 %3286 }
 0x5ed   : > { %6443 = vmatmul.mubr.bf16.gmra.mrb[60].mxu0 %v4246_v26  ;;  %4185 = vrot.lane.b32.xlu1 %v10597_v41, %s6941_s8 }
 0x5ee   : > { %4183 = vrot.lane.b32.xlu0 %v10599_v22, %s6941_s8 }
 0x5ef   : > { %v10702_v62 = vpop.permute.xlu1 %3792 }
 0x5f0   : > { %v10704_v47 = vpop.permute.xlu0 %3790 }
 0x5f1   : > { %3684 = vrot.lane.b32.xlu1 %v10452_v51, %s6937_s4 }
 0x5f2   : > { %3682 = vrot.lane.b32.xlu0 %v10443_v61, %s6937_s4 }
 0x5f3   : > { %v10710_v53 = vpop.permute.xlu1 %3292 }
 0x5f4   : > { %v10712_v1 = vpop.permute.xlu0 %3290 }
 0x5f5   : > { %4189 = vrot.lane.b32.xlu1 %v10619_v32, %s6941_s8 }
 0x5f6   : > { %4187 = vrot.lane.b32.xlu0 %v10621_v42, %s6941_s8 }
 0x5f7   : > { %v10718_v41 = vpop.permute.xlu1 %3796 }
 0x5f8   : > { %v10720_v22 = vpop.permute.xlu0 %3794 }
 0x5f9   : > { %3304 = vrot.lane.b32.xlu1 %v10452_v51, %s6935_s24 }
 0x5fa   : > { %3302 = vrot.lane.b32.xlu0 %v10443_v61, %s6935_s24 }
 0x5fb   : > { %v10726_v2 = vpop.permute.xlu1 %3416 }
 0x5fc   : > { %v10728_v3 = vpop.permute.xlu0 %3414 }
 0x5fd   : > { %3808 = vrot.lane.b32.xlu1 %v10619_v32, %s6938_s5  ;;  %v3152_v32 = vld [vmem:[#allocation3 + $0x48] sm:$0xff] }
 0x5fe   : > { %3806 = vrot.lane.b32.xlu0 %v10621_v42, %s6938_s5 }
 0x5ff   : > { %v10739_v52 = vpop.permute.xlu1 %3921 }
 0x600   : > { %v10741_v54 = vpop.permute.xlu0 %3919  ;;  %v6432_v56 = vpop.f32.mrb[48].mxu0 }
 0x601   : > { %v4368_v33 = vadd.f32 %v6432_v56, %v10737_v50  ;;  %v4359_v49 = vpop.f32.mrb[49].mxu0  ;;  %3308 = vrot.lane.b32.xlu1 %v10549_v43, %s6935_s24 }
 0x602   : > { %v4360_v8 = vadd.f32 %v10737_v50, %v4359_v49  ;;  %3306 = vrot.lane.b32.xlu0 %v10538_v6, %s6935_s24  ;;  %v6433_v42 = vpop.f32.mrb[50].mxu0 }
 0x603   : > { %v4488_v24 = vadd.f32 %v4368_v33, %v3152_v32  ;;  %v4371_v36 = vadd.f32 %v6433_v42, %v10737_v50  ;;  %v4362_v21 = vpop.f32.mrb[51].mxu0  ;;  %v10750_v60 = vpop.permute.xlu1 %3420 }
 0x604   : > { %v4486_v25 = vadd.f32 %v4360_v8, %v3150_v27  ;;  %v4363_v12 = vadd.f32 %v10737_v50, %v4362_v21  ;;  %v10753_v29 = vpop.permute.xlu0 %3418  ;;  %v10779_v27 = vld [vmem:[#allocation4 + $0x1f1] sm:$0xff] }
 0x605   : > { %v4520_v30 = vmax.f32 %v4488_v24, 0.0  ;;  %v4489_v63 = vadd.f32 %v4371_v36, %v3153_v31  ;;  %3812 = vrot.lane.b32.xlu1 %v10755_v44, %s6938_s5  ;;  %v10781_v36 = vld [vmem:[#allocation4 + $0x1e9] sm:$0xff]  ;;  %v11717_v21 = vld [vmem:[#allocation17_spill] sm:$0xff] }
 0x606   : > { %v4518_v35 = vmax.f32 %v4486_v25, 0.0  ;;  %v4487_v58 = vadd.f32 %v4363_v12, %v3151_v48  ;;  %3810 = vrot.lane.b32.xlu0 %v10757_v37, %s6938_s5  ;;  %v3327_v25 = vadd.f32 %v11717_v21, %v10551_v59  ;;  %v11718_v31 = vld [vmem:[#allocation13_spill] sm:$0xff] }
 0x607   : > { %4552 = vst [vmem:[#allocation2 + $0x48] sm:$0xff] %v4520_v30  ;;  %v4521_v26 = vmax.f32 %v4489_v63, 0.0  ;;  %v10763_v56 = vpop.permute.xlu1 %3925  ;;  %v3326_v12 = vadd.f32 %v11718_v31, %v10554_v34 }
 0x608   : > { %4550 = vst [vmem:[#allocation2 + $0x28] sm:$0xff] %v4518_v35  ;;  %v4519_v33 = vmax.f32 %v4487_v58, 0.0  ;;  %v10765_v49 = vpop.permute.xlu0 %3923  ;;  %v3455_v63 = vadd.f32 %v10581_v7, %v3327_v25  ;;  %v10796_v35 = vld [vmem:[#allocation4 + $0x1ef] sm:$0xff] }
 0x609   : > { %4553 = vst [vmem:[#allocation2 + $0x50] sm:$0xff] %v4521_v26  ;;  %3432 = vrot.lane.b32.xlu1 %v10755_v44, %s6936_s30  ;;  %v3454_v58 = vadd.f32 %v10583_v0, %v3326_v12  ;;  %v10799_v26 = vld [vmem:[#allocation4 + $0x1e7] sm:$0xff]  ;;  %v3329_v0 = vadd.f32 %v10302_v9, %v10565_v28 }
 0x60a   : > { %4551 = vst [vmem:[#allocation2 + $0x30] sm:$0xff] %v4519_v33  ;;  %3430 = vrot.lane.b32.xlu0 %v10757_v37, %s6936_s30  ;;  %v3583_v59 = vadd.f32 %v10611_v40, %v3455_v63  ;;  %v3328_v40 = vadd.f32 %v10305_v19, %v10567_v23 }
 0x60b   : > { %v10771_v32 = vpop.permute.xlu1 %3544  ;;  %v3582_v34 = vadd.f32 %v10613_v20, %v3454_v58 }
 0x60c   : > { %v10773_v8 = vpop.permute.xlu0 %3542  ;;  %v3711_v7 = vadd.f32 %v10657_v15, %v3583_v59  ;;  %v3456_v9 = vadd.f32 %v10595_v38, %v3328_v40  ;;  %v3501_v38 = vld [vmem:[#allocation4 + $0x20f] sm:$0xff] }
 0x60d   : > { %3937 = vrot.lane.b32.xlu1 %v10670_v11, %s6939_s6  ;;  %v3710_v25 = vadd.f32 %v10660_v39, %v3582_v34  ;;  %v3457_v39 = vadd.f32 %v10593_v18, %v3329_v0 }
 0x60e   : > { %3935 = vrot.lane.b32.xlu0 %v10673_v13, %s6939_s6  ;;  %v3839_v31 = vadd.f32 %v10702_v62, %v3711_v7  ;;  %v3584_v23 = vadd.f32 %v10634_v17, %v3456_v9  ;;  %v3500_v7 = vld [vmem:[#allocation4 + $0x207] sm:$0xff] }
 0x60f   : > { %v4050_v42 = vpop.permute.xlu1 %4049  ;;  %v3838_v20 = vadd.f32 %v10704_v47, %v3710_v25  ;;  %v3585_v62 = vadd.f32 %v10631_v5, %v3457_v39  ;;  %v3756_v9 = vld [vmem:[#allocation4 + $0x209] sm:$0xff] }
 0x610   : > { %v4048_v24 = vpop.permute.xlu0 %4047  ;;  %v3968_v12 = vadd.f32 %v10739_v52, %v3839_v31 }
 0x611   : > { %3436 = vrot.lane.b32.xlu1 %v10779_v27, %s6936_s30  ;;  %v3967_v28 = vadd.f32 %v10741_v54, %v3838_v20  ;;  %v3713_v52 = vadd.f32 %v10681_v4, %v3585_v62  ;;  %v3712_v54 = vadd.f32 %v10683_v14, %v3584_v23  ;;  %v3885_v62 = vld [vmem:[#allocation4 + $0x227] sm:$0xff] }
 0x612   : > { %3434 = vrot.lane.b32.xlu0 %v10781_v36, %s6936_s30  ;;  %v4096_v19 = vadd.f32 %v4050_v42, %v3968_v12  ;;  %v3757_v12 = vld [vmem:[#allocation4 + $0x211] sm:$0xff] }
 0x613   : > { %v10791_v30 = vpop.permute.xlu1 %3548  ;;  %v4095_v18 = vadd.f32 %v4048_v24, %v3967_v28 }
 0x614   : > { %v10794_v48 = vpop.permute.xlu0 %3546 }
 0x615   : > { %3941 = vrot.lane.b32.xlu1 %v10796_v35, %s6939_s6 }
 0x616   : > { %3939 = vrot.lane.b32.xlu0 %v10799_v26, %s6939_s6 }
 0x617   : > { %v4054_v33 = vpop.permute.xlu1 %4053 }
 0x618   : > { %v4052_v21 = vpop.permute.xlu0 %4051 }
 0x619   : > { %3560 = vrot.lane.b32.xlu1 %v10796_v35, %s6934_s20 }
 0x61a   : > { %3558 = vrot.lane.b32.xlu0 %v10799_v26, %s6934_s20 }
 0x61b   : > { %v10819_v15 = vpop.permute.xlu1 %3672 }
 0x61c   : > { %v10823_v63 = vpop.permute.xlu0 %3670 }
 0x61d   : > { %4065 = vrot.lane.b32.xlu1 %v10452_v51, %s6940_s17  ;;  %v3841_v51 = vadd.f32 %v10718_v41, %v3713_v52 }
 0x61e   : > { %4063 = vrot.lane.b32.xlu0 %v10443_v61, %s6940_s17  ;;  %v3840_v61 = vadd.f32 %v10720_v22, %v3712_v54 }
 0x61f   : > { %v4178_v47 = vpop.permute.xlu1 %4177  ;;  %v3970_v4 = vadd.f32 %v10763_v56, %v3841_v51 }
 0x620   : > { %v4176_v58 = vpop.permute.xlu0 %4175  ;;  %v4224_v59 = vadd.f32 %v4178_v47, %v4096_v19  ;;  %v3969_v24 = vadd.f32 %v10765_v49, %v3840_v61  ;;  %v3886_v19 = vld [vmem:[#allocation4 + $0x22f] sm:$0xff] }
 0x621   : > { %v4223_v34 = vadd.f32 %v4176_v58, %v4095_v18  ;;  %3564 = vrot.lane.b32.xlu1 %v3501_v38, %s6934_s20  ;;  %v4098_v14 = vadd.f32 %v4054_v33, %v3970_v4  ;;  %v3156_v47 = vld [vmem:[#allocation3 + $0x88] sm:$0xff] }
 0x622   : > { %3562 = vrot.lane.b32.xlu0 %v3500_v7, %s6934_s20  ;;  %v4097_v41 = vadd.f32 %v4052_v21, %v3969_v24  ;;  %v3157_v24 = vld [vmem:[#allocation3 + $0x90] sm:$0xff] }
 0x623   : > { %v4247_v5 = vpack.c.bf16 %v4224_v59, %v4223_v34  ;;  %v10839_v17 = vpop.permute.xlu1 %3676  ;;  %v6745_v59 = vpack.i.bf16 %v3886_v19, %v3885_v62  ;;  %v3154_v34 = vld [vmem:[#allocation3 + $0x68] sm:$0xff] }
 0x624   : > { %v10842_v42 = vpop.permute.xlu0 %3674 }
 0x625   : > { %6446 = vmatprep.mubr.bf16.mxu0 %v4247_v5  ;;  %4069 = vrot.lane.b32.xlu1 %v10549_v43, %s6940_s17 }
 0x626   : > { %4067 = vrot.lane.b32.xlu0 %v10538_v6, %s6940_s17 }
 0x627   : > { %v4182_v25 = vpop.permute.xlu1 %4181 }
 0x628   : > { %v4180_v22 = vpop.permute.xlu0 %4179  ;;  %v4226_v0 = vadd.f32 %v4182_v25, %v4098_v14 }
 0x629   : > { %v4225_v31 = vadd.f32 %v4180_v22, %v4097_v41  ;;  %3688 = vrot.lane.b32.xlu1 %v10549_v43, %s6937_s4  ;;  %v3155_v22 = vld [vmem:[#allocation3 + $0x70] sm:$0xff] }
 0x62a   : > { %3686 = vrot.lane.b32.xlu0 %v10538_v6, %s6937_s4 }
 0x62b   : > { %v4248_v56 = vpack.c.bf16 %v4226_v0, %v4225_v31  ;;  %v10853_v49 = vpop.permute.xlu1 %3296 }
 0x62c   : > { %v10855_v40 = vpop.permute.xlu0 %3294 }
 0x62d   : > { %6447 = vmatmul.mubr.bf16.gmra.mrb[64].mxu0 %v4248_v56  ;;  %4193 = vrot.lane.b32.xlu1 %v10755_v44, %s6941_s8 }
 0x62e   : > { %4191 = vrot.lane.b32.xlu0 %v10757_v37, %s6941_s8 }
 0x62f   : > { %v10861_v33 = vpop.permute.xlu1 %3800 }
 0x630   : > { %v10863_v21 = vpop.permute.xlu0 %3798 }
 0x631   : > { %3692 = vrot.lane.b32.xlu1 %v10544_v10, %s6937_s4 }
 0x632   : > { %3690 = vrot.lane.b32.xlu0 %v10535_v55, %s6937_s4 }
 0x633   : > { %v10869_v6 = vpop.permute.xlu1 %3300 }
 0x634   : > { %v10871_v43 = vpop.permute.xlu0 %3298 }
 0x635   : > { %4197 = vrot.lane.b32.xlu1 %v10779_v27, %s6941_s8 }
 0x636   : > { %4195 = vrot.lane.b32.xlu0 %v10781_v36, %s6941_s8 }
 0x637   : > { %v10877_v44 = vpop.permute.xlu1 %3804 }
 0x638   : > { %v10879_v37 = vpop.permute.xlu0 %3802 }
 0x639   : > { %3816 = vrot.lane.b32.xlu1 %v10779_v27, %s6938_s5 }
 0x63a   : > { %3814 = vrot.lane.b32.xlu0 %v10781_v36, %s6938_s5 }
 0x63b   : > { %v10885_v20 = vpop.permute.xlu1 %3424 }
 0x63c   : > { %v10887_v39 = vpop.permute.xlu0 %3422 }
 0x63d   : > { %3820 = vrot.lane.b32.xlu1 %v3757_v12, %s6938_s5 }
 0x63e   : > { %3818 = vrot.lane.b32.xlu0 %v3756_v9, %s6938_s5 }
 0x63f   : > { %v10891_v28 = vpop.permute.xlu1 %3929 }
 0x640   : > { %v10893_v23 = vpop.permute.xlu0 %3927  ;;  %v6436_v27 = vpop.f32.mrb[52].mxu0 }
 0x641   : > { %v4384_v18 = vadd.f32 %v6436_v27, %v10737_v50  ;;  %v4375_v36 = vpop.f32.mrb[53].mxu0  ;;  %3945 = vrot.lane.b32.xlu1 %v3501_v38, %s6939_s6 }
 0x642   : > { %v4376_v52 = vadd.f32 %v10737_v50, %v4375_v36  ;;  %3943 = vrot.lane.b32.xlu0 %v3500_v7, %s6939_s6  ;;  %v6437_v58 = vpop.f32.mrb[54].mxu0  ;;  %v10907_v7 = vld [vmem:[#allocation2 + $0x8] sm:$0xff] }
 0x643   : > { %v4492_v54 = vadd.f32 %v4384_v18, %v3156_v47  ;;  %v4387_v51 = vadd.f32 %v6437_v58, %v10737_v50  ;;  %v4378_v61 = vpop.f32.mrb[55].mxu0  ;;  %v10900_v5 = vpop.permute.xlu1 %3428  ;;  %v6750_v0 = vpack.i.bf16 %v10907_v7, %v10907_v7  ;;  %v4141_v36 = vld [vmem:[#allocation4 + $0x229] sm:$0xff]  ;;  %v4142_v47 = vld [vmem:[#allocation4 + $0x231] sm:$0xff] }
 0x644   : > { %v4490_v4 = vadd.f32 %v4376_v52, %v3154_v34  ;;  %v4379_v14 = vadd.f32 %v10737_v50, %v4378_v61  ;;  %v10903_v41 = vpop.permute.xlu0 %3426  ;;  %v6755_v58 = vpack.i.bf16 %v4142_v47, %v4141_v36 }
 0x645   : > { %v4524_v38 = vmax.f32 %v4492_v54, 0.0  ;;  %v4493_v25 = vadd.f32 %v4387_v51, %v3157_v24  ;;  %4071 = vrot.lane.b32.xlu1 %v10535_v55, %s6940_s17  ;;  %v11719_v51 = vld [vmem:[#allocation20_spill] sm:$0xff] }
 0x646   : > { %v4522_v31 = vmax.f32 %v4490_v4, 0.0  ;;  %v4491_v56 = vadd.f32 %v4379_v14, %v3155_v22  ;;  %6746 = vrot.lane.b32.xlu0 %v6745_v59, %s6939_s6  ;;  %v4599_v59 = vld [vmem:[#allocation2 + $0x8] ss:$2 sm:$0xff]  ;;  %v3331_v61 = vadd.f32 %v11719_v51, %v10694_v16  ;;  %v4639_v16 = vld [vmem:[#allocation2 + $0x9] ss:$2 sm:$0xff] }
 0x647   : > { %4556 = vst [vmem:[#allocation2 + $0x88] sm:$0xff] %v4524_v38  ;;  %v4525_v62 = vmax.f32 %v4493_v25, 0.0  ;;  %v10912_v19 = vpop.permute.xlu1 %3933  ;;  %v4601_v25 = vld [vmem:[#allocation2 + $0x48] ss:$2 sm:$0xff] }
 0x648   : > { %4554 = vst [vmem:[#allocation2 + $0x68] sm:$0xff] %v4522_v31  ;;  %v4523_v27 = vmax.f32 %v4491_v56, 0.0  ;;  %v10914_v18 = vpop.permute.xlu0 %3931 }
 0x649   : > { %4557 = vst [vmem:[#allocation2 + $0x90] sm:$0xff] %v4525_v62  ;;  %6751 = vrot.lane.b32.xlu1 %v6750_v0, %s6940_s17 }
 0x64a   : > { %4555 = vst [vmem:[#allocation2 + $0x70] sm:$0xff] %v4523_v27  ;;  %4073 = vrot.lane.b32.xlu0 %v10544_v10, %s6940_s17  ;;  %v11720_v10 = vld [vmem:[#allocation14_spill] sm:$0xff] }
 0x64b   : > { %v10919_v55 = vpop.permute.xlu1 %3552  ;;  %v3330_v4 = vadd.f32 %v11720_v10, %v10696_v57  ;;  %v4679_v10 = vld [vmem:[#allocation2 + $0x27] ss:$2 sm:$0xff] }
 0x64c   : > { %v10921_v52 = vpop.permute.xlu0 %3550 }
 0x64d   : > { %4201 = vrot.lane.b32.xlu1 %v3757_v12, %s6941_s8  ;;  %v3459_v12 = vadd.f32 %v10726_v2, %v3331_v61  ;;  %v3458_v38 = vadd.f32 %v10728_v3, %v3330_v4  ;;  %v3333_v3 = vadd.f32 %v10474_v45, %v10710_v53 }
 0x64e   : > { %4199 = vrot.lane.b32.xlu0 %v3756_v9, %s6941_s8 }
 0x64f   : > { %v4058_v54 = vpop.permute.xlu1 %4057  ;;  %v3587_v22 = vadd.f32 %v10771_v32, %v3459_v12  ;;  %v3586_v0 = vadd.f32 %v10773_v8, %v3458_v38  ;;  %v11721_v32 = vld [vmem:[#allocation18_spill] sm:$0xff]  ;;  %v3461_v8 = vadd.f32 %v10750_v60, %v3333_v3 }
 0x650   : > { %v4056_v34 = vpop.permute.xlu0 %4055  ;;  %v4603_v9 = vld [vmem:[#allocation2 + $0x88] ss:$2 sm:$0xff]  ;;  %v3332_v27 = vadd.f32 %v11721_v32, %v10712_v1 }
 0x651   : > { %4614 = vrot.lane.b32.xlu1 %v4599_v59, %s6935_s24  ;;  %v3715_v31 = vadd.f32 %v10819_v15, %v3587_v22  ;;  %v3714_v2 = vadd.f32 %v10823_v63, %v3586_v0  ;;  %v4643_v63 = vld [vmem:[#allocation2 + $0x89] ss:$2 sm:$0xff]  ;;  %v3589_v53 = vadd.f32 %v10791_v30, %v3461_v8 }
 0x652   : > { %6756 = vrot.lane.b32.xlu0 %v6755_v58, %s6941_s8  ;;  %v3460_v59 = vadd.f32 %v10753_v29, %v3332_v27 }
 0x653   : > { %v10931_v24 = vpop.permute.xlu1 %3556  ;;  %v3843_v62 = vadd.f32 %v10861_v33, %v3715_v31  ;;  %v3842_v36 = vadd.f32 %v10863_v21, %v3714_v2  ;;  %v3717_v60 = vadd.f32 %v10839_v17, %v3589_v53 }
 0x654   : > { %v10934_v14 = vpop.permute.xlu0 %3554  ;;  %v3588_v33 = vadd.f32 %v10794_v48, %v3460_v59 }
 0x655   : > { %4618 = vrot.lane.b32.xlu1 %v4603_v9, %s6935_s24  ;;  %v3972_v15 = vadd.f32 %v10891_v28, %v3843_v62  ;;  %v3971_v45 = vadd.f32 %v10893_v23, %v3842_v36  ;;  %v3845_v29 = vadd.f32 %v10877_v44, %v3717_v60 }
 0x656   : > { %4616 = vrot.lane.b32.xlu0 %v4601_v25, %s6935_s24  ;;  %v3716_v4 = vadd.f32 %v10842_v42, %v3588_v33 }
 0x657   : > { %v4062_v57 = vpop.permute.xlu1 %4061  ;;  %v4100_v1 = vadd.f32 %v4058_v54, %v3972_v15  ;;  %v4099_v21 = vadd.f32 %v4056_v34, %v3971_v45  ;;  %v3974_v48 = vadd.f32 %v10912_v19, %v3845_v29  ;;  %v3159_v29 = vld [vmem:[#allocation3 + $0xb0] sm:$0xff] }
 0x658   : > { %v4060_v56 = vpop.permute.xlu0 %4059  ;;  %v3844_v23 = vadd.f32 %v10879_v37, %v3716_v4 }
 0x659   : > { %4654 = vrot.lane.b32.xlu1 %v4639_v16, %s6936_s30  ;;  %v4102_v9 = vadd.f32 %v4062_v57, %v3974_v48 }
 0x65a   : > { %v3973_v17 = vadd.f32 %v10914_v18, %v3844_v23 }
 0x65b   : > { %v10950_v47 = vpop.permute.xlu1 %3680 }
 0x65c   : > { %v10954_v58 = vpop.permute.xlu0 %3678  ;;  %v4101_v38 = vadd.f32 %v4060_v56, %v3973_v17 }
 0x65d   : > { %4658 = vrot.lane.b32.xlu1 %v4643_v63, %s6936_s30  ;;  %v3160_v63 = vld [vmem:[#allocation3 + $0xc8] sm:$0xff] }
 0x65f   : > { %v4186_v51 = vpop.permute.xlu1 %4185 }
 0x660   : > { %v4184_v61 = vpop.permute.xlu0 %4183  ;;  %v4228_v28 = vadd.f32 %v4186_v51, %v4100_v1  ;;  %v3158_v1 = vld [vmem:[#allocation3 + $0xa8] sm:$0xff] }
 0x661   : > { %v4227_v12 = vadd.f32 %v4184_v61, %v4099_v21  ;;  %4694 = vrot.lane.b32.xlu1 %v4679_v10, %s6934_s20  ;;  %v3161_v61 = vld [vmem:[#allocation3 + $0xd0] sm:$0xff] }
 0x663   : > { %v4249_v30 = vpack.c.bf16 %v4228_v28, %v4227_v12  ;;  %v10966_v54 = vpop.permute.xlu1 %3684 }
 0x664   : > { %v10969_v34 = vpop.permute.xlu0 %3682 }
 0x665   : > { %6450 = vmatprep.mubr.bf16.mxu0 %v4249_v30 }
 0x667   : > { %v4190_v42 = vpop.permute.xlu1 %4189 }
 0x668   : > { %v4188_v25 = vpop.permute.xlu0 %4187  ;;  %v4230_v22 = vadd.f32 %v4190_v42, %v4102_v9 }
 0x669   : > { %v4229_v16 = vadd.f32 %v4188_v25, %v4101_v38 }
 0x66b   : > { %v4250_v0 = vpack.c.bf16 %v4230_v22, %v4229_v16  ;;  %v10972_v44 = vpop.permute.xlu1 %3304 }
 0x66c   : > { %v10974_v37 = vpop.permute.xlu0 %3302 }
 0x66d   : > { %6451 = vmatmul.mubr.bf16.gmra.mrb[68].mxu0 %v4250_v0 }
 0x66f   : > { %v10976_v31 = vpop.permute.xlu1 %3808 }
 0x670   : > { %v10978_v19 = vpop.permute.xlu0 %3806 }
 0x673   : > { %v10980_v2 = vpop.permute.xlu1 %3308 }
 0x674   : > { %v10982_v18 = vpop.permute.xlu0 %3306 }
 0x677   : > { %v10984_v57 = vpop.permute.xlu1 %3812 }
 0x678   : > { %v10986_v56 = vpop.permute.xlu0 %3810 }
 0x67b   : > { %v10988_v3 = vpop.permute.xlu1 %3432 }
 0x67c   : > { %v10990_v62 = vpop.permute.xlu0 %3430 }
 0x67f   : > { %v10992_v32 = vpop.permute.xlu1 %3937 }
 0x680   : > { %v10994_v27 = vpop.permute.xlu0 %3935  ;;  %v6440_v36 = vpop.f32.mrb[56].mxu0 }
 0x681   : > { %v4400_v8 = vadd.f32 %v6440_v36, %v10737_v50  ;;  %v4391_v15 = vpop.f32.mrb[57].mxu0 }
 0x682   : > { %v4392_v59 = vadd.f32 %v10737_v50, %v4391_v15  ;;  %v6441_v45 = vpop.f32.mrb[58].mxu0 }
 0x683   : > { %v4496_v53 = vadd.f32 %v4400_v8, %v3160_v63  ;;  %v4403_v33 = vadd.f32 %v6441_v45, %v10737_v50  ;;  %v4394_v21 = vpop.f32.mrb[59].mxu0  ;;  %v10999_v51 = vpop.permute.xlu1 %3436  ;;  %v11722_v8 = vld [vmem:[#allocation9_spill] sm:$0xff]  ;;  %v11723_v63 = vld [vmem:[#allocation19_spill] sm:$0xff] }
 0x684   : > { %v4494_v60 = vadd.f32 %v4392_v59, %v3158_v1  ;;  %v4395_v28 = vadd.f32 %v10737_v50, %v4394_v21  ;;  %v11002_v10 = vpop.permute.xlu0 %3434  ;;  %v3335_v15 = vadd.f32 %v11722_v8, %v10853_v49  ;;  %v3334_v59 = vadd.f32 %v11723_v63, %v10855_v40 }
 0x685   : > { %v4528_v4 = vmax.f32 %v4496_v53, 0.0  ;;  %v4497_v12 = vadd.f32 %v4403_v33, %v3161_v61  ;;  %v4641_v33 = vld [vmem:[#allocation2 + $0x49] ss:$2 sm:$0xff] }
 0x686   : > { %v4526_v23 = vmax.f32 %v4494_v60, 0.0  ;;  %v4495_v30 = vadd.f32 %v4395_v28, %v3159_v29  ;;  %v3463_v53 = vadd.f32 %v10885_v20, %v3335_v15  ;;  %v3462_v21 = vadd.f32 %v10887_v39, %v3334_v59  ;;  %v4719_v60 = vld [vmem:[#allocation2 + $0x28] ss:$2 sm:$0xff]  ;;  %v11724_v39 = vld [vmem:[#allocation10_spill] sm:$0xff] }
 0x687   : > { %4560 = vst [vmem:[#allocation2 + $0xc8] sm:$0xff] %v4528_v4  ;;  %v4529_v48 = vmax.f32 %v4497_v12, 0.0  ;;  %v3942_v17 = vpop.permute.xlu1 %3941 }
 0x688   : > { %4558 = vst [vmem:[#allocation2 + $0xa8] sm:$0xff] %v4526_v23  ;;  %v4527_v9 = vmax.f32 %v4495_v30, 0.0  ;;  %v3940_v38 = vpop.permute.xlu0 %3939  ;;  %v3591_v61 = vadd.f32 %v10919_v55, %v3463_v53  ;;  %v3590_v49 = vadd.f32 %v10921_v52, %v3462_v21  ;;  %v3337_v23 = vadd.f32 %v11724_v39, %v10869_v6 }
 0x689   : > { %4561 = vst [vmem:[#allocation2 + $0xd0] sm:$0xff] %v4529_v48  ;;  %v3336_v55 = vadd.f32 %v10639_v46, %v10871_v43 }
 0x68a   : > { %4559 = vst [vmem:[#allocation2 + $0xb0] sm:$0xff] %v4527_v9  ;;  %v3719_v40 = vadd.f32 %v10950_v47, %v3591_v61  ;;  %v3718_v20 = vadd.f32 %v10954_v58, %v3590_v49  ;;  %v3465_v48 = vadd.f32 %v10900_v5, %v3337_v23  ;;  %v3341_v23 = vadd.f32 %v10796_v35, %v10980_v2 }
 0x68b   : > { %v11004_v42 = vpop.permute.xlu1 %3560 }
 0x68c   : > { %v11006_v25 = vpop.permute.xlu0 %3558  ;;  %v3847_v30 = vadd.f32 %v10976_v31, %v3719_v40  ;;  %v3846_v52 = vadd.f32 %v10978_v19, %v3718_v20  ;;  %v3593_v31 = vadd.f32 %v10931_v24, %v3465_v48 }
 0x68e   : > { %v3976_v58 = vadd.f32 %v10992_v32, %v3847_v30  ;;  %v3975_v6 = vadd.f32 %v10994_v27, %v3846_v52  ;;  %v3721_v15 = vadd.f32 %v10966_v54, %v3593_v31 }
 0x68f   : > { %v4066_v22 = vpop.permute.xlu1 %4065 }
 0x690   : > { %v4064_v16 = vpop.permute.xlu0 %4063  ;;  %v4605_v0 = vld [vmem:[#allocation2 + $0xc8] ss:$2 sm:$0xff]  ;;  %v4645_v12 = vld [vmem:[#allocation2 + $0xc9] ss:$2 sm:$0xff]  ;;  %v4104_v8 = vadd.f32 %v4066_v22, %v3976_v58 }
 0x691   : > { %4620 = vrot.lane.b32.xlu0 %v4605_v0, %s6935_s24  ;;  %v4683_v36 = vld [vmem:[#allocation2 + $0xa7] ss:$2 sm:$0xff]  ;;  %v4723_v29 = vld [vmem:[#allocation2 + $0xa8] ss:$2 sm:$0xff]  ;;  %v4103_v43 = vadd.f32 %v4064_v16, %v3975_v6 }
 0x692   : > { %4698 = vrot.lane.b32.xlu1 %v4683_v36, %s6934_s20  ;;  %v4681_v0 = vld [vmem:[#allocation2 + $0x67] ss:$2 sm:$0xff]  ;;  %v3464_v36 = vadd.f32 %v10903_v41, %v3336_v55  ;;  %v3849_v41 = vadd.f32 %v10984_v57, %v3721_v15 }
 0x693   : > { %v11014_v45 = vpop.permute.xlu1 %3564 }
 0x694   : > { %v11017_v1 = vpop.permute.xlu0 %3562  ;;  %v3592_v46 = vadd.f32 %v10934_v14, %v3464_v36  ;;  %v3978_v21 = vadd.f32 %v3942_v17, %v3849_v41  ;;  %v3338_v17 = vadd.f32 %v10673_v13, %v10974_v37  ;;  %v3469_v13 = vadd.f32 %v10999_v51, %v3341_v23  ;;  %v3162_v41 = vld [vmem:[#allocation3 + $0xe8] sm:$0xff] }
 0x695   : > { %4656 = vrot.lane.b32.xlu0 %v4641_v33, %s6936_s30 }
 0x696   : > { %4734 = vrot.lane.b32.xlu1 %v4719_v60, %s6937_s4  ;;  %v3720_v32 = vadd.f32 %v10969_v34, %v3592_v46 }
 0x697   : > { %v4070_v28 = vpop.permute.xlu1 %4069 }
 0x698   : > { %v4068_v4 = vpop.permute.xlu0 %4067  ;;  %v3848_v27 = vadd.f32 %v10986_v56, %v3720_v32  ;;  %v4106_v14 = vadd.f32 %v4070_v28, %v3978_v21  ;;  %v3339_v56 = vadd.f32 %v10670_v11, %v10972_v44  ;;  %v3340_v11 = vadd.f32 %v10799_v26, %v10982_v18 }
 0x699   : > { %4660 = vrot.lane.b32.xlu0 %v4645_v12, %s6936_s30 }
 0x69a   : > { %4738 = vrot.lane.b32.xlu1 %v4723_v29, %s6937_s4  ;;  %v3977_v22 = vadd.f32 %v3940_v38, %v3848_v27  ;;  %v3467_v28 = vadd.f32 %v10988_v3, %v3339_v56  ;;  %v3466_v29 = vadd.f32 %v10990_v62, %v3338_v17  ;;  %v3468_v3 = vadd.f32 %v11002_v10, %v3340_v11 }
 0x69b   : > { %v3689_v47 = vpop.permute.xlu1 %3688  ;;  %v3597_v62 = vadd.f32 %v11014_v45, %v3469_v13  ;;  %v3166_v13 = vld [vmem:[#allocation3 + $0x128] sm:$0xff] }
 0x69c   : > { %v3687_v9 = vpop.permute.xlu0 %3686  ;;  %v4105_v16 = vadd.f32 %v4068_v4, %v3977_v22  ;;  %v3595_v39 = vadd.f32 %v11004_v42, %v3467_v28  ;;  %v3594_v30 = vadd.f32 %v11006_v25, %v3466_v29  ;;  %v3596_v35 = vadd.f32 %v11017_v1, %v3468_v3  ;;  %v3164_v1 = vld [vmem:[#allocation3 + $0x108] sm:$0xff]  ;;  %v3165_v22 = vld [vmem:[#allocation3 + $0x110] sm:$0xff] }
 0x69d   : > { %4696 = vrot.lane.b32.xlu0 %v4681_v0, %s6934_s20  ;;  %v4759_v28 = vld [vmem:[#allocation2 + $0x29] ss:$2 sm:$0xff] }
 0x69e   : > { %v3723_v44 = vadd.f32 %v3689_v47, %v3595_v39  ;;  %v3722_v37 = vadd.f32 %v3687_v9, %v3594_v30 }
 0x69f   : > { %v4194_v19 = vpop.permute.xlu1 %4193 }
 0x6a0   : > { %v4192_v5 = vpop.permute.xlu0 %4191  ;;  %v4232_v63 = vadd.f32 %v4194_v19, %v4104_v8 }
 0x6a1   : > { %v4231_v59 = vadd.f32 %v4192_v5, %v4103_v43 }
 0x6a3   : > { %v4251_v53 = vpack.c.bf16 %v4232_v63, %v4231_v59  ;;  %v3693_v33 = vpop.permute.xlu1 %3692 }
 0x6a4   : > { %v3691_v24 = vpop.permute.xlu0 %3690  ;;  %v3725_v0 = vadd.f32 %v3693_v33, %v3597_v62  ;;  %v3169_v62 = vld [vmem:[#allocation3 + $0x150] sm:$0xff] }
 0x6a5   : > { %6454 = vmatprep.mubr.bf16.mxu0 %v4251_v53  ;;  %v3724_v6 = vadd.f32 %v3691_v24, %v3596_v35 }
 0x6a7   : > { %v4198_v60 = vpop.permute.xlu1 %4197 }
 0x6a8   : > { %v4196_v61 = vpop.permute.xlu0 %4195  ;;  %v4234_v54 = vadd.f32 %v4198_v60, %v4106_v14 }
 0x6a9   : > { %v4233_v49 = vadd.f32 %v4196_v61, %v4105_v16 }
 0x6ab   : > { %v4252_v40 = vpack.c.bf16 %v4234_v54, %v4233_v49  ;;  %v3817_v12 = vpop.permute.xlu1 %3816  ;;  %v3163_v54 = vld [vmem:[#allocation3 + $0xf0] sm:$0xff] }
 0x6ac   : > { %v3815_v34 = vpop.permute.xlu0 %3814  ;;  %v3851_v48 = vadd.f32 %v3817_v12, %v3723_v44 }
 0x6ad   : > { %6455 = vmatmul.mubr.bf16.gmra.mrb[72].mxu0 %v4252_v40  ;;  %v3850_v42 = vadd.f32 %v3815_v34, %v3722_v37 }
 0x6af   : > { %v3821_v20 = vpop.permute.xlu1 %3820 }
 0x6b0   : > { %v3819_v57 = vpop.permute.xlu0 %3818  ;;  %v3853_v18 = vadd.f32 %v3821_v20, %v3725_v0 }
 0x6b1   : > { %v3852_v51 = vadd.f32 %v3819_v57, %v3724_v6 }
 0x6b3   : > { %v3946_v38 = vpop.permute.xlu1 %3945 }
 0x6b4   : > { %v3944_v4 = vpop.permute.xlu0 %3943  ;;  %v3980_v2 = vadd.f32 %v3946_v38, %v3851_v48 }
 0x6b5   : > { %v3979_v36 = vadd.f32 %v3944_v4, %v3850_v42  ;;  %v4721_v4 = vld [vmem:[#allocation2 + $0x68] ss:$2 sm:$0xff] }
 0x6b7   : > { %v4072_v55 = vpop.permute.xlu1 %4071 }
 0x6b8   : > { %v6747_v52 = vpop.permute.xlu0 %6746  ;;  %v4107_v47 = vadd.f32 %v4072_v55, %v3979_v36  ;;  %v3168_v55 = vld [vmem:[#allocation3 + $0x148] sm:$0xff] }
 0x6b9   : > { %v6856_v19 = vadd.low.f32.bf16 %v3852_v51, %v6747_v52  ;;  %v6857_v15 = vadd.high.f32.bf16 %v3853_v18, %v6747_v52  ;;  %v4761_v18 = vld [vmem:[#allocation2 + $0x69] ss:$2 sm:$0xff] }
 0x6bb   : > { %v6752_v58 = vpop.permute.xlu1 %6751 }
 0x6bc   : > { %v4074_v25 = vpop.permute.xlu0 %4073  ;;  %v6858_v33 = vadd.high.f32.bf16 %v6857_v15, %v6752_v58  ;;  %v6859_v21 = vadd.low.f32.bf16 %v6856_v19, %v6752_v58 }
 0x6bd   : > { %v4108_v26 = vadd.f32 %v4074_v25, %v3980_v2  ;;  %v3167_v2 = vld [vmem:[#allocation3 + $0x130] sm:$0xff] }
 0x6bf   : > { %v4202_v31 = vpop.permute.xlu1 %4201 }
 0x6c0   : > { %v4200_v9 = vpop.permute.xlu0 %4199  ;;  %v4236_v8 = vadd.f32 %v4202_v31, %v4108_v26  ;;  %v6444_v10 = vpop.f32.mrb[60].mxu0 }
 0x6c1   : > { %v4235_v46 = vadd.f32 %v4200_v9, %v4107_v47  ;;  %v4416_v45 = vadd.f32 %v6444_v10, %v10737_v50  ;;  %v4407_v43 = vpop.f32.mrb[61].mxu0  ;;  %v3172_v9 = vld [vmem:[#allocation3 + $0x188] sm:$0xff] }
 0x6c2   : > { %v4408_v5 = vadd.f32 %v10737_v50, %v4407_v43  ;;  %v6445_v63 = vpop.f32.mrb[62].mxu0 }
 0x6c3   : > { %v4253_v32 = vpack.c.bf16 %v4236_v8, %v4235_v46  ;;  %v4500_v59 = vadd.f32 %v4416_v45, %v3164_v1  ;;  %v4419_v27 = vadd.f32 %v6445_v63, %v10737_v50  ;;  %v4410_v53 = vpop.f32.mrb[63].mxu0  ;;  %v3170_v45 = vld [vmem:[#allocation3 + $0x168] sm:$0xff]  ;;  %v3173_v1 = vld [vmem:[#allocation3 + $0x190] sm:$0xff] }
 0x6c4   : > { %v4498_v24 = vadd.f32 %v4408_v5, %v3162_v41  ;;  %v4411_v14 = vadd.f32 %v10737_v50, %v4410_v53  ;;  %v6757_v16 = vpop.permute.xlu0 %6756 }
 0x6c5   : > { %v4532_v60 = vmax.f32 %v4500_v59, 0.0  ;;  %v4501_v61 = vadd.f32 %v4419_v27, %v3165_v22  ;;  %6458 = vmatprep.mubr.bf16.mxu0 %v4253_v32  ;;  %v6860_v34 = vadd.low.f32.bf16 %v6859_v21, %v6757_v16  ;;  %v6861_v20 = vadd.high.f32.bf16 %v6858_v33, %v6757_v16  ;;  %v3171_v59 = vld [vmem:[#allocation3 + $0x170] sm:$0xff] }
 0x6c6   : > { %v4530_v49 = vmax.f32 %v4498_v24, 0.0  ;;  %v4499_v40 = vadd.f32 %v4411_v14, %v3163_v54  ;;  %v4763_v24 = vld [vmem:[#allocation2 + $0xa9] ss:$2 sm:$0xff]  ;;  %v4839_v54 = vld [vmem:[#allocation2 + $0x48] ss:$2 sm:$0xff] }
 0x6c7   : > { %4564 = vst [vmem:[#allocation2 + $0x108] sm:$0xff] %v4532_v60  ;;  %v4533_v12 = vmax.f32 %v4501_v61, 0.0  ;;  %v4254_v56 = vpack.c.bf16 %v6861_v20, %v6860_v34  ;;  %v4799_v14 = vld [vmem:[#allocation2 + $0x47] ss:$2 sm:$0xff]  ;;  %v6830_v20 = vld [vmem:[%s11544_s2 + $0x2] ss:$0 sm:$0xff] }
 0x6c8   : > { %4562 = vst [vmem:[#allocation2 + $0xe8] sm:$0xff] %v4530_v49  ;;  %v4531_v57 = vmax.f32 %v4499_v40, 0.0  ;;  %v4803_v60 = vld [vmem:[#allocation2 + $0xc7] ss:$2 sm:$0xff] }
 0x6c9   : > { %4565 = vst [vmem:[#allocation2 + $0x110] sm:$0xff] %v4533_v12  ;;  %6459 = vmatmul.mubr.bf16.gmra.mrb[76].mxu0 %v4254_v56  ;;  %v3176_v34 = vld [vmem:[#allocation3 + $0x1c8] sm:$0xff] }
 0x6ca   : > { %4563 = vst [vmem:[#allocation2 + $0xf0] sm:$0xff] %v4531_v57 }
 0x6d0   : > { %v4607_v17 = vld [vmem:[#allocation2 + $0x108] ss:$2 sm:$0xff]  ;;  %v4647_v22 = vld [vmem:[#allocation2 + $0x109] ss:$2 sm:$0xff] }
 0x6d1   : > { %4622 = vrot.lane.b32.xlu1 %v4607_v17, %s6935_s24  ;;  %v4685_v38 = vld [vmem:[#allocation2 + $0xe7] ss:$2 sm:$0xff]  ;;  %v4725_v29 = vld [vmem:[#allocation2 + $0xe8] ss:$2 sm:$0xff] }
 0x6d2   : > { %4700 = vrot.lane.b32.xlu0 %v4685_v38, %s6934_s20  ;;  %v3174_v38 = vld [vmem:[#allocation3 + $0x1a8] sm:$0xff] }
 0x6d5   : > { %4774 = vrot.lane.b32.xlu1 %v4759_v28, %s6938_s5 }
 0x6d6   : > { %4736 = vrot.lane.b32.xlu0 %v4721_v4, %s6937_s4 }
 0x6da   : > { %4740 = vrot.lane.b32.xlu0 %v4725_v29, %s6937_s4 }
 0x700   : > { %v6448_v39 = vpop.f32.mrb[64].mxu0 }
 0x701   : > { %v4432_v23 = vadd.f32 %v6448_v39, %v10737_v50  ;;  %v4423_v30 = vpop.f32.mrb[65].mxu0  ;;  %v3177_v39 = vld [vmem:[#allocation3 + $0x1d0] sm:$0xff] }
 0x702   : > { %v4424_v11 = vadd.f32 %v10737_v50, %v4423_v30  ;;  %v6449_v44 = vpop.f32.mrb[66].mxu0 }
 0x703   : > { %v4504_v52 = vadd.f32 %v4432_v23, %v3168_v55  ;;  %v4435_v37 = vadd.f32 %v6449_v44, %v10737_v50  ;;  %v4426_v3 = vpop.f32.mrb[67].mxu0 }
 0x704   : > { %v4502_v48 = vadd.f32 %v4424_v11, %v3166_v13  ;;  %v4427_v42 = vadd.f32 %v10737_v50, %v4426_v3  ;;  %v3175_v11 = vld [vmem:[#allocation3 + $0x1b0] sm:$0xff] }
 0x705   : > { %v4536_v58 = vmax.f32 %v4504_v52, 0.0  ;;  %v4505_v35 = vadd.f32 %v4435_v37, %v3169_v62  ;;  %v4843_v62 = vld [vmem:[#allocation2 + $0xc8] ss:$2 sm:$0xff] }
 0x706   : > { %v4534_v25 = vmax.f32 %v4502_v48, 0.0  ;;  %v4503_v0 = vadd.f32 %v4427_v42, %v3167_v2  ;;  %v4765_v48 = vld [vmem:[#allocation2 + $0xe9] ss:$2 sm:$0xff] }
 0x707   : > { %4568 = vst [vmem:[#allocation2 + $0x148] sm:$0xff] %v4536_v58  ;;  %v4537_v36 = vmax.f32 %v4505_v35, 0.0  ;;  %v6784_v35 = vld [vmem:[%s11543_s1 + $0xc0] sm:$0xff]  }
 0x708   : > { %4566 = vst [vmem:[#allocation2 + $0x128] sm:$0xff] %v4534_v25  ;;  %v4535_v6 = vmax.f32 %v4503_v0, 0.0  ;;  %6462 = vmatprep.subr.bf16.mxu1 %v6784_v35  ;;  %v4801_v2 = vld [vmem:[#allocation2 + $0x87] ss:$2 sm:$0xff] }
 0x709   : > { %4569 = vst [vmem:[#allocation2 + $0x150] sm:$0xff] %v4537_v36  ;;  %6463 = vmatpush3.bf16.msra.mxu1 %v6784_v35  ;;  %v4879_v25 = vld [vmem:[#allocation2 + $0x49] ss:$2 sm:$0xff] }
 0x70a   : > { %4567 = vst [vmem:[#allocation2 + $0x130] sm:$0xff] %v4535_v6  ;;  %v6785_v0 = vld [vmem:[%s11543_s1 + $0xc8] sm:$0xff]  }
 0x70b   : > { %6464 = vmatprep.subr.bf16.mxu1 %v6785_v0 }
 0x70d   : > { %6465 = vmatpush3.bf16.msra.mxu1 %v6785_v0 }
 0x710   : > { %v4609_v26 = vld [vmem:[#allocation2 + $0x148] ss:$2 sm:$0xff]  ;;  %v4649_v42 = vld [vmem:[#allocation2 + $0x149] ss:$2 sm:$0xff] }
 0x711   : > { %4624 = vrot.lane.b32.xlu0 %v4609_v26, %s6935_s24  ;;  %v4687_v61 = vld [vmem:[#allocation2 + $0x127] ss:$2 sm:$0xff]  ;;  %v4727_v58 = vld [vmem:[#allocation2 + $0x128] ss:$2 sm:$0xff] }
 0x715   : > { %4776 = vrot.lane.b32.xlu0 %v4761_v18, %s6938_s5  ;;  %v3180_v18 = vld [vmem:[#allocation3 + $0x208] sm:$0xff] }
 0x740   : > { %v6452_v47 = vpop.f32.mrb[68].mxu0 }
 0x741   : > { %v4448_v31 = vadd.f32 %v6452_v47, %v10737_v50  ;;  %v4439_v51 = vpop.f32.mrb[69].mxu0 }
 0x742   : > { %v4440_v8 = vadd.f32 %v10737_v50, %v4439_v51  ;;  %v6453_v10 = vpop.f32.mrb[70].mxu0 }
 0x743   : > { %v4508_v46 = vadd.f32 %v4448_v31, %v3172_v9  ;;  %v4451_v43 = vadd.f32 %v6453_v10, %v10737_v50  ;;  %v4442_v19 = vpop.f32.mrb[71].mxu0 }
 0x744   : > { %v4506_v15 = vadd.f32 %v4440_v8, %v3170_v45  ;;  %v4443_v5 = vadd.f32 %v10737_v50, %v4442_v19  ;;  %v3178_v8 = vld [vmem:[#allocation3 + $0x1e8] sm:$0xff] }
 0x745   : > { %v4540_v63 = vmax.f32 %v4508_v46, 0.0  ;;  %v4509_v32 = vadd.f32 %v4451_v43, %v3173_v1  ;;  %v6786_v43 = vld [vmem:[%s11543_s1 + $0xd0] sm:$0xff]  }
 0x746   : > { %v4538_v41 = vmax.f32 %v4506_v15, 0.0  ;;  %v4507_v27 = vadd.f32 %v4443_v5, %v3171_v59  ;;  %v3181_v15 = vld [vmem:[#allocation3 + $0x210] sm:$0xff]  ;;  %v11111_v5 = vpop.permute.xlu1 %4614  ;;  %6466 = vmatprep.subr.bf16.mxu1 %v6786_v43 }
 0x747   : > { %4572 = vst [vmem:[#allocation2 + $0x188] sm:$0xff] %v4540_v63  ;;  %v4541_v53 = vmax.f32 %v4509_v32, 0.0  ;;  %v3179_v59 = vld [vmem:[#allocation3 + $0x1f0] sm:$0xff]  ;;  %6467 = vmatpush3.bf16.msra.mxu1 %v6786_v43 }
 0x748   : > { %4570 = vst [vmem:[#allocation2 + $0x168] sm:$0xff] %v4538_v41  ;;  %v4539_v33 = vmax.f32 %v4507_v27, 0.0 }
 0x749   : > { %4573 = vst [vmem:[#allocation2 + $0x190] sm:$0xff] %v4541_v53  ;;  %v4805_v53 = vld [vmem:[#allocation2 + $0x107] ss:$2 sm:$0xff] }
 0x74a   : > { %4571 = vst [vmem:[#allocation2 + $0x170] sm:$0xff] %v4539_v33 }
 0x750   : > { %v4611_v21 = vld [vmem:[#allocation2 + $0x188] ss:$2 sm:$0xff]  ;;  %v4651_v16 = vld [vmem:[#allocation2 + $0x189] ss:$2 sm:$0xff] }
 0x751   : > { %4626 = vrot.lane.b32.xlu1 %v4611_v21, %s6935_s24  ;;  %v4883_v21 = vld [vmem:[#allocation2 + $0xc9] ss:$2 sm:$0xff] }
 0x752   : > { %v4809_v35 = vld [vmem:[#allocation2 + $0x187] ss:$2 sm:$0xff] }
 0x755   : > { %4778 = vrot.lane.b32.xlu1 %v4763_v24, %s6938_s5  ;;  %v6787_v24 = vld [vmem:[%s11543_s1 + $0xd8] sm:$0xff]  }
 0x756   : > { %6468 = vmatprep.subr.bf16.mxu1 %v6787_v24 }
 0x757   : > { %6469 = vmatpush3.bf16.msra.mxu1 %v6787_v24 }
 0x759   : > { %4662 = vrot.lane.b32.xlu1 %v4647_v22, %s6936_s30 }
 0x75d   : > { %4814 = vrot.lane.b32.xlu1 %v4799_v14, %s6939_s6  ;;  %v4689_v14 = vld [vmem:[#allocation2 + $0x167] ss:$2 sm:$0xff] }
 0x761   : > { %4666 = vrot.lane.b32.xlu1 %v4651_v16, %s6936_s30  ;;  %v11118_v16 = vpop.permute.xlu1 %4618 }
 0x765   : > { %4818 = vrot.lane.b32.xlu1 %v4803_v60, %s6939_s6  ;;  %v4767_v60 = vld [vmem:[#allocation2 + $0x129] ss:$2 sm:$0xff] }
 0x769   : > { %4702 = vrot.lane.b32.xlu1 %v4687_v61, %s6934_s20  ;;  %v6788_v61 = vld [vmem:[%s11543_s1 + $0xe0] sm:$0xff]  }
 0x76a   : > { %6470 = vmatprep.subr.bf16.mxu1 %v6788_v61 }
 0x76b   : > { %6471 = vmatpush3.bf16.msra.mxu1 %v6788_v61 }
 0x76d   : > { %4854 = vrot.lane.b32.xlu1 %v4839_v54, %s6940_s17  ;;  %v4841_v54 = vld [vmem:[#allocation2 + $0x88] ss:$2 sm:$0xff] }
 0x780   : > { %v6456_v49 = vpop.f32.mrb[72].mxu0 }
 0x781   : > { %v4464_v40 = vadd.f32 %v6456_v49, %v10737_v50  ;;  %v4455_v12 = vpop.f32.mrb[73].mxu0 }
 0x782   : > { %v4456_v57 = vadd.f32 %v6830_v20, %v4455_v12  ;;  %v6457_v56 = vpop.f32.mrb[74].mxu0  ;;  %v11130_v12 = vpop.permute.xlu1 %4654 }
 0x783   : > { %v4512_v17 = vadd.f32 %v4464_v40, %v3176_v34  ;;  %v4467_v28 = vadd.f32 %v6830_v20, %v6457_v56  ;;  %v4458_v4 = vpop.f32.mrb[75].mxu0  ;;  %v6789_v40 = vld [vmem:[%s11543_s1 + $0xe8] sm:$0xff]  }
 0x784   : > { %v4510_v29 = vadd.f32 %v4456_v57, %v3174_v38  ;;  %v4459_v23 = vadd.f32 %v6830_v20, %v4458_v4  ;;  %6472 = vmatprep.subr.bf16.mxu1 %v6789_v40  ;;  %v6790_v57 = vld [vmem:[%s11543_s1 + $0xf0] sm:$0xff]  }
 0x785   : > { %v4544_v30 = vmax.f32 %v4512_v17, 0.0  ;;  %v4513_v55 = vadd.f32 %v4467_v28, %v3177_v39  ;;  %6473 = vmatpush3.bf16.msra.mxu1 %v6789_v40  ;;  %v4845_v56 = vld [vmem:[#allocation2 + $0x108] ss:$2 sm:$0xff]  ;;  %v6791_v28 = vld [vmem:[%s11543_s1 + $0xf8] sm:$0xff]  }
 0x786   : > { %v4542_v44 = vmax.f32 %v4510_v29, 0.0  ;;  %v4511_v50 = vadd.f32 %v4459_v23, %v3175_v11  ;;  %6474 = vmatprep.subr.bf16.mxu1 %v6790_v57  ;;  %v11137_v17 = vpop.permute.xlu1 %4658  ;;  %v4729_v4 = vld [vmem:[#allocation2 + $0x168] ss:$2 sm:$0xff]  ;;  %v4881_v23 = vld [vmem:[#allocation2 + $0x89] ss:$2 sm:$0xff] }
 0x787   : > { %4576 = vst [vmem:[#allocation2 + $0x1c8] sm:$0xff] %v4544_v30  ;;  %v4545_v52 = vmax.f32 %v4513_v55, 0.0  ;;  %v4847_v29 = vld [vmem:[#allocation2 + $0x148] ss:$2 sm:$0xff] }
 0x788   : > { %4574 = vst [vmem:[#allocation2 + $0x1a8] sm:$0xff] %v4542_v44  ;;  %v4543_v13 = vmax.f32 %v4511_v50, 0.0  ;;  %v4887_v44 = vld [vmem:[#allocation2 + $0x149] ss:$2 sm:$0xff] }
 0x789   : > { %4577 = vst [vmem:[#allocation2 + $0x1d0] sm:$0xff] %v4545_v52  ;;  %6475 = vmatpush3.bf16.msra.mxu1 %v6790_v57  ;;  %v4885_v50 = vld [vmem:[#allocation2 + $0x109] ss:$2 sm:$0xff]  ;;  %v11157_v52 = vld [vmem:[%s11543_s1 + $0x100] sm:$0xff]  }
 0x78a   : > { %4575 = vst [vmem:[#allocation2 + $0x1b0] sm:$0xff] %v4543_v13  ;;  %6476 = vmatprep.subr.bf16.mxu1 %v6791_v28  ;;  %v11146_v39 = vpop.permute.xlu1 %4694  ;;  %v4585_v57 = vld [vmem:[#allocation2 + $0x47] ss:$2 sm:$0xff] }
 0x78d   : > { %6477 = vmatpush3.bf16.msra.mxu1 %v6791_v28 }
 0x78e   : > { %v11150_v55 = vpop.permute.xlu1 %4698  ;;  %6486 = vmatprep.subr.bf16.mxu1 %v11157_v52 }
 0x790   : > { %v4613_v37 = vld [vmem:[#allocation2 + $0x1c8] ss:$2 sm:$0xff]  ;;  %v4653_v51 = vld [vmem:[#allocation2 + $0x1c9] ss:$2 sm:$0xff] }
 0x791   : > { %4628 = vrot.lane.b32.xlu0 %v4613_v37, %s6935_s24  ;;  %v4691_v3 = vld [vmem:[#allocation2 + $0x1a7] ss:$2 sm:$0xff]  ;;  %v4731_v45 = vld [vmem:[#allocation2 + $0x1a8] ss:$2 sm:$0xff] }
 0x792   : > { %4706 = vrot.lane.b32.xlu1 %v4691_v3, %s6934_s20  ;;  %v4771_v49 = vld [vmem:[#allocation2 + $0x1a9] ss:$2 sm:$0xff]  ;;  %v4851_v30 = vld [vmem:[#allocation2 + $0x1c8] ss:$2 sm:$0xff]  ;;  %v11159_v13 = vpop.permute.xlu1 %4734 }
 0x793   : > { %v4811_v38 = vld [vmem:[#allocation2 + $0x1c7] ss:$2 sm:$0xff] }
 0x794   : > { %v4891_v37 = vld [vmem:[#allocation2 + $0x1c9] ss:$2 sm:$0xff] }
 0x795   : > { %4780 = vrot.lane.b32.xlu0 %v4765_v48, %s6938_s5  ;;  %v4769_v3 = vld [vmem:[#allocation2 + $0x169] ss:$2 sm:$0xff] }
 0x796   : > { %4858 = vrot.lane.b32.xlu1 %v4843_v62, %s6940_s17  ;;  %v11167_v48 = vpop.permute.xlu1 %4738 }
 0x799   : > { %4664 = vrot.lane.b32.xlu0 %v4649_v42, %s6936_s30  ;;  %v4617_v42 = vpop.permute.xlu0 %4616 }
 0x79a   : > { %4742 = vrot.lane.b32.xlu1 %v4727_v58, %s6937_s4  ;;  %v11170_v58 = vpop.permute.xlu1 %4622 }
 0x79c   : > { %v6460_v36 = vpop.f32.mrb[76].mxu0 }
 0x79d   : > { %4816 = vrot.lane.b32.xlu0 %v4801_v2, %s6939_s6  ;;  %v4480_v6 = vadd.f32 %v6830_v20, %v6460_v36  ;;  %v4471_v26 = vpop.f32.mrb[77].mxu0  ;;  %v4621_v2 = vpop.permute.xlu0 %4620  ;;  %v4849_v36 = vld [vmem:[#allocation2 + $0x188] ss:$2 sm:$0xff] }
 0x79e   : > { %4894 = vrot.lane.b32.xlu1 %v4879_v25, %s6941_s8  ;;  %v4472_v47 = vadd.f32 %v6830_v20, %v4471_v26  ;;  %v6461_v31 = vpop.f32.mrb[78].mxu0  ;;  %v4775_v0 = vpop.permute.xlu1 %4774 }
 0x79f   : > { %v4516_v9 = vadd.f32 %v4480_v6, %v3180_v18  ;;  %v4483_v10 = vadd.f32 %v6830_v20, %v6461_v31  ;;  %v4474_v46 = vpop.f32.mrb[79].mxu0  ;;  %v4889_v31 = vld [vmem:[#allocation2 + $0x189] ss:$2 sm:$0xff] }
 0x7a0   : > { %v4514_v19 = vadd.f32 %v4472_v47, %v3178_v8  ;;  %v4475_v1 = vadd.f32 %v6830_v20, %v4474_v46  ;;  %v4807_v20 = vld [vmem:[#allocation2 + $0x147] ss:$2 sm:$0xff] }
 0x7a1   : > { %4668 = vrot.lane.b32.xlu0 %v4653_v51, %s6936_s30  ;;  %v4548_v63 = vmax.f32 %v4516_v9, 0.0  ;;  %v4517_v32 = vadd.f32 %v4483_v10, %v3181_v15  ;;  %v4657_v6 = vpop.permute.xlu0 %4656 }
 0x7a2   : > { %4746 = vrot.lane.b32.xlu1 %v4731_v45, %s6937_s4  ;;  %v4546_v41 = vmax.f32 %v4514_v19, 0.0  ;;  %v4515_v27 = vadd.f32 %v4475_v1, %v3179_v59 }
 0x7a3   : > { %4580 = vst [vmem:[#allocation2 + $0x208] sm:$0xff] %v4548_v63  ;;  %v4549_v33 = vmax.f32 %v4517_v32, 0.0 }
 0x7a4   : > { %4578 = vst [vmem:[#allocation2 + $0x1e8] sm:$0xff] %v4546_v41  ;;  %v4547_v22 = vmax.f32 %v4515_v27, 0.0 }
 0x7a5   : > { %4820 = vrot.lane.b32.xlu0 %v4805_v53, %s6939_s6  ;;  %4581 = vst [vmem:[#allocation2 + $0x210] sm:$0xff] %v4549_v33  ;;  %v4661_v18 = vpop.permute.xlu0 %4660 }
 0x7a6   : > { %4898 = vrot.lane.b32.xlu1 %v4883_v21, %s6941_s8  ;;  %4579 = vst [vmem:[#allocation2 + $0x1f0] sm:$0xff] %v4547_v22 }
 0x7a9   : > { %4704 = vrot.lane.b32.xlu0 %v4689_v14, %s6934_s20  ;;  %v4697_v9 = vpop.permute.xlu0 %4696 }
 0x7aa   : > { %4782 = vrot.lane.b32.xlu1 %v4767_v60, %s6938_s5 }
 0x7ac   : > { %v4813_v25 = vld [vmem:[#allocation2 + $0x207] ss:$2 sm:$0xff] }
 0x7ad   : > { %4856 = vrot.lane.b32.xlu0 %v4841_v54, %s6940_s17  ;;  %v4693_v34 = vld [vmem:[#allocation2 + $0x1e7] ss:$2 sm:$0xff]  ;;  %v4733_v11 = vld [vmem:[#allocation2 + $0x1e8] ss:$2 sm:$0xff]  ;;  %v4701_v10 = vpop.permute.xlu0 %4700 }
 0x7ae   : > { %4786 = vrot.lane.b32.xlu1 %v4771_v49, %s6938_s5  ;;  %v4773_v62 = vld [vmem:[#allocation2 + $0x1e9] ss:$2 sm:$0xff] }
 0x7af   : > { %v4893_v51 = vld [vmem:[#allocation2 + $0x209] ss:$2 sm:$0xff] }
 0x7b0   : > { %v4583_v54 = vld [vmem:[#allocation2 + $0x7] ss:$2 sm:$0xff] }
 0x7b1   : > { %4708 = vrot.lane.b32.xlu0 %v4693_v34, %s6934_s20  ;;  %v4737_v45 = vpop.permute.xlu0 %4736  ;;  %v4630_v40 = vadd.f32 %v11111_v5, %v4583_v54  ;;  %v4589_v5 = vld [vmem:[#allocation2 + $0xc7] ss:$2 sm:$0xff]  ;;  %s6943_s20 = smov 96  }
 0x7b2   : > { %4822 = vrot.lane.b32.xlu1 %v4807_v20, %s6939_s6 }
 0x7b5   : > { %4860 = vrot.lane.b32.xlu0 %v4845_v56, %s6940_s17  ;;  %v4741_v19 = vpop.permute.xlu0 %4740  ;;  %v4631_v56 = vadd.f32 %v4617_v42, %v4585_v57 }
 0x7b6   : > { %4826 = vrot.lane.b32.xlu1 %v4811_v38, %s6939_s6  ;;  %v4670_v38 = vadd.f32 %v11130_v12, %v4630_v40 }
 0x7b9   : > { %4744 = vrot.lane.b32.xlu0 %v4729_v4, %s6937_s4  ;;  %v11186_v1 = vpop.permute.xlu0 %4624  ;;  %v4671_v4 = vadd.f32 %v4657_v6, %v4631_v56 }
 0x7ba   : > { %4862 = vrot.lane.b32.xlu1 %v4847_v29, %s6940_s17 }
 0x7bd   : > { %4896 = vrot.lane.b32.xlu0 %v4881_v23, %s6941_s8  ;;  %v4777_v32 = vpop.permute.xlu0 %4776  ;;  %v4710_v23 = vadd.f32 %v11146_v39, %v4670_v38 }
 0x7be   : > { %4866 = vrot.lane.b32.xlu1 %v4851_v30, %s6940_s17  ;;  %v4711_v30 = vadd.f32 %v4697_v9, %v4671_v4 }
 0x7c1   : > { %4748 = vrot.lane.b32.xlu0 %v4733_v11, %s6937_s4 }
 0x7c2   : > { %4902 = vrot.lane.b32.xlu1 %v4887_v44, %s6941_s8  ;;  %v4750_v44 = vadd.f32 %v11159_v13, %v4710_v23  ;;  %v4593_v23 = vld [vmem:[#allocation2 + $0x147] ss:$2 sm:$0xff] }
 0x7c3   : > { %v11174_v26 = vpop.permute.xlu1 %4626 }
 0x7c5   : > { %4900 = vrot.lane.b32.xlu0 %v4885_v50, %s6941_s8  ;;  %v4751_v50 = vadd.f32 %v4737_v45, %v4711_v30 }
 0x7c6   : > { %4906 = vrot.lane.b32.xlu1 %v4891_v37, %s6941_s8  ;;  %v4587_v37 = vld [vmem:[#allocation2 + $0x87] ss:$2 sm:$0xff] }
 0x7c7   : > { %v11178_v47 = vpop.permute.xlu1 %4778  ;;  %v4791_v42 = vadd.f32 %v4777_v32, %v4751_v50 }
 0x7c9   : > { %4784 = vrot.lane.b32.xlu0 %v4769_v3, %s6938_s5  ;;  %v4632_v3 = vadd.f32 %v11118_v16, %v4587_v37 }
 0x7ca   : > { %5236 = vrot.lane.b32.xlu1 %v10907_v7, %s6936_s30  ;;  %v4853_v7 = vld [vmem:[#allocation2 + $0x208] ss:$2 sm:$0xff] }
 0x7cb   : > { %v11181_v8 = vpop.permute.xlu1 %4662 }
 0x7cd   : > { %4788 = vrot.lane.b32.xlu0 %v4773_v62, %s6938_s5  ;;  %v4633_v62 = vadd.f32 %v4621_v2, %v4589_v5  ;;  %v4595_v5 = vld [vmem:[#allocation2 + $0x187] ss:$2 sm:$0xff]  ;;  %s11500_s5 = scalar_lea.hbm %s11545_s3, %s6185_s28 }
 0x7cf   : > { %v4815_v46 = vpop.permute.xlu1 %4814  ;;  %v4673_v6 = vadd.f32 %v4661_v18, %v4633_v62 }
 0x7d1   : > { %4824 = vrot.lane.b32.xlu0 %v4809_v35, %s6939_s6  ;;  %v4790_v35 = vadd.f32 %v4775_v0, %v4750_v44  ;;  %v4713_v13 = vadd.f32 %v4701_v10, %v4673_v6 }
 0x7d3   : > { %v11184_v43 = vpop.permute.xlu1 %4666  ;;  %v4830_v39 = vadd.f32 %v4815_v46, %v4790_v35  ;;  %v4753_v2 = vadd.f32 %v4741_v19, %v4713_v13  ;;  %v6793_v19 = vld [vmem:[%s11543_s1 + $0x108] sm:$0xff]   ;;  %v4636_v35 = vadd.f32 %v11174_v26, %v4595_v5 }
 0x7d5   : > { %4828 = vrot.lane.b32.xlu0 %v4813_v25, %s6939_s6 }
 0x7d7   : > { %v4819_v15 = vpop.permute.xlu1 %4818 }
 0x7d9   : > { %4864 = vrot.lane.b32.xlu0 %v4849_v36, %s6940_s17  ;;  %v4672_v36 = vadd.f32 %v11137_v17, %v4632_v3  ;;  %v4597_v3 = vld [vmem:[#allocation2 + $0x1c7] ss:$2 sm:$0xff] }
 0x7db   : > { %v11188_v63 = vpop.permute.xlu1 %4702 }
 0x7dd   : > { %4868 = vrot.lane.b32.xlu0 %v4853_v7, %s6940_s17 }
 0x7df   : > { %v4855_v59 = vpop.permute.xlu1 %4854 }
 0x7e1   : > { %4904 = vrot.lane.b32.xlu0 %v4889_v31, %s6941_s8  ;;  %v4712_v31 = vadd.f32 %v11150_v55, %v4672_v36  ;;  %v6797_v36 = vld [vmem:[%s11543_s1 + $0x128] sm:$0xff]  }
 0x7e3   : > { %v4752_v16 = vadd.f32 %v11167_v48, %v4712_v31  ;;  %v6798_v31 = vld [vmem:[%s11543_s1 + $0x130] sm:$0xff]  }
 0x7e5   : > { %4908 = vrot.lane.b32.xlu0 %v4893_v51, %s6941_s8  ;;  %v4870_v51 = vadd.f32 %v4855_v59, %v4830_v39  ;;  %v4792_v40 = vadd.f32 %v11178_v47, %v4752_v16 }
 0x7e7   : > { %v4832_v46 = vadd.f32 %v4819_v15, %v4792_v40  ;;  %v6794_v15 = vld [vmem:[%s11543_s1 + $0x110] sm:$0xff]  }
 0x803   : > { %v11190_v41 = vpop.permute.xlu0 %4628 }
 0x804   : > { %v11192_v27 = vpop.permute.xlu1 %4706 }
 0x807   : > { %v4781_v53 = vpop.permute.xlu0 %4780 }
 0x808   : > { %v4859_v21 = vpop.permute.xlu1 %4858  ;;  %v4793_v57 = vadd.f32 %v4781_v53, %v4753_v2 }
 0x809   : > { %v4872_v55 = vadd.f32 %v4859_v21, %v4832_v46  ;;  %v6795_v21 = vld [vmem:[%s11543_s1 + $0x118] sm:$0xff]  }
 0x80b   : > { %v11194_v33 = vpop.permute.xlu0 %4664 }
 0x80c   : > { %v11196_v22 = vpop.permute.xlu1 %4742 }
 0x80f   : > { %v4817_v24 = vpop.permute.xlu0 %4816 }
 0x810   : > { %v4895_v61 = vpop.permute.xlu1 %4894  ;;  %v4831_v7 = vadd.f32 %v4817_v24, %v4791_v42 }
 0x811   : > { %v4910_v0 = vadd.f32 %v4895_v61, %v4870_v51 }
 0x813   : > { %v11198_v14 = vpop.permute.xlu0 %4668 }
 0x814   : > { %v11203_v34 = vpop.permute.xlu1 %4746 }
 0x817   : > { %v4821_v60 = vpop.permute.xlu0 %4820 }
 0x818   : > { %v4899_v29 = vpop.permute.xlu1 %4898  ;;  %v4833_v24 = vadd.f32 %v4821_v60, %v4793_v57 }
 0x819   : > { %v4912_v56 = vadd.f32 %v4899_v29, %v4872_v55  ;;  %v4591_v29 = vld [vmem:[#allocation2 + $0x107] ss:$2 sm:$0xff]  ;;  %v5074_v55 = vld [vmem:[#allocation2 + $0x68] ss:$2 sm:$0xff] }
 0x81a   : > { %v4634_v30 = vadd.f32 %v11170_v58, %v4591_v29  ;;  %v6802_v29 = vld [vmem:[%s11543_s1 + $0x190] sm:$0xff]  }
 0x81b   : > { %v11200_v49 = vpop.permute.xlu0 %4704 }
 0x81c   : > { %v11211_v25 = vpop.permute.xlu1 %4782  ;;  %v4674_v50 = vadd.f32 %v11181_v8, %v4634_v30  ;;  %v6804_v30 = vld [vmem:[%s11543_s1 + $0x1a0] sm:$0xff]  }
 0x81e   : > { %v4714_v58 = vadd.f32 %v11188_v63, %v4674_v50  ;;  %v6078_v50 = vld [vmem:[%s11544_s2 + $0x3] ss:$0 sm:$0xff] }
 0x81f   : > { %v4857_v20 = vpop.permute.xlu0 %4856 }
 0x820   : > { %v4871_v9 = vadd.f32 %v4857_v20, %v4831_v7  ;;  %v11218_v54 = vpop.permute.xlu1 %4786  ;;  %v4754_v6 = vadd.f32 %v11196_v22, %v4714_v58 }
 0x823   : > { %v11206_v28 = vpop.permute.xlu0 %4708 }
 0x824   : > { %v4823_v59 = vpop.permute.xlu1 %4822 }
 0x827   : > { %v4861_v11 = vpop.permute.xlu0 %4860 }
 0x828   : > { %v4873_v10 = vadd.f32 %v4861_v11, %v4833_v24  ;;  %v4827_v47 = vpop.permute.xlu1 %4826  ;;  %v6796_v11 = vld [vmem:[%s11543_s1 + $0x120] sm:$0xff]  }
 0x82b   : > { %v11213_v12 = vpop.permute.xlu0 %4744 }
 0x82c   : > { %v4863_v60 = vpop.permute.xlu1 %4862 }
 0x82f   : > { %v4897_v45 = vpop.permute.xlu0 %4896 }
 0x830   : > { %v4911_v32 = vadd.f32 %v4897_v45, %v4871_v9  ;;  %v4867_v62 = vpop.permute.xlu1 %4866 }
 0x832   : > { %v4918_v17 = vpack.c.bf16 %v4911_v32, %v4910_v0 }
 0x833   : > { %v4749_v18 = vpop.permute.xlu0 %4748 }
 0x834   : > { %6478 = vmatprep.mubr.bf16.mxu1 %v4918_v17 }
 0x837   : > { %v4901_v20 = vpop.permute.xlu0 %4900 }
 0x838   : > { %v4913_v38 = vadd.f32 %v4901_v20, %v4873_v10 }
 0x83a   : > { %v4919_v48 = vpack.c.bf16 %v4913_v38, %v4912_v56  ;;  %v5076_v56 = vld [vmem:[#allocation2 + $0xe8] ss:$2 sm:$0xff] }
 0x83b   : > { %v4785_v61 = vpop.permute.xlu0 %4784  ;;  %v5078_v38 = vld [vmem:[#allocation2 + $0x168] ss:$2 sm:$0xff] }
 0x83c   : > { %6479 = vmatmul.mubr.bf16.vlgmr.msra.gmra.mrb[16].mxu1 %v4919_v48  ;;  %v5075_v48 = vld [vmem:[#allocation2 + $0xa8] ss:$2 sm:$0xff] }
 0x83d   : > { %6487 = vmatpush3.bf16.msra.mxu1 %v11157_v52  ;;  %v4635_v52 = vadd.f32 %v11186_v1, %v4593_v23  ;;  %v4637_v1 = vadd.f32 %v11190_v41, %v4597_v3  ;;  %v4794_v41 = vadd.f32 %v11211_v25, %v4754_v6  ;;  %v6803_v23 = vld [vmem:[%s11543_s1 + $0x198] sm:$0xff]  }
 0x83e   : > { %6488 = vmatprep.subr.bf16.mxu1 %v6793_v19 }
 0x83f   : > { %v4789_v53 = vpop.permute.xlu0 %4788  ;;  %v4675_v37 = vadd.f32 %v11194_v33, %v4635_v52  ;;  %v4676_v33 = vadd.f32 %v11184_v43, %v4636_v35  ;;  %v4677_v39 = vadd.f32 %v11198_v14, %v4637_v1  ;;  %v4903_v43 = vpop.permute.xlu1 %4902  ;;  %v4834_v14 = vadd.f32 %v4823_v59, %v4794_v41  ;;  %v5073_v59 = vld [vmem:[#allocation2 + $0x28] ss:$2 sm:$0xff] }
 0x840   : > { %v5081_v20 = vpack.c.bf16 %v5074_v55, %v5073_v59  ;;  %v6805_v52 = vld [vmem:[%s11543_s1 + $0x1a8] sm:$0xff]  }
 0x841   : > { %6489 = vmatpush3.bf16.msra.mxu1 %v6793_v19  ;;  %v4715_v42 = vadd.f32 %v11200_v49, %v4675_v37  ;;  %v4716_v63 = vadd.f32 %v11192_v27, %v4676_v33  ;;  %v4717_v49 = vadd.f32 %v11206_v28, %v4677_v39  ;;  %v4874_v9 = vadd.f32 %v4863_v60, %v4834_v14  ;;  %v6799_v28 = vld [vmem:[%s11543_s1 + $0x138] sm:$0xff]   ;;  %v6800_v60 = vld [vmem:[%s11543_s1 + $0x180] sm:$0xff]   ;;  %v5260_v39 = vld [vmem:[#allocation5 + $0x9] sm:$0xff] }
 0x842   : > { %6490 = vmatprep.subr.bf16.mxu1 %v6794_v15  ;;  %v5082_v19 = vpack.c.bf16 %v5076_v56, %v5075_v48  ;;  %v6812_v56 = vld [vmem:[%s11543_s1 + $0x160] sm:$0xff]  }
 0x843   : > { %v4825_v4 = vpop.permute.xlu0 %4824  ;;  %v4755_v26 = vadd.f32 %v11213_v12, %v4715_v42  ;;  %v4756_v22 = vadd.f32 %v11203_v34, %v4716_v63  ;;  %v4757_v51 = vadd.f32 %v4749_v18, %v4717_v49  ;;  %v4914_v0 = vadd.f32 %v4903_v43, %v4874_v9  ;;  %v4907_v34 = vpop.permute.xlu1 %4906 }
 0x845   : > { %6491 = vmatpush3.bf16.msra.mxu1 %v6794_v15  ;;  %v4795_v7 = vadd.f32 %v4785_v61, %v4755_v26  ;;  %v4796_v27 = vadd.f32 %v11218_v54, %v4756_v22  ;;  %v4797_v25 = vadd.f32 %v4789_v53, %v4757_v51  ;;  %v5077_v61 = vld [vmem:[#allocation2 + $0x128] ss:$2 sm:$0xff] }
 0x846   : > { %6492 = vmatprep.subr.bf16.mxu1 %v6795_v21  ;;  %v5080_v15 = vld [vmem:[#allocation2 + $0x1e8] ss:$2 sm:$0xff] }
 0x847   : > { %v4829_v44 = vpop.permute.xlu0 %4828  ;;  %v4835_v12 = vadd.f32 %v4825_v4, %v4795_v7  ;;  %v4836_v2 = vadd.f32 %v4827_v47, %v4796_v27  ;;  %v5083_v47 = vpack.c.bf16 %v5078_v38, %v5077_v61  ;;  %v5079_v53 = vld [vmem:[#allocation2 + $0x1a8] ss:$2 sm:$0xff] }
 0x848   : > { %v4837_v32 = vadd.f32 %v4829_v44, %v4797_v25  ;;  %v6801_v4 = vld [vmem:[%s11543_s1 + $0x188] sm:$0xff]   ;;  %v6807_v44 = vld [vmem:[%s11543_s1 + $0x1b8] sm:$0xff]  }
 0x849   : > { %6493 = vmatpush3.bf16.msra.mxu1 %v6795_v21  ;;  %v4876_v57 = vadd.f32 %v4867_v62, %v4836_v2  ;;  %v5084_v21 = vpack.c.bf16 %v5080_v15, %v5079_v53  ;;  %v6813_v38 = vld [vmem:[%s11543_s1 + $0x168] sm:$0xff]  }
 0x84a   : > { %6494 = vmatprep.subr.bf16.mxu1 %v6796_v11 }
 0x84b   : > { %v4865_v8 = vpop.permute.xlu0 %4864  ;;  %v4916_v46 = vadd.f32 %v4907_v34, %v4876_v57 }
 0x84c   : > { %v4875_v45 = vadd.f32 %v4865_v8, %v4835_v12 }
 0x84d   : > { %6495 = vmatpush3.bf16.msra.mxu1 %v6796_v11  ;;  %v6806_v11 = vld [vmem:[%s11543_s1 + $0x1b0] sm:$0xff]  }
 0x84e   : > { %6496 = vmatprep.subr.bf16.mxu1 %v6797_v36 }
 0x84f   : > { %v4869_v13 = vpop.permute.xlu0 %4868 }
 0x850   : > { %v4877_v17 = vadd.f32 %v4869_v13, %v4837_v32  ;;  %v6808_v32 = vld [vmem:[%s11543_s1 + $0x140] sm:$0xff]  }
 0x851   : > { %6497 = vmatpush3.bf16.msra.mxu1 %v6797_v36 }
 0x852   : > { %6498 = vmatprep.subr.bf16.mxu1 %v6798_v31 }
 0x853   : > { %v4905_v16 = vpop.permute.xlu0 %4904 }
 0x854   : > { %v4915_v40 = vadd.f32 %v4905_v16, %v4875_v45 }
 0x855   : > { %6499 = vmatpush3.bf16.msra.mxu1 %v6798_v31 }
 0x856   : > { %v4920_v18 = vpack.c.bf16 %v4915_v40, %v4914_v0  ;;  %6500 = vmatprep.subr.bf16.mxu1 %v6799_v28 }
 0x857   : > { %v4909_v54 = vpop.permute.xlu0 %4908 }
 0x858   : > { %v4917_v24 = vadd.f32 %v4909_v54, %v4877_v17  ;;  %6482 = vmatprep.mubr.bf16.mxu1 %v4920_v18  ;;  %v6809_v54 = vld [vmem:[%s11543_s1 + $0x148] sm:$0xff]  }
 0x859   : > { %6501 = vmatpush3.bf16.msra.mxu1 %v6799_v28 }
 0x85a   : > { %v4921_v10 = vpack.c.bf16 %v4917_v24, %v4916_v46  ;;  %6510 = vmatprep.subr.bf16.mxu1 %v6800_v60  ;;  %v6810_v24 = vld [vmem:[%s11543_s1 + $0x150] sm:$0xff]  }
 0x85c   : > { %6483 = vmatmul.mubr.bf16.gmra.mrb[20].mxu1 %v4921_v10  ;;  %v5481_v10 = vld [vmem:[#allocation5 + $0xe1] sm:$0xff] }
 0x85d   : > { %6502 = vmatprep.mubr.bf16.mxu1 %v5081_v20  ;;  %v6811_v20 = vld [vmem:[%s11543_s1 + $0x158] sm:$0xff]  }
 0x864   : > { %6503 = vmatmul.mubr.bf16.vlgmr.msra.gmra.mrb[24].mxu1 %v5082_v19  ;;  %v6814_v19 = vld [vmem:[%s11543_s1 + $0x170] sm:$0xff]  }
 0x865   : > { %6506 = vmatprep.mubr.bf16.mxu1 %v5083_v47  ;;  %6511 = vmatpush3.bf16.msra.mxu1 %v6800_v60  ;;  %v6815_v47 = vld [vmem:[%s11543_s1 + $0x178] sm:$0xff]   ;;  %v11426_v60 = vld [vmem:[#allocation2 + $0x8] sm:$0xff] }
 0x866   : > { %6512 = vmatprep.subr.bf16.mxu1 %v6801_v4  ;;  %6574 = vmatprep.mubr.msk.bf16.mxu0 %vm6945_vm1, %v11426_v60 }
 0x869   : > { %6513 = vmatpush3.bf16.msra.mxu1 %v6801_v4  ;;  %v5237_v4 = vpop.permute.xlu1 %5236 }
 0x86a   : > { %6514 = vmatprep.subr.bf16.mxu1 %v6802_v29 }
 0x86c   : > { %6507 = vmatmul.mubr.bf16.gmra.mrb[28].mxu1 %v5084_v21  ;;  %v5396_v21 = vld [vmem:[#allocation5 + $0xdf] sm:$0xff] }
 0x86d   : > { %6515 = vmatpush3.bf16.msra.mxu1 %v6802_v29 }
 0x86e   : > { %6516 = vmatprep.subr.bf16.mxu1 %v6803_v23 }
 0x871   : > { %6517 = vmatpush3.bf16.msra.mxu1 %v6803_v23 }
 0x872   : > { %6518 = vmatprep.subr.bf16.mxu1 %v6804_v30 }
 0x875   : > { %6519 = vmatpush3.bf16.msra.mxu1 %v6804_v30 }
 0x876   : > { %6520 = vmatprep.subr.bf16.mxu1 %v6805_v52 }
 0x879   : > { %6521 = vmatpush3.bf16.msra.mxu1 %v6805_v52 }
 0x87a   : > { %6522 = vmatprep.subr.bf16.mxu1 %v6806_v11 }
 0x87d   : > { %6523 = vmatpush3.bf16.msra.mxu1 %v6806_v11 }
 0x87e   : > { %6524 = vmatprep.subr.bf16.mxu1 %v6807_v44 }
 0x881   : > { %6525 = vmatpush3.bf16.msra.mxu1 %v6807_v44 }
 0x882   : > { %6534 = vmatprep.subr.bf16.mxu1 %v6808_v32 }
 0x90f   : > { %v6480_v37 = vpop.f32.mrb[16].mxu1 }
 0x910   : > { %v5035_v5 = vadd.f32 %v6480_v37, %v6078_v50  ;;  %v5026_v3 = vpop.f32.mrb[17].mxu1 }
 0x911   : > { %v5027_v62 = vadd.f32 %v6078_v50, %v5026_v3  ;;  %v6481_v35 = vpop.f32.mrb[18].mxu1 }
 0x912   : > { %v11287_v58 = vmax.f32 %v5035_v5, 0.0  ;;  %v5038_v1 = vadd.f32 %v6481_v35, %v6078_v50  ;;  %v5029_v42 = vpop.f32.mrb[19].mxu1 }
 0x913   : > { %v5057_v36 = vmax.f32 %v5027_v62, 0.0  ;;  %v5030_v8 = vadd.f32 %v6078_v50, %v5029_v42 }
 0x914   : > { %5067 = vst [vmem:[#allocation5 + $0x50] sm:$0xff] %v11287_v58  ;;  %v11290_v33 = vmax.f32 %v5038_v1, 0.0 }
 0x915   : > { %5065 = vst [vmem:[#allocation5 + $0x20] sm:$0xff] %v5057_v36  ;;  %v11292_v6 = vmax.f32 %v5030_v8, 0.0  ;;  %5238 = vrot.lane.b32.xlu0 %v5057_v36, %s6936_s30 }
 0x916   : > { %5068 = vst [vmem:[#allocation5 + $0x68] sm:$0xff] %v11290_v33 }
 0x917   : > { %5066 = vst [vmem:[#allocation5 + $0x38] sm:$0xff] %v11292_v6  ;;  %5240 = vrot.lane.b32.xlu1 %v11292_v6, %s6936_s30 }
 0x919   : > { %5242 = vrot.lane.b32.xlu0 %v11287_v58, %s6936_s30 }
 0x91b   : > { %5268 = vrot.lane.b32.xlu1 %v5260_v39, %s6937_s4  ;;  %v5475_v41 = vld [vmem:[#allocation5 + $0x51] sm:$0xff] }
 0x91c   : > { %v5261_v26 = vld [vmem:[#allocation5 + $0x21] sm:$0xff]  ;;  %v11313_v43 = vld [vmem:[#allocation5 + $0x4f] sm:$0xff] }
 0x91d   : > { %5270 = vrot.lane.b32.xlu0 %v5261_v26, %s6937_s4  ;;  %v11305_v7 = vld [vmem:[#allocation5 + $0x1f] sm:$0xff]  ;;  %v11317_v13 = vld [vmem:[#allocation5 + $0x67] sm:$0xff] }
 0x91e   : > { %v5474_v63 = vld [vmem:[#allocation5 + $0x39] sm:$0xff]  ;;  %v5476_v40 = vld [vmem:[#allocation5 + $0x69] sm:$0xff] }
 0x91f   : > { %v5482_v49 = vpack.c.bf16 %v5475_v41, %v5474_v63  ;;  %5272 = vrot.lane.b32.xlu1 %v5474_v63, %s6937_s4  ;;  %v11309_v31 = vld [vmem:[#allocation5 + $0x37] sm:$0xff] }
 0x921   : > { %6526 = vmatprep.mubr.bf16.mxu1 %v5482_v49  ;;  %5274 = vrot.lane.b32.xlu0 %v5475_v41, %s6937_s4 }
 0x923   : > { %5300 = vrot.lane.b32.xlu1 %v11305_v7, %s6939_s6 }
 0x925   : > { %5302 = vrot.lane.b32.xlu0 %v11309_v31, %s6939_s6 }
 0x927   : > { %5304 = vrot.lane.b32.xlu1 %v11313_v43, %s6939_s6 }
 0x929   : > { %5306 = vrot.lane.b32.xlu0 %v11317_v13, %s6939_s6 }
 0x92b   : > { %5332 = vrot.lane.b32.xlu1 %v5057_v36, %s6941_s8 }
 0x92d   : > { %5334 = vrot.lane.b32.xlu0 %v11292_v6, %s6941_s8 }
 0x92f   : > { %v6484_v22 = vpop.f32.mrb[20].mxu1  ;;  %5336 = vrot.lane.b32.xlu1 %v11287_v58, %s6941_s8 }
 0x930   : > { %v5051_v14 = vadd.f32 %v6484_v22, %v6078_v50  ;;  %v5042_v51 = vpop.f32.mrb[21].mxu1 }
 0x931   : > { %v5043_v12 = vadd.f32 %v6078_v50, %v5042_v51  ;;  %v6485_v27 = vpop.f32.mrb[22].mxu1  ;;  %5338 = vrot.lane.b32.xlu0 %v11290_v33, %s6941_s8 }
 0x932   : > { %v11328_v9 = vmax.f32 %v5051_v14, 0.0  ;;  %v5054_v25 = vadd.f32 %v6485_v27, %v6078_v50  ;;  %v5045_v45 = vpop.f32.mrb[23].mxu1 }
 0x933   : > { %v11330_v28 = vmax.f32 %v5043_v12, 0.0  ;;  %v5046_v16 = vadd.f32 %v6078_v50, %v5045_v45  ;;  %5244 = vrot.lane.b32.xlu1 %v11290_v33, %s6936_s30  ;;  %v5220_v12 = vld [vmem:[#allocation5 + $0x7] sm:$0xff] }
 0x934   : > { %5071 = vst [vmem:[#allocation5 + $0xb0] sm:$0xff] %v11328_v9  ;;  %v11335_v2 = vmax.f32 %v5054_v25, 0.0  ;;  %v5252_v25 = vadd.f32 %v5237_v4, %v5220_v12 }
 0x935   : > { %5069 = vst [vmem:[#allocation5 + $0x80] sm:$0xff] %v11330_v28  ;;  %v11338_v0 = vmax.f32 %v5046_v16, 0.0  ;;  %5246 = vrot.lane.b32.xlu0 %v11330_v28, %s6936_s30 }
 0x936   : > { %5072 = vst [vmem:[#allocation5 + $0xc8] sm:$0xff] %v11335_v2 }
 0x937   : > { %5070 = vst [vmem:[#allocation5 + $0x98] sm:$0xff] %v11338_v0  ;;  %5364 = vrot.lane.b32.xlu1 %v5261_v26, %s6942_s29 }
 0x939   : > { %5366 = vrot.lane.b32.xlu0 %v5474_v63, %s6942_s29 }
 0x93b   : > { %5248 = vrot.lane.b32.xlu1 %v11338_v0, %s6936_s30  ;;  %v5479_v18 = vld [vmem:[#allocation5 + $0xb1] sm:$0xff] }
 0x93c   : > { %v5477_v34 = vld [vmem:[#allocation5 + $0x81] sm:$0xff]  ;;  %v11398_v15 = vld [vmem:[#allocation5 + $0xaf] sm:$0xff] }
 0x93d   : > { %v5483_v57 = vpack.c.bf16 %v5477_v34, %v5476_v40  ;;  %5250 = vrot.lane.b32.xlu0 %v11328_v9, %s6936_s30  ;;  %v5480_v55 = vld [vmem:[#allocation5 + $0xc9] sm:$0xff]  ;;  %v11380_v48 = vld [vmem:[#allocation5 + $0x7f] sm:$0xff] }
 0x93e   : > { %v5478_v17 = vld [vmem:[#allocation5 + $0x99] sm:$0xff]  ;;  %v5485_v59 = vpack.c.bf16 %v5481_v10, %v5480_v55  ;;  %v5299_v53 = vld [vmem:[#allocation5 + $0xc7] sm:$0xff] }
 0x93f   : > { %6527 = vmatmul.mubr.bf16.vlgmr.msra.gmra.mrb[24].mxu1 %v5483_v57  ;;  %v5484_v46 = vpack.c.bf16 %v5479_v18, %v5478_v17  ;;  %5368 = vrot.lane.b32.xlu1 %v5475_v41, %s6942_s29  ;;  %v11389_v61 = vld [vmem:[#allocation5 + $0x97] sm:$0xff] }
 0x940   : > { %6535 = vmatpush3.bf16.msra.mxu1 %v6808_v32 }
 0x941   : > { %6530 = vmatprep.mubr.bf16.mxu1 %v5484_v46  ;;  %5370 = vrot.lane.b32.xlu0 %v5476_v40, %s6942_s29 }
 0x942   : > { %6536 = vmatprep.subr.bf16.mxu1 %v6809_v54 }
 0x943   : > { %5276 = vrot.lane.b32.xlu1 %v5476_v40, %s6937_s4 }
 0x944   : > { %6537 = vmatpush3.bf16.msra.mxu1 %v6809_v54 }
 0x945   : > { %5278 = vrot.lane.b32.xlu0 %v5477_v34, %s6937_s4  ;;  %6538 = vmatprep.subr.bf16.mxu1 %v6810_v24 }
 0x947   : > { %6531 = vmatmul.mubr.bf16.gmra.mrb[28].mxu1 %v5485_v59  ;;  %5397 = vrot.lane.b32.xlu1 %v11309_v31, %s6943_s20 }
 0x948   : > { %6539 = vmatpush3.bf16.msra.mxu1 %v6810_v24 }
 0x949   : > { %5399 = vrot.lane.b32.xlu0 %v11313_v43, %s6943_s20  ;;  %6540 = vmatprep.subr.bf16.mxu1 %v6811_v20 }
 0x94b   : > { %5280 = vrot.lane.b32.xlu1 %v5478_v17, %s6937_s4 }
 0x94c   : > { %6541 = vmatpush3.bf16.msra.mxu1 %v6811_v20 }
 0x94d   : > { %5282 = vrot.lane.b32.xlu0 %v5479_v18, %s6937_s4  ;;  %6542 = vmatprep.subr.bf16.mxu1 %v6812_v56 }
 0x94f   : > { %5401 = vrot.lane.b32.xlu1 %v11317_v13, %s6943_s20 }
 0x950   : > { %6543 = vmatpush3.bf16.msra.mxu1 %v6812_v56 }
 0x951   : > { %5403 = vrot.lane.b32.xlu0 %v11380_v48, %s6943_s20  ;;  %6544 = vmatprep.subr.bf16.mxu1 %v6813_v38 }
 0x953   : > { %5308 = vrot.lane.b32.xlu1 %v11380_v48, %s6939_s6 }
 0x954   : > { %6545 = vmatpush3.bf16.msra.mxu1 %v6813_v38 }
 0x955   : > { %5310 = vrot.lane.b32.xlu0 %v11389_v61, %s6939_s6  ;;  %6546 = vmatprep.subr.bf16.mxu1 %v6814_v19 }
 0x957   : > { %5429 = vrot.lane.b32.xlu1 %v11292_v6, %s6944_s26 }
 0x958   : > { %6547 = vmatpush3.bf16.msra.mxu1 %v6814_v19 }
 0x959   : > { %5431 = vrot.lane.b32.xlu0 %v11287_v58, %s6944_s26  ;;  %6548 = vmatprep.subr.bf16.mxu1 %v6815_v47 }
 0x95b   : > { %5312 = vrot.lane.b32.xlu1 %v11398_v15, %s6939_s6 }
 0x95c   : > { %6549 = vmatpush3.bf16.msra.mxu1 %v6815_v47 }
 0x95d   : > { %5314 = vrot.lane.b32.xlu0 %v5299_v53, %s6939_s6 }
 0x95f   : > { %5433 = vrot.lane.b32.xlu1 %v11290_v33, %s6944_s26 }
 0x961   : > { %5435 = vrot.lane.b32.xlu0 %v11330_v28, %s6944_s26 }
 0x963   : > { %5340 = vrot.lane.b32.xlu1 %v11330_v28, %s6941_s8 }
 0x965   : > { %5342 = vrot.lane.b32.xlu0 %v11338_v0, %s6941_s8 }
 0x967   : > { %5344 = vrot.lane.b32.xlu1 %v11328_v9, %s6941_s8 }
 0x969   : > { %5346 = vrot.lane.b32.xlu0 %v11335_v2, %s6941_s8 }
 0x96b   : > { %5372 = vrot.lane.b32.xlu1 %v5477_v34, %s6942_s29 }
 0x96d   : > { %5374 = vrot.lane.b32.xlu0 %v5478_v17, %s6942_s29 }
 0x96f   : > { %5376 = vrot.lane.b32.xlu1 %v5479_v18, %s6942_s29 }
 0x971   : > { %5378 = vrot.lane.b32.xlu0 %v5480_v55, %s6942_s29  ;;  %s161_s29 = sand.u32 1, %s6916_s13  }
 0x972   : > { %s162_s30 = scalar_lea.vmem [#allocation6], %s161_s29  ;;  %s5882_s17 = scalar_lea.sflag [#allocation7], %s161_s29 }
 0x973   : > { %5405 = vrot.lane.b32.xlu1 %v11389_v61, %s6943_s20  ;;  %s5894_s7 = sshll.u32 %s162_s30, 4  ;;  %s11502_s7 = int_to_ptr.vmem [resolvable:$true] %s5894_s7 }
 0x974   : > { %s6862_s16 = scalar_lea.vmem %s11502_s7, 16  ;;  %p6869_p0 = scmp.lt.s32.totalorder %s11502_s7, %s6867_s19 }
 0x975   : > { %5407 = vrot.lane.b32.xlu0 %v11398_v15, %s6943_s20  ;;  %p6863_p11 = scmp.ne.s32.totalorder %s11502_s7, %s6862_s16  ;;  %p6870_p1 = scmp.lt.s32.totalorder %s6868_s25, %s6862_s16 }
 0x977   : > { %5409 = vrot.lane.b32.xlu1 %v5299_v53, %s6943_s20  ;;  %p6864_p12 = pnand %p6863_p11, %p7005_p5  ;;  %p6871_p2 = por %p6870_p1, %p6869_p0 }
 0x979   : > { %5411 = vrot.lane.b32.xlu0 %v5396_v21, %s6943_s20  ;;  %p6865_p13 = pneg %p6864_p12 }
 0x97b   : > { %5437 = vrot.lane.b32.xlu1 %v11338_v0, %s6944_s26  ;;  %p6872_p3 = pnand %p6871_p2, %p6865_p13 }
 0x97d   : > { %5439 = vrot.lane.b32.xlu0 %v11328_v9, %s6944_s26 }
 0x97f   : > { %5441 = vrot.lane.b32.xlu1 %v11335_v2, %s6944_s26 }
 0x981   : > { %5443 = vrot.lane.b32.xlu0 %v11426_v60, %s6944_s26 }
 0x987   : > { %v5239_v29 = vpop.permute.xlu0 %5238 }
 0x988   : > { %v5253_v45 = vadd.f32 %v11305_v7, %v5239_v29 }
 0x989   : > { %v5241_v23 = vpop.permute.xlu1 %5240 }
 0x98a   : > { %v5254_v54 = vadd.f32 %v11309_v31, %v5241_v23 }
 0x98b   : > { %v5243_v30 = vpop.permute.xlu0 %5242 }
 0x98c   : > { %v5255_v46 = vadd.f32 %v11313_v43, %v5243_v30 }
 0x98d   : > { %v5269_v52 = vpop.permute.xlu1 %5268 }
 0x98e   : > { %v5284_v16 = vadd.f32 %v5269_v52, %v5252_v25 }
 0x98f   : > { %v5271_v11 = vpop.permute.xlu0 %5270 }
 0x990   : > { %v5285_v2 = vadd.f32 %v5271_v11, %v5253_v45 }
 0x991   : > { %v5273_v44 = vpop.permute.xlu1 %5272 }
 0x992   : > { %v5286_v59 = vadd.f32 %v5273_v44, %v5254_v54 }
 0x993   : > { %v5275_v50 = vpop.permute.xlu0 %5274 }
 0x994   : > { %v5287_v20 = vadd.f32 %v5275_v50, %v5255_v46 }
 0x995   : > { %v5301_v37 = vpop.permute.xlu1 %5300 }
 0x996   : > { %v5316_v32 = vadd.f32 %v5301_v37, %v5284_v16 }
 0x997   : > { %v5303_v5 = vpop.permute.xlu0 %5302 }
 0x998   : > { %v5317_v40 = vadd.f32 %v5303_v5, %v5285_v2 }
 0x999   : > { %v5305_v3 = vpop.permute.xlu1 %5304 }
 0x99a   : > { %v5318_v19 = vadd.f32 %v5305_v3, %v5286_v59 }
 0x99b   : > { %v5307_v62 = vpop.permute.xlu0 %5306 }
 0x99c   : > { %v5319_v47 = vadd.f32 %v5307_v62, %v5287_v20 }
 0x99d   : > { %v5333_v35 = vpop.permute.xlu1 %5332 }
 0x99e   : > { %v5348_v57 = vadd.f32 %v5333_v35, %v5316_v32 }
 0x99f   : > { %v5335_v58 = vpop.permute.xlu0 %5334 }
 0x9a0   : > { %v5349_v17 = vadd.f32 %v5335_v58, %v5317_v40 }
 0x9a1   : > { %v5337_v1 = vpop.permute.xlu1 %5336 }
 0x9a2   : > { %v5350_v29 = vadd.f32 %v5337_v1, %v5318_v19 }
 0x9a3   : > { %v5339_v42 = vpop.permute.xlu0 %5338 }
 0x9a4   : > { %v5351_v52 = vadd.f32 %v5339_v42, %v5319_v47  ;;  %v6816_v47 = vld [vmem:[%s11543_s1 + $0x1c0] sm:$0xff]  }
 0x9a5   : > { %v11429_v36 = vpop.permute.xlu1 %5244  ;;  %6559 = vmatpush3.bf16.msra.mxu0 %v6816_v47 }
 0x9a6   : > { %6560 = vmatprep.subr.bf16.mxu0 %v11426_v60 }
 0x9a7   : > { %v11431_v8 = vpop.permute.xlu0 %5246 }
 0x9a9   : > { %v5365_v33 = vpop.permute.xlu1 %5364 }
 0x9aa   : > { %v5380_v24 = vadd.f32 %v5365_v33, %v5348_v57 }
 0x9ab   : > { %v5367_v6 = vpop.permute.xlu0 %5366 }
 0x9ac   : > { %v5381_v55 = vadd.f32 %v5367_v6, %v5349_v17 }
 0x9ad   : > { %v11433_v39 = vpop.permute.xlu1 %5248 }
 0x9ae   : > { %v5258_v16 = vadd.f32 %v11389_v61, %v11433_v39 }
 0x9af   : > { %v11435_v26 = vpop.permute.xlu0 %5250 }
 0x9b0   : > { %v5259_v2 = vadd.f32 %v11398_v15, %v11435_v26 }
 0x9b1   : > { %v5369_v63 = vpop.permute.xlu1 %5368 }
 0x9b2   : > { %v5382_v31 = vadd.f32 %v5369_v63, %v5350_v29  ;;  %v5256_v63 = vadd.f32 %v11317_v13, %v11429_v36  ;;  %v6820_v29 = vld [vmem:[%s11543_s1 + $0x1e0] sm:$0xff]  }
 0x9b3   : > { %v5371_v41 = vpop.permute.xlu0 %5370 }
 0x9b4   : > { %v5383_v23 = vadd.f32 %v5371_v41, %v5351_v52  ;;  %v5257_v41 = vadd.f32 %v11380_v48, %v11431_v8  ;;  %v6821_v52 = vld [vmem:[%s11543_s1 + $0x1e8] sm:$0xff]  }
 0x9b5   : > { %v5277_v49 = vpop.permute.xlu1 %5276 }
 0x9b6   : > { %v5288_v25 = vadd.f32 %v5277_v49, %v5256_v63 }
 0x9b7   : > { %v5279_v22 = vpop.permute.xlu0 %5278 }
 0x9b8   : > { %v5289_v45 = vadd.f32 %v5279_v22, %v5257_v41 }
 0x9b9   : > { %v5398_v14 = vpop.permute.xlu1 %5397 }
 0x9ba   : > { %v5413_v7 = vadd.f32 %v5398_v14, %v5380_v24 }
 0x9bb   : > { %v5400_v51 = vpop.permute.xlu0 %5399 }
 0x9bc   : > { %v5414_v56 = vadd.f32 %v5400_v51, %v5381_v55 }
 0x9bd   : > { %v11437_v27 = vpop.permute.xlu1 %5280 }
 0x9be   : > { %v5290_v57 = vadd.f32 %v11437_v27, %v5258_v16 }
 0x9bf   : > { %v11439_v9 = vpop.permute.xlu0 %5282 }
 0x9c0   : > { %v5291_v13 = vadd.f32 %v11439_v9, %v5259_v2 }
 0x9c1   : > { %v5402_v28 = vpop.permute.xlu1 %5401 }
 0x9c2   : > { %v5415_v30 = vadd.f32 %v5402_v28, %v5382_v31  ;;  %v6103_v31 = vld [vmem:[%s11544_s2 + $0x4] ss:$0 sm:$0xff] }
 0x9c3   : > { %v5404_v0 = vpop.permute.xlu0 %5403 }
 0x9c4   : > { %v5416_v5 = vadd.f32 %v5404_v0, %v5383_v23 }
 0x9c5   : > { %v5309_v34 = vpop.permute.xlu1 %5308 }
 0x9c6   : > { %v5320_v0 = vadd.f32 %v5309_v34, %v5288_v25 }
 0x9c7   : > { %v5311_v18 = vpop.permute.xlu0 %5310 }
 0x9c8   : > { %v5321_v32 = vadd.f32 %v5311_v18, %v5289_v45 }
 0x9c9   : > { %v5430_v10 = vpop.permute.xlu1 %5429 }
 0x9ca   : > { %v5445_v53 = vadd.f32 %v5430_v10, %v5413_v7 }
 0x9cb   : > { %v5432_v38 = vpop.permute.xlu0 %5431 }
 0x9cc   : > { %v5446_v21 = vadd.f32 %v5432_v38, %v5414_v56 }
 0x9cd   : > { %v5313_v4 = vpop.permute.xlu1 %5312 }
 0x9ce   : > { %v5453_v11 = vpack.c.bf16 %v5446_v21, %v5445_v53  ;;  %v5322_v8 = vadd.f32 %v5313_v4, %v5290_v57  ;;  %v6817_v53 = vld [vmem:[%s11543_s1 + $0x1c8] sm:$0xff]   ;;  %v6818_v21 = vld [vmem:[%s11543_s1 + $0x1d0] sm:$0xff]   ;;  %v6819_v4 = vld [vmem:[%s11543_s1 + $0x1d8] sm:$0xff]  }
 0x9cf   : > { %v5315_v37 = vpop.permute.xlu0 %5314  ;;  %6561 = vmatpush3.bf16.msra.mxu0 %v6817_v53 }
 0x9d0   : > { %6550 = vmatprep.mubr.bf16.mxu1 %v5453_v11  ;;  %v5323_v49 = vadd.f32 %v5315_v37, %v5291_v13  ;;  %6562 = vmatprep.subr.bf16.mxu0 %v11426_v60  ;;  %v6822_v11 = vld [vmem:[%s11543_s1 + $0x1f0] sm:$0xff]   ;;  %v6823_v37 = vld [vmem:[%s11543_s1 + $0x1f8] sm:$0xff]  }
 0x9d1   : > { %v5434_v43 = vpop.permute.xlu1 %5433 }
 0x9d2   : > { %v5447_v50 = vadd.f32 %v5434_v43, %v5415_v30  ;;  %v6160_v43 = vld [vmem:[%s11544_s2 + $0x5] ss:$0 sm:$0xff] }
 0x9d3   : > { %v5436_v44 = vpop.permute.xlu0 %5435  ;;  %6563 = vmatpush3.bf16.msra.mxu0 %v6818_v21 }
 0x9d4   : > { %v5448_v35 = vadd.f32 %v5436_v44, %v5416_v5  ;;  %6564 = vmatprep.subr.bf16.mxu0 %v11426_v60 }
 0x9d5   : > { %v5341_v58 = vpop.permute.xlu1 %5340 }
 0x9d6   : > { %v5454_v33 = vpack.c.bf16 %v5448_v35, %v5447_v50  ;;  %v5352_v36 = vadd.f32 %v5341_v58, %v5320_v0 }
 0x9d7   : > { %v5343_v3 = vpop.permute.xlu0 %5342  ;;  %6565 = vmatpush3.bf16.msra.mxu0 %v6819_v4 }
 0x9d8   : > { %6551 = vmatmul.mubr.bf16.vlgmr.msra.gmra.mrb[24].mxu1 %v5454_v33  ;;  %v5353_v17 = vadd.f32 %v5343_v3, %v5321_v32  ;;  %6566 = vmatprep.subr.bf16.mxu0 %v11426_v60 }
 0x9d9   : > { %v5345_v62 = vpop.permute.xlu1 %5344 }
 0x9da   : > { %v5354_v24 = vadd.f32 %v5345_v62, %v5322_v8 }
 0x9db   : > { %v5347_v6 = vpop.permute.xlu0 %5346  ;;  %6567 = vmatpush3.bf16.msra.mxu0 %v6820_v29 }
 0x9dc   : > { %v5355_v61 = vadd.f32 %v5347_v6, %v5323_v49  ;;  %6568 = vmatprep.subr.bf16.mxu0 %v11426_v60 }
 0x9dd   : > { %v5373_v14 = vpop.permute.xlu1 %5372 }
 0x9de   : > { %v5384_v22 = vadd.f32 %v5373_v14, %v5352_v36 }
 0x9df   : > { %v5375_v1 = vpop.permute.xlu0 %5374  ;;  %6569 = vmatpush3.bf16.msra.mxu0 %v6821_v52 }
 0x9e0   : > { %v5385_v54 = vadd.f32 %v5375_v1, %v5353_v17  ;;  %6570 = vmatprep.subr.bf16.mxu0 %v11426_v60 }
 0x9e1   : > { %v5377_v42 = vpop.permute.xlu1 %5376 }
 0x9e2   : > { %v5386_v26 = vadd.f32 %v5377_v42, %v5354_v24 }
 0x9e3   : > { %v5379_v51 = vpop.permute.xlu0 %5378  ;;  %6571 = vmatpush3.bf16.msra.mxu0 %v6822_v11 }
 0x9e4   : > { %v5387_v34 = vadd.f32 %v5379_v51, %v5355_v61  ;;  %6572 = vmatprep.subr.bf16.mxu0 %v11426_v60 }
 0x9e5   : > { %v5406_v12 = vpop.permute.xlu1 %5405 }
 0x9e6   : > { %v5417_v39 = vadd.f32 %v5406_v12, %v5384_v22 }
 0x9e7   : > { %v5408_v28 = vpop.permute.xlu0 %5407  ;;  %6573 = vmatpush3.bf16.msra.mxu0 %v6823_v37 }
 0x9e8   : > { %v5418_v55 = vadd.f32 %v5408_v28, %v5385_v54 }
 0x9e9   : > { %v5410_v40 = vpop.permute.xlu1 %5409 }
 0x9ea   : > { %v5419_v59 = vadd.f32 %v5410_v40, %v5386_v26 }
 0x9eb   : > { %v5412_v48 = vpop.permute.xlu0 %5411 }
 0x9ec   : > { %v5420_v9 = vadd.f32 %v5412_v48, %v5387_v34 }
 0x9ed   : > { %v5438_v46 = vpop.permute.xlu1 %5437 }
 0x9ee   : > { %v5449_v18 = vadd.f32 %v5438_v46, %v5417_v39 }
 0x9ef   : > { %v5440_v15 = vpop.permute.xlu0 %5439 }
 0x9f0   : > { %v5450_v10 = vadd.f32 %v5440_v15, %v5418_v55 }
 0x9f1   : > { %v5442_v27 = vpop.permute.xlu1 %5441 }
 0x9f2   : > { %v5455_v20 = vpack.c.bf16 %v5450_v10, %v5449_v18  ;;  %v5451_v56 = vadd.f32 %v5442_v27, %v5419_v59  ;;  %v5791_v59 = vld [vmem:[%s11544_s2 + $0x6] sm:$0x1] }
 0x9f3   : > { %v5444_v7 = vpop.permute.xlu0 %5443 }
 0x9f4   : > { %v5452_v38 = vadd.f32 %v5444_v7, %v5420_v9  ;;  %6554 = vmatprep.mubr.bf16.mxu1 %v5455_v20 }
 0x9f6   : > { %v5456_v19 = vpack.c.bf16 %v5452_v38, %v5451_v56 }
 0x9f8   : > { %6555 = vmatmul.mubr.bf16.gmra.mrb[28].mxu1 %v5456_v19 }
 0xaab   : > { %v6552_v23 = vpop.f32.mrb[24].mxu1 }
 0xaac   : > { %v5698_v30 = vpop.f32.mrb[25].mxu1  ;;  %v6594_v5 = vadd.f32 %v6552_v23, %v6103_v31 }
 0xaad   : > { %v6596_v44 = vadd.f32 %v6103_v31, %v5698_v30  ;;  %v6553_v50 = vpop.f32.mrb[26].mxu1 }
 0xaae   : > { %v5701_v35 = vpop.f32.mrb[27].mxu1  ;;  %v6598_v33 = vadd.f32 %v6553_v50, %v6103_v31  ;;  %v6595_v62 = vadd.f32 %v6594_v5, %v6160_v43 }
 0xaaf   : > { %v6597_v58 = vadd.f32 %v6596_v44, %v6160_v43  ;;  %v6600_v3 = vadd.f32 %v6103_v31, %v5701_v35 }
 0xab0   : > { %v6599_v14 = vadd.f32 %v6598_v33, %v6160_v43  ;;  %v5752_v42 = vmax.f32 %v6595_v62, 0.0 }
 0xab1   : > { %v6601_v60 = vadd.f32 %v6600_v3, %v6160_v43  ;;  %v5750_v6 = vmax.f32 %v6597_v58, 0.0 }
 0xab2   : > { %v5753_v63 = vmax.f32 %v6599_v14, 0.0 }
 0xab3   : > { %v5751_v1 = vmax.f32 %v6601_v60, 0.0 }
 0xab5   : > { %v5758_v51 = vadd.f32 %v5751_v1, %v5750_v6 }
 0xab7   : > { %v5759_v41 = vadd.f32 %v5758_v51, %v5752_v42 }
 0xab9   : > { %v5760_v12 = vadd.f32 %v5759_v41, %v5753_v63 }
 0xacb   : > { %v6556_v25 = vpop.f32.mrb[28].mxu1 }
 0xacc   : > { %v5714_v45 = vpop.f32.mrb[29].mxu1  ;;  %v6602_v28 = vadd.f32 %v6556_v25, %v6103_v31 }
 0xacd   : > { %v6604_v16 = vadd.f32 %v6103_v31, %v5714_v45  ;;  %v6557_v2 = vpop.f32.mrb[30].mxu1 }
 0xace   : > { %v5717_v0 = vpop.f32.mrb[31].mxu1  ;;  %v6606_v40 = vadd.f32 %v6557_v2, %v6103_v31  ;;  %v6603_v13 = vadd.f32 %v6602_v28, %v6160_v43 }
 0xacf   : > { %v6605_v32 = vadd.f32 %v6604_v16, %v6160_v43  ;;  %v6608_v57 = vadd.f32 %v6103_v31, %v5717_v0 }
 0xad0   : > { %v6607_v8 = vadd.f32 %v6606_v40, %v6160_v43  ;;  %v5756_v22 = vmax.f32 %v6603_v13, 0.0 }
 0xad1   : > { %v5754_v36 = vmax.f32 %v6605_v32, 0.0  ;;  %v6609_v17 = vadd.f32 %v6608_v57, %v6160_v43 }
 0xad2   : > { %v5757_v46 = vmax.f32 %v6607_v8, 0.0 }
 0xad3   : > { %v5761_v48 = vadd.f32 %v5760_v12, %v5754_v36  ;;  %v5755_v49 = vmax.f32 %v6609_v17, 0.0 }
 0xad5   : > { %v5762_v54 = vadd.f32 %v5761_v48, %v5755_v49 }
 0xad7   : > { %v5763_v24 = vadd.f32 %v5762_v54, %v5756_v22 }
 0xad9   : > { %v5764_v61 = vadd.f32 %v5763_v24, %v5757_v46 }
 0xadb   : > { %v5765_v39 = vrot.slane %v5764_v61, 4 }
 0xadd   : > { %v5766_v55 = vadd.f32 %v5765_v39, %v5764_v61 }
 0xadf   : > { %v5767_v15 = vrot.slane %v5766_v55, 2 }
 0xae1   : > { %v5768_v26 = vadd.f32 %v5767_v15, %v5766_v55 }
 0xae3   : > { %v5769_v34 = vrot.slane %v5768_v26, 1 }
 0xae5   : > { %v5770_v18 = vadd.f32 %v5769_v34, %v5768_v26 }
 0xae7   : > { %v5772_v10 = vmul.f32 0.015625, %v5770_v18 }
 0xae9   : > { %v5773_v27 = vpack.c.bf16 %v5772_v10, %v5772_v10 }
 0xaeb   : > { %6575 = vmatmul.mubr.bf16.vlgmr.msra.gmra.mrb[80].mxu0 %v5773_v27 }
 0xbbe   : > { %v5874_v9 = vpop.f32.mrb[80].mxu0 }
 0xbbf   : > { %v5875_v20 = vadd.f32 %v5874_v9, %v5791_v59  ;;  %v6576_v7 = vpop.f32.mrb[81].mxu0 }
 0xbc0   : > { %v5877_v56 = vpop.f32.mrb[82].mxu0 }
 0xbc1   : > { %5880 = vst [vmem:[%s162_s30] sm:$0x1] %v5875_v20  ;;  %v6577_v38 = vpop.f32.mrb[83].mxu0 }
 0xbc2   : > { %6875 = shalt.err (!%p6872_p3)
}
 0xbc3   : > { %s6876_s4 = scalar_lea.hbm %s11500_s5, 16  ;;  %s6880_s6 = scalar_lea.hbm %s11545_s3, 32 }
 0xbc4   : > { %p6877_p4 = scmp.ne.s32.totalorder %s11500_s5, %s6876_s4  ;;  %p6881_p9 = scmp.lt.u32.totalorder %s11500_s5, %s11545_s3 }
 0xbc5   : > { %p6882_p10 = scmp.lt.u32.totalorder %s6880_s6, %s6876_s4  ;;  %p6884_p12 = scmp.lt.u32.totalorder %s6876_s4, %s11500_s5 }
 0xbc6   : > { %p6878_p7 = pnand %p6877_p4, %p7005_p5 }
 0xbc7   : > { %p6883_p11 = por %p6882_p10, %p6881_p9 }
 0xbc8   : > { %p6879_p8 = pneg %p6878_p7 }
 0xbc9   : > { %p6885_p13 = por %p6884_p12, %p6883_p11 }
 0xbcb   : > { %p6886_p0 = pnand %p6885_p13, %p6879_p8 }
 0xbcd   : > { %6889 = shalt.err (!%p6886_p0)
}
 0xbce   : > { %6626 = dma.vmem_to_hbm [thread:$0]  (%p7005_p5), %s11502_s7, 16, %s11500_s5, %s5882_s17  }
 0xbcf PF: > { %p6632_p1 = scmp.ge.s32.totalorder %s6924_s15, 2  ;;  %s5906_s27 = sand.u32 1, %s6912_s12  }
 0xbd0   : > { %s5907_s24 = scalar_lea.sflag [#allocation7], %s5906_s27 }
 0xbd1   : > { %p6629_p2 = pnand %p6632_p1, %p7009_p6 }
 0xbd3   : > { %6907 = dma.done.wait (!%p6629_p2), %s5907_s24, 16  }
 0xbd4   : > { %6909 = vsyncadd (!%p6629_p2), %s5907_s24, 4294967280  ;;  %p13_p3 = scmp.ge.s32.totalorder %s6992_s18, 4   ;;  %s11725_s12 = smov %s6916_s13 }
 0xbd5   : > { %s11726_s13 = smov %s6920_s14  ;;  %s11727_s14 = smov %s7003_s21 }
 0xbd6   : > { %s11728_s15 = smov %s6992_s18  ;;  %15 = sbr.rel (!%p13_p3) target bundleno = 3 (0x3), region = 157 }
 0xbdd   :  { %5911 = vsyncpa [#allocation7], 1 }
 0xbde   :  { %5913 = vsyncpa [#allocation7 + $0x1], 1 }

</bundles_post_ra>
